<compile_context>
chip_gen: v6e
topology: v6e:2x2x1
jax: 0.10.0
libtpu: 0.0.40
codegen_flags: <defaults>
</compile_context>

<pallas_src>
import functools

import jax
import jax.numpy as jnp
from jax.experimental import pallas as pl
from jax.experimental.pallas import tpu as pltpu

_HIGH = jax.lax.Precision.HIGHEST


# ----------------------------- kernel helpers --------------------------------

def _layernorm(x, g, b, eps=1e-5):
    """fp32 LayerNorm over the last dim."""
    mu = jnp.mean(x, axis=-1, keepdims=True)
    var = jnp.mean(jnp.square(x - mu), axis=-1, keepdims=True)
    return (x - mu) * jax.lax.rsqrt(var + eps) * g + b


def _mm(a_bf16, w_bf16):
    # Both operands already bf16 (casts hoisted); fp32 MXU accumulation.
    return jnp.dot(a_bf16, w_bf16, preferred_element_type=jnp.float32)


def _encoder_layer(x, win, bin_, wo, bo, g1, b1, w1, bf1, w2, bf2, g2, b2, *, H):
    """One post-norm nn.TransformerEncoderLayer (eval mode). x: (Bt, S, D) fp32.

    FLOP-heavy matmuls (QKV / out-proj / FFN) run on the batch-flattened
    (Bt*S, D) slab; attention runs per head, batched over Bt via 3-D einsums.
    """
    Bt, S, D = x.shape
    Dh = D // H
    scale = 1.0 / float(Dh) ** 0.5

    xf = x.reshape(Bt * S, D)                        # flatten batch into M rows
    qkv = _mm(xf.astype(jnp.bfloat16), win) + bin_   # (Bt*S, 3D) fp32
    qkv_b = qkv.astype(jnp.bfloat16)                 # cast once, reuse per head
    q = qkv_b[:, :D].reshape(Bt, S, D)
    k = qkv_b[:, D:2 * D].reshape(Bt, S, D)
    v = qkv_b[:, 2 * D:].reshape(Bt, S, D)

    heads = []
    for h in range(H):                               # static unroll (H small)
        sl = slice(h * Dh, (h + 1) * Dh)
        s = jnp.einsum('bqd,bkd->bqk', q[..., sl], k[..., sl],
                       preferred_element_type=jnp.float32) * scale
        s = s - jnp.max(s, axis=-1, keepdims=True)
        p = jnp.exp(s)                               # fp32 softmax
        p = p * pl.reciprocal(jnp.sum(p, axis=-1, keepdims=True), approx=True)
        heads.append(jnp.einsum('bqk,bkd->bqd', p.astype(jnp.bfloat16),
                                v[..., sl], preferred_element_type=jnp.float32))
    ctx = jnp.concatenate(heads, axis=-1).reshape(Bt * S, D)

    attn = _mm(ctx.astype(jnp.bfloat16), wo) + bo    # single out-proj matmul
    x1 = _layernorm(xf + attn, g1, b1)               # (Bt*S, D) fp32

    x1b = x1.astype(jnp.bfloat16)
    hid = jnp.maximum(_mm(x1b, w1) + bf1, 0.0)       # (Bt*S, dff)
    ff = _mm(hid.astype(jnp.bfloat16), w2) + bf2
    return _layernorm(x1 + ff, g2, b2).reshape(Bt, S, D)


# ------------------------------ fused MBT kernel ------------------------------

def mbt_kernel(x_ref, y_ref,
               win_ref, bin_ref, wo_ref, bo_ref, g1_ref, b1_ref,
               w1_ref, bf1_ref, w2_ref, bf2_ref, g2_ref, b2_ref,
               ox_ref, oy_ref, *, num_heads, num_layers, nb, Lx, Ly):
    # Layout: real tokens first, bottleneck tokens last (order-free: no mask,
    # no positional term), so exchange rows start at Lx and outputs at row 0.
    x = x_ref[...].astype(jnp.float32)       # (Bt, Sx, D)
    y = y_ref[...].astype(jnp.float32)       # (Bt, Sy, D)

    Bt, Sx, D = x.shape
    Sy = y.shape[1]
    aligned = (Sx == Sy) and (Lx == Ly)
    if aligned:
        # 0/1 row mask for the trailing bottleneck rows, hoisted out of the
        # layer loop.  Exact select via lerp-with-{0,1} -> pure VPU, no
        # per-layer sublane concat/rotate.
        row = jax.lax.broadcasted_iota(jnp.int32, (Sx, D), 0)
        m = (row >= Lx).astype(jnp.float32)[None]     # (1, Sx, D)
        one_minus_m = 1.0 - m

    def layer_params(l, mod):
        return (win_ref[l, mod], bin_ref[l, mod], wo_ref[l, mod], bo_ref[l, mod],
                g1_ref[l, mod], b1_ref[l, mod], w1_ref[l, mod], bf1_ref[l, mod],
                w2_ref[l, mod], bf2_ref[l, mod], g2_ref[l, mod], b2_ref[l, mod])

    # TODO(synk): at larger num_layers/dff, switch to lax.fori_loop over the
    # stacked layer axis and stream weights one layer at a time via a grid
    # axis (keeps vreg live ranges bounded and VMEM flat on v7x's 64 MiB).
    for l in range(num_layers):              # all layers fused, static unroll
        x = _encoder_layer(x, *layer_params(l, 0), H=num_heads)
        y = _encoder_layer(y, *layer_params(l, 1), H=num_heads)
        if aligned:
            blend = (x + y) * 0.5            # bottleneck-token exchange
            x = x * one_minus_m + blend * m
            y = y * one_minus_m + blend * m
        else:
            avg = (x[:, Lx:Lx + nb, :] + y[:, Ly:Ly + nb, :]) * 0.5
            x = jnp.concatenate([x[:, :Lx, :], avg], axis=1)
            y = jnp.concatenate([y[:, :Ly, :], avg], axis=1)

    ox_ref[...] = x[:, :Lx, :].astype(ox_ref.dtype)   # row-0 aligned slices
    oy_ref[...] = y[:, :Ly, :].astype(oy_ref.dtype)


# --------------------------------- wrapper ------------------------------------

def _pick_batch_tile(B, Sx, Sy, max_rows=256):
    """Largest divisor of B whose flattened row count (Bt*S) stays <= max_rows
    while keeping a >=2-way parallel grid (both v7x TensorCores busy) when
    B >= 2."""
    best = 1
    for d in range(1, B + 1):
        if B % d:
            continue
        if d * max(Sx, Sy) > max_rows:
            break
        if B // d >= 2 or B < 2:
            best = d
    return best


def _stack_weights(x_params, y_params):
    """Stack each weight over (layer, modality). Matmul weights are transposed
    to (Din, Dout) and cast to bf16 once on the host side."""
    L = len(x_params)
    n = len(x_params[0])
    mm_idx = (0, 2, 6, 8)                    # win, wo, w1, w2
    out = []
    for i in range(n):
        per_layer = []
        for l in range(L):
            pair = []
            for params in (x_params, y_params):
                w = params[l][i]
                if i in mm_idx:
                    w = w.T.astype(jnp.bfloat16)
                pair.append(w)
            per_layer.append(jnp.stack(pair, axis=0))
        out.append(jnp.stack(per_layer, axis=0))   # (L, 2, ...)
    return out


def mbt_forward(x, y, bot, x_params, y_params, num_heads, num_bottle_token):
    """x: (B, Lx, D), y: (B, Ly, D), bot: (1, nb, D)."""
    B, Lx, D = x.shape
    Ly = y.shape[1]
    nb = num_bottle_token
    Sx, Sy = Lx + nb, Ly + nb

    # Bottleneck tokens at the TAIL (valid: no attention mask / positions).
    bot_e = jnp.broadcast_to(bot, (B, nb, D))
    xin = jnp.concatenate([x, bot_e], axis=1)       # (B, Sx, D)
    yin = jnp.concatenate([y, bot_e], axis=1)       # (B, Sy, D)

    weights = _stack_weights(x_params, y_params)

    Bt = _pick_batch_tile(B, Sx, Sy)
    grid = (B // Bt,)

    kernel = functools.partial(mbt_kernel, num_heads=num_heads,
                               num_layers=len(x_params), nb=nb, Lx=Lx, Ly=Ly)

    in_specs = [pl.BlockSpec((Bt, Sx, D), lambda b: (b, 0, 0)),
                pl.BlockSpec((Bt, Sy, D), lambda b: (b, 0, 0))]
    for w in weights:
        # Constant block index across the grid -> DMA'd once, stays resident.
        # TODO(synk): single-buffer these grid-invariant weights once weight
        # VMEM becomes a limiter (double-buffering costs ~1 MB at this size).
        in_specs.append(pl.BlockSpec(w.shape, lambda b, n=w.ndim: (0,) * n))

    out_specs = [pl.BlockSpec((Bt, Lx, D), lambda b: (b, 0, 0)),
                 pl.BlockSpec((Bt, Ly, D), lambda b: (b, 0, 0))]
    out_shape = [jax.ShapeDtypeStruct((B, Lx, D), x.dtype),
                 jax.ShapeDtypeStruct((B, Ly, D), y.dtype)]

    weight_bytes = sum(int(w.size) * w.dtype.itemsize for w in weights)
    act_bytes = (Bt * Sx * D + Bt * Sy * D + Bt * Lx * D + Bt * Ly * D) * 4
    vmem_limit = min(int(2 * weight_bytes + 4 * act_bytes) + (16 << 20),
                     100 << 20)

    out_x, out_y = pl.pallas_call(
        kernel,
        out_shape=out_shape,
        grid=grid,
        in_specs=in_specs,
        out_specs=out_specs,
        compiler_params=pltpu.CompilerParams(
            dimension_semantics=("parallel",),
            vmem_limit_bytes=vmem_limit),
    )(xin, yin, *weights)
    return out_x, out_y


# --------------------------- parameter creation ------------------------------

def init_encoder_layer_params(key, dim, dff=2048):
    # Shapes mirror nn.TransformerEncoderLayer(d_model=dim, nhead=H):
    # in_proj (3D, D) + (3D,), out_proj (D, D) + (D,), norm1/2 (D,) each,
    # linear1 (dff, D) + (dff,), linear2 (D, dff) + (D,).  (biases kept 2D)
    ks = jax.random.split(key, 6)
    s = 0.05
    win = jax.random.normal(ks[0], (3 * dim, dim), jnp.float32) * s
    bin_ = jnp.zeros((1, 3 * dim), jnp.float32)
    wo = jax.random.normal(ks[1], (dim, dim), jnp.float32) * s
    bo = jnp.zeros((1, dim), jnp.float32)
    g1 = jnp.ones((1, dim), jnp.float32)
    be1 = jnp.zeros((1, dim), jnp.float32)
    w1 = jax.random.normal(ks[2], (dff, dim), jnp.float32) * s
    bf1 = jax.random.normal(ks[3], (1, dff), jnp.float32) * s
    w2 = jax.random.normal(ks[4], (dim, dff), jnp.float32) * s
    bf2 = jax.random.normal(ks[5], (1, dim), jnp.float32) * s
    g2 = jnp.ones((1, dim), jnp.float32)
    be2 = jnp.zeros((1, dim), jnp.float32)
    return (win, bin_, wo, bo, g1, be1, w1, bf1, w2, bf2, g2, be2)


# ----------------------------- pure-JAX reference ----------------------------

def _encoder_layer_ref(src, params, num_heads):
    win, bin_, wo, bo, g1, be1, w1, bf1, w2, bf2, g2, be2 = params
    B, S, D = src.shape
    H, Dh = num_heads, D // num_heads
    qkv = jnp.einsum('bsd,ed->bse', src, win, precision=_HIGH) + bin_[0]
    q, k, v = qkv[..., :D], qkv[..., D:2 * D], qkv[..., 2 * D:]
    q = q.reshape(B, S, H, Dh)
    k = k.reshape(B, S, H, Dh)
    v = v.reshape(B, S, H, Dh)
    s = jnp.einsum('bqhd,bkhd->bhqk', q, k, precision=_HIGH) / jnp.sqrt(Dh)
    p = jax.nn.softmax(s, axis=-1)
    ctx = jnp.einsum('bhqk,bkhd->bqhd', p, v, precision=_HIGH).reshape(B, S, D)
    attn = jnp.einsum('bsd,ed->bse', ctx, wo, precision=_HIGH) + bo[0]

    def ln(z, g, b):
        mu = z.mean(-1, keepdims=True)
        var = ((z - mu) ** 2).mean(-1, keepdims=True)
        return (z - mu) / jnp.sqrt(var + 1e-5) * g[0] + b[0]

    x1 = ln(src + attn, g1, be1)
    hid = jax.nn.relu(jnp.einsum('bsd,fd->bsf', x1, w1, precision=_HIGH) + bf1[0])
    ff = jnp.einsum('bsf,df->bsd', hid, w2, precision=_HIGH) + bf2[0]
    return ln(x1 + ff, g2, be2)


def mbt_forward_ref(x, y, bot, x_params, y_params, num_heads, nb):
    # Bottleneck-first ordering, exactly as the PyTorch module.
    B = x.shape[0]
    bot_e = jnp.broadcast_to(bot, (B,) + bot.shape[1:])
    x = jnp.concatenate([bot_e, x], axis=1)
    y = jnp.concatenate([bot_e, y], axis=1)
    for px, py in zip(x_params, y_params):
        x = _encoder_layer_ref(x, px, num_heads)
        y = _encoder_layer_ref(y, py, num_heads)
        avg = (x[:, :nb] + y[:, :nb]) * 0.5
        x = x.at[:, :nb].set(avg)
        y = y.at[:, :nb].set(avg)
    return x[:, nb:], y[:, nb:]


# ----------------------------------- main ------------------------------------

if __name__ == "__main__":
    B, Lx, Ly = 4, 8, 8
    dim, num_heads, num_layers, num_bottle_token = 32, 4, 2, 4

    key = jax.random.PRNGKey(0)
    kx, ky, kb, kp = jax.random.split(key, 4)
    x = jax.random.normal(kx, (B, Lx, dim), jnp.float32)
    y = jax.random.normal(ky, (B, Ly, dim), jnp.float32)
    bot = jax.random.normal(kb, (1, num_bottle_token, dim), jnp.float32)

    pkeys = jax.random.split(kp, 2 * num_layers)
    x_params = [init_encoder_layer_params(pkeys[i], dim)
                for i in range(num_layers)]
    y_params = [init_encoder_layer_params(pkeys[num_layers + i], dim)
                for i in range(num_layers)]

    out_x, out_y = mbt_forward(x, y, bot, x_params, y_params,
                               num_heads, num_bottle_token)
    jax.block_until_ready((out_x, out_y))

    ref_x, ref_y = mbt_forward_ref(x, y, bot, x_params, y_params,
                                   num_heads, num_bottle_token)
    assert out_x.shape == (B, Lx, dim) and out_y.shape == (B, Ly, dim)
    # Intentional tolerance: bf16 MXU operands (fp32 accumulation) + EUP
    # approx reciprocal in softmax vs. an fp32-HIGHEST reference.
    assert jnp.allclose(out_x, ref_x, atol=2e-2, rtol=2e-2)
    assert jnp.allclose(out_y, ref_y, atol=2e-2, rtol=2e-2)

    print("KERNEL_OK")
</pallas_src>

<mosaic_0001>
module attributes {stable_mosaic.version = 11 : i64} {
  func.func @mbt_kernel(%arg0: i32, %arg1: memref<2x12x32xf32, #tpu.memory_space<vmem>>, %arg2: memref<2x12x32xf32, #tpu.memory_space<vmem>>, %arg3: memref<2x2x32x96xbf16, #tpu.memory_space<vmem>>, %arg4: memref<2x2x1x96xf32, #tpu.memory_space<vmem>>, %arg5: memref<2x2x32x32xbf16, #tpu.memory_space<vmem>>, %arg6: memref<2x2x1x32xf32, #tpu.memory_space<vmem>>, %arg7: memref<2x2x1x32xf32, #tpu.memory_space<vmem>>, %arg8: memref<2x2x1x32xf32, #tpu.memory_space<vmem>>, %arg9: memref<2x2x32x2048xbf16, #tpu.memory_space<vmem>>, %arg10: memref<2x2x1x2048xf32, #tpu.memory_space<vmem>>, %arg11: memref<2x2x2048x32xbf16, #tpu.memory_space<vmem>>, %arg12: memref<2x2x1x32xf32, #tpu.memory_space<vmem>>, %arg13: memref<2x2x1x32xf32, #tpu.memory_space<vmem>>, %arg14: memref<2x2x1x32xf32, #tpu.memory_space<vmem>>, %arg15: memref<2x8x32xf32, #tpu.memory_space<vmem>>, %arg16: memref<2x8x32xf32, #tpu.memory_space<vmem>>) attributes {dimension_semantics = [#tpu.dimension_semantics<parallel>], iteration_bounds = array<i64: 2>, scalar_prefetch = 0 : i64, scratch_operands = 0 : i64, tpu.core_type = #tpu.core_type<tc>, window_params = [{transform_indices = @transform_0, window_bounds = array<i64: 2, 12, 32>}, {transform_indices = @transform_1, window_bounds = array<i64: 2, 12, 32>}, {pipeline_mode = #tpu.pipeline_mode<synchronous>, transform_indices = @transform_2, window_bounds = array<i64: 2, 2, 32, 96>}, {pipeline_mode = #tpu.pipeline_mode<synchronous>, transform_indices = @transform_3, window_bounds = array<i64: 2, 2, 1, 96>}, {pipeline_mode = #tpu.pipeline_mode<synchronous>, transform_indices = @transform_4, window_bounds = array<i64: 2, 2, 32, 32>}, {pipeline_mode = #tpu.pipeline_mode<synchronous>, transform_indices = @transform_5, window_bounds = array<i64: 2, 2, 1, 32>}, {pipeline_mode = #tpu.pipeline_mode<synchronous>, transform_indices = @transform_6, window_bounds = array<i64: 2, 2, 1, 32>}, {pipeline_mode = #tpu.pipeline_mode<synchronous>, transform_indices = @transform_7, window_bounds = array<i64: 2, 2, 1, 32>}, {pipeline_mode = #tpu.pipeline_mode<synchronous>, transform_indices = @transform_8, window_bounds = array<i64: 2, 2, 32, 2048>}, {pipeline_mode = #tpu.pipeline_mode<synchronous>, transform_indices = @transform_9, window_bounds = array<i64: 2, 2, 1, 2048>}, {pipeline_mode = #tpu.pipeline_mode<synchronous>, transform_indices = @transform_10, window_bounds = array<i64: 2, 2, 2048, 32>}, {pipeline_mode = #tpu.pipeline_mode<synchronous>, transform_indices = @transform_11, window_bounds = array<i64: 2, 2, 1, 32>}, {pipeline_mode = #tpu.pipeline_mode<synchronous>, transform_indices = @transform_12, window_bounds = array<i64: 2, 2, 1, 32>}, {pipeline_mode = #tpu.pipeline_mode<synchronous>, transform_indices = @transform_13, window_bounds = array<i64: 2, 2, 1, 32>}, {transform_indices = @transform_14, window_bounds = array<i64: 2, 8, 32>}, {transform_indices = @transform_15, window_bounds = array<i64: 2, 8, 32>}]} {
    %c0 = arith.constant 0 : index
    %c0_0 = arith.constant 0 : index
    %c0_1 = arith.constant 0 : index
    %0 = vector.load %arg1[%c0, %c0_0, %c0_1] : memref<2x12x32xf32, #tpu.memory_space<vmem>>, vector<2x12x32xf32>
    %c0_2 = arith.constant 0 : index
    %c0_3 = arith.constant 0 : index
    %c0_4 = arith.constant 0 : index
    %1 = vector.load %arg2[%c0_2, %c0_3, %c0_4] : memref<2x12x32xf32, #tpu.memory_space<vmem>>, vector<2x12x32xf32>
    %2 = tpu.iota {dimensions = array<i32: 0>} : vector<12x32xi32>
    %c8_i32 = arith.constant 8 : i32
    %3 = vector.broadcast %c8_i32 : i32 to vector<12x32xi32>
    %4 = arith.cmpi sge, %2, %3 : vector<12x32xi32>
    %5 = arith.extui %4 : vector<12x32xi1> to vector<12x32xi32>
    %6 = arith.sitofp %5 : vector<12x32xi32> to vector<12x32xf32>
    %7 = vector.shape_cast %6 : vector<12x32xf32> to vector<1x12x32xf32>
    %cst = arith.constant 1.000000e+00 : f32
    %8 = vector.broadcast %cst : f32 to vector<1x12x32xf32>
    %9 = arith.subf %8, %7 : vector<1x12x32xf32>
    %c0_5 = arith.constant 0 : index
    %c0_6 = arith.constant 0 : index
    %c0_7 = arith.constant 0 : index
    %c0_8 = arith.constant 0 : index
    %10 = vector.load %arg3[%c0_5, %c0_6, %c0_7, %c0_8] : memref<2x2x32x96xbf16, #tpu.memory_space<vmem>>, vector<1x1x32x96xbf16>
    %11 = vector.shape_cast %10 : vector<1x1x32x96xbf16> to vector<32x96xbf16>
    %c0_9 = arith.constant 0 : index
    %c0_10 = arith.constant 0 : index
    %c0_11 = arith.constant 0 : index
    %c0_12 = arith.constant 0 : index
    %12 = vector.load %arg4[%c0_9, %c0_10, %c0_11, %c0_12] : memref<2x2x1x96xf32, #tpu.memory_space<vmem>>, vector<1x1x1x96xf32>
    %13 = vector.shape_cast %12 : vector<1x1x1x96xf32> to vector<1x96xf32>
    %c0_13 = arith.constant 0 : index
    %c0_14 = arith.constant 0 : index
    %c0_15 = arith.constant 0 : index
    %c0_16 = arith.constant 0 : index
    %14 = vector.load %arg5[%c0_13, %c0_14, %c0_15, %c0_16] : memref<2x2x32x32xbf16, #tpu.memory_space<vmem>>, vector<1x1x32x32xbf16>
    %15 = vector.shape_cast %14 : vector<1x1x32x32xbf16> to vector<32x32xbf16>
    %c0_17 = arith.constant 0 : index
    %c0_18 = arith.constant 0 : index
    %c0_19 = arith.constant 0 : index
    %c0_20 = arith.constant 0 : index
    %16 = vector.load %arg6[%c0_17, %c0_18, %c0_19, %c0_20] : memref<2x2x1x32xf32, #tpu.memory_space<vmem>>, vector<1x1x1x32xf32>
    %17 = vector.shape_cast %16 : vector<1x1x1x32xf32> to vector<1x32xf32>
    %c0_21 = arith.constant 0 : index
    %c0_22 = arith.constant 0 : index
    %c0_23 = arith.constant 0 : index
    %c0_24 = arith.constant 0 : index
    %18 = vector.load %arg7[%c0_21, %c0_22, %c0_23, %c0_24] : memref<2x2x1x32xf32, #tpu.memory_space<vmem>>, vector<1x1x1x32xf32>
    %19 = vector.shape_cast %18 : vector<1x1x1x32xf32> to vector<1x32xf32>
    %c0_25 = arith.constant 0 : index
    %c0_26 = arith.constant 0 : index
    %c0_27 = arith.constant 0 : index
    %c0_28 = arith.constant 0 : index
    %20 = vector.load %arg8[%c0_25, %c0_26, %c0_27, %c0_28] : memref<2x2x1x32xf32, #tpu.memory_space<vmem>>, vector<1x1x1x32xf32>
    %21 = vector.shape_cast %20 : vector<1x1x1x32xf32> to vector<1x32xf32>
    %c0_29 = arith.constant 0 : index
    %c0_30 = arith.constant 0 : index
    %c0_31 = arith.constant 0 : index
    %c0_32 = arith.constant 0 : index
    %22 = vector.load %arg9[%c0_29, %c0_30, %c0_31, %c0_32] : memref<2x2x32x2048xbf16, #tpu.memory_space<vmem>>, vector<1x1x32x2048xbf16>
    %23 = vector.shape_cast %22 : vector<1x1x32x2048xbf16> to vector<32x2048xbf16>
    %c0_33 = arith.constant 0 : index
    %c0_34 = arith.constant 0 : index
    %c0_35 = arith.constant 0 : index
    %c0_36 = arith.constant 0 : index
    %24 = vector.load %arg10[%c0_33, %c0_34, %c0_35, %c0_36] : memref<2x2x1x2048xf32, #tpu.memory_space<vmem>>, vector<1x1x1x2048xf32>
    %25 = vector.shape_cast %24 : vector<1x1x1x2048xf32> to vector<1x2048xf32>
    %c0_37 = arith.constant 0 : index
    %c0_38 = arith.constant 0 : index
    %c0_39 = arith.constant 0 : index
    %c0_40 = arith.constant 0 : index
    %26 = vector.load %arg11[%c0_37, %c0_38, %c0_39, %c0_40] : memref<2x2x2048x32xbf16, #tpu.memory_space<vmem>>, vector<1x1x2048x32xbf16>
    %27 = vector.shape_cast %26 : vector<1x1x2048x32xbf16> to vector<2048x32xbf16>
    %c0_41 = arith.constant 0 : index
    %c0_42 = arith.constant 0 : index
    %c0_43 = arith.constant 0 : index
    %c0_44 = arith.constant 0 : index
    %28 = vector.load %arg12[%c0_41, %c0_42, %c0_43, %c0_44] : memref<2x2x1x32xf32, #tpu.memory_space<vmem>>, vector<1x1x1x32xf32>
    %29 = vector.shape_cast %28 : vector<1x1x1x32xf32> to vector<1x32xf32>
    %c0_45 = arith.constant 0 : index
    %c0_46 = arith.constant 0 : index
    %c0_47 = arith.constant 0 : index
    %c0_48 = arith.constant 0 : index
    %30 = vector.load %arg13[%c0_45, %c0_46, %c0_47, %c0_48] : memref<2x2x1x32xf32, #tpu.memory_space<vmem>>, vector<1x1x1x32xf32>
    %31 = vector.shape_cast %30 : vector<1x1x1x32xf32> to vector<1x32xf32>
    %c0_49 = arith.constant 0 : index
    %c0_50 = arith.constant 0 : index
    %c0_51 = arith.constant 0 : index
    %c0_52 = arith.constant 0 : index
    %32 = vector.load %arg14[%c0_49, %c0_50, %c0_51, %c0_52] : memref<2x2x1x32xf32, #tpu.memory_space<vmem>>, vector<1x1x1x32xf32>
    %33 = vector.shape_cast %32 : vector<1x1x1x32xf32> to vector<1x32xf32>
    %34 = vector.shape_cast %0 : vector<2x12x32xf32> to vector<24x32xf32>
    %35 = arith.truncf %34 : vector<24x32xf32> to vector<24x32xbf16>
    %cst_53 = arith.constant dense<0.000000e+00> : vector<24x96xf32>
    %36 = tpu.matmul %35, %11, %cst_53 {dimension_numbers = #tpu.dot_dimension_numbers<[1], [0], [0], [1], [0, 0, 1, 1], [], []>} : vector<24x32xbf16>, vector<32x96xbf16>, vector<24x96xf32> -> vector<24x96xf32>
    %37 = vector.broadcast %13 : vector<1x96xf32> to vector<24x96xf32>
    %38 = arith.addf %36, %37 : vector<24x96xf32>
    %39 = arith.truncf %38 : vector<24x96xf32> to vector<24x96xbf16>
    %40 = vector.extract_strided_slice %39 {offsets = [0, 0], sizes = [24, 32], strides = [1, 1]} : vector<24x96xbf16> to vector<24x32xbf16>
    %41 = vector.shape_cast %40 : vector<24x32xbf16> to vector<2x12x32xbf16>
    %42 = vector.extract_strided_slice %39 {offsets = [0, 32], sizes = [24, 32], strides = [1, 1]} : vector<24x96xbf16> to vector<24x32xbf16>
    %43 = vector.shape_cast %42 : vector<24x32xbf16> to vector<2x12x32xbf16>
    %44 = vector.extract_strided_slice %39 {offsets = [0, 64], sizes = [24, 32], strides = [1, 1]} : vector<24x96xbf16> to vector<24x32xbf16>
    %45 = vector.shape_cast %44 : vector<24x32xbf16> to vector<2x12x32xbf16>
    %46 = vector.extract_strided_slice %41 {offsets = [0, 0, 0], sizes = [2, 12, 8], strides = [1, 1, 1]} : vector<2x12x32xbf16> to vector<2x12x8xbf16>
    %47 = vector.extract_strided_slice %43 {offsets = [0, 0, 0], sizes = [2, 12, 8], strides = [1, 1, 1]} : vector<2x12x32xbf16> to vector<2x12x8xbf16>
    "tpu.trace_start"() <{level = 10 : i32, message = "bqd,bkd->bqk"}> : () -> ()
    %cst_54 = arith.constant dense<0.000000e+00> : vector<2x12x12xf32>
    %48 = tpu.matmul %46, %47, %cst_54 {dimension_numbers = #tpu.dot_dimension_numbers<[2], [2], [1], [1], [0, 0, 0, 1, 1, 1], [0], [0]>} : vector<2x12x8xbf16>, vector<2x12x8xbf16>, vector<2x12x12xf32> -> vector<2x12x12xf32>
    "tpu.trace_stop"() : () -> ()
    %cst_55 = arith.constant 0.353553385 : f32
    %49 = vector.broadcast %cst_55 : f32 to vector<2x12x12xf32>
    %50 = arith.mulf %48, %49 : vector<2x12x12xf32>
    %cst_56 = arith.constant dense<0xFF800000> : vector<2x12xf32>
    %51 = vector.multi_reduction <maximumf>, %50, %cst_56 [2] : vector<2x12x12xf32> to vector<2x12xf32>
    %52 = vector.shape_cast %51 : vector<2x12xf32> to vector<2x12x1xf32>
    %53 = vector.broadcast %52 : vector<2x12x1xf32> to vector<2x12x12xf32>
    %54 = arith.subf %50, %53 : vector<2x12x12xf32>
    %55 = math.exp %54 : vector<2x12x12xf32>
    %cst_57 = arith.constant dense<0.000000e+00> : vector<2x12xf32>
    %56 = vector.multi_reduction <add>, %55, %cst_57 [2] : vector<2x12x12xf32> to vector<2x12xf32>
    %57 = vector.shape_cast %56 : vector<2x12xf32> to vector<2x12x1xf32>
    %58 = tpu.reciprocal %57 {approx = true} : vector<2x12x1xf32> -> vector<2x12x1xf32>
    %59 = vector.broadcast %58 : vector<2x12x1xf32> to vector<2x12x12xf32>
    %60 = arith.mulf %55, %59 : vector<2x12x12xf32>
    %61 = arith.truncf %60 : vector<2x12x12xf32> to vector<2x12x12xbf16>
    %62 = vector.extract_strided_slice %45 {offsets = [0, 0, 0], sizes = [2, 12, 8], strides = [1, 1, 1]} : vector<2x12x32xbf16> to vector<2x12x8xbf16>
    "tpu.trace_start"() <{level = 10 : i32, message = "bqk,bkd->bqd"}> : () -> ()
    %cst_58 = arith.constant dense<0.000000e+00> : vector<2x12x8xf32>
    %63 = tpu.matmul %61, %62, %cst_58 {dimension_numbers = #tpu.dot_dimension_numbers<[2], [1], [1], [2], [0, 0, 0, 1, 1, 2], [0], [0]>} : vector<2x12x12xbf16>, vector<2x12x8xbf16>, vector<2x12x8xf32> -> vector<2x12x8xf32>
    "tpu.trace_stop"() : () -> ()
    %64 = vector.extract_strided_slice %41 {offsets = [0, 0, 8], sizes = [2, 12, 8], strides = [1, 1, 1]} : vector<2x12x32xbf16> to vector<2x12x8xbf16>
    %65 = vector.extract_strided_slice %43 {offsets = [0, 0, 8], sizes = [2, 12, 8], strides = [1, 1, 1]} : vector<2x12x32xbf16> to vector<2x12x8xbf16>
    "tpu.trace_start"() <{level = 10 : i32, message = "bqd,bkd->bqk"}> : () -> ()
    %cst_59 = arith.constant dense<0.000000e+00> : vector<2x12x12xf32>
    %66 = tpu.matmul %64, %65, %cst_59 {dimension_numbers = #tpu.dot_dimension_numbers<[2], [2], [1], [1], [0, 0, 0, 1, 1, 1], [0], [0]>} : vector<2x12x8xbf16>, vector<2x12x8xbf16>, vector<2x12x12xf32> -> vector<2x12x12xf32>
    "tpu.trace_stop"() : () -> ()
    %cst_60 = arith.constant 0.353553385 : f32
    %67 = vector.broadcast %cst_60 : f32 to vector<2x12x12xf32>
    %68 = arith.mulf %66, %67 : vector<2x12x12xf32>
    %cst_61 = arith.constant dense<0xFF800000> : vector<2x12xf32>
    %69 = vector.multi_reduction <maximumf>, %68, %cst_61 [2] : vector<2x12x12xf32> to vector<2x12xf32>
    %70 = vector.shape_cast %69 : vector<2x12xf32> to vector<2x12x1xf32>
    %71 = vector.broadcast %70 : vector<2x12x1xf32> to vector<2x12x12xf32>
    %72 = arith.subf %68, %71 : vector<2x12x12xf32>
    %73 = math.exp %72 : vector<2x12x12xf32>
    %cst_62 = arith.constant dense<0.000000e+00> : vector<2x12xf32>
    %74 = vector.multi_reduction <add>, %73, %cst_62 [2] : vector<2x12x12xf32> to vector<2x12xf32>
    %75 = vector.shape_cast %74 : vector<2x12xf32> to vector<2x12x1xf32>
    %76 = tpu.reciprocal %75 {approx = true} : vector<2x12x1xf32> -> vector<2x12x1xf32>
    %77 = vector.broadcast %76 : vector<2x12x1xf32> to vector<2x12x12xf32>
    %78 = arith.mulf %73, %77 : vector<2x12x12xf32>
    %79 = arith.truncf %78 : vector<2x12x12xf32> to vector<2x12x12xbf16>
    %80 = vector.extract_strided_slice %45 {offsets = [0, 0, 8], sizes = [2, 12, 8], strides = [1, 1, 1]} : vector<2x12x32xbf16> to vector<2x12x8xbf16>
    "tpu.trace_start"() <{level = 10 : i32, message = "bqk,bkd->bqd"}> : () -> ()
    %cst_63 = arith.constant dense<0.000000e+00> : vector<2x12x8xf32>
    %81 = tpu.matmul %79, %80, %cst_63 {dimension_numbers = #tpu.dot_dimension_numbers<[2], [1], [1], [2], [0, 0, 0, 1, 1, 2], [0], [0]>} : vector<2x12x12xbf16>, vector<2x12x8xbf16>, vector<2x12x8xf32> -> vector<2x12x8xf32>
    "tpu.trace_stop"() : () -> ()
    %82 = vector.extract_strided_slice %41 {offsets = [0, 0, 16], sizes = [2, 12, 8], strides = [1, 1, 1]} : vector<2x12x32xbf16> to vector<2x12x8xbf16>
    %83 = vector.extract_strided_slice %43 {offsets = [0, 0, 16], sizes = [2, 12, 8], strides = [1, 1, 1]} : vector<2x12x32xbf16> to vector<2x12x8xbf16>
    "tpu.trace_start"() <{level = 10 : i32, message = "bqd,bkd->bqk"}> : () -> ()
    %cst_64 = arith.constant dense<0.000000e+00> : vector<2x12x12xf32>
    %84 = tpu.matmul %82, %83, %cst_64 {dimension_numbers = #tpu.dot_dimension_numbers<[2], [2], [1], [1], [0, 0, 0, 1, 1, 1], [0], [0]>} : vector<2x12x8xbf16>, vector<2x12x8xbf16>, vector<2x12x12xf32> -> vector<2x12x12xf32>
    "tpu.trace_stop"() : () -> ()
    %cst_65 = arith.constant 0.353553385 : f32
    %85 = vector.broadcast %cst_65 : f32 to vector<2x12x12xf32>
    %86 = arith.mulf %84, %85 : vector<2x12x12xf32>
    %cst_66 = arith.constant dense<0xFF800000> : vector<2x12xf32>
    %87 = vector.multi_reduction <maximumf>, %86, %cst_66 [2] : vector<2x12x12xf32> to vector<2x12xf32>
    %88 = vector.shape_cast %87 : vector<2x12xf32> to vector<2x12x1xf32>
    %89 = vector.broadcast %88 : vector<2x12x1xf32> to vector<2x12x12xf32>
    %90 = arith.subf %86, %89 : vector<2x12x12xf32>
    %91 = math.exp %90 : vector<2x12x12xf32>
    %cst_67 = arith.constant dense<0.000000e+00> : vector<2x12xf32>
    %92 = vector.multi_reduction <add>, %91, %cst_67 [2] : vector<2x12x12xf32> to vector<2x12xf32>
    %93 = vector.shape_cast %92 : vector<2x12xf32> to vector<2x12x1xf32>
    %94 = tpu.reciprocal %93 {approx = true} : vector<2x12x1xf32> -> vector<2x12x1xf32>
    %95 = vector.broadcast %94 : vector<2x12x1xf32> to vector<2x12x12xf32>
    %96 = arith.mulf %91, %95 : vector<2x12x12xf32>
    %97 = arith.truncf %96 : vector<2x12x12xf32> to vector<2x12x12xbf16>
    %98 = vector.extract_strided_slice %45 {offsets = [0, 0, 16], sizes = [2, 12, 8], strides = [1, 1, 1]} : vector<2x12x32xbf16> to vector<2x12x8xbf16>
    "tpu.trace_start"() <{level = 10 : i32, message = "bqk,bkd->bqd"}> : () -> ()
    %cst_68 = arith.constant dense<0.000000e+00> : vector<2x12x8xf32>
    %99 = tpu.matmul %97, %98, %cst_68 {dimension_numbers = #tpu.dot_dimension_numbers<[2], [1], [1], [2], [0, 0, 0, 1, 1, 2], [0], [0]>} : vector<2x12x12xbf16>, vector<2x12x8xbf16>, vector<2x12x8xf32> -> vector<2x12x8xf32>
    "tpu.trace_stop"() : () -> ()
    %100 = vector.extract_strided_slice %41 {offsets = [0, 0, 24], sizes = [2, 12, 8], strides = [1, 1, 1]} : vector<2x12x32xbf16> to vector<2x12x8xbf16>
    %101 = vector.extract_strided_slice %43 {offsets = [0, 0, 24], sizes = [2, 12, 8], strides = [1, 1, 1]} : vector<2x12x32xbf16> to vector<2x12x8xbf16>
    "tpu.trace_start"() <{level = 10 : i32, message = "bqd,bkd->bqk"}> : () -> ()
    %cst_69 = arith.constant dense<0.000000e+00> : vector<2x12x12xf32>
    %102 = tpu.matmul %100, %101, %cst_69 {dimension_numbers = #tpu.dot_dimension_numbers<[2], [2], [1], [1], [0, 0, 0, 1, 1, 1], [0], [0]>} : vector<2x12x8xbf16>, vector<2x12x8xbf16>, vector<2x12x12xf32> -> vector<2x12x12xf32>
    "tpu.trace_stop"() : () -> ()
    %cst_70 = arith.constant 0.353553385 : f32
    %103 = vector.broadcast %cst_70 : f32 to vector<2x12x12xf32>
    %104 = arith.mulf %102, %103 : vector<2x12x12xf32>
    %cst_71 = arith.constant dense<0xFF800000> : vector<2x12xf32>
    %105 = vector.multi_reduction <maximumf>, %104, %cst_71 [2] : vector<2x12x12xf32> to vector<2x12xf32>
    %106 = vector.shape_cast %105 : vector<2x12xf32> to vector<2x12x1xf32>
    %107 = vector.broadcast %106 : vector<2x12x1xf32> to vector<2x12x12xf32>
    %108 = arith.subf %104, %107 : vector<2x12x12xf32>
    %109 = math.exp %108 : vector<2x12x12xf32>
    %cst_72 = arith.constant dense<0.000000e+00> : vector<2x12xf32>
    %110 = vector.multi_reduction <add>, %109, %cst_72 [2] : vector<2x12x12xf32> to vector<2x12xf32>
    %111 = vector.shape_cast %110 : vector<2x12xf32> to vector<2x12x1xf32>
    %112 = tpu.reciprocal %111 {approx = true} : vector<2x12x1xf32> -> vector<2x12x1xf32>
    %113 = vector.broadcast %112 : vector<2x12x1xf32> to vector<2x12x12xf32>
    %114 = arith.mulf %109, %113 : vector<2x12x12xf32>
    %115 = arith.truncf %114 : vector<2x12x12xf32> to vector<2x12x12xbf16>
    %116 = vector.extract_strided_slice %45 {offsets = [0, 0, 24], sizes = [2, 12, 8], strides = [1, 1, 1]} : vector<2x12x32xbf16> to vector<2x12x8xbf16>
    "tpu.trace_start"() <{level = 10 : i32, message = "bqk,bkd->bqd"}> : () -> ()
    %cst_73 = arith.constant dense<0.000000e+00> : vector<2x12x8xf32>
    %117 = tpu.matmul %115, %116, %cst_73 {dimension_numbers = #tpu.dot_dimension_numbers<[2], [1], [1], [2], [0, 0, 0, 1, 1, 2], [0], [0]>} : vector<2x12x12xbf16>, vector<2x12x8xbf16>, vector<2x12x8xf32> -> vector<2x12x8xf32>
    "tpu.trace_stop"() : () -> ()
    %118 = tpu.concatenate %63, %81, %99, %117 in 2 : vector<2x12x8xf32>, vector<2x12x8xf32>, vector<2x12x8xf32>, vector<2x12x8xf32> -> vector<2x12x32xf32>
    %119 = vector.shape_cast %118 : vector<2x12x32xf32> to vector<24x32xf32>
    %120 = arith.truncf %119 : vector<24x32xf32> to vector<24x32xbf16>
    %cst_74 = arith.constant dense<0.000000e+00> : vector<24x32xf32>
    %121 = tpu.matmul %120, %15, %cst_74 {dimension_numbers = #tpu.dot_dimension_numbers<[1], [0], [0], [1], [0, 0, 1, 1], [], []>} : vector<24x32xbf16>, vector<32x32xbf16>, vector<24x32xf32> -> vector<24x32xf32>
    %122 = vector.broadcast %17 : vector<1x32xf32> to vector<24x32xf32>
    %123 = arith.addf %121, %122 : vector<24x32xf32>
    %124 = arith.addf %34, %123 : vector<24x32xf32>
    %cst_75 = arith.constant dense<0.000000e+00> : vector<24xf32>
    %125 = vector.multi_reduction <add>, %124, %cst_75 [1] : vector<24x32xf32> to vector<24xf32>
    %126 = vector.shape_cast %125 : vector<24xf32> to vector<24x1xf32>
    %cst_76 = arith.constant 3.200000e+01 : f32
    %127 = vector.broadcast %cst_76 : f32 to vector<24x1xf32>
    %128 = arith.divf %126, %127 : vector<24x1xf32>
    %129 = vector.broadcast %128 : vector<24x1xf32> to vector<24x32xf32>
    %130 = arith.subf %124, %129 : vector<24x32xf32>
    %131 = arith.mulf %130, %130 : vector<24x32xf32>
    %cst_77 = arith.constant dense<0.000000e+00> : vector<24xf32>
    %132 = vector.multi_reduction <add>, %131, %cst_77 [1] : vector<24x32xf32> to vector<24xf32>
    %133 = vector.shape_cast %132 : vector<24xf32> to vector<24x1xf32>
    %cst_78 = arith.constant 3.200000e+01 : f32
    %134 = vector.broadcast %cst_78 : f32 to vector<24x1xf32>
    %135 = arith.divf %133, %134 : vector<24x1xf32>
    %136 = vector.broadcast %128 : vector<24x1xf32> to vector<24x32xf32>
    %137 = arith.subf %124, %136 : vector<24x32xf32>
    %cst_79 = arith.constant 9.99999974E-6 : f32
    %138 = vector.broadcast %cst_79 : f32 to vector<24x1xf32>
    %139 = arith.addf %135, %138 : vector<24x1xf32>
    %140 = math.rsqrt %139 : vector<24x1xf32>
    %141 = vector.broadcast %140 : vector<24x1xf32> to vector<24x32xf32>
    %142 = arith.mulf %137, %141 : vector<24x32xf32>
    %143 = vector.broadcast %19 : vector<1x32xf32> to vector<24x32xf32>
    %144 = arith.mulf %142, %143 : vector<24x32xf32>
    %145 = vector.broadcast %21 : vector<1x32xf32> to vector<24x32xf32>
    %146 = arith.addf %144, %145 : vector<24x32xf32>
    %147 = arith.truncf %146 : vector<24x32xf32> to vector<24x32xbf16>
    %cst_80 = arith.constant dense<0.000000e+00> : vector<24x2048xf32>
    %148 = tpu.matmul %147, %23, %cst_80 {dimension_numbers = #tpu.dot_dimension_numbers<[1], [0], [0], [1], [0, 0, 1, 1], [], []>} : vector<24x32xbf16>, vector<32x2048xbf16>, vector<24x2048xf32> -> vector<24x2048xf32>
    %149 = vector.broadcast %25 : vector<1x2048xf32> to vector<24x2048xf32>
    %150 = arith.addf %148, %149 : vector<24x2048xf32>
    %cst_81 = arith.constant 0.000000e+00 : f32
    %151 = vector.broadcast %cst_81 : f32 to vector<24x2048xf32>
    %152 = arith.maximumf %150, %151 : vector<24x2048xf32>
    %153 = arith.truncf %152 : vector<24x2048xf32> to vector<24x2048xbf16>
    %cst_82 = arith.constant dense<0.000000e+00> : vector<24x32xf32>
    %154 = tpu.matmul %153, %27, %cst_82 {dimension_numbers = #tpu.dot_dimension_numbers<[1], [0], [0], [1], [0, 0, 1, 1], [], []>} : vector<24x2048xbf16>, vector<2048x32xbf16>, vector<24x32xf32> -> vector<24x32xf32>
    %155 = vector.broadcast %29 : vector<1x32xf32> to vector<24x32xf32>
    %156 = arith.addf %154, %155 : vector<24x32xf32>
    %157 = arith.addf %146, %156 : vector<24x32xf32>
    %cst_83 = arith.constant dense<0.000000e+00> : vector<24xf32>
    %158 = vector.multi_reduction <add>, %157, %cst_83 [1] : vector<24x32xf32> to vector<24xf32>
    %159 = vector.shape_cast %158 : vector<24xf32> to vector<24x1xf32>
    %cst_84 = arith.constant 3.200000e+01 : f32
    %160 = vector.broadcast %cst_84 : f32 to vector<24x1xf32>
    %161 = arith.divf %159, %160 : vector<24x1xf32>
    %162 = vector.broadcast %161 : vector<24x1xf32> to vector<24x32xf32>
    %163 = arith.subf %157, %162 : vector<24x32xf32>
    %164 = arith.mulf %163, %163 : vector<24x32xf32>
    %cst_85 = arith.constant dense<0.000000e+00> : vector<24xf32>
    %165 = vector.multi_reduction <add>, %164, %cst_85 [1] : vector<24x32xf32> to vector<24xf32>
    %166 = vector.shape_cast %165 : vector<24xf32> to vector<24x1xf32>
    %cst_86 = arith.constant 3.200000e+01 : f32
    %167 = vector.broadcast %cst_86 : f32 to vector<24x1xf32>
    %168 = arith.divf %166, %167 : vector<24x1xf32>
    %169 = vector.broadcast %161 : vector<24x1xf32> to vector<24x32xf32>
    %170 = arith.subf %157, %169 : vector<24x32xf32>
    %cst_87 = arith.constant 9.99999974E-6 : f32
    %171 = vector.broadcast %cst_87 : f32 to vector<24x1xf32>
    %172 = arith.addf %168, %171 : vector<24x1xf32>
    %173 = math.rsqrt %172 : vector<24x1xf32>
    %174 = vector.broadcast %173 : vector<24x1xf32> to vector<24x32xf32>
    %175 = arith.mulf %170, %174 : vector<24x32xf32>
    %176 = vector.broadcast %31 : vector<1x32xf32> to vector<24x32xf32>
    %177 = arith.mulf %175, %176 : vector<24x32xf32>
    %178 = vector.broadcast %33 : vector<1x32xf32> to vector<24x32xf32>
    %179 = arith.addf %177, %178 : vector<24x32xf32>
    %180 = vector.shape_cast %179 : vector<24x32xf32> to vector<2x12x32xf32>
    %c0_88 = arith.constant 0 : index
    %c1 = arith.constant 1 : index
    %c0_89 = arith.constant 0 : index
    %c0_90 = arith.constant 0 : index
    %181 = vector.load %arg3[%c0_88, %c1, %c0_89, %c0_90] : memref<2x2x32x96xbf16, #tpu.memory_space<vmem>>, vector<1x1x32x96xbf16>
    %182 = vector.shape_cast %181 : vector<1x1x32x96xbf16> to vector<32x96xbf16>
    %c0_91 = arith.constant 0 : index
    %c1_92 = arith.constant 1 : index
    %c0_93 = arith.constant 0 : index
    %c0_94 = arith.constant 0 : index
    %183 = vector.load %arg4[%c0_91, %c1_92, %c0_93, %c0_94] : memref<2x2x1x96xf32, #tpu.memory_space<vmem>>, vector<1x1x1x96xf32>
    %184 = vector.shape_cast %183 : vector<1x1x1x96xf32> to vector<1x96xf32>
    %c0_95 = arith.constant 0 : index
    %c1_96 = arith.constant 1 : index
    %c0_97 = arith.constant 0 : index
    %c0_98 = arith.constant 0 : index
    %185 = vector.load %arg5[%c0_95, %c1_96, %c0_97, %c0_98] : memref<2x2x32x32xbf16, #tpu.memory_space<vmem>>, vector<1x1x32x32xbf16>
    %186 = vector.shape_cast %185 : vector<1x1x32x32xbf16> to vector<32x32xbf16>
    %c0_99 = arith.constant 0 : index
    %c1_100 = arith.constant 1 : index
    %c0_101 = arith.constant 0 : index
    %c0_102 = arith.constant 0 : index
    %187 = vector.load %arg6[%c0_99, %c1_100, %c0_101, %c0_102] : memref<2x2x1x32xf32, #tpu.memory_space<vmem>>, vector<1x1x1x32xf32>
    %188 = vector.shape_cast %187 : vector<1x1x1x32xf32> to vector<1x32xf32>
    %c0_103 = arith.constant 0 : index
    %c1_104 = arith.constant 1 : index
    %c0_105 = arith.constant 0 : index
    %c0_106 = arith.constant 0 : index
    %189 = vector.load %arg7[%c0_103, %c1_104, %c0_105, %c0_106] : memref<2x2x1x32xf32, #tpu.memory_space<vmem>>, vector<1x1x1x32xf32>
    %190 = vector.shape_cast %189 : vector<1x1x1x32xf32> to vector<1x32xf32>
    %c0_107 = arith.constant 0 : index
    %c1_108 = arith.constant 1 : index
    %c0_109 = arith.constant 0 : index
    %c0_110 = arith.constant 0 : index
    %191 = vector.load %arg8[%c0_107, %c1_108, %c0_109, %c0_110] : memref<2x2x1x32xf32, #tpu.memory_space<vmem>>, vector<1x1x1x32xf32>
    %192 = vector.shape_cast %191 : vector<1x1x1x32xf32> to vector<1x32xf32>
    %c0_111 = arith.constant 0 : index
    %c1_112 = arith.constant 1 : index
    %c0_113 = arith.constant 0 : index
    %c0_114 = arith.constant 0 : index
    %193 = vector.load %arg9[%c0_111, %c1_112, %c0_113, %c0_114] : memref<2x2x32x2048xbf16, #tpu.memory_space<vmem>>, vector<1x1x32x2048xbf16>
    %194 = vector.shape_cast %193 : vector<1x1x32x2048xbf16> to vector<32x2048xbf16>
    %c0_115 = arith.constant 0 : index
    %c1_116 = arith.constant 1 : index
    %c0_117 = arith.constant 0 : index
    %c0_118 = arith.constant 0 : index
    %195 = vector.load %arg10[%c0_115, %c1_116, %c0_117, %c0_118] : memref<2x2x1x2048xf32, #tpu.memory_space<vmem>>, vector<1x1x1x2048xf32>
    %196 = vector.shape_cast %195 : vector<1x1x1x2048xf32> to vector<1x2048xf32>
    %c0_119 = arith.constant 0 : index
    %c1_120 = arith.constant 1 : index
    %c0_121 = arith.constant 0 : index
    %c0_122 = arith.constant 0 : index
    %197 = vector.load %arg11[%c0_119, %c1_120, %c0_121, %c0_122] : memref<2x2x2048x32xbf16, #tpu.memory_space<vmem>>, vector<1x1x2048x32xbf16>
    %198 = vector.shape_cast %197 : vector<1x1x2048x32xbf16> to vector<2048x32xbf16>
    %c0_123 = arith.constant 0 : index
    %c1_124 = arith.constant 1 : index
    %c0_125 = arith.constant 0 : index
    %c0_126 = arith.constant 0 : index
    %199 = vector.load %arg12[%c0_123, %c1_124, %c0_125, %c0_126] : memref<2x2x1x32xf32, #tpu.memory_space<vmem>>, vector<1x1x1x32xf32>
    %200 = vector.shape_cast %199 : vector<1x1x1x32xf32> to vector<1x32xf32>
    %c0_127 = arith.constant 0 : index
    %c1_128 = arith.constant 1 : index
    %c0_129 = arith.constant 0 : index
    %c0_130 = arith.constant 0 : index
    %201 = vector.load %arg13[%c0_127, %c1_128, %c0_129, %c0_130] : memref<2x2x1x32xf32, #tpu.memory_space<vmem>>, vector<1x1x1x32xf32>
    %202 = vector.shape_cast %201 : vector<1x1x1x32xf32> to vector<1x32xf32>
    %c0_131 = arith.constant 0 : index
    %c1_132 = arith.constant 1 : index
    %c0_133 = arith.constant 0 : index
    %c0_134 = arith.constant 0 : index
    %203 = vector.load %arg14[%c0_131, %c1_132, %c0_133, %c0_134] : memref<2x2x1x32xf32, #tpu.memory_space<vmem>>, vector<1x1x1x32xf32>
    %204 = vector.shape_cast %203 : vector<1x1x1x32xf32> to vector<1x32xf32>
    %205 = vector.shape_cast %1 : vector<2x12x32xf32> to vector<24x32xf32>
    %206 = arith.truncf %205 : vector<24x32xf32> to vector<24x32xbf16>
    %cst_135 = arith.constant dense<0.000000e+00> : vector<24x96xf32>
    %207 = tpu.matmul %206, %182, %cst_135 {dimension_numbers = #tpu.dot_dimension_numbers<[1], [0], [0], [1], [0, 0, 1, 1], [], []>} : vector<24x32xbf16>, vector<32x96xbf16>, vector<24x96xf32> -> vector<24x96xf32>
    %208 = vector.broadcast %184 : vector<1x96xf32> to vector<24x96xf32>
    %209 = arith.addf %207, %208 : vector<24x96xf32>
    %210 = arith.truncf %209 : vector<24x96xf32> to vector<24x96xbf16>
    %211 = vector.extract_strided_slice %210 {offsets = [0, 0], sizes = [24, 32], strides = [1, 1]} : vector<24x96xbf16> to vector<24x32xbf16>
    %212 = vector.shape_cast %211 : vector<24x32xbf16> to vector<2x12x32xbf16>
    %213 = vector.extract_strided_slice %210 {offsets = [0, 32], sizes = [24, 32], strides = [1, 1]} : vector<24x96xbf16> to vector<24x32xbf16>
    %214 = vector.shape_cast %213 : vector<24x32xbf16> to vector<2x12x32xbf16>
    %215 = vector.extract_strided_slice %210 {offsets = [0, 64], sizes = [24, 32], strides = [1, 1]} : vector<24x96xbf16> to vector<24x32xbf16>
    %216 = vector.shape_cast %215 : vector<24x32xbf16> to vector<2x12x32xbf16>
    %217 = vector.extract_strided_slice %212 {offsets = [0, 0, 0], sizes = [2, 12, 8], strides = [1, 1, 1]} : vector<2x12x32xbf16> to vector<2x12x8xbf16>
    %218 = vector.extract_strided_slice %214 {offsets = [0, 0, 0], sizes = [2, 12, 8], strides = [1, 1, 1]} : vector<2x12x32xbf16> to vector<2x12x8xbf16>
    "tpu.trace_start"() <{level = 10 : i32, message = "bqd,bkd->bqk"}> : () -> ()
    %cst_136 = arith.constant dense<0.000000e+00> : vector<2x12x12xf32>
    %219 = tpu.matmul %217, %218, %cst_136 {dimension_numbers = #tpu.dot_dimension_numbers<[2], [2], [1], [1], [0, 0, 0, 1, 1, 1], [0], [0]>} : vector<2x12x8xbf16>, vector<2x12x8xbf16>, vector<2x12x12xf32> -> vector<2x12x12xf32>
    "tpu.trace_stop"() : () -> ()
    %cst_137 = arith.constant 0.353553385 : f32
    %220 = vector.broadcast %cst_137 : f32 to vector<2x12x12xf32>
    %221 = arith.mulf %219, %220 : vector<2x12x12xf32>
    %cst_138 = arith.constant dense<0xFF800000> : vector<2x12xf32>
    %222 = vector.multi_reduction <maximumf>, %221, %cst_138 [2] : vector<2x12x12xf32> to vector<2x12xf32>
    %223 = vector.shape_cast %222 : vector<2x12xf32> to vector<2x12x1xf32>
    %224 = vector.broadcast %223 : vector<2x12x1xf32> to vector<2x12x12xf32>
    %225 = arith.subf %221, %224 : vector<2x12x12xf32>
    %226 = math.exp %225 : vector<2x12x12xf32>
    %cst_139 = arith.constant dense<0.000000e+00> : vector<2x12xf32>
    %227 = vector.multi_reduction <add>, %226, %cst_139 [2] : vector<2x12x12xf32> to vector<2x12xf32>
    %228 = vector.shape_cast %227 : vector<2x12xf32> to vector<2x12x1xf32>
    %229 = tpu.reciprocal %228 {approx = true} : vector<2x12x1xf32> -> vector<2x12x1xf32>
    %230 = vector.broadcast %229 : vector<2x12x1xf32> to vector<2x12x12xf32>
    %231 = arith.mulf %226, %230 : vector<2x12x12xf32>
    %232 = arith.truncf %231 : vector<2x12x12xf32> to vector<2x12x12xbf16>
    %233 = vector.extract_strided_slice %216 {offsets = [0, 0, 0], sizes = [2, 12, 8], strides = [1, 1, 1]} : vector<2x12x32xbf16> to vector<2x12x8xbf16>
    "tpu.trace_start"() <{level = 10 : i32, message = "bqk,bkd->bqd"}> : () -> ()
    %cst_140 = arith.constant dense<0.000000e+00> : vector<2x12x8xf32>
    %234 = tpu.matmul %232, %233, %cst_140 {dimension_numbers = #tpu.dot_dimension_numbers<[2], [1], [1], [2], [0, 0, 0, 1, 1, 2], [0], [0]>} : vector<2x12x12xbf16>, vector<2x12x8xbf16>, vector<2x12x8xf32> -> vector<2x12x8xf32>
    "tpu.trace_stop"() : () -> ()
    %235 = vector.extract_strided_slice %212 {offsets = [0, 0, 8], sizes = [2, 12, 8], strides = [1, 1, 1]} : vector<2x12x32xbf16> to vector<2x12x8xbf16>
    %236 = vector.extract_strided_slice %214 {offsets = [0, 0, 8], sizes = [2, 12, 8], strides = [1, 1, 1]} : vector<2x12x32xbf16> to vector<2x12x8xbf16>
    "tpu.trace_start"() <{level = 10 : i32, message = "bqd,bkd->bqk"}> : () -> ()
    %cst_141 = arith.constant dense<0.000000e+00> : vector<2x12x12xf32>
    %237 = tpu.matmul %235, %236, %cst_141 {dimension_numbers = #tpu.dot_dimension_numbers<[2], [2], [1], [1], [0, 0, 0, 1, 1, 1], [0], [0]>} : vector<2x12x8xbf16>, vector<2x12x8xbf16>, vector<2x12x12xf32> -> vector<2x12x12xf32>
    "tpu.trace_stop"() : () -> ()
    %cst_142 = arith.constant 0.353553385 : f32
    %238 = vector.broadcast %cst_142 : f32 to vector<2x12x12xf32>
    %239 = arith.mulf %237, %238 : vector<2x12x12xf32>
    %cst_143 = arith.constant dense<0xFF800000> : vector<2x12xf32>
    %240 = vector.multi_reduction <maximumf>, %239, %cst_143 [2] : vector<2x12x12xf32> to vector<2x12xf32>
    %241 = vector.shape_cast %240 : vector<2x12xf32> to vector<2x12x1xf32>
    %242 = vector.broadcast %241 : vector<2x12x1xf32> to vector<2x12x12xf32>
    %243 = arith.subf %239, %242 : vector<2x12x12xf32>
    %244 = math.exp %243 : vector<2x12x12xf32>
    %cst_144 = arith.constant dense<0.000000e+00> : vector<2x12xf32>
    %245 = vector.multi_reduction <add>, %244, %cst_144 [2] : vector<2x12x12xf32> to vector<2x12xf32>
    %246 = vector.shape_cast %245 : vector<2x12xf32> to vector<2x12x1xf32>
    %247 = tpu.reciprocal %246 {approx = true} : vector<2x12x1xf32> -> vector<2x12x1xf32>
    %248 = vector.broadcast %247 : vector<2x12x1xf32> to vector<2x12x12xf32>
    %249 = arith.mulf %244, %248 : vector<2x12x12xf32>
    %250 = arith.truncf %249 : vector<2x12x12xf32> to vector<2x12x12xbf16>
    %251 = vector.extract_strided_slice %216 {offsets = [0, 0, 8], sizes = [2, 12, 8], strides = [1, 1, 1]} : vector<2x12x32xbf16> to vector<2x12x8xbf16>
    "tpu.trace_start"() <{level = 10 : i32, message = "bqk,bkd->bqd"}> : () -> ()
    %cst_145 = arith.constant dense<0.000000e+00> : vector<2x12x8xf32>
    %252 = tpu.matmul %250, %251, %cst_145 {dimension_numbers = #tpu.dot_dimension_numbers<[2], [1], [1], [2], [0, 0, 0, 1, 1, 2], [0], [0]>} : vector<2x12x12xbf16>, vector<2x12x8xbf16>, vector<2x12x8xf32> -> vector<2x12x8xf32>
    "tpu.trace_stop"() : () -> ()
    %253 = vector.extract_strided_slice %212 {offsets = [0, 0, 16], sizes = [2, 12, 8], strides = [1, 1, 1]} : vector<2x12x32xbf16> to vector<2x12x8xbf16>
    %254 = vector.extract_strided_slice %214 {offsets = [0, 0, 16], sizes = [2, 12, 8], strides = [1, 1, 1]} : vector<2x12x32xbf16> to vector<2x12x8xbf16>
    "tpu.trace_start"() <{level = 10 : i32, message = "bqd,bkd->bqk"}> : () -> ()
    %cst_146 = arith.constant dense<0.000000e+00> : vector<2x12x12xf32>
    %255 = tpu.matmul %253, %254, %cst_146 {dimension_numbers = #tpu.dot_dimension_numbers<[2], [2], [1], [1], [0, 0, 0, 1, 1, 1], [0], [0]>} : vector<2x12x8xbf16>, vector<2x12x8xbf16>, vector<2x12x12xf32> -> vector<2x12x12xf32>
    "tpu.trace_stop"() : () -> ()
    %cst_147 = arith.constant 0.353553385 : f32
    %256 = vector.broadcast %cst_147 : f32 to vector<2x12x12xf32>
    %257 = arith.mulf %255, %256 : vector<2x12x12xf32>
    %cst_148 = arith.constant dense<0xFF800000> : vector<2x12xf32>
    %258 = vector.multi_reduction <maximumf>, %257, %cst_148 [2] : vector<2x12x12xf32> to vector<2x12xf32>
    %259 = vector.shape_cast %258 : vector<2x12xf32> to vector<2x12x1xf32>
    %260 = vector.broadcast %259 : vector<2x12x1xf32> to vector<2x12x12xf32>
    %261 = arith.subf %257, %260 : vector<2x12x12xf32>
    %262 = math.exp %261 : vector<2x12x12xf32>
    %cst_149 = arith.constant dense<0.000000e+00> : vector<2x12xf32>
    %263 = vector.multi_reduction <add>, %262, %cst_149 [2] : vector<2x12x12xf32> to vector<2x12xf32>
    %264 = vector.shape_cast %263 : vector<2x12xf32> to vector<2x12x1xf32>
    %265 = tpu.reciprocal %264 {approx = true} : vector<2x12x1xf32> -> vector<2x12x1xf32>
    %266 = vector.broadcast %265 : vector<2x12x1xf32> to vector<2x12x12xf32>
    %267 = arith.mulf %262, %266 : vector<2x12x12xf32>
    %268 = arith.truncf %267 : vector<2x12x12xf32> to vector<2x12x12xbf16>
    %269 = vector.extract_strided_slice %216 {offsets = [0, 0, 16], sizes = [2, 12, 8], strides = [1, 1, 1]} : vector<2x12x32xbf16> to vector<2x12x8xbf16>
    "tpu.trace_start"() <{level = 10 : i32, message = "bqk,bkd->bqd"}> : () -> ()
    %cst_150 = arith.constant dense<0.000000e+00> : vector<2x12x8xf32>
    %270 = tpu.matmul %268, %269, %cst_150 {dimension_numbers = #tpu.dot_dimension_numbers<[2], [1], [1], [2], [0, 0, 0, 1, 1, 2], [0], [0]>} : vector<2x12x12xbf16>, vector<2x12x8xbf16>, vector<2x12x8xf32> -> vector<2x12x8xf32>
    "tpu.trace_stop"() : () -> ()
    %271 = vector.extract_strided_slice %212 {offsets = [0, 0, 24], sizes = [2, 12, 8], strides = [1, 1, 1]} : vector<2x12x32xbf16> to vector<2x12x8xbf16>
    %272 = vector.extract_strided_slice %214 {offsets = [0, 0, 24], sizes = [2, 12, 8], strides = [1, 1, 1]} : vector<2x12x32xbf16> to vector<2x12x8xbf16>
    "tpu.trace_start"() <{level = 10 : i32, message = "bqd,bkd->bqk"}> : () -> ()
    %cst_151 = arith.constant dense<0.000000e+00> : vector<2x12x12xf32>
    %273 = tpu.matmul %271, %272, %cst_151 {dimension_numbers = #tpu.dot_dimension_numbers<[2], [2], [1], [1], [0, 0, 0, 1, 1, 1], [0], [0]>} : vector<2x12x8xbf16>, vector<2x12x8xbf16>, vector<2x12x12xf32> -> vector<2x12x12xf32>
    "tpu.trace_stop"() : () -> ()
    %cst_152 = arith.constant 0.353553385 : f32
    %274 = vector.broadcast %cst_152 : f32 to vector<2x12x12xf32>
    %275 = arith.mulf %273, %274 : vector<2x12x12xf32>
    %cst_153 = arith.constant dense<0xFF800000> : vector<2x12xf32>
    %276 = vector.multi_reduction <maximumf>, %275, %cst_153 [2] : vector<2x12x12xf32> to vector<2x12xf32>
    %277 = vector.shape_cast %276 : vector<2x12xf32> to vector<2x12x1xf32>
    %278 = vector.broadcast %277 : vector<2x12x1xf32> to vector<2x12x12xf32>
    %279 = arith.subf %275, %278 : vector<2x12x12xf32>
    %280 = math.exp %279 : vector<2x12x12xf32>
    %cst_154 = arith.constant dense<0.000000e+00> : vector<2x12xf32>
    %281 = vector.multi_reduction <add>, %280, %cst_154 [2] : vector<2x12x12xf32> to vector<2x12xf32>
    %282 = vector.shape_cast %281 : vector<2x12xf32> to vector<2x12x1xf32>
    %283 = tpu.reciprocal %282 {approx = true} : vector<2x12x1xf32> -> vector<2x12x1xf32>
    %284 = vector.broadcast %283 : vector<2x12x1xf32> to vector<2x12x12xf32>
    %285 = arith.mulf %280, %284 : vector<2x12x12xf32>
    %286 = arith.truncf %285 : vector<2x12x12xf32> to vector<2x12x12xbf16>
    %287 = vector.extract_strided_slice %216 {offsets = [0, 0, 24], sizes = [2, 12, 8], strides = [1, 1, 1]} : vector<2x12x32xbf16> to vector<2x12x8xbf16>
    "tpu.trace_start"() <{level = 10 : i32, message = "bqk,bkd->bqd"}> : () -> ()
    %cst_155 = arith.constant dense<0.000000e+00> : vector<2x12x8xf32>
    %288 = tpu.matmul %286, %287, %cst_155 {dimension_numbers = #tpu.dot_dimension_numbers<[2], [1], [1], [2], [0, 0, 0, 1, 1, 2], [0], [0]>} : vector<2x12x12xbf16>, vector<2x12x8xbf16>, vector<2x12x8xf32> -> vector<2x12x8xf32>
    "tpu.trace_stop"() : () -> ()
    %289 = tpu.concatenate %234, %252, %270, %288 in 2 : vector<2x12x8xf32>, vector<2x12x8xf32>, vector<2x12x8xf32>, vector<2x12x8xf32> -> vector<2x12x32xf32>
    %290 = vector.shape_cast %289 : vector<2x12x32xf32> to vector<24x32xf32>
    %291 = arith.truncf %290 : vector<24x32xf32> to vector<24x32xbf16>
    %cst_156 = arith.constant dense<0.000000e+00> : vector<24x32xf32>
    %292 = tpu.matmul %291, %186, %cst_156 {dimension_numbers = #tpu.dot_dimension_numbers<[1], [0], [0], [1], [0, 0, 1, 1], [], []>} : vector<24x32xbf16>, vector<32x32xbf16>, vector<24x32xf32> -> vector<24x32xf32>
    %293 = vector.broadcast %188 : vector<1x32xf32> to vector<24x32xf32>
    %294 = arith.addf %292, %293 : vector<24x32xf32>
    %295 = arith.addf %205, %294 : vector<24x32xf32>
    %cst_157 = arith.constant dense<0.000000e+00> : vector<24xf32>
    %296 = vector.multi_reduction <add>, %295, %cst_157 [1] : vector<24x32xf32> to vector<24xf32>
    %297 = vector.shape_cast %296 : vector<24xf32> to vector<24x1xf32>
    %cst_158 = arith.constant 3.200000e+01 : f32
    %298 = vector.broadcast %cst_158 : f32 to vector<24x1xf32>
    %299 = arith.divf %297, %298 : vector<24x1xf32>
    %300 = vector.broadcast %299 : vector<24x1xf32> to vector<24x32xf32>
    %301 = arith.subf %295, %300 : vector<24x32xf32>
    %302 = arith.mulf %301, %301 : vector<24x32xf32>
    %cst_159 = arith.constant dense<0.000000e+00> : vector<24xf32>
    %303 = vector.multi_reduction <add>, %302, %cst_159 [1] : vector<24x32xf32> to vector<24xf32>
    %304 = vector.shape_cast %303 : vector<24xf32> to vector<24x1xf32>
    %cst_160 = arith.constant 3.200000e+01 : f32
    %305 = vector.broadcast %cst_160 : f32 to vector<24x1xf32>
    %306 = arith.divf %304, %305 : vector<24x1xf32>
    %307 = vector.broadcast %299 : vector<24x1xf32> to vector<24x32xf32>
    %308 = arith.subf %295, %307 : vector<24x32xf32>
    %cst_161 = arith.constant 9.99999974E-6 : f32
    %309 = vector.broadcast %cst_161 : f32 to vector<24x1xf32>
    %310 = arith.addf %306, %309 : vector<24x1xf32>
    %311 = math.rsqrt %310 : vector<24x1xf32>
    %312 = vector.broadcast %311 : vector<24x1xf32> to vector<24x32xf32>
    %313 = arith.mulf %308, %312 : vector<24x32xf32>
    %314 = vector.broadcast %190 : vector<1x32xf32> to vector<24x32xf32>
    %315 = arith.mulf %313, %314 : vector<24x32xf32>
    %316 = vector.broadcast %192 : vector<1x32xf32> to vector<24x32xf32>
    %317 = arith.addf %315, %316 : vector<24x32xf32>
    %318 = arith.truncf %317 : vector<24x32xf32> to vector<24x32xbf16>
    %cst_162 = arith.constant dense<0.000000e+00> : vector<24x2048xf32>
    %319 = tpu.matmul %318, %194, %cst_162 {dimension_numbers = #tpu.dot_dimension_numbers<[1], [0], [0], [1], [0, 0, 1, 1], [], []>} : vector<24x32xbf16>, vector<32x2048xbf16>, vector<24x2048xf32> -> vector<24x2048xf32>
    %320 = vector.broadcast %196 : vector<1x2048xf32> to vector<24x2048xf32>
    %321 = arith.addf %319, %320 : vector<24x2048xf32>
    %cst_163 = arith.constant 0.000000e+00 : f32
    %322 = vector.broadcast %cst_163 : f32 to vector<24x2048xf32>
    %323 = arith.maximumf %321, %322 : vector<24x2048xf32>
    %324 = arith.truncf %323 : vector<24x2048xf32> to vector<24x2048xbf16>
    %cst_164 = arith.constant dense<0.000000e+00> : vector<24x32xf32>
    %325 = tpu.matmul %324, %198, %cst_164 {dimension_numbers = #tpu.dot_dimension_numbers<[1], [0], [0], [1], [0, 0, 1, 1], [], []>} : vector<24x2048xbf16>, vector<2048x32xbf16>, vector<24x32xf32> -> vector<24x32xf32>
    %326 = vector.broadcast %200 : vector<1x32xf32> to vector<24x32xf32>
    %327 = arith.addf %325, %326 : vector<24x32xf32>
    %328 = arith.addf %317, %327 : vector<24x32xf32>
    %cst_165 = arith.constant dense<0.000000e+00> : vector<24xf32>
    %329 = vector.multi_reduction <add>, %328, %cst_165 [1] : vector<24x32xf32> to vector<24xf32>
    %330 = vector.shape_cast %329 : vector<24xf32> to vector<24x1xf32>
    %cst_166 = arith.constant 3.200000e+01 : f32
    %331 = vector.broadcast %cst_166 : f32 to vector<24x1xf32>
    %332 = arith.divf %330, %331 : vector<24x1xf32>
    %333 = vector.broadcast %332 : vector<24x1xf32> to vector<24x32xf32>
    %334 = arith.subf %328, %333 : vector<24x32xf32>
    %335 = arith.mulf %334, %334 : vector<24x32xf32>
    %cst_167 = arith.constant dense<0.000000e+00> : vector<24xf32>
    %336 = vector.multi_reduction <add>, %335, %cst_167 [1] : vector<24x32xf32> to vector<24xf32>
    %337 = vector.shape_cast %336 : vector<24xf32> to vector<24x1xf32>
    %cst_168 = arith.constant 3.200000e+01 : f32
    %338 = vector.broadcast %cst_168 : f32 to vector<24x1xf32>
    %339 = arith.divf %337, %338 : vector<24x1xf32>
    %340 = vector.broadcast %332 : vector<24x1xf32> to vector<24x32xf32>
    %341 = arith.subf %328, %340 : vector<24x32xf32>
    %cst_169 = arith.constant 9.99999974E-6 : f32
    %342 = vector.broadcast %cst_169 : f32 to vector<24x1xf32>
    %343 = arith.addf %339, %342 : vector<24x1xf32>
    %344 = math.rsqrt %343 : vector<24x1xf32>
    %345 = vector.broadcast %344 : vector<24x1xf32> to vector<24x32xf32>
    %346 = arith.mulf %341, %345 : vector<24x32xf32>
    %347 = vector.broadcast %202 : vector<1x32xf32> to vector<24x32xf32>
    %348 = arith.mulf %346, %347 : vector<24x32xf32>
    %349 = vector.broadcast %204 : vector<1x32xf32> to vector<24x32xf32>
    %350 = arith.addf %348, %349 : vector<24x32xf32>
    %351 = vector.shape_cast %350 : vector<24x32xf32> to vector<2x12x32xf32>
    %352 = arith.addf %180, %351 : vector<2x12x32xf32>
    %cst_170 = arith.constant 5.000000e-01 : f32
    %353 = vector.broadcast %cst_170 : f32 to vector<2x12x32xf32>
    %354 = arith.mulf %352, %353 : vector<2x12x32xf32>
    %355 = vector.broadcast %9 : vector<1x12x32xf32> to vector<2x12x32xf32>
    %356 = arith.mulf %180, %355 : vector<2x12x32xf32>
    %357 = vector.broadcast %7 : vector<1x12x32xf32> to vector<2x12x32xf32>
    %358 = arith.mulf %354, %357 : vector<2x12x32xf32>
    %359 = arith.addf %356, %358 : vector<2x12x32xf32>
    %360 = vector.broadcast %9 : vector<1x12x32xf32> to vector<2x12x32xf32>
    %361 = arith.mulf %351, %360 : vector<2x12x32xf32>
    %362 = vector.broadcast %7 : vector<1x12x32xf32> to vector<2x12x32xf32>
    %363 = arith.mulf %354, %362 : vector<2x12x32xf32>
    %364 = arith.addf %361, %363 : vector<2x12x32xf32>
    %c1_171 = arith.constant 1 : index
    %c0_172 = arith.constant 0 : index
    %c0_173 = arith.constant 0 : index
    %c0_174 = arith.constant 0 : index
    %365 = vector.load %arg3[%c1_171, %c0_172, %c0_173, %c0_174] : memref<2x2x32x96xbf16, #tpu.memory_space<vmem>>, vector<1x1x32x96xbf16>
    %366 = vector.shape_cast %365 : vector<1x1x32x96xbf16> to vector<32x96xbf16>
    %c1_175 = arith.constant 1 : index
    %c0_176 = arith.constant 0 : index
    %c0_177 = arith.constant 0 : index
    %c0_178 = arith.constant 0 : index
    %367 = vector.load %arg4[%c1_175, %c0_176, %c0_177, %c0_178] : memref<2x2x1x96xf32, #tpu.memory_space<vmem>>, vector<1x1x1x96xf32>
    %368 = vector.shape_cast %367 : vector<1x1x1x96xf32> to vector<1x96xf32>
    %c1_179 = arith.constant 1 : index
    %c0_180 = arith.constant 0 : index
    %c0_181 = arith.constant 0 : index
    %c0_182 = arith.constant 0 : index
    %369 = vector.load %arg5[%c1_179, %c0_180, %c0_181, %c0_182] : memref<2x2x32x32xbf16, #tpu.memory_space<vmem>>, vector<1x1x32x32xbf16>
    %370 = vector.shape_cast %369 : vector<1x1x32x32xbf16> to vector<32x32xbf16>
    %c1_183 = arith.constant 1 : index
    %c0_184 = arith.constant 0 : index
    %c0_185 = arith.constant 0 : index
    %c0_186 = arith.constant 0 : index
    %371 = vector.load %arg6[%c1_183, %c0_184, %c0_185, %c0_186] : memref<2x2x1x32xf32, #tpu.memory_space<vmem>>, vector<1x1x1x32xf32>
    %372 = vector.shape_cast %371 : vector<1x1x1x32xf32> to vector<1x32xf32>
    %c1_187 = arith.constant 1 : index
    %c0_188 = arith.constant 0 : index
    %c0_189 = arith.constant 0 : index
    %c0_190 = arith.constant 0 : index
    %373 = vector.load %arg7[%c1_187, %c0_188, %c0_189, %c0_190] : memref<2x2x1x32xf32, #tpu.memory_space<vmem>>, vector<1x1x1x32xf32>
    %374 = vector.shape_cast %373 : vector<1x1x1x32xf32> to vector<1x32xf32>
    %c1_191 = arith.constant 1 : index
    %c0_192 = arith.constant 0 : index
    %c0_193 = arith.constant 0 : index
    %c0_194 = arith.constant 0 : index
    %375 = vector.load %arg8[%c1_191, %c0_192, %c0_193, %c0_194] : memref<2x2x1x32xf32, #tpu.memory_space<vmem>>, vector<1x1x1x32xf32>
    %376 = vector.shape_cast %375 : vector<1x1x1x32xf32> to vector<1x32xf32>
    %c1_195 = arith.constant 1 : index
    %c0_196 = arith.constant 0 : index
    %c0_197 = arith.constant 0 : index
    %c0_198 = arith.constant 0 : index
    %377 = vector.load %arg9[%c1_195, %c0_196, %c0_197, %c0_198] : memref<2x2x32x2048xbf16, #tpu.memory_space<vmem>>, vector<1x1x32x2048xbf16>
    %378 = vector.shape_cast %377 : vector<1x1x32x2048xbf16> to vector<32x2048xbf16>
    %c1_199 = arith.constant 1 : index
    %c0_200 = arith.constant 0 : index
    %c0_201 = arith.constant 0 : index
    %c0_202 = arith.constant 0 : index
    %379 = vector.load %arg10[%c1_199, %c0_200, %c0_201, %c0_202] : memref<2x2x1x2048xf32, #tpu.memory_space<vmem>>, vector<1x1x1x2048xf32>
    %380 = vector.shape_cast %379 : vector<1x1x1x2048xf32> to vector<1x2048xf32>
    %c1_203 = arith.constant 1 : index
    %c0_204 = arith.constant 0 : index
    %c0_205 = arith.constant 0 : index
    %c0_206 = arith.constant 0 : index
    %381 = vector.load %arg11[%c1_203, %c0_204, %c0_205, %c0_206] : memref<2x2x2048x32xbf16, #tpu.memory_space<vmem>>, vector<1x1x2048x32xbf16>
    %382 = vector.shape_cast %381 : vector<1x1x2048x32xbf16> to vector<2048x32xbf16>
    %c1_207 = arith.constant 1 : index
    %c0_208 = arith.constant 0 : index
    %c0_209 = arith.constant 0 : index
    %c0_210 = arith.constant 0 : index
    %383 = vector.load %arg12[%c1_207, %c0_208, %c0_209, %c0_210] : memref<2x2x1x32xf32, #tpu.memory_space<vmem>>, vector<1x1x1x32xf32>
    %384 = vector.shape_cast %383 : vector<1x1x1x32xf32> to vector<1x32xf32>
    %c1_211 = arith.constant 1 : index
    %c0_212 = arith.constant 0 : index
    %c0_213 = arith.constant 0 : index
    %c0_214 = arith.constant 0 : index
    %385 = vector.load %arg13[%c1_211, %c0_212, %c0_213, %c0_214] : memref<2x2x1x32xf32, #tpu.memory_space<vmem>>, vector<1x1x1x32xf32>
    %386 = vector.shape_cast %385 : vector<1x1x1x32xf32> to vector<1x32xf32>
    %c1_215 = arith.constant 1 : index
    %c0_216 = arith.constant 0 : index
    %c0_217 = arith.constant 0 : index
    %c0_218 = arith.constant 0 : index
    %387 = vector.load %arg14[%c1_215, %c0_216, %c0_217, %c0_218] : memref<2x2x1x32xf32, #tpu.memory_space<vmem>>, vector<1x1x1x32xf32>
    %388 = vector.shape_cast %387 : vector<1x1x1x32xf32> to vector<1x32xf32>
    %389 = vector.shape_cast %359 : vector<2x12x32xf32> to vector<24x32xf32>
    %390 = arith.truncf %389 : vector<24x32xf32> to vector<24x32xbf16>
    %cst_219 = arith.constant dense<0.000000e+00> : vector<24x96xf32>
    %391 = tpu.matmul %390, %366, %cst_219 {dimension_numbers = #tpu.dot_dimension_numbers<[1], [0], [0], [1], [0, 0, 1, 1], [], []>} : vector<24x32xbf16>, vector<32x96xbf16>, vector<24x96xf32> -> vector<24x96xf32>
    %392 = vector.broadcast %368 : vector<1x96xf32> to vector<24x96xf32>
    %393 = arith.addf %391, %392 : vector<24x96xf32>
    %394 = arith.truncf %393 : vector<24x96xf32> to vector<24x96xbf16>
    %395 = vector.extract_strided_slice %394 {offsets = [0, 0], sizes = [24, 32], strides = [1, 1]} : vector<24x96xbf16> to vector<24x32xbf16>
    %396 = vector.shape_cast %395 : vector<24x32xbf16> to vector<2x12x32xbf16>
    %397 = vector.extract_strided_slice %394 {offsets = [0, 32], sizes = [24, 32], strides = [1, 1]} : vector<24x96xbf16> to vector<24x32xbf16>
    %398 = vector.shape_cast %397 : vector<24x32xbf16> to vector<2x12x32xbf16>
    %399 = vector.extract_strided_slice %394 {offsets = [0, 64], sizes = [24, 32], strides = [1, 1]} : vector<24x96xbf16> to vector<24x32xbf16>
    %400 = vector.shape_cast %399 : vector<24x32xbf16> to vector<2x12x32xbf16>
    %401 = vector.extract_strided_slice %396 {offsets = [0, 0, 0], sizes = [2, 12, 8], strides = [1, 1, 1]} : vector<2x12x32xbf16> to vector<2x12x8xbf16>
    %402 = vector.extract_strided_slice %398 {offsets = [0, 0, 0], sizes = [2, 12, 8], strides = [1, 1, 1]} : vector<2x12x32xbf16> to vector<2x12x8xbf16>
    "tpu.trace_start"() <{level = 10 : i32, message = "bqd,bkd->bqk"}> : () -> ()
    %cst_220 = arith.constant dense<0.000000e+00> : vector<2x12x12xf32>
    %403 = tpu.matmul %401, %402, %cst_220 {dimension_numbers = #tpu.dot_dimension_numbers<[2], [2], [1], [1], [0, 0, 0, 1, 1, 1], [0], [0]>} : vector<2x12x8xbf16>, vector<2x12x8xbf16>, vector<2x12x12xf32> -> vector<2x12x12xf32>
    "tpu.trace_stop"() : () -> ()
    %cst_221 = arith.constant 0.353553385 : f32
    %404 = vector.broadcast %cst_221 : f32 to vector<2x12x12xf32>
    %405 = arith.mulf %403, %404 : vector<2x12x12xf32>
    %cst_222 = arith.constant dense<0xFF800000> : vector<2x12xf32>
    %406 = vector.multi_reduction <maximumf>, %405, %cst_222 [2] : vector<2x12x12xf32> to vector<2x12xf32>
    %407 = vector.shape_cast %406 : vector<2x12xf32> to vector<2x12x1xf32>
    %408 = vector.broadcast %407 : vector<2x12x1xf32> to vector<2x12x12xf32>
    %409 = arith.subf %405, %408 : vector<2x12x12xf32>
    %410 = math.exp %409 : vector<2x12x12xf32>
    %cst_223 = arith.constant dense<0.000000e+00> : vector<2x12xf32>
    %411 = vector.multi_reduction <add>, %410, %cst_223 [2] : vector<2x12x12xf32> to vector<2x12xf32>
    %412 = vector.shape_cast %411 : vector<2x12xf32> to vector<2x12x1xf32>
    %413 = tpu.reciprocal %412 {approx = true} : vector<2x12x1xf32> -> vector<2x12x1xf32>
    %414 = vector.broadcast %413 : vector<2x12x1xf32> to vector<2x12x12xf32>
    %415 = arith.mulf %410, %414 : vector<2x12x12xf32>
    %416 = arith.truncf %415 : vector<2x12x12xf32> to vector<2x12x12xbf16>
    %417 = vector.extract_strided_slice %400 {offsets = [0, 0, 0], sizes = [2, 12, 8], strides = [1, 1, 1]} : vector<2x12x32xbf16> to vector<2x12x8xbf16>
    "tpu.trace_start"() <{level = 10 : i32, message = "bqk,bkd->bqd"}> : () -> ()
    %cst_224 = arith.constant dense<0.000000e+00> : vector<2x12x8xf32>
    %418 = tpu.matmul %416, %417, %cst_224 {dimension_numbers = #tpu.dot_dimension_numbers<[2], [1], [1], [2], [0, 0, 0, 1, 1, 2], [0], [0]>} : vector<2x12x12xbf16>, vector<2x12x8xbf16>, vector<2x12x8xf32> -> vector<2x12x8xf32>
    "tpu.trace_stop"() : () -> ()
    %419 = vector.extract_strided_slice %396 {offsets = [0, 0, 8], sizes = [2, 12, 8], strides = [1, 1, 1]} : vector<2x12x32xbf16> to vector<2x12x8xbf16>
    %420 = vector.extract_strided_slice %398 {offsets = [0, 0, 8], sizes = [2, 12, 8], strides = [1, 1, 1]} : vector<2x12x32xbf16> to vector<2x12x8xbf16>
    "tpu.trace_start"() <{level = 10 : i32, message = "bqd,bkd->bqk"}> : () -> ()
    %cst_225 = arith.constant dense<0.000000e+00> : vector<2x12x12xf32>
    %421 = tpu.matmul %419, %420, %cst_225 {dimension_numbers = #tpu.dot_dimension_numbers<[2], [2], [1], [1], [0, 0, 0, 1, 1, 1], [0], [0]>} : vector<2x12x8xbf16>, vector<2x12x8xbf16>, vector<2x12x12xf32> -> vector<2x12x12xf32>
    "tpu.trace_stop"() : () -> ()
    %cst_226 = arith.constant 0.353553385 : f32
    %422 = vector.broadcast %cst_226 : f32 to vector<2x12x12xf32>
    %423 = arith.mulf %421, %422 : vector<2x12x12xf32>
    %cst_227 = arith.constant dense<0xFF800000> : vector<2x12xf32>
    %424 = vector.multi_reduction <maximumf>, %423, %cst_227 [2] : vector<2x12x12xf32> to vector<2x12xf32>
    %425 = vector.shape_cast %424 : vector<2x12xf32> to vector<2x12x1xf32>
    %426 = vector.broadcast %425 : vector<2x12x1xf32> to vector<2x12x12xf32>
    %427 = arith.subf %423, %426 : vector<2x12x12xf32>
    %428 = math.exp %427 : vector<2x12x12xf32>
    %cst_228 = arith.constant dense<0.000000e+00> : vector<2x12xf32>
    %429 = vector.multi_reduction <add>, %428, %cst_228 [2] : vector<2x12x12xf32> to vector<2x12xf32>
    %430 = vector.shape_cast %429 : vector<2x12xf32> to vector<2x12x1xf32>
    %431 = tpu.reciprocal %430 {approx = true} : vector<2x12x1xf32> -> vector<2x12x1xf32>
    %432 = vector.broadcast %431 : vector<2x12x1xf32> to vector<2x12x12xf32>
    %433 = arith.mulf %428, %432 : vector<2x12x12xf32>
    %434 = arith.truncf %433 : vector<2x12x12xf32> to vector<2x12x12xbf16>
    %435 = vector.extract_strided_slice %400 {offsets = [0, 0, 8], sizes = [2, 12, 8], strides = [1, 1, 1]} : vector<2x12x32xbf16> to vector<2x12x8xbf16>
    "tpu.trace_start"() <{level = 10 : i32, message = "bqk,bkd->bqd"}> : () -> ()
    %cst_229 = arith.constant dense<0.000000e+00> : vector<2x12x8xf32>
    %436 = tpu.matmul %434, %435, %cst_229 {dimension_numbers = #tpu.dot_dimension_numbers<[2], [1], [1], [2], [0, 0, 0, 1, 1, 2], [0], [0]>} : vector<2x12x12xbf16>, vector<2x12x8xbf16>, vector<2x12x8xf32> -> vector<2x12x8xf32>
    "tpu.trace_stop"() : () -> ()
    %437 = vector.extract_strided_slice %396 {offsets = [0, 0, 16], sizes = [2, 12, 8], strides = [1, 1, 1]} : vector<2x12x32xbf16> to vector<2x12x8xbf16>
    %438 = vector.extract_strided_slice %398 {offsets = [0, 0, 16], sizes = [2, 12, 8], strides = [1, 1, 1]} : vector<2x12x32xbf16> to vector<2x12x8xbf16>
    "tpu.trace_start"() <{level = 10 : i32, message = "bqd,bkd->bqk"}> : () -> ()
    %cst_230 = arith.constant dense<0.000000e+00> : vector<2x12x12xf32>
    %439 = tpu.matmul %437, %438, %cst_230 {dimension_numbers = #tpu.dot_dimension_numbers<[2], [2], [1], [1], [0, 0, 0, 1, 1, 1], [0], [0]>} : vector<2x12x8xbf16>, vector<2x12x8xbf16>, vector<2x12x12xf32> -> vector<2x12x12xf32>
    "tpu.trace_stop"() : () -> ()
    %cst_231 = arith.constant 0.353553385 : f32
    %440 = vector.broadcast %cst_231 : f32 to vector<2x12x12xf32>
    %441 = arith.mulf %439, %440 : vector<2x12x12xf32>
    %cst_232 = arith.constant dense<0xFF800000> : vector<2x12xf32>
    %442 = vector.multi_reduction <maximumf>, %441, %cst_232 [2] : vector<2x12x12xf32> to vector<2x12xf32>
    %443 = vector.shape_cast %442 : vector<2x12xf32> to vector<2x12x1xf32>
    %444 = vector.broadcast %443 : vector<2x12x1xf32> to vector<2x12x12xf32>
    %445 = arith.subf %441, %444 : vector<2x12x12xf32>
    %446 = math.exp %445 : vector<2x12x12xf32>
    %cst_233 = arith.constant dense<0.000000e+00> : vector<2x12xf32>
    %447 = vector.multi_reduction <add>, %446, %cst_233 [2] : vector<2x12x12xf32> to vector<2x12xf32>
    %448 = vector.shape_cast %447 : vector<2x12xf32> to vector<2x12x1xf32>
    %449 = tpu.reciprocal %448 {approx = true} : vector<2x12x1xf32> -> vector<2x12x1xf32>
    %450 = vector.broadcast %449 : vector<2x12x1xf32> to vector<2x12x12xf32>
    %451 = arith.mulf %446, %450 : vector<2x12x12xf32>
    %452 = arith.truncf %451 : vector<2x12x12xf32> to vector<2x12x12xbf16>
    %453 = vector.extract_strided_slice %400 {offsets = [0, 0, 16], sizes = [2, 12, 8], strides = [1, 1, 1]} : vector<2x12x32xbf16> to vector<2x12x8xbf16>
    "tpu.trace_start"() <{level = 10 : i32, message = "bqk,bkd->bqd"}> : () -> ()
    %cst_234 = arith.constant dense<0.000000e+00> : vector<2x12x8xf32>
    %454 = tpu.matmul %452, %453, %cst_234 {dimension_numbers = #tpu.dot_dimension_numbers<[2], [1], [1], [2], [0, 0, 0, 1, 1, 2], [0], [0]>} : vector<2x12x12xbf16>, vector<2x12x8xbf16>, vector<2x12x8xf32> -> vector<2x12x8xf32>
    "tpu.trace_stop"() : () -> ()
    %455 = vector.extract_strided_slice %396 {offsets = [0, 0, 24], sizes = [2, 12, 8], strides = [1, 1, 1]} : vector<2x12x32xbf16> to vector<2x12x8xbf16>
    %456 = vector.extract_strided_slice %398 {offsets = [0, 0, 24], sizes = [2, 12, 8], strides = [1, 1, 1]} : vector<2x12x32xbf16> to vector<2x12x8xbf16>
    "tpu.trace_start"() <{level = 10 : i32, message = "bqd,bkd->bqk"}> : () -> ()
    %cst_235 = arith.constant dense<0.000000e+00> : vector<2x12x12xf32>
    %457 = tpu.matmul %455, %456, %cst_235 {dimension_numbers = #tpu.dot_dimension_numbers<[2], [2], [1], [1], [0, 0, 0, 1, 1, 1], [0], [0]>} : vector<2x12x8xbf16>, vector<2x12x8xbf16>, vector<2x12x12xf32> -> vector<2x12x12xf32>
    "tpu.trace_stop"() : () -> ()
    %cst_236 = arith.constant 0.353553385 : f32
    %458 = vector.broadcast %cst_236 : f32 to vector<2x12x12xf32>
    %459 = arith.mulf %457, %458 : vector<2x12x12xf32>
    %cst_237 = arith.constant dense<0xFF800000> : vector<2x12xf32>
    %460 = vector.multi_reduction <maximumf>, %459, %cst_237 [2] : vector<2x12x12xf32> to vector<2x12xf32>
    %461 = vector.shape_cast %460 : vector<2x12xf32> to vector<2x12x1xf32>
    %462 = vector.broadcast %461 : vector<2x12x1xf32> to vector<2x12x12xf32>
    %463 = arith.subf %459, %462 : vector<2x12x12xf32>
    %464 = math.exp %463 : vector<2x12x12xf32>
    %cst_238 = arith.constant dense<0.000000e+00> : vector<2x12xf32>
    %465 = vector.multi_reduction <add>, %464, %cst_238 [2] : vector<2x12x12xf32> to vector<2x12xf32>
    %466 = vector.shape_cast %465 : vector<2x12xf32> to vector<2x12x1xf32>
    %467 = tpu.reciprocal %466 {approx = true} : vector<2x12x1xf32> -> vector<2x12x1xf32>
    %468 = vector.broadcast %467 : vector<2x12x1xf32> to vector<2x12x12xf32>
    %469 = arith.mulf %464, %468 : vector<2x12x12xf32>
    %470 = arith.truncf %469 : vector<2x12x12xf32> to vector<2x12x12xbf16>
    %471 = vector.extract_strided_slice %400 {offsets = [0, 0, 24], sizes = [2, 12, 8], strides = [1, 1, 1]} : vector<2x12x32xbf16> to vector<2x12x8xbf16>
    "tpu.trace_start"() <{level = 10 : i32, message = "bqk,bkd->bqd"}> : () -> ()
    %cst_239 = arith.constant dense<0.000000e+00> : vector<2x12x8xf32>
    %472 = tpu.matmul %470, %471, %cst_239 {dimension_numbers = #tpu.dot_dimension_numbers<[2], [1], [1], [2], [0, 0, 0, 1, 1, 2], [0], [0]>} : vector<2x12x12xbf16>, vector<2x12x8xbf16>, vector<2x12x8xf32> -> vector<2x12x8xf32>
    "tpu.trace_stop"() : () -> ()
    %473 = tpu.concatenate %418, %436, %454, %472 in 2 : vector<2x12x8xf32>, vector<2x12x8xf32>, vector<2x12x8xf32>, vector<2x12x8xf32> -> vector<2x12x32xf32>
    %474 = vector.shape_cast %473 : vector<2x12x32xf32> to vector<24x32xf32>
    %475 = arith.truncf %474 : vector<24x32xf32> to vector<24x32xbf16>
    %cst_240 = arith.constant dense<0.000000e+00> : vector<24x32xf32>
    %476 = tpu.matmul %475, %370, %cst_240 {dimension_numbers = #tpu.dot_dimension_numbers<[1], [0], [0], [1], [0, 0, 1, 1], [], []>} : vector<24x32xbf16>, vector<32x32xbf16>, vector<24x32xf32> -> vector<24x32xf32>
    %477 = vector.broadcast %372 : vector<1x32xf32> to vector<24x32xf32>
    %478 = arith.addf %476, %477 : vector<24x32xf32>
    %479 = arith.addf %389, %478 : vector<24x32xf32>
    %cst_241 = arith.constant dense<0.000000e+00> : vector<24xf32>
    %480 = vector.multi_reduction <add>, %479, %cst_241 [1] : vector<24x32xf32> to vector<24xf32>
    %481 = vector.shape_cast %480 : vector<24xf32> to vector<24x1xf32>
    %cst_242 = arith.constant 3.200000e+01 : f32
    %482 = vector.broadcast %cst_242 : f32 to vector<24x1xf32>
    %483 = arith.divf %481, %482 : vector<24x1xf32>
    %484 = vector.broadcast %483 : vector<24x1xf32> to vector<24x32xf32>
    %485 = arith.subf %479, %484 : vector<24x32xf32>
    %486 = arith.mulf %485, %485 : vector<24x32xf32>
    %cst_243 = arith.constant dense<0.000000e+00> : vector<24xf32>
    %487 = vector.multi_reduction <add>, %486, %cst_243 [1] : vector<24x32xf32> to vector<24xf32>
    %488 = vector.shape_cast %487 : vector<24xf32> to vector<24x1xf32>
    %cst_244 = arith.constant 3.200000e+01 : f32
    %489 = vector.broadcast %cst_244 : f32 to vector<24x1xf32>
    %490 = arith.divf %488, %489 : vector<24x1xf32>
    %491 = vector.broadcast %483 : vector<24x1xf32> to vector<24x32xf32>
    %492 = arith.subf %479, %491 : vector<24x32xf32>
    %cst_245 = arith.constant 9.99999974E-6 : f32
    %493 = vector.broadcast %cst_245 : f32 to vector<24x1xf32>
    %494 = arith.addf %490, %493 : vector<24x1xf32>
    %495 = math.rsqrt %494 : vector<24x1xf32>
    %496 = vector.broadcast %495 : vector<24x1xf32> to vector<24x32xf32>
    %497 = arith.mulf %492, %496 : vector<24x32xf32>
    %498 = vector.broadcast %374 : vector<1x32xf32> to vector<24x32xf32>
    %499 = arith.mulf %497, %498 : vector<24x32xf32>
    %500 = vector.broadcast %376 : vector<1x32xf32> to vector<24x32xf32>
    %501 = arith.addf %499, %500 : vector<24x32xf32>
    %502 = arith.truncf %501 : vector<24x32xf32> to vector<24x32xbf16>
    %cst_246 = arith.constant dense<0.000000e+00> : vector<24x2048xf32>
    %503 = tpu.matmul %502, %378, %cst_246 {dimension_numbers = #tpu.dot_dimension_numbers<[1], [0], [0], [1], [0, 0, 1, 1], [], []>} : vector<24x32xbf16>, vector<32x2048xbf16>, vector<24x2048xf32> -> vector<24x2048xf32>
    %504 = vector.broadcast %380 : vector<1x2048xf32> to vector<24x2048xf32>
    %505 = arith.addf %503, %504 : vector<24x2048xf32>
    %cst_247 = arith.constant 0.000000e+00 : f32
    %506 = vector.broadcast %cst_247 : f32 to vector<24x2048xf32>
    %507 = arith.maximumf %505, %506 : vector<24x2048xf32>
    %508 = arith.truncf %507 : vector<24x2048xf32> to vector<24x2048xbf16>
    %cst_248 = arith.constant dense<0.000000e+00> : vector<24x32xf32>
    %509 = tpu.matmul %508, %382, %cst_248 {dimension_numbers = #tpu.dot_dimension_numbers<[1], [0], [0], [1], [0, 0, 1, 1], [], []>} : vector<24x2048xbf16>, vector<2048x32xbf16>, vector<24x32xf32> -> vector<24x32xf32>
    %510 = vector.broadcast %384 : vector<1x32xf32> to vector<24x32xf32>
    %511 = arith.addf %509, %510 : vector<24x32xf32>
    %512 = arith.addf %501, %511 : vector<24x32xf32>
    %cst_249 = arith.constant dense<0.000000e+00> : vector<24xf32>
    %513 = vector.multi_reduction <add>, %512, %cst_249 [1] : vector<24x32xf32> to vector<24xf32>
    %514 = vector.shape_cast %513 : vector<24xf32> to vector<24x1xf32>
    %cst_250 = arith.constant 3.200000e+01 : f32
    %515 = vector.broadcast %cst_250 : f32 to vector<24x1xf32>
    %516 = arith.divf %514, %515 : vector<24x1xf32>
    %517 = vector.broadcast %516 : vector<24x1xf32> to vector<24x32xf32>
    %518 = arith.subf %512, %517 : vector<24x32xf32>
    %519 = arith.mulf %518, %518 : vector<24x32xf32>
    %cst_251 = arith.constant dense<0.000000e+00> : vector<24xf32>
    %520 = vector.multi_reduction <add>, %519, %cst_251 [1] : vector<24x32xf32> to vector<24xf32>
    %521 = vector.shape_cast %520 : vector<24xf32> to vector<24x1xf32>
    %cst_252 = arith.constant 3.200000e+01 : f32
    %522 = vector.broadcast %cst_252 : f32 to vector<24x1xf32>
    %523 = arith.divf %521, %522 : vector<24x1xf32>
    %524 = vector.broadcast %516 : vector<24x1xf32> to vector<24x32xf32>
    %525 = arith.subf %512, %524 : vector<24x32xf32>
    %cst_253 = arith.constant 9.99999974E-6 : f32
    %526 = vector.broadcast %cst_253 : f32 to vector<24x1xf32>
    %527 = arith.addf %523, %526 : vector<24x1xf32>
    %528 = math.rsqrt %527 : vector<24x1xf32>
    %529 = vector.broadcast %528 : vector<24x1xf32> to vector<24x32xf32>
    %530 = arith.mulf %525, %529 : vector<24x32xf32>
    %531 = vector.broadcast %386 : vector<1x32xf32> to vector<24x32xf32>
    %532 = arith.mulf %530, %531 : vector<24x32xf32>
    %533 = vector.broadcast %388 : vector<1x32xf32> to vector<24x32xf32>
    %534 = arith.addf %532, %533 : vector<24x32xf32>
    %535 = vector.shape_cast %534 : vector<24x32xf32> to vector<2x12x32xf32>
    %c1_254 = arith.constant 1 : index
    %c1_255 = arith.constant 1 : index
    %c0_256 = arith.constant 0 : index
    %c0_257 = arith.constant 0 : index
    %536 = vector.load %arg3[%c1_254, %c1_255, %c0_256, %c0_257] : memref<2x2x32x96xbf16, #tpu.memory_space<vmem>>, vector<1x1x32x96xbf16>
    %537 = vector.shape_cast %536 : vector<1x1x32x96xbf16> to vector<32x96xbf16>
    %c1_258 = arith.constant 1 : index
    %c1_259 = arith.constant 1 : index
    %c0_260 = arith.constant 0 : index
    %c0_261 = arith.constant 0 : index
    %538 = vector.load %arg4[%c1_258, %c1_259, %c0_260, %c0_261] : memref<2x2x1x96xf32, #tpu.memory_space<vmem>>, vector<1x1x1x96xf32>
    %539 = vector.shape_cast %538 : vector<1x1x1x96xf32> to vector<1x96xf32>
    %c1_262 = arith.constant 1 : index
    %c1_263 = arith.constant 1 : index
    %c0_264 = arith.constant 0 : index
    %c0_265 = arith.constant 0 : index
    %540 = vector.load %arg5[%c1_262, %c1_263, %c0_264, %c0_265] : memref<2x2x32x32xbf16, #tpu.memory_space<vmem>>, vector<1x1x32x32xbf16>
    %541 = vector.shape_cast %540 : vector<1x1x32x32xbf16> to vector<32x32xbf16>
    %c1_266 = arith.constant 1 : index
    %c1_267 = arith.constant 1 : index
    %c0_268 = arith.constant 0 : index
    %c0_269 = arith.constant 0 : index
    %542 = vector.load %arg6[%c1_266, %c1_267, %c0_268, %c0_269] : memref<2x2x1x32xf32, #tpu.memory_space<vmem>>, vector<1x1x1x32xf32>
    %543 = vector.shape_cast %542 : vector<1x1x1x32xf32> to vector<1x32xf32>
    %c1_270 = arith.constant 1 : index
    %c1_271 = arith.constant 1 : index
    %c0_272 = arith.constant 0 : index
    %c0_273 = arith.constant 0 : index
    %544 = vector.load %arg7[%c1_270, %c1_271, %c0_272, %c0_273] : memref<2x2x1x32xf32, #tpu.memory_space<vmem>>, vector<1x1x1x32xf32>
    %545 = vector.shape_cast %544 : vector<1x1x1x32xf32> to vector<1x32xf32>
    %c1_274 = arith.constant 1 : index
    %c1_275 = arith.constant 1 : index
    %c0_276 = arith.constant 0 : index
    %c0_277 = arith.constant 0 : index
    %546 = vector.load %arg8[%c1_274, %c1_275, %c0_276, %c0_277] : memref<2x2x1x32xf32, #tpu.memory_space<vmem>>, vector<1x1x1x32xf32>
    %547 = vector.shape_cast %546 : vector<1x1x1x32xf32> to vector<1x32xf32>
    %c1_278 = arith.constant 1 : index
    %c1_279 = arith.constant 1 : index
    %c0_280 = arith.constant 0 : index
    %c0_281 = arith.constant 0 : index
    %548 = vector.load %arg9[%c1_278, %c1_279, %c0_280, %c0_281] : memref<2x2x32x2048xbf16, #tpu.memory_space<vmem>>, vector<1x1x32x2048xbf16>
    %549 = vector.shape_cast %548 : vector<1x1x32x2048xbf16> to vector<32x2048xbf16>
    %c1_282 = arith.constant 1 : index
    %c1_283 = arith.constant 1 : index
    %c0_284 = arith.constant 0 : index
    %c0_285 = arith.constant 0 : index
    %550 = vector.load %arg10[%c1_282, %c1_283, %c0_284, %c0_285] : memref<2x2x1x2048xf32, #tpu.memory_space<vmem>>, vector<1x1x1x2048xf32>
    %551 = vector.shape_cast %550 : vector<1x1x1x2048xf32> to vector<1x2048xf32>
    %c1_286 = arith.constant 1 : index
    %c1_287 = arith.constant 1 : index
    %c0_288 = arith.constant 0 : index
    %c0_289 = arith.constant 0 : index
    %552 = vector.load %arg11[%c1_286, %c1_287, %c0_288, %c0_289] : memref<2x2x2048x32xbf16, #tpu.memory_space<vmem>>, vector<1x1x2048x32xbf16>
    %553 = vector.shape_cast %552 : vector<1x1x2048x32xbf16> to vector<2048x32xbf16>
    %c1_290 = arith.constant 1 : index
    %c1_291 = arith.constant 1 : index
    %c0_292 = arith.constant 0 : index
    %c0_293 = arith.constant 0 : index
    %554 = vector.load %arg12[%c1_290, %c1_291, %c0_292, %c0_293] : memref<2x2x1x32xf32, #tpu.memory_space<vmem>>, vector<1x1x1x32xf32>
    %555 = vector.shape_cast %554 : vector<1x1x1x32xf32> to vector<1x32xf32>
    %c1_294 = arith.constant 1 : index
    %c1_295 = arith.constant 1 : index
    %c0_296 = arith.constant 0 : index
    %c0_297 = arith.constant 0 : index
    %556 = vector.load %arg13[%c1_294, %c1_295, %c0_296, %c0_297] : memref<2x2x1x32xf32, #tpu.memory_space<vmem>>, vector<1x1x1x32xf32>
    %557 = vector.shape_cast %556 : vector<1x1x1x32xf32> to vector<1x32xf32>
    %c1_298 = arith.constant 1 : index
    %c1_299 = arith.constant 1 : index
    %c0_300 = arith.constant 0 : index
    %c0_301 = arith.constant 0 : index
    %558 = vector.load %arg14[%c1_298, %c1_299, %c0_300, %c0_301] : memref<2x2x1x32xf32, #tpu.memory_space<vmem>>, vector<1x1x1x32xf32>
    %559 = vector.shape_cast %558 : vector<1x1x1x32xf32> to vector<1x32xf32>
    %560 = vector.shape_cast %364 : vector<2x12x32xf32> to vector<24x32xf32>
    %561 = arith.truncf %560 : vector<24x32xf32> to vector<24x32xbf16>
    %cst_302 = arith.constant dense<0.000000e+00> : vector<24x96xf32>
    %562 = tpu.matmul %561, %537, %cst_302 {dimension_numbers = #tpu.dot_dimension_numbers<[1], [0], [0], [1], [0, 0, 1, 1], [], []>} : vector<24x32xbf16>, vector<32x96xbf16>, vector<24x96xf32> -> vector<24x96xf32>
    %563 = vector.broadcast %539 : vector<1x96xf32> to vector<24x96xf32>
    %564 = arith.addf %562, %563 : vector<24x96xf32>
    %565 = arith.truncf %564 : vector<24x96xf32> to vector<24x96xbf16>
    %566 = vector.extract_strided_slice %565 {offsets = [0, 0], sizes = [24, 32], strides = [1, 1]} : vector<24x96xbf16> to vector<24x32xbf16>
    %567 = vector.shape_cast %566 : vector<24x32xbf16> to vector<2x12x32xbf16>
    %568 = vector.extract_strided_slice %565 {offsets = [0, 32], sizes = [24, 32], strides = [1, 1]} : vector<24x96xbf16> to vector<24x32xbf16>
    %569 = vector.shape_cast %568 : vector<24x32xbf16> to vector<2x12x32xbf16>
    %570 = vector.extract_strided_slice %565 {offsets = [0, 64], sizes = [24, 32], strides = [1, 1]} : vector<24x96xbf16> to vector<24x32xbf16>
    %571 = vector.shape_cast %570 : vector<24x32xbf16> to vector<2x12x32xbf16>
    %572 = vector.extract_strided_slice %567 {offsets = [0, 0, 0], sizes = [2, 12, 8], strides = [1, 1, 1]} : vector<2x12x32xbf16> to vector<2x12x8xbf16>
    %573 = vector.extract_strided_slice %569 {offsets = [0, 0, 0], sizes = [2, 12, 8], strides = [1, 1, 1]} : vector<2x12x32xbf16> to vector<2x12x8xbf16>
    "tpu.trace_start"() <{level = 10 : i32, message = "bqd,bkd->bqk"}> : () -> ()
    %cst_303 = arith.constant dense<0.000000e+00> : vector<2x12x12xf32>
    %574 = tpu.matmul %572, %573, %cst_303 {dimension_numbers = #tpu.dot_dimension_numbers<[2], [2], [1], [1], [0, 0, 0, 1, 1, 1], [0], [0]>} : vector<2x12x8xbf16>, vector<2x12x8xbf16>, vector<2x12x12xf32> -> vector<2x12x12xf32>
    "tpu.trace_stop"() : () -> ()
    %cst_304 = arith.constant 0.353553385 : f32
    %575 = vector.broadcast %cst_304 : f32 to vector<2x12x12xf32>
    %576 = arith.mulf %574, %575 : vector<2x12x12xf32>
    %cst_305 = arith.constant dense<0xFF800000> : vector<2x12xf32>
    %577 = vector.multi_reduction <maximumf>, %576, %cst_305 [2] : vector<2x12x12xf32> to vector<2x12xf32>
    %578 = vector.shape_cast %577 : vector<2x12xf32> to vector<2x12x1xf32>
    %579 = vector.broadcast %578 : vector<2x12x1xf32> to vector<2x12x12xf32>
    %580 = arith.subf %576, %579 : vector<2x12x12xf32>
    %581 = math.exp %580 : vector<2x12x12xf32>
    %cst_306 = arith.constant dense<0.000000e+00> : vector<2x12xf32>
    %582 = vector.multi_reduction <add>, %581, %cst_306 [2] : vector<2x12x12xf32> to vector<2x12xf32>
    %583 = vector.shape_cast %582 : vector<2x12xf32> to vector<2x12x1xf32>
    %584 = tpu.reciprocal %583 {approx = true} : vector<2x12x1xf32> -> vector<2x12x1xf32>
    %585 = vector.broadcast %584 : vector<2x12x1xf32> to vector<2x12x12xf32>
    %586 = arith.mulf %581, %585 : vector<2x12x12xf32>
    %587 = arith.truncf %586 : vector<2x12x12xf32> to vector<2x12x12xbf16>
    %588 = vector.extract_strided_slice %571 {offsets = [0, 0, 0], sizes = [2, 12, 8], strides = [1, 1, 1]} : vector<2x12x32xbf16> to vector<2x12x8xbf16>
    "tpu.trace_start"() <{level = 10 : i32, message = "bqk,bkd->bqd"}> : () -> ()
    %cst_307 = arith.constant dense<0.000000e+00> : vector<2x12x8xf32>
    %589 = tpu.matmul %587, %588, %cst_307 {dimension_numbers = #tpu.dot_dimension_numbers<[2], [1], [1], [2], [0, 0, 0, 1, 1, 2], [0], [0]>} : vector<2x12x12xbf16>, vector<2x12x8xbf16>, vector<2x12x8xf32> -> vector<2x12x8xf32>
    "tpu.trace_stop"() : () -> ()
    %590 = vector.extract_strided_slice %567 {offsets = [0, 0, 8], sizes = [2, 12, 8], strides = [1, 1, 1]} : vector<2x12x32xbf16> to vector<2x12x8xbf16>
    %591 = vector.extract_strided_slice %569 {offsets = [0, 0, 8], sizes = [2, 12, 8], strides = [1, 1, 1]} : vector<2x12x32xbf16> to vector<2x12x8xbf16>
    "tpu.trace_start"() <{level = 10 : i32, message = "bqd,bkd->bqk"}> : () -> ()
    %cst_308 = arith.constant dense<0.000000e+00> : vector<2x12x12xf32>
    %592 = tpu.matmul %590, %591, %cst_308 {dimension_numbers = #tpu.dot_dimension_numbers<[2], [2], [1], [1], [0, 0, 0, 1, 1, 1], [0], [0]>} : vector<2x12x8xbf16>, vector<2x12x8xbf16>, vector<2x12x12xf32> -> vector<2x12x12xf32>
    "tpu.trace_stop"() : () -> ()
    %cst_309 = arith.constant 0.353553385 : f32
    %593 = vector.broadcast %cst_309 : f32 to vector<2x12x12xf32>
    %594 = arith.mulf %592, %593 : vector<2x12x12xf32>
    %cst_310 = arith.constant dense<0xFF800000> : vector<2x12xf32>
    %595 = vector.multi_reduction <maximumf>, %594, %cst_310 [2] : vector<2x12x12xf32> to vector<2x12xf32>
    %596 = vector.shape_cast %595 : vector<2x12xf32> to vector<2x12x1xf32>
    %597 = vector.broadcast %596 : vector<2x12x1xf32> to vector<2x12x12xf32>
    %598 = arith.subf %594, %597 : vector<2x12x12xf32>
    %599 = math.exp %598 : vector<2x12x12xf32>
    %cst_311 = arith.constant dense<0.000000e+00> : vector<2x12xf32>
    %600 = vector.multi_reduction <add>, %599, %cst_311 [2] : vector<2x12x12xf32> to vector<2x12xf32>
    %601 = vector.shape_cast %600 : vector<2x12xf32> to vector<2x12x1xf32>
    %602 = tpu.reciprocal %601 {approx = true} : vector<2x12x1xf32> -> vector<2x12x1xf32>
    %603 = vector.broadcast %602 : vector<2x12x1xf32> to vector<2x12x12xf32>
    %604 = arith.mulf %599, %603 : vector<2x12x12xf32>
    %605 = arith.truncf %604 : vector<2x12x12xf32> to vector<2x12x12xbf16>
    %606 = vector.extract_strided_slice %571 {offsets = [0, 0, 8], sizes = [2, 12, 8], strides = [1, 1, 1]} : vector<2x12x32xbf16> to vector<2x12x8xbf16>
    "tpu.trace_start"() <{level = 10 : i32, message = "bqk,bkd->bqd"}> : () -> ()
    %cst_312 = arith.constant dense<0.000000e+00> : vector<2x12x8xf32>
    %607 = tpu.matmul %605, %606, %cst_312 {dimension_numbers = #tpu.dot_dimension_numbers<[2], [1], [1], [2], [0, 0, 0, 1, 1, 2], [0], [0]>} : vector<2x12x12xbf16>, vector<2x12x8xbf16>, vector<2x12x8xf32> -> vector<2x12x8xf32>
    "tpu.trace_stop"() : () -> ()
    %608 = vector.extract_strided_slice %567 {offsets = [0, 0, 16], sizes = [2, 12, 8], strides = [1, 1, 1]} : vector<2x12x32xbf16> to vector<2x12x8xbf16>
    %609 = vector.extract_strided_slice %569 {offsets = [0, 0, 16], sizes = [2, 12, 8], strides = [1, 1, 1]} : vector<2x12x32xbf16> to vector<2x12x8xbf16>
    "tpu.trace_start"() <{level = 10 : i32, message = "bqd,bkd->bqk"}> : () -> ()
    %cst_313 = arith.constant dense<0.000000e+00> : vector<2x12x12xf32>
    %610 = tpu.matmul %608, %609, %cst_313 {dimension_numbers = #tpu.dot_dimension_numbers<[2], [2], [1], [1], [0, 0, 0, 1, 1, 1], [0], [0]>} : vector<2x12x8xbf16>, vector<2x12x8xbf16>, vector<2x12x12xf32> -> vector<2x12x12xf32>
    "tpu.trace_stop"() : () -> ()
    %cst_314 = arith.constant 0.353553385 : f32
    %611 = vector.broadcast %cst_314 : f32 to vector<2x12x12xf32>
    %612 = arith.mulf %610, %611 : vector<2x12x12xf32>
    %cst_315 = arith.constant dense<0xFF800000> : vector<2x12xf32>
    %613 = vector.multi_reduction <maximumf>, %612, %cst_315 [2] : vector<2x12x12xf32> to vector<2x12xf32>
    %614 = vector.shape_cast %613 : vector<2x12xf32> to vector<2x12x1xf32>
    %615 = vector.broadcast %614 : vector<2x12x1xf32> to vector<2x12x12xf32>
    %616 = arith.subf %612, %615 : vector<2x12x12xf32>
    %617 = math.exp %616 : vector<2x12x12xf32>
    %cst_316 = arith.constant dense<0.000000e+00> : vector<2x12xf32>
    %618 = vector.multi_reduction <add>, %617, %cst_316 [2] : vector<2x12x12xf32> to vector<2x12xf32>
    %619 = vector.shape_cast %618 : vector<2x12xf32> to vector<2x12x1xf32>
    %620 = tpu.reciprocal %619 {approx = true} : vector<2x12x1xf32> -> vector<2x12x1xf32>
    %621 = vector.broadcast %620 : vector<2x12x1xf32> to vector<2x12x12xf32>
    %622 = arith.mulf %617, %621 : vector<2x12x12xf32>
    %623 = arith.truncf %622 : vector<2x12x12xf32> to vector<2x12x12xbf16>
    %624 = vector.extract_strided_slice %571 {offsets = [0, 0, 16], sizes = [2, 12, 8], strides = [1, 1, 1]} : vector<2x12x32xbf16> to vector<2x12x8xbf16>
    "tpu.trace_start"() <{level = 10 : i32, message = "bqk,bkd->bqd"}> : () -> ()
    %cst_317 = arith.constant dense<0.000000e+00> : vector<2x12x8xf32>
    %625 = tpu.matmul %623, %624, %cst_317 {dimension_numbers = #tpu.dot_dimension_numbers<[2], [1], [1], [2], [0, 0, 0, 1, 1, 2], [0], [0]>} : vector<2x12x12xbf16>, vector<2x12x8xbf16>, vector<2x12x8xf32> -> vector<2x12x8xf32>
    "tpu.trace_stop"() : () -> ()
    %626 = vector.extract_strided_slice %567 {offsets = [0, 0, 24], sizes = [2, 12, 8], strides = [1, 1, 1]} : vector<2x12x32xbf16> to vector<2x12x8xbf16>
    %627 = vector.extract_strided_slice %569 {offsets = [0, 0, 24], sizes = [2, 12, 8], strides = [1, 1, 1]} : vector<2x12x32xbf16> to vector<2x12x8xbf16>
    "tpu.trace_start"() <{level = 10 : i32, message = "bqd,bkd->bqk"}> : () -> ()
    %cst_318 = arith.constant dense<0.000000e+00> : vector<2x12x12xf32>
    %628 = tpu.matmul %626, %627, %cst_318 {dimension_numbers = #tpu.dot_dimension_numbers<[2], [2], [1], [1], [0, 0, 0, 1, 1, 1], [0], [0]>} : vector<2x12x8xbf16>, vector<2x12x8xbf16>, vector<2x12x12xf32> -> vector<2x12x12xf32>
    "tpu.trace_stop"() : () -> ()
    %cst_319 = arith.constant 0.353553385 : f32
    %629 = vector.broadcast %cst_319 : f32 to vector<2x12x12xf32>
    %630 = arith.mulf %628, %629 : vector<2x12x12xf32>
    %cst_320 = arith.constant dense<0xFF800000> : vector<2x12xf32>
    %631 = vector.multi_reduction <maximumf>, %630, %cst_320 [2] : vector<2x12x12xf32> to vector<2x12xf32>
    %632 = vector.shape_cast %631 : vector<2x12xf32> to vector<2x12x1xf32>
    %633 = vector.broadcast %632 : vector<2x12x1xf32> to vector<2x12x12xf32>
    %634 = arith.subf %630, %633 : vector<2x12x12xf32>
    %635 = math.exp %634 : vector<2x12x12xf32>
    %cst_321 = arith.constant dense<0.000000e+00> : vector<2x12xf32>
    %636 = vector.multi_reduction <add>, %635, %cst_321 [2] : vector<2x12x12xf32> to vector<2x12xf32>
    %637 = vector.shape_cast %636 : vector<2x12xf32> to vector<2x12x1xf32>
    %638 = tpu.reciprocal %637 {approx = true} : vector<2x12x1xf32> -> vector<2x12x1xf32>
    %639 = vector.broadcast %638 : vector<2x12x1xf32> to vector<2x12x12xf32>
    %640 = arith.mulf %635, %639 : vector<2x12x12xf32>
    %641 = arith.truncf %640 : vector<2x12x12xf32> to vector<2x12x12xbf16>
    %642 = vector.extract_strided_slice %571 {offsets = [0, 0, 24], sizes = [2, 12, 8], strides = [1, 1, 1]} : vector<2x12x32xbf16> to vector<2x12x8xbf16>
    "tpu.trace_start"() <{level = 10 : i32, message = "bqk,bkd->bqd"}> : () -> ()
    %cst_322 = arith.constant dense<0.000000e+00> : vector<2x12x8xf32>
    %643 = tpu.matmul %641, %642, %cst_322 {dimension_numbers = #tpu.dot_dimension_numbers<[2], [1], [1], [2], [0, 0, 0, 1, 1, 2], [0], [0]>} : vector<2x12x12xbf16>, vector<2x12x8xbf16>, vector<2x12x8xf32> -> vector<2x12x8xf32>
    "tpu.trace_stop"() : () -> ()
    %644 = tpu.concatenate %589, %607, %625, %643 in 2 : vector<2x12x8xf32>, vector<2x12x8xf32>, vector<2x12x8xf32>, vector<2x12x8xf32> -> vector<2x12x32xf32>
    %645 = vector.shape_cast %644 : vector<2x12x32xf32> to vector<24x32xf32>
    %646 = arith.truncf %645 : vector<24x32xf32> to vector<24x32xbf16>
    %cst_323 = arith.constant dense<0.000000e+00> : vector<24x32xf32>
    %647 = tpu.matmul %646, %541, %cst_323 {dimension_numbers = #tpu.dot_dimension_numbers<[1], [0], [0], [1], [0, 0, 1, 1], [], []>} : vector<24x32xbf16>, vector<32x32xbf16>, vector<24x32xf32> -> vector<24x32xf32>
    %648 = vector.broadcast %543 : vector<1x32xf32> to vector<24x32xf32>
    %649 = arith.addf %647, %648 : vector<24x32xf32>
    %650 = arith.addf %560, %649 : vector<24x32xf32>
    %cst_324 = arith.constant dense<0.000000e+00> : vector<24xf32>
    %651 = vector.multi_reduction <add>, %650, %cst_324 [1] : vector<24x32xf32> to vector<24xf32>
    %652 = vector.shape_cast %651 : vector<24xf32> to vector<24x1xf32>
    %cst_325 = arith.constant 3.200000e+01 : f32
    %653 = vector.broadcast %cst_325 : f32 to vector<24x1xf32>
    %654 = arith.divf %652, %653 : vector<24x1xf32>
    %655 = vector.broadcast %654 : vector<24x1xf32> to vector<24x32xf32>
    %656 = arith.subf %650, %655 : vector<24x32xf32>
    %657 = arith.mulf %656, %656 : vector<24x32xf32>
    %cst_326 = arith.constant dense<0.000000e+00> : vector<24xf32>
    %658 = vector.multi_reduction <add>, %657, %cst_326 [1] : vector<24x32xf32> to vector<24xf32>
    %659 = vector.shape_cast %658 : vector<24xf32> to vector<24x1xf32>
    %cst_327 = arith.constant 3.200000e+01 : f32
    %660 = vector.broadcast %cst_327 : f32 to vector<24x1xf32>
    %661 = arith.divf %659, %660 : vector<24x1xf32>
    %662 = vector.broadcast %654 : vector<24x1xf32> to vector<24x32xf32>
    %663 = arith.subf %650, %662 : vector<24x32xf32>
    %cst_328 = arith.constant 9.99999974E-6 : f32
    %664 = vector.broadcast %cst_328 : f32 to vector<24x1xf32>
    %665 = arith.addf %661, %664 : vector<24x1xf32>
    %666 = math.rsqrt %665 : vector<24x1xf32>
    %667 = vector.broadcast %666 : vector<24x1xf32> to vector<24x32xf32>
    %668 = arith.mulf %663, %667 : vector<24x32xf32>
    %669 = vector.broadcast %545 : vector<1x32xf32> to vector<24x32xf32>
    %670 = arith.mulf %668, %669 : vector<24x32xf32>
    %671 = vector.broadcast %547 : vector<1x32xf32> to vector<24x32xf32>
    %672 = arith.addf %670, %671 : vector<24x32xf32>
    %673 = arith.truncf %672 : vector<24x32xf32> to vector<24x32xbf16>
    %cst_329 = arith.constant dense<0.000000e+00> : vector<24x2048xf32>
    %674 = tpu.matmul %673, %549, %cst_329 {dimension_numbers = #tpu.dot_dimension_numbers<[1], [0], [0], [1], [0, 0, 1, 1], [], []>} : vector<24x32xbf16>, vector<32x2048xbf16>, vector<24x2048xf32> -> vector<24x2048xf32>
    %675 = vector.broadcast %551 : vector<1x2048xf32> to vector<24x2048xf32>
    %676 = arith.addf %674, %675 : vector<24x2048xf32>
    %cst_330 = arith.constant 0.000000e+00 : f32
    %677 = vector.broadcast %cst_330 : f32 to vector<24x2048xf32>
    %678 = arith.maximumf %676, %677 : vector<24x2048xf32>
    %679 = arith.truncf %678 : vector<24x2048xf32> to vector<24x2048xbf16>
    %cst_331 = arith.constant dense<0.000000e+00> : vector<24x32xf32>
    %680 = tpu.matmul %679, %553, %cst_331 {dimension_numbers = #tpu.dot_dimension_numbers<[1], [0], [0], [1], [0, 0, 1, 1], [], []>} : vector<24x2048xbf16>, vector<2048x32xbf16>, vector<24x32xf32> -> vector<24x32xf32>
    %681 = vector.broadcast %555 : vector<1x32xf32> to vector<24x32xf32>
    %682 = arith.addf %680, %681 : vector<24x32xf32>
    %683 = arith.addf %672, %682 : vector<24x32xf32>
    %cst_332 = arith.constant dense<0.000000e+00> : vector<24xf32>
    %684 = vector.multi_reduction <add>, %683, %cst_332 [1] : vector<24x32xf32> to vector<24xf32>
    %685 = vector.shape_cast %684 : vector<24xf32> to vector<24x1xf32>
    %cst_333 = arith.constant 3.200000e+01 : f32
    %686 = vector.broadcast %cst_333 : f32 to vector<24x1xf32>
    %687 = arith.divf %685, %686 : vector<24x1xf32>
    %688 = vector.broadcast %687 : vector<24x1xf32> to vector<24x32xf32>
    %689 = arith.subf %683, %688 : vector<24x32xf32>
    %690 = arith.mulf %689, %689 : vector<24x32xf32>
    %cst_334 = arith.constant dense<0.000000e+00> : vector<24xf32>
    %691 = vector.multi_reduction <add>, %690, %cst_334 [1] : vector<24x32xf32> to vector<24xf32>
    %692 = vector.shape_cast %691 : vector<24xf32> to vector<24x1xf32>
    %cst_335 = arith.constant 3.200000e+01 : f32
    %693 = vector.broadcast %cst_335 : f32 to vector<24x1xf32>
    %694 = arith.divf %692, %693 : vector<24x1xf32>
    %695 = vector.broadcast %687 : vector<24x1xf32> to vector<24x32xf32>
    %696 = arith.subf %683, %695 : vector<24x32xf32>
    %cst_336 = arith.constant 9.99999974E-6 : f32
    %697 = vector.broadcast %cst_336 : f32 to vector<24x1xf32>
    %698 = arith.addf %694, %697 : vector<24x1xf32>
    %699 = math.rsqrt %698 : vector<24x1xf32>
    %700 = vector.broadcast %699 : vector<24x1xf32> to vector<24x32xf32>
    %701 = arith.mulf %696, %700 : vector<24x32xf32>
    %702 = vector.broadcast %557 : vector<1x32xf32> to vector<24x32xf32>
    %703 = arith.mulf %701, %702 : vector<24x32xf32>
    %704 = vector.broadcast %559 : vector<1x32xf32> to vector<24x32xf32>
    %705 = arith.addf %703, %704 : vector<24x32xf32>
    %706 = vector.shape_cast %705 : vector<24x32xf32> to vector<2x12x32xf32>
    %707 = arith.addf %535, %706 : vector<2x12x32xf32>
    %cst_337 = arith.constant 5.000000e-01 : f32
    %708 = vector.broadcast %cst_337 : f32 to vector<2x12x32xf32>
    %709 = arith.mulf %707, %708 : vector<2x12x32xf32>
    %710 = vector.broadcast %9 : vector<1x12x32xf32> to vector<2x12x32xf32>
    %711 = arith.mulf %535, %710 : vector<2x12x32xf32>
    %712 = vector.broadcast %7 : vector<1x12x32xf32> to vector<2x12x32xf32>
    %713 = arith.mulf %709, %712 : vector<2x12x32xf32>
    %714 = arith.addf %711, %713 : vector<2x12x32xf32>
    %715 = vector.broadcast %9 : vector<1x12x32xf32> to vector<2x12x32xf32>
    %716 = arith.mulf %706, %715 : vector<2x12x32xf32>
    %717 = vector.broadcast %7 : vector<1x12x32xf32> to vector<2x12x32xf32>
    %718 = arith.mulf %709, %717 : vector<2x12x32xf32>
    %719 = arith.addf %716, %718 : vector<2x12x32xf32>
    %720 = vector.extract_strided_slice %714 {offsets = [0, 0, 0], sizes = [2, 8, 32], strides = [1, 1, 1]} : vector<2x12x32xf32> to vector<2x8x32xf32>
    %c0_338 = arith.constant 0 : index
    %c0_339 = arith.constant 0 : index
    %c0_340 = arith.constant 0 : index
    %721 = vector.load %arg15[%c0_338, %c0_339, %c0_340] : memref<2x8x32xf32, #tpu.memory_space<vmem>>, vector<2x8x32xf32>
    tpu.vector_store %arg15[%c0_338, %c0_339, %c0_340], %720 {strides = array<i32>} : memref<2x8x32xf32, #tpu.memory_space<vmem>>, vector<2x8x32xf32>,
    %722 = vector.extract_strided_slice %719 {offsets = [0, 0, 0], sizes = [2, 8, 32], strides = [1, 1, 1]} : vector<2x12x32xf32> to vector<2x8x32xf32>
    %c0_341 = arith.constant 0 : index
    %c0_342 = arith.constant 0 : index
    %c0_343 = arith.constant 0 : index
    %723 = vector.load %arg16[%c0_341, %c0_342, %c0_343] : memref<2x8x32xf32, #tpu.memory_space<vmem>>, vector<2x8x32xf32>
    tpu.vector_store %arg16[%c0_341, %c0_342, %c0_343], %722 {strides = array<i32>} : memref<2x8x32xf32, #tpu.memory_space<vmem>>, vector<2x8x32xf32>,
    return
  }
  func.func @transform_0(%arg0: i32) -> (i32, i32, i32) {
    %c0_i32 = arith.constant 0 : i32
    %c0_i32_0 = arith.constant 0 : i32
    %c0_i32_1 = arith.constant 0 : i32
    return %arg0, %c0_i32, %c0_i32_0 : i32, i32, i32
  }
  func.func @transform_1(%arg0: i32) -> (i32, i32, i32) {
    %c0_i32 = arith.constant 0 : i32
    %c0_i32_0 = arith.constant 0 : i32
    %c0_i32_1 = arith.constant 0 : i32
    return %arg0, %c0_i32, %c0_i32_0 : i32, i32, i32
  }
  func.func @transform_2(%arg0: i32) -> (i32, i32, i32, i32) {
    %c0_i32 = arith.constant 0 : i32
    %c0_i32_0 = arith.constant 0 : i32
    %c0_i32_1 = arith.constant 0 : i32
    %c0_i32_2 = arith.constant 0 : i32
    %c0_i32_3 = arith.constant 0 : i32
    return %c0_i32, %c0_i32_0, %c0_i32_1, %c0_i32_2 : i32, i32, i32, i32
  }
  func.func @transform_3(%arg0: i32) -> (i32, i32, i32, i32) {
    %c0_i32 = arith.constant 0 : i32
    %c0_i32_0 = arith.constant 0 : i32
    %c0_i32_1 = arith.constant 0 : i32
    %c0_i32_2 = arith.constant 0 : i32
    %c0_i32_3 = arith.constant 0 : i32
    return %c0_i32, %c0_i32_0, %c0_i32_1, %c0_i32_2 : i32, i32, i32, i32
  }
  func.func @transform_4(%arg0: i32) -> (i32, i32, i32, i32) {
    %c0_i32 = arith.constant 0 : i32
    %c0_i32_0 = arith.constant 0 : i32
    %c0_i32_1 = arith.constant 0 : i32
    %c0_i32_2 = arith.constant 0 : i32
    %c0_i32_3 = arith.constant 0 : i32
    return %c0_i32, %c0_i32_0, %c0_i32_1, %c0_i32_2 : i32, i32, i32, i32
  }
  func.func @transform_5(%arg0: i32) -> (i32, i32, i32, i32) {
    %c0_i32 = arith.constant 0 : i32
    %c0_i32_0 = arith.constant 0 : i32
    %c0_i32_1 = arith.constant 0 : i32
    %c0_i32_2 = arith.constant 0 : i32
    %c0_i32_3 = arith.constant 0 : i32
    return %c0_i32, %c0_i32_0, %c0_i32_1, %c0_i32_2 : i32, i32, i32, i32
  }
  func.func @transform_6(%arg0: i32) -> (i32, i32, i32, i32) {
    %c0_i32 = arith.constant 0 : i32
    %c0_i32_0 = arith.constant 0 : i32
    %c0_i32_1 = arith.constant 0 : i32
    %c0_i32_2 = arith.constant 0 : i32
    %c0_i32_3 = arith.constant 0 : i32
    return %c0_i32, %c0_i32_0, %c0_i32_1, %c0_i32_2 : i32, i32, i32, i32
  }
  func.func @transform_7(%arg0: i32) -> (i32, i32, i32, i32) {
    %c0_i32 = arith.constant 0 : i32
    %c0_i32_0 = arith.constant 0 : i32
    %c0_i32_1 = arith.constant 0 : i32
    %c0_i32_2 = arith.constant 0 : i32
    %c0_i32_3 = arith.constant 0 : i32
    return %c0_i32, %c0_i32_0, %c0_i32_1, %c0_i32_2 : i32, i32, i32, i32
  }
  func.func @transform_8(%arg0: i32) -> (i32, i32, i32, i32) {
    %c0_i32 = arith.constant 0 : i32
    %c0_i32_0 = arith.constant 0 : i32
    %c0_i32_1 = arith.constant 0 : i32
    %c0_i32_2 = arith.constant 0 : i32
    %c0_i32_3 = arith.constant 0 : i32
    return %c0_i32, %c0_i32_0, %c0_i32_1, %c0_i32_2 : i32, i32, i32, i32
  }
  func.func @transform_9(%arg0: i32) -> (i32, i32, i32, i32) {
    %c0_i32 = arith.constant 0 : i32
    %c0_i32_0 = arith.constant 0 : i32
    %c0_i32_1 = arith.constant 0 : i32
    %c0_i32_2 = arith.constant 0 : i32
    %c0_i32_3 = arith.constant 0 : i32
    return %c0_i32, %c0_i32_0, %c0_i32_1, %c0_i32_2 : i32, i32, i32, i32
  }
  func.func @transform_10(%arg0: i32) -> (i32, i32, i32, i32) {
    %c0_i32 = arith.constant 0 : i32
    %c0_i32_0 = arith.constant 0 : i32
    %c0_i32_1 = arith.constant 0 : i32
    %c0_i32_2 = arith.constant 0 : i32
    %c0_i32_3 = arith.constant 0 : i32
    return %c0_i32, %c0_i32_0, %c0_i32_1, %c0_i32_2 : i32, i32, i32, i32
  }
  func.func @transform_11(%arg0: i32) -> (i32, i32, i32, i32) {
    %c0_i32 = arith.constant 0 : i32
    %c0_i32_0 = arith.constant 0 : i32
    %c0_i32_1 = arith.constant 0 : i32
    %c0_i32_2 = arith.constant 0 : i32
    %c0_i32_3 = arith.constant 0 : i32
    return %c0_i32, %c0_i32_0, %c0_i32_1, %c0_i32_2 : i32, i32, i32, i32
  }
  func.func @transform_12(%arg0: i32) -> (i32, i32, i32, i32) {
    %c0_i32 = arith.constant 0 : i32
    %c0_i32_0 = arith.constant 0 : i32
    %c0_i32_1 = arith.constant 0 : i32
    %c0_i32_2 = arith.constant 0 : i32
    %c0_i32_3 = arith.constant 0 : i32
    return %c0_i32, %c0_i32_0, %c0_i32_1, %c0_i32_2 : i32, i32, i32, i32
  }
  func.func @transform_13(%arg0: i32) -> (i32, i32, i32, i32) {
    %c0_i32 = arith.constant 0 : i32
    %c0_i32_0 = arith.constant 0 : i32
    %c0_i32_1 = arith.constant 0 : i32
    %c0_i32_2 = arith.constant 0 : i32
    %c0_i32_3 = arith.constant 0 : i32
    return %c0_i32, %c0_i32_0, %c0_i32_1, %c0_i32_2 : i32, i32, i32, i32
  }
  func.func @transform_14(%arg0: i32) -> (i32, i32, i32) {
    %c0_i32 = arith.constant 0 : i32
    %c0_i32_0 = arith.constant 0 : i32
    %c0_i32_1 = arith.constant 0 : i32
    return %arg0, %c0_i32, %c0_i32_0 : i32, i32, i32
  }
  func.func @transform_15(%arg0: i32) -> (i32, i32, i32) {
    %c0_i32 = arith.constant 0 : i32
    %c0_i32_0 = arith.constant 0 : i32
    %c0_i32_1 = arith.constant 0 : i32
    return %arg0, %c0_i32, %c0_i32_0 : i32, i32, i32
  }
}

</mosaic_0001>

<bundles_post_ra>
// kernel: tpu_custom_call.1
= control target key start
LH: loop header
LB: loop body
LE: loop exit
PB: predicated region body
PF: predicated region fallthrough
CT: control target
= control target key end

     0   :  { %s25666_s0 = inlined_call_operand.vmem [shape: f32[4,12,32], index: 0, kind: input, shape index: {}]   ;;  %s25667_s1 = inlined_call_operand.vmem [shape: f32[4,12,32], index: 1, kind: input, shape index: {}]   ;;  %s25668_s2 = inlined_call_operand.vmem [shape: bf16[2,2,32,96], index: 2, kind: input, shape index: {}]   ;;  %s25669_s3 = inlined_call_operand.vmem [shape: f32[2,2,1,96], index: 3, kind: input, shape index: {}]   ;;  %s25670_s4 = inlined_call_operand.vmem [shape: bf16[2,2,32,32], index: 4, kind: input, shape index: {}]   ;;  %s25671_s5 = inlined_call_operand.vmem [shape: f32[2,2,1,32], index: 5, kind: input, shape index: {}]   ;;  %s25672_s6 = inlined_call_operand.vmem [shape: f32[2,2,1,32], index: 6, kind: input, shape index: {}]   ;;  %s25673_s7 = inlined_call_operand.vmem [shape: f32[2,2,1,32], index: 7, kind: input, shape index: {}]   ;;  %s25674_s8 = inlined_call_operand.vmem [shape: bf16[2,2,32,2048], index: 8, kind: input, shape index: {}]   ;;  %s25675_s9 = inlined_call_operand.vmem [shape: f32[2,2,1,2048], index: 9, kind: input, shape index: {}]   ;;  %s25676_s10 = inlined_call_operand.vmem [shape: bf16[2,2,2048,32], index: 10, kind: input, shape index: {}]   ;;  %s25677_s11 = inlined_call_operand.vmem [shape: f32[2,2,1,32], index: 11, kind: input, shape index: {}]   ;;  %s25678_s12 = inlined_call_operand.vmem [shape: f32[2,2,1,32], index: 12, kind: input, shape index: {}]   ;;  %s25679_s13 = inlined_call_operand.vmem [shape: f32[2,2,1,32], index: 13, kind: input, shape index: {}]   ;;  %s25680_s14 = inlined_call_operand.hbm [shape: f32[4,8,32], index: 14, kind: output, shape index: {0}]   ;;  %s25681_s15 = inlined_call_operand.hbm [shape: f32[4,8,32], index: 15, kind: output, shape index: {1}]  }
   0x1   :  { %25752 = sst [smem:[#allocation26_spill]] %s25666_s0 }
   0x2   :  { %25753 = sst [smem:[#allocation27_spill]] %s25667_s1 }
   0x3   :  { %25754 = sst [smem:[#allocation28_spill]] %s25670_s4 }
   0x4   :  { %25755 = sst [smem:[#allocation29_spill]] %s25671_s5 }
   0x5   :  { %25756 = sst [smem:[#allocation30_spill]] %s25672_s6 }
   0x6   :  { %25757 = sst [smem:[#allocation31_spill]] %s25673_s7 }
   0x7   :  { %25758 = sst [smem:[#allocation32_spill]] %s25678_s12 }
   0x8   :  { %25759 = sst [smem:[#allocation33_spill]] %s25679_s13 }
   0x9   :  { %25760 = sst [smem:[#allocation34_spill]] %s25680_s14 }
   0xa   :  { %25761 = sst [smem:[#allocation35_spill]] %s25681_s15 }
   0xb   :  { %21 = vsyncpa [#allocation3], 0 }
   0xc   :  { %23 = vsyncpa [#allocation3 + $0x1], 0 }
   0xd   :  { %24 = vsyncpa [#allocation5], 0 }
   0xe   :  { %26 = vsyncpa [#allocation5 + $0x1], 0  ;;  %s20970_s18 = smov 0   ;;  %s20972_s19 = smov 0  }
   0xf   :  { %s20974_s20 = smov 0   ;;  %s20976_s21 = smov 0  }
  0x10 LB: > { %25762 = sst [smem:[#allocation8_spill]] %s20852_s18  ;;  %s20991_s22 = sadd.s32 4294967295, %s20864_s21   ;;  %s20864_s21 = sphi %s20976_s21, %s25835_s21   ;;  %s20860_s20 = sphi %s20974_s20, %s25838_s20   ;;  %s20856_s19 = sphi %s20972_s19, %s25837_s19   ;;  %s20852_s18 = sphi %s20970_s18, %s25836_s18  }
  0x11   : > { %25763 = sst [smem:[#allocation9_spill]] %s20856_s19  ;;  %s16587_s23 = sadd.s32 4294967294, %s20864_s21  }
  0x12   : > { %25764 = sst [smem:[#allocation10_spill]] %s20860_s20  ;;  %s20995_s24 = sadd.s32 1, %s20864_s21  }
  0x13   : > { %25765 = sst [smem:[#allocation11_spill]] %s20864_s21  ;;  %s343_s25 = sadd.s32 1, %s20860_s20 }
  0x14   : > { %25766 = sst [smem:[#allocation12_spill]] %s20991_s22  ;;  %s340_s26 = ssub.s32 %s20864_s21, %s20995_s24 }
  0x15   : > { %25767 = sst [smem:[#allocation13_spill]] %s20995_s24  ;;  %p353_p0 = scmp.ne.s32.totalorder %s20860_s20, %s20856_s19 }
  0x16   : > { %p341_p1 = scmp.eq.s32.totalorder %s340_s26, 0  ;;  %p354_p2 = scmp.eq.s32.totalorder %s20991_s22, 1 }
  0x17   : > { %p359_p3 = scmp.ne.s32.totalorder %s20856_s19, %s20852_s18  ;;  %p360_p4 = scmp.eq.s32.totalorder %s16587_s23, 1 }
  0x18   : > { %s21006_s27 = scalar_select %p341_p1, %s20860_s20, %s343_s25  }
  0x19   : > { %p21008_p5 = por %p354_p2, %p353_p0  ;;  %p21012_p6 = por %p360_p4, %p359_p3 }
  0x1a   : > { %25768 = sst [smem:[#allocation14_spill]] %s21006_s27  ;;  %p16590_p7 = scmp.ge.s32.totalorder %s20864_s21, 1 }
  0x1b   : > { %s25769_s28 = scalar_select %p21008_p5, 1, 0 }
  0x1c   : > { %s25771_s29 = scalar_select %p21012_p6, 1, 0 }
  0x1d   : > { %25770 = sst [smem:[#allocation15_spill]] %s25769_s28  ;;  %p460_p8 = scmp.lt.s32.totalorder %s20864_s21, 3 }
  0x1e   : > { %25772 = sst [smem:[#allocation16_spill]] %s25771_s29 }
  0x1f   : > { %p461_p9 = pnand %p16590_p7, %p460_p8 }
  0x21   : > { %464 = sbr.rel (%p461_p9) target bundleno = 15469 (0x3c6d), region = 76 }
  0x26   : > { %v19928_v0 = vld [vmem:[%s25668_s2 + $0x8] sm:$0xff]   ;;  %s16593_s17 = sshll.u32 %s20991_s22, 1  ;;  %v19929_v1 = vld [vmem:[%s25668_s2] sm:$0xff]   ;;  %s25773_s0 = sld [smem:[#allocation26_spill]]  ;;  %vm895_vm0 = vcmask 261120   ;;  %v958_v13 = vlaneseq  ;;  %v25730_v26 = vmov 0.0  }
  0x27   : > { %p521_p10 = scmp.lt.s32.totalorder %s16593_s17, 3  ;;  %19414 = vmatprep.subr.bf16.mxu0 %v19928_v0  ;;  %v16599_v16 = vld [vmem:[%s25669_s3] ss:$0 sm:$0xff]  ;;  %v20866_v17 = vmov 1983009808   ;;  %19422 = vmatprep.subr.bf16.mxu1 %v25730_v26  ;;  %vm20868_vm1 = vmmov 0  }
  0x28   : > { %19415 = vmatpush3.bf16.msra.mxu0 %v19928_v0  ;;  %v21047_v14 = vshrl.u32 %v958_v13, 7  ;;  %v956_v18 = vunpack.c.l.s4 %v20866_v17  ;;  %19424 = vmatprep.mubr.msk.bf16.mxu1 %vm20868_vm1, %v25730_v26  ;;  %s25707_s16 = smov 96   ;;  %vm997_vm2 = vcmask 64512   ;;  %vm1114_vm3 = vcmask 97280   ;;  %s25705_s23 = smov 64  }
  0x29   : > { %s25840_s17 = smov (!%p521_p10, %s16593_s17), 3  ;;  %19416 = vmatprep.subr.bf16.mxu0 %v19929_v1  ;;  %vm1118_vm4 = vcmask 93184   ;;  %s25685_s25 = smov 88   ;;  %vm1167_vm5 = vcmask 1045504   ;;  %vm2063_vm6 = vcmask 130048   ;;  %vm2068_vm7 = vcmask 195584  }
  0x2a   : > { %s25711_s26 = sshll.u32 %s25840_s17, 4  ;;  %v957_v22 = vunpack.c.0.s8 %v956_v18  ;;  %s25683_s20 = smov 120  }
  0x2b   : > { %s25691_s27 = smov 56   ;;  %s25774_s4 = sld [smem:[#allocation28_spill]] }
  0x2c   : > { %s21033_s30 = scalar_lea.vmem %s25773_s0, %s25711_s26  ;;  %19417 = vmatpush3.bf16.msra.mxu0 %v19929_v1  ;;  %v21055_v28 = vsub.s32 %v957_v22, %v21047_v14  ;;  %s25775_s5 = sld [smem:[#allocation29_spill]] }
  0x2d   : > { %v537_v2 = vld [vmem:[%s21033_s30] sm:$0xff]  ;;  %v538_v3 = vld [vmem:[%s21033_s30 + $0x8] sm:$0xf]  ;;  %v539_v4 = vld [vmem:[%s21033_s30 + $0x10] sm:$0xff]  ;;  %19428 = vmatprep.subr.bf16.mxu0 %v25730_v26  ;;  %s25776_s6 = sld [smem:[#allocation30_spill]]  ;;  %s25788_s24 = smov 64  }
  0x2e   : > { %v21038_v5 = vcombine.high %v537_v2, %v537_v2  ;;  %v21040_v6 = vcombine.high %v539_v4, %v539_v4  ;;  %v870_v7 = vcombine.low %v538_v3, %v539_v4  ;;  %v540_v8 = vld [vmem:[%s21033_s30 + $0x18] sm:$0xf]  ;;  %s25777_s7 = sld [smem:[#allocation31_spill]]  ;;  %s25789_s29 = smov 88  }
  0x2f   : > { %s25786_s1 = sld [smem:[#allocation27_spill]]  ;;  %s25794_s0 = smov 48  }
  0x30   : > { %v869_v9 = vcombine.low %v537_v2, %v21038_v5  ;;  %v871_v10 = vcombine.low %v21040_v6, %v540_v8  ;;  %s25798_s18 = smov 8   ;;  %s25799_s21 = smov 16  }
  0x31   : > { %s25800_s19 = smov 24   ;;  %s25802_s12 = sld [smem:[#allocation32_spill]] }
  0x32   : > { %v875_v11 = vpack.c.bf16 %v870_v7, %v869_v9  ;;  %v876_v12 = vpack.c.bf16 %v871_v10, %v871_v10  ;;  %s25803_s13 = sld [smem:[#allocation33_spill]]  ;;  %s25808_s28 = smov 24  }
  0x33   : > { %s25810_s15 = sld [smem:[#allocation30_spill]] }
  0x34   : > { %19418 = vmatprep.mubr.msk.bf16.mxu0 %vm895_vm0, %v875_v11  ;;  %s25827_s14 = sld [smem:[#allocation12_spill]] }
  0x35   : > { %19419 = vmatmul.mubr.msk.bf16.vlgmr.msra.gmra.mxu0 %vm895_vm0, %v876_v12 }
  0x36   : > { %19430 = vmatprep.mubr.msk.bf16.mxu0 %vm20868_vm1, %v25730_v26 }
  0xf5   : > { %v19420_v15 = vpop.f32.mrf.mxu0 }
  0xf6   : > { %v945_v21 = vadd.f32 %v19420_v15, %v16599_v16 }
  0xf7   : > { %v936_v19 = vpop.f32.mrf.mxu0 }
  0xf8   : > { %v937_v24 = vadd.f32 %v16599_v16, %v936_v19  ;;  %v951_v27 = vpack.c.bf16 %v945_v21, %v945_v21 }
  0xf9   : > { %v19421_v20 = vpop.f32.mrf.mxu0 }
  0xfa   : > { %v977_v33 = vrot.slane %v951_v27, %v21055_v28 }
  0xfb   : > { %v939_v23 = vpop.f32.mrf.mxu0 }
  0xfc   : > { %v940_v25 = vadd.f32 %v16599_v16, %v939_v23  ;;  %v978_v38 = vcombine.high %v977_v33, %v977_v33 }
  0xfe   : > { %v950_v29 = vpack.c.bf16 %v940_v25, %v937_v24  ;;  %v16604_v30 = vpack.c.bf16 %v940_v25, %v940_v25  ;;  %v1059_v43 = vrot.slane %v978_v38, %v21055_v28 }
 0x100   : > { %v961_v31 = vrot.slane %v950_v29, %v21055_v28  ;;  %v968_v32 = vrot.slane %v16604_v30, %v21055_v28 }
 0x102   : > { %v969_v34 = vcombine.high %v961_v31, %v961_v31  ;;  %v970_v35 = vcombine.high %v968_v32, %v968_v32  ;;  %v993_v40 = vrot.slane %v968_v32, %v21055_v28 }
 0x104   : > { %v979_v36 = vcombine.low %v961_v31, %v969_v34  ;;  %v1045_v37 = vcombine.low %v970_v35, %v977_v33 }
 0x106   : > { %v986_v39 = vrot.slane %v979_v36, %v21055_v28  ;;  %v1052_v42 = vrot.slane %v1045_v37, %v21055_v28 }
 0x108   : > { %v21066_v41 = vcombine.low %v986_v39, %v993_v40  ;;  %v21072_v44 = vcombine.low %v1052_v42, %v1059_v43 }
 0x10a   : > { %995 = vrot.lane.b32.xlu0 %v21066_v41, %s25707_s16 }
 0x10e   : > { %1061 = vrot.lane.b32.xlu0 %v21072_v44, %s25707_s16  ;;  %s25709_s16 = smov 24  }
 0x17c   : > { %v996_v45 = vpop.permute.xlu0 %995 }
 0x17d   : > { %v1002_v46 = vsel %vm997_vm2, %v996_v45, 0 }
 0x17e   : > { %19423 = vmatpush3.bf16.xpose.msra.mxu1 %v1002_v46 }
 0x17f   : > { %19434 = vmatprep.subr.bf16.mxu1 %v25730_v26 }
 0x180   : > { %v1062_v47 = vpop.permute.xlu0 %1061 }
 0x181   : > { %v1067_v48 = vsel %vm997_vm2, %v1062_v47, 0 }
 0x182   : > { %19429 = vmatpush3.bf16.xpose.msra.mxu0 %v1067_v48 }
 0x183   : > { %19440 = vmatprep.subr.bf16.mxu0 %v25730_v26 }
 0x185   : > { %19425 = vmatmul.mubr.msk.bf16.vlgmr.msra.gmra.mxu1 %vm997_vm2, %v21066_v41 }
 0x186   : > { %19436 = vmatprep.mubr.msk.bf16.mxu1 %vm20868_vm1, %v25730_v26 }
 0x189   : > { %19431 = vmatmul.mubr.msk.bf16.vlgmr.msra.gmra.mxu0 %vm997_vm2, %v21072_v44 }
 0x18a   : > { %19442 = vmatprep.mubr.msk.bf16.mxu0 %vm20868_vm1, %v25730_v26 }
 0x245   : > { %v1038_v49 = vpop.f32.mrf.mxu1 }
 0x246   : > { %v1110_v50 = vmul.f32 0.35355338, %v1038_v49 }
 0x247   : > { %v19426_v51 = vpop.f32.mrf.mxu1 }
 0x248   : > { %v1115_v52 = vsel %vm1114_vm3, %v1110_v50, -inf }
 0x249   : > { %1116 = vmax.xlane.f32.xlu1 %v1115_v52  ;;  %v1041_v53 = vpop.f32.mrf.mxu1  ;;  %v1103_v54 = vpop.f32.mrf.mxu0 }
 0x24a   : > { %v1111_v55 = vmul.f32 0.35355338, %v1041_v53  ;;  %v1112_v56 = vmul.f32 0.35355338, %v1103_v54 }
 0x24b   : > { %v19427_v57 = vpop.f32.mrf.mxu1  ;;  %v19432_v58 = vpop.f32.mrf.mxu0 }
 0x24c   : > { %v1119_v59 = vsel %vm1118_vm4, %v1111_v55, -inf  ;;  %v1122_v60 = vsel %vm1114_vm3, %v1112_v56, -inf }
 0x24d   : > { %1120 = vmax.xlane.f32.xlu1 %v1119_v59  ;;  %1123 = vmax.xlane.f32.xlu0 %v1122_v60  ;;  %v1106_v61 = vpop.f32.mrf.mxu0 }
 0x24e   : > { %v1113_v62 = vmul.f32 0.35355338, %v1106_v61 }
 0x24f   : > { %v19433_v63 = vpop.f32.mrf.mxu0 }
 0x250   : > { %v1125_v0 = vsel %vm1118_vm4, %v1113_v62, -inf }
 0x251   : > { %1126 = vmax.xlane.f32.xlu1 %v1125_v0 }
 0x262   : > { %1162 = vrot.lane.b32.xlu1 %v21066_v41, %s25705_s23 }
 0x263   : > { %1212 = vrot.lane.b32.xlu0 %v21072_v44, %s25705_s23  ;;  %s25791_s23 = smov 56  }
 0x266   : > { %1263 = vrot.lane.b32.xlu1 %v21066_v41, %s25685_s25 }
 0x26a   : > { %1314 = vrot.lane.b32.xlu1 %v21072_v44, %s25685_s25  ;;  %s25687_s25 = smov 112  }
 0x2d2   : > { %v1117_v1 = vpop.xlane.xlu1 %1116 }
 0x2d3   : > { %v1128_v2 = vsub.f32 %v1110_v50, %v1117_v1 }
 0x2d5   : > { %v1132_v3 = vmul.f32 1.442695, %v1128_v2 }
 0x2d6   : > { %v1121_v4 = vpop.xlane.xlu1 %1120  ;;  %v1124_v7 = vpop.xlane.xlu0 %1123 }
 0x2d7   : > { %20462 = vpow2.f32 %v1132_v3  ;;  %v1129_v8 = vsub.f32 %v1111_v55, %v1121_v4  ;;  %v1130_v9 = vsub.f32 %v1112_v56, %v1124_v7 }
 0x2d9   : > { %v1136_v10 = vmul.f32 1.442695, %v1130_v9  ;;  %v1134_v11 = vmul.f32 1.442695, %v1129_v8 }
 0x2da   : > { %v1213_v12 = vpop.permute.xlu0 %1212  ;;  %v1127_v13 = vpop.xlane.xlu1 %1126 }
 0x2db   : > { %v1218_v15 = vsel %vm1167_vm5, %v1213_v12, 0  ;;  %v1131_v16 = vsub.f32 %v1113_v62, %v1127_v13  ;;  %20464 = vpow2.f32 %v1136_v10 }
 0x2dc   : > { %19441 = vmatpush3.bf16.msra.mxu0 %v1218_v15  ;;  %20466 = vpow2.f32 %v1134_v11 }
 0x2dd   : > { %19452 = vmatprep.subr.bf16.mxu0 %v25730_v26  ;;  %v1138_v17 = vmul.f32 1.442695, %v1131_v16 }
 0x2de   : > { %v1163_v18 = vpop.permute.xlu1 %1162 }
 0x2df   : > { %v1169_v19 = vsel %vm1167_vm5, %v1163_v18, 0  ;;  %20468 = vpow2.f32 %v1138_v17 }
 0x2e0   : > { %19435 = vmatpush3.bf16.msra.mxu1 %v1169_v19 }
 0x2e1   : > { %19446 = vmatprep.subr.bf16.mxu1 %v25730_v26 }
 0x2e2   : > { %v1264_v30 = vpop.permute.xlu1 %1263 }
 0x2e3   : > { %v1269_v45 = vsel %vm997_vm2, %v1264_v30, 0 }
 0x2e4   : > { %v20463_v20 = vpop.eup %20462 }
 0x2e5   : > { %v1140_v21 = vsel %vm1114_vm3, %v20463_v20, 0.0 }
 0x2e6   : > { %1141 = vadd.xlane.f32.xlu1 %v1140_v21  ;;  %v1315_v31 = vpop.permute.xlu1 %1314 }
 0x2e7   : > { %v1320_v49 = vsel %vm997_vm2, %v1315_v31, 0 }
 0x2e8   : > { %v20465_v22 = vpop.eup %20464 }
 0x2e9   : > { %v1146_v23 = vsel %vm1114_vm3, %v20465_v22, 0.0  ;;  %v20467_v24 = vpop.eup %20466 }
 0x2ea   : > { %1147 = vadd.xlane.f32.xlu1 %v1146_v23  ;;  %v1143_v25 = vsel %vm1118_vm4, %v20467_v24, 0.0 }
 0x2ec   : > { %v20469_v27 = vpop.eup %20468 }
 0x2ed   : > { %v1149_v29 = vsel %vm1118_vm4, %v20469_v27, 0.0 }
 0x2ee   : > { %1144 = vadd.xlane.f32.xlu1 %v1143_v25 }
 0x2f2   : > { %1150 = vadd.xlane.f32.xlu1 %v1149_v29 }
 0x303   : > { %1261 = vrot.lane.b32.xlu1 %v21066_v41, %s25683_s20 }
 0x307   : > { %1312 = vrot.lane.b32.xlu1 %v21072_v44, %s25683_s20  ;;  %s25689_s20 = smov 80  }
 0x36f   : > { %v1142_v32 = vpop.xlane.xlu1 %1141 }
 0x370   : > { %20470 = vrcp.f32 %v1142_v32 }
 0x373   : > { %v1148_v33 = vpop.xlane.xlu1 %1147 }
 0x377   : > { %v1145_v34 = vpop.xlane.xlu1 %1144 }
 0x378   : > { %20472 = vrcp.f32 %v1145_v34 }
 0x379   : > { %20474 = vrcp.f32 %v1148_v33 }
 0x37b   : > { %v1151_v35 = vpop.xlane.xlu1 %1150 }
 0x37c   : > { %20476 = vrcp.f32 %v1151_v35 }
 0x37d   : > { %v20471_v36 = vpop.eup %20470 }
 0x37e   : > { %v1156_v38 = vmul.f32 %v20471_v36, %v20463_v20 }
 0x37f   : > { %v1262_v50 = vpop.permute.xlu1 %1261 }
 0x383   : > { %v1313_v51 = vpop.permute.xlu1 %1312 }
 0x385   : > { %v20473_v37 = vpop.eup %20472 }
 0x386   : > { %v1157_v39 = vmul.f32 %v20473_v37, %v20467_v24  ;;  %v20475_v40 = vpop.eup %20474 }
 0x387   : > { %v1158_v46 = vmul.f32 %v20475_v40, %v20465_v22 }
 0x388   : > { %v1160_v42 = vpack.c.bf16 %v1157_v39, %v1156_v38 }
 0x389   : > { %v20477_v43 = vpop.eup %20476 }
 0x38a   : > { %19437 = vmatmul.mubr.msk.bf16.vlgmr.msra.gmra.mxu1 %vm1114_vm3, %v1160_v42  ;;  %v1159_v47 = vmul.f32 %v20477_v43, %v20469_v27 }
 0x38b   : > { %19447 = vmatpush3.bf16.xpose.msra.mxu1 %v1269_v45  ;;  %19448 = vmatprep.mubr.msk.bf16.mxu1 %vm20868_vm1, %v25730_v26 }
 0x38c   : > { %v1161_v48 = vpack.c.bf16 %v1159_v47, %v1158_v46  ;;  %19458 = vmatprep.subr.bf16.mxu1 %v25730_v26 }
 0x38e   : > { %19443 = vmatmul.mubr.msk.bf16.vlgmr.msra.gmra.mxu0 %vm1114_vm3, %v1161_v48 }
 0x38f   : > { %19453 = vmatpush3.bf16.xpose.msra.mxu0 %v1320_v49  ;;  %19454 = vmatprep.mubr.msk.bf16.mxu0 %vm20868_vm1, %v25730_v26 }
 0x390   : > { %19464 = vmatprep.subr.bf16.mxu0 %v25730_v26 }
 0x392   : > { %19449 = vmatmul.mubr.msk.bf16.vlgmr.msra.gmra.mxu1 %vm997_vm2, %v1262_v50 }
 0x393   : > { %19460 = vmatprep.mubr.msk.bf16.mxu1 %vm20868_vm1, %v25730_v26 }
 0x396   : > { %19455 = vmatmul.mubr.msk.bf16.vlgmr.msra.gmra.mxu0 %vm997_vm2, %v1313_v51 }
 0x397   : > { %19466 = vmatprep.mubr.msk.bf16.mxu0 %vm20868_vm1, %v25730_v26 }
 0x44a   : > { %v21128_v52 = vpop.f32.mrf.mxu1 }
 0x44c   : > { %v19438_v53 = vpop.f32.mrf.mxu1 }
 0x44e   : > { %v21130_v54 = vpop.f32.mrf.mxu1  ;;  %v21132_v55 = vpop.f32.mrf.mxu0 }
 0x450   : > { %v19439_v56 = vpop.f32.mrf.mxu1  ;;  %v19444_v57 = vpop.f32.mrf.mxu0 }
 0x452   : > { %v21134_v58 = vpop.f32.mrf.mxu0  ;;  %v1305_v59 = vpop.f32.mrf.mxu1 }
 0x453   : > { %v1363_v60 = vmul.f32 0.35355338, %v1305_v59 }
 0x454   : > { %v19445_v61 = vpop.f32.mrf.mxu0  ;;  %v19450_v62 = vpop.f32.mrf.mxu1 }
 0x455   : > { %v1367_v63 = vsel %vm1114_vm3, %v1363_v60, -inf }
 0x456   : > { %1368 = vmax.xlane.f32.xlu0 %v1367_v63  ;;  %v1308_v0 = vpop.f32.mrf.mxu1  ;;  %v1356_v1 = vpop.f32.mrf.mxu0 }
 0x457   : > { %v1364_v2 = vmul.f32 0.35355338, %v1308_v0  ;;  %v1365_v3 = vmul.f32 0.35355338, %v1356_v1 }
 0x458   : > { %v19451_v4 = vpop.f32.mrf.mxu1  ;;  %v19456_v7 = vpop.f32.mrf.mxu0 }
 0x459   : > { %v1370_v8 = vsel %vm1118_vm4, %v1364_v2, -inf  ;;  %v1373_v9 = vsel %vm1114_vm3, %v1365_v3, -inf }
 0x45a   : > { %1371 = vmax.xlane.f32.xlu1 %v1370_v8  ;;  %1374 = vmax.xlane.f32.xlu0 %v1373_v9  ;;  %v1359_v10 = vpop.f32.mrf.mxu0 }
 0x45b   : > { %v1366_v11 = vmul.f32 0.35355338, %v1359_v10 }
 0x45c   : > { %v19457_v12 = vpop.f32.mrf.mxu0 }
 0x45d   : > { %v1376_v13 = vsel %vm1118_vm4, %v1366_v11, -inf }
 0x45e   : > { %1377 = vmax.xlane.f32.xlu0 %v1376_v13 }
 0x46b   : > { %1413 = vrot.lane.b32.xlu1 %v21066_v41, %s25691_s27 }
 0x4df   : > { %v1369_v15 = vpop.xlane.xlu0 %1368 }
 0x4e0   : > { %v1379_v16 = vsub.f32 %v1363_v60, %v1369_v15 }
 0x4e2   : > { %v1383_v17 = vmul.f32 1.442695, %v1379_v16 }
 0x4e3   : > { %v1372_v18 = vpop.xlane.xlu1 %1371  ;;  %v1375_v19 = vpop.xlane.xlu0 %1374 }
 0x4e4   : > { %20478 = vpow2.f32 %v1383_v17  ;;  %v1380_v20 = vsub.f32 %v1364_v2, %v1372_v18  ;;  %v1381_v21 = vsub.f32 %v1365_v3, %v1375_v19 }
 0x4e6   : > { %v1385_v22 = vmul.f32 1.442695, %v1380_v20  ;;  %v1387_v23 = vmul.f32 1.442695, %v1381_v21 }
 0x4e7   : > { %v1414_v24 = vpop.permute.xlu1 %1413  ;;  %v1378_v25 = vpop.xlane.xlu0 %1377 }
 0x4e8   : > { %20480 = vpow2.f32 %v1385_v22  ;;  %v1419_v27 = vsel %vm1167_vm5, %v1414_v24, 0  ;;  %v1382_v29 = vsub.f32 %v1366_v11, %v1378_v25 }
 0x4e9   : > { %20482 = vpow2.f32 %v1387_v23  ;;  %19459 = vmatpush3.bf16.msra.mxu1 %v1419_v27 }
 0x4ea   : > { %v1389_v30 = vmul.f32 1.442695, %v1382_v29  ;;  %19470 = vmatprep.subr.bf16.mxu1 %v25730_v26 }
 0x4ec   : > { %20484 = vpow2.f32 %v1389_v30 }
 0x4f1   : > { %v20479_v31 = vpop.eup %20478 }
 0x4f2   : > { %v1391_v32 = vsel %vm1114_vm3, %v20479_v31, 0.0 }
 0x4f3   : > { %1392 = vadd.xlane.f32.xlu1 %v1391_v32 }
 0x4f5   : > { %v20481_v33 = vpop.eup %20480 }
 0x4f6   : > { %v20483_v34 = vpop.eup %20482  ;;  %v1394_v35 = vsel %vm1118_vm4, %v20481_v33, 0.0 }
 0x4f7   : > { %v1397_v36 = vsel %vm1114_vm3, %v20483_v34, 0.0  ;;  %1395 = vadd.xlane.f32.xlu0 %v1394_v35 }
 0x4f8   : > { %1398 = vadd.xlane.f32.xlu1 %v1397_v36 }
 0x4f9   : > { %v20485_v37 = vpop.eup %20484 }
 0x4fa   : > { %v1400_v38 = vsel %vm1118_vm4, %v20485_v37, 0.0 }
 0x4fb   : > { %1401 = vadd.xlane.f32.xlu0 %v1400_v38 }
 0x509   : > { %1513 = vrot.lane.b32.xlu1 %v21066_v41, %s25689_s20 }
 0x50d   : > { %1564 = vrot.lane.b32.xlu1 %v21072_v44, %s25689_s20  ;;  %s25695_s20 = smov 72  }
 0x511   : > { %1562 = vrot.lane.b32.xlu1 %v21072_v44, %s25687_s25  ;;  %1462 = vrot.lane.b32.xlu0 %v21072_v44, %s25691_s27  ;;  %s25693_s27 = smov 104  }
 0x515   : > { %1511 = vrot.lane.b32.xlu0 %v21066_v41, %s25687_s25  ;;  %s25697_s25 = smov 48  }
 0x57c   : > { %v1393_v39 = vpop.xlane.xlu1 %1392 }
 0x57d   : > { %20486 = vrcp.f32 %v1393_v39 }
 0x580   : > { %v1396_v40 = vpop.xlane.xlu0 %1395 }
 0x581   : > { %v1399_v42 = vpop.xlane.xlu1 %1398  ;;  %20488 = vrcp.f32 %v1396_v40 }
 0x582   : > { %20490 = vrcp.f32 %v1399_v42 }
 0x584   : > { %v1402_v43 = vpop.xlane.xlu0 %1401 }
 0x585   : > { %20492 = vrcp.f32 %v1402_v43  ;;  %v1514_v49 = vpop.permute.xlu1 %1513 }
 0x586   : > { %v1519_v59 = vsel %vm997_vm2, %v1514_v49, 0 }
 0x588   : > { %v1463_v45 = vpop.permute.xlu0 %1462 }
 0x589   : > { %v1468_v46 = vsel %vm1167_vm5, %v1463_v45, 0  ;;  %v1565_v62 = vpop.permute.xlu1 %1564 }
 0x58a   : > { %19465 = vmatpush3.bf16.msra.mxu0 %v1468_v46  ;;  %v20487_v47 = vpop.eup %20486  ;;  %v1570_v0 = vsel %vm997_vm2, %v1565_v62, 0 }
 0x58b   : > { %19476 = vmatprep.subr.bf16.mxu0 %v25730_v26  ;;  %v1407_v50 = vmul.f32 %v20487_v47, %v20479_v31 }
 0x58c   : > { %v1512_v1 = vpop.permute.xlu0 %1511 }
 0x58d   : > { %v1563_v2 = vpop.permute.xlu1 %1562 }
 0x58e   : > { %v20489_v48 = vpop.eup %20488 }
 0x58f   : > { %v1408_v51 = vmul.f32 %v20489_v48, %v20481_v33  ;;  %v20491_v53 = vpop.eup %20490 }
 0x590   : > { %v1409_v60 = vmul.f32 %v20491_v53, %v20483_v34 }
 0x591   : > { %v1411_v56 = vpack.c.bf16 %v1408_v51, %v1407_v50 }
 0x592   : > { %v20493_v57 = vpop.eup %20492 }
 0x593   : > { %19461 = vmatmul.mubr.msk.bf16.vlgmr.msra.gmra.mxu1 %vm1114_vm3, %v1411_v56  ;;  %v1410_v61 = vmul.f32 %v20493_v57, %v20485_v37 }
 0x594   : > { %19471 = vmatpush3.bf16.xpose.msra.mxu1 %v1519_v59  ;;  %19472 = vmatprep.mubr.msk.bf16.mxu1 %vm20868_vm1, %v25730_v26 }
 0x595   : > { %v1412_v63 = vpack.c.bf16 %v1410_v61, %v1409_v60  ;;  %19482 = vmatprep.subr.bf16.mxu1 %v25730_v26 }
 0x597   : > { %19467 = vmatmul.mubr.msk.bf16.vlgmr.msra.gmra.mxu0 %vm1114_vm3, %v1412_v63 }
 0x598   : > { %19477 = vmatpush3.bf16.xpose.msra.mxu0 %v1570_v0  ;;  %19478 = vmatprep.mubr.msk.bf16.mxu0 %vm20868_vm1, %v25730_v26 }
 0x599   : > { %19488 = vmatprep.subr.bf16.mxu0 %v25730_v26 }
 0x59b   : > { %19473 = vmatmul.mubr.msk.bf16.vlgmr.msra.gmra.mxu1 %vm997_vm2, %v1512_v1 }
 0x59c   : > { %19484 = vmatprep.mubr.msk.bf16.mxu1 %vm20868_vm1, %v25730_v26 }
 0x59f   : > { %19479 = vmatmul.mubr.msk.bf16.vlgmr.msra.gmra.mxu0 %vm997_vm2, %v1563_v2 }
 0x5a0   : > { %19490 = vmatprep.mubr.msk.bf16.mxu0 %vm20868_vm1, %v25730_v26 }
 0x653   : > { %v21176_v3 = vpop.f32.mrf.mxu1 }
 0x655   : > { %v19462_v4 = vpop.f32.mrf.mxu1 }
 0x657   : > { %v21178_v7 = vpop.f32.mrf.mxu1  ;;  %v21180_v8 = vpop.f32.mrf.mxu0 }
 0x659   : > { %v19463_v9 = vpop.f32.mrf.mxu1  ;;  %v19468_v10 = vpop.f32.mrf.mxu0 }
 0x65b   : > { %v21182_v11 = vpop.f32.mrf.mxu0  ;;  %v1555_v12 = vpop.f32.mrf.mxu1 }
 0x65c   : > { %v1613_v13 = vmul.f32 0.35355338, %v1555_v12 }
 0x65d   : > { %v19469_v15 = vpop.f32.mrf.mxu0  ;;  %v19474_v16 = vpop.f32.mrf.mxu1 }
 0x65e   : > { %v1617_v17 = vsel %vm1114_vm3, %v1613_v13, -inf }
 0x65f   : > { %1618 = vmax.xlane.f32.xlu0 %v1617_v17  ;;  %v1558_v18 = vpop.f32.mrf.mxu1  ;;  %v1606_v19 = vpop.f32.mrf.mxu0 }
 0x660   : > { %v1614_v20 = vmul.f32 0.35355338, %v1558_v18  ;;  %v1615_v21 = vmul.f32 0.35355338, %v1606_v19 }
 0x661   : > { %v19475_v22 = vpop.f32.mrf.mxu1  ;;  %v19480_v23 = vpop.f32.mrf.mxu0 }
 0x662   : > { %v1620_v24 = vsel %vm1118_vm4, %v1614_v20, -inf  ;;  %v1623_v25 = vsel %vm1114_vm3, %v1615_v21, -inf }
 0x663   : > { %1621 = vmax.xlane.f32.xlu1 %v1620_v24  ;;  %1624 = vmax.xlane.f32.xlu0 %v1623_v25  ;;  %v1609_v27 = vpop.f32.mrf.mxu0 }
 0x664   : > { %v1616_v29 = vmul.f32 0.35355338, %v1609_v27 }
 0x665   : > { %v19481_v30 = vpop.f32.mrf.mxu0 }
 0x666   : > { %v1626_v31 = vsel %vm1118_vm4, %v1616_v29, -inf }
 0x667   : > { %1627 = vmax.xlane.f32.xlu0 %v1626_v31 }
 0x674   : > { %1663 = vrot.lane.b32.xlu1 %v21066_v41, %s25697_s25 }
 0x6e8   : > { %v1619_v32 = vpop.xlane.xlu0 %1618 }
 0x6e9   : > { %v1629_v33 = vsub.f32 %v1613_v13, %v1619_v32 }
 0x6eb   : > { %v1633_v34 = vmul.f32 1.442695, %v1629_v33 }
 0x6ec   : > { %v1622_v35 = vpop.xlane.xlu1 %1621  ;;  %v1625_v36 = vpop.xlane.xlu0 %1624 }
 0x6ed   : > { %20494 = vpow2.f32 %v1633_v34  ;;  %v1630_v37 = vsub.f32 %v1614_v20, %v1622_v35  ;;  %v1631_v38 = vsub.f32 %v1615_v21, %v1625_v36 }
 0x6ef   : > { %v1635_v39 = vmul.f32 1.442695, %v1630_v37  ;;  %v1637_v40 = vmul.f32 1.442695, %v1631_v38 }
 0x6f0   : > { %v1664_v42 = vpop.permute.xlu1 %1663  ;;  %v1628_v43 = vpop.xlane.xlu0 %1627 }
 0x6f1   : > { %20496 = vpow2.f32 %v1635_v39  ;;  %v1669_v45 = vsel %vm1167_vm5, %v1664_v42, 0  ;;  %v1632_v46 = vsub.f32 %v1616_v29, %v1628_v43 }
 0x6f2   : > { %20498 = vpow2.f32 %v1637_v40  ;;  %19483 = vmatpush3.bf16.msra.mxu1 %v1669_v45 }
 0x6f3   : > { %v1639_v47 = vmul.f32 1.442695, %v1632_v46  ;;  %19494 = vmatprep.subr.bf16.mxu1 %v25730_v26 }
 0x6f5   : > { %20500 = vpow2.f32 %v1639_v47 }
 0x6fa   : > { %v20495_v48 = vpop.eup %20494 }
 0x6fb   : > { %v1641_v49 = vsel %vm1114_vm3, %v20495_v48, 0.0 }
 0x6fc   : > { %1642 = vadd.xlane.f32.xlu1 %v1641_v49 }
 0x6fe   : > { %v20497_v50 = vpop.eup %20496 }
 0x6ff   : > { %v20499_v51 = vpop.eup %20498  ;;  %v1644_v53 = vsel %vm1118_vm4, %v20497_v50, 0.0 }
 0x700   : > { %v1647_v56 = vsel %vm1114_vm3, %v20499_v51, 0.0  ;;  %1645 = vadd.xlane.f32.xlu0 %v1644_v53 }
 0x701   : > { %1648 = vadd.xlane.f32.xlu1 %v1647_v56 }
 0x702   : > { %v20501_v57 = vpop.eup %20500 }
 0x703   : > { %v1650_v59 = vsel %vm1118_vm4, %v20501_v57, 0.0 }
 0x704   : > { %1651 = vadd.xlane.f32.xlu0 %v1650_v59 }
 0x712   : > { %1763 = vrot.lane.b32.xlu1 %v21066_v41, %s25695_s20 }
 0x716   : > { %1814 = vrot.lane.b32.xlu1 %v21072_v44, %s25695_s20  ;;  %s25701_s20 = smov 8  }
 0x71a   : > { %1812 = vrot.lane.b32.xlu1 %v21072_v44, %s25693_s27  ;;  %1712 = vrot.lane.b32.xlu0 %v21072_v44, %s25697_s25  ;;  %s25699_s25 = smov 16  }
 0x71e   : > { %1761 = vrot.lane.b32.xlu0 %v21066_v41, %s25693_s27  ;;  %s25703_s27 = smov 40  }
 0x785   : > { %v1643_v60 = vpop.xlane.xlu1 %1642 }
 0x786   : > { %20502 = vrcp.f32 %v1643_v60 }
 0x789   : > { %v1646_v61 = vpop.xlane.xlu0 %1645 }
 0x78a   : > { %v1649_v62 = vpop.xlane.xlu1 %1648  ;;  %20504 = vrcp.f32 %v1646_v61 }
 0x78b   : > { %20506 = vrcp.f32 %v1649_v62 }
 0x78d   : > { %v1652_v63 = vpop.xlane.xlu0 %1651 }
 0x78e   : > { %20508 = vrcp.f32 %v1652_v63  ;;  %v1764_v9 = vpop.permute.xlu1 %1763 }
 0x78f   : > { %v1769_v17 = vsel %vm997_vm2, %v1764_v9, 0 }
 0x791   : > { %v1713_v0 = vpop.permute.xlu0 %1712 }
 0x792   : > { %v1718_v1 = vsel %vm1167_vm5, %v1713_v0, 0  ;;  %v1815_v20 = vpop.permute.xlu1 %1814 }
 0x793   : > { %19489 = vmatpush3.bf16.msra.mxu0 %v1718_v1  ;;  %v20503_v2 = vpop.eup %20502  ;;  %v1820_v22 = vsel %vm997_vm2, %v1815_v20, 0 }
 0x794   : > { %19500 = vmatprep.subr.bf16.mxu0 %v25730_v26  ;;  %v1657_v10 = vmul.f32 %v20503_v2, %v20495_v48 }
 0x795   : > { %v1762_v23 = vpop.permute.xlu0 %1761 }
 0x796   : > { %v1813_v24 = vpop.permute.xlu1 %1812 }
 0x797   : > { %v20505_v4 = vpop.eup %20504 }
 0x798   : > { %v1658_v12 = vmul.f32 %v20505_v4, %v20497_v50  ;;  %v20507_v13 = vpop.eup %20506 }
 0x799   : > { %v1659_v18 = vmul.f32 %v20507_v13, %v20499_v51 }
 0x79a   : > { %v1661_v15 = vpack.c.bf16 %v1658_v12, %v1657_v10 }
 0x79b   : > { %v20509_v16 = vpop.eup %20508 }
 0x79c   : > { %19485 = vmatmul.mubr.msk.bf16.vlgmr.msra.gmra.mxu1 %vm1114_vm3, %v1661_v15  ;;  %v1660_v19 = vmul.f32 %v20509_v16, %v20501_v57 }
 0x79d   : > { %19495 = vmatpush3.bf16.xpose.msra.mxu1 %v1769_v17  ;;  %19496 = vmatprep.mubr.msk.bf16.mxu1 %vm20868_vm1, %v25730_v26 }
 0x79e   : > { %v1662_v21 = vpack.c.bf16 %v1660_v19, %v1659_v18  ;;  %19506 = vmatprep.subr.bf16.mxu1 %v25730_v26 }
 0x7a0   : > { %19491 = vmatmul.mubr.msk.bf16.vlgmr.msra.gmra.mxu0 %vm1114_vm3, %v1662_v21 }
 0x7a1   : > { %19501 = vmatpush3.bf16.xpose.msra.mxu0 %v1820_v22  ;;  %19502 = vmatprep.mubr.msk.bf16.mxu0 %vm20868_vm1, %v25730_v26 }
 0x7a2   : > { %19512 = vmatprep.subr.bf16.mxu0 %v25730_v26 }
 0x7a4   : > { %19497 = vmatmul.mubr.msk.bf16.vlgmr.msra.gmra.mxu1 %vm997_vm2, %v1762_v23 }
 0x7a5   : > { %19508 = vmatprep.mubr.msk.bf16.mxu1 %vm20868_vm1, %v25730_v26 }
 0x7a8   : > { %19503 = vmatmul.mubr.msk.bf16.vlgmr.msra.gmra.mxu0 %vm997_vm2, %v1813_v24 }
 0x7a9   : > { %19514 = vmatprep.mubr.msk.bf16.mxu0 %vm20868_vm1, %v25730_v26 }
 0x85c   : > { %v21224_v25 = vpop.f32.mrf.mxu1 }
 0x85e   : > { %v19486_v27 = vpop.f32.mrf.mxu1 }
 0x860   : > { %v1708_v29 = vpop.f32.mrf.mxu1  ;;  %v1754_v30 = vpop.f32.mrf.mxu0 }
 0x862   : > { %v19487_v31 = vpop.f32.mrf.mxu1  ;;  %v19492_v32 = vpop.f32.mrf.mxu0 }
 0x864   : > { %v1757_v33 = vpop.f32.mrf.mxu0  ;;  %v1805_v34 = vpop.f32.mrf.mxu1 }
 0x865   : > { %v1863_v35 = vmul.f32 0.35355338, %v1805_v34  ;;  %v19933_v34 = vld [vmem:[%s25774_s4 + $0x8] sm:$0xff]  }
 0x866   : > { %v19493_v36 = vpop.f32.mrf.mxu0  ;;  %v19498_v37 = vpop.f32.mrf.mxu1 }
 0x867   : > { %v1867_v38 = vsel %vm1114_vm3, %v1863_v35, -inf }
 0x868   : > { %1868 = vmax.xlane.f32.xlu0 %v1867_v38  ;;  %v1808_v39 = vpop.f32.mrf.mxu1  ;;  %v1856_v40 = vpop.f32.mrf.mxu0 }
 0x869   : > { %v1864_v42 = vmul.f32 0.35355338, %v1808_v39  ;;  %v1865_v43 = vmul.f32 0.35355338, %v1856_v40 }
 0x86a   : > { %v19499_v45 = vpop.f32.mrf.mxu1  ;;  %v19504_v46 = vpop.f32.mrf.mxu0 }
 0x86b   : > { %v1870_v47 = vsel %vm1118_vm4, %v1864_v42, -inf  ;;  %v1873_v48 = vsel %vm1114_vm3, %v1865_v43, -inf }
 0x86c   : > { %1871 = vmax.xlane.f32.xlu1 %v1870_v47  ;;  %1874 = vmax.xlane.f32.xlu0 %v1873_v48  ;;  %v1859_v49 = vpop.f32.mrf.mxu0 }
 0x86d   : > { %v1866_v50 = vmul.f32 0.35355338, %v1859_v49 }
 0x86e   : > { %v19505_v51 = vpop.f32.mrf.mxu0 }
 0x86f   : > { %v1876_v53 = vsel %vm1118_vm4, %v1866_v50, -inf }
 0x870   : > { %1877 = vmax.xlane.f32.xlu0 %v1876_v53 }
 0x8f1   : > { %v1869_v56 = vpop.xlane.xlu0 %1868 }
 0x8f2   : > { %v1879_v57 = vsub.f32 %v1863_v35, %v1869_v56  ;;  %v19934_v35 = vld [vmem:[%s25774_s4] sm:$0xff]  }
 0x8f4   : > { %v1883_v59 = vmul.f32 1.442695, %v1879_v57 }
 0x8f5   : > { %v1872_v60 = vpop.xlane.xlu1 %1871  ;;  %v1875_v61 = vpop.xlane.xlu0 %1874 }
 0x8f6   : > { %20510 = vpow2.f32 %v1883_v59  ;;  %v1880_v62 = vsub.f32 %v1864_v42, %v1872_v60  ;;  %v1881_v63 = vsub.f32 %v1865_v43, %v1875_v61 }
 0x8f8   : > { %v1885_v0 = vmul.f32 1.442695, %v1880_v62  ;;  %v1887_v1 = vmul.f32 1.442695, %v1881_v63 }
 0x8f9   : > { %v1878_v2 = vpop.xlane.xlu0 %1877 }
 0x8fa   : > { %20512 = vpow2.f32 %v1885_v0  ;;  %v1882_v4 = vsub.f32 %v1866_v50, %v1878_v2 }
 0x8fb   : > { %20514 = vpow2.f32 %v1887_v1 }
 0x8fc   : > { %v1889_v9 = vmul.f32 1.442695, %v1882_v4 }
 0x8fe   : > { %20516 = vpow2.f32 %v1889_v9 }
 0x903   : > { %v20511_v10 = vpop.eup %20510 }
 0x904   : > { %v1891_v12 = vsel %vm1114_vm3, %v20511_v10, 0.0 }
 0x905   : > { %1892 = vadd.xlane.f32.xlu1 %v1891_v12 }
 0x907   : > { %v20513_v13 = vpop.eup %20512 }
 0x908   : > { %v20515_v15 = vpop.eup %20514  ;;  %v1894_v16 = vsel %vm1118_vm4, %v20513_v13, 0.0 }
 0x909   : > { %v1897_v17 = vsel %vm1114_vm3, %v20515_v15, 0.0  ;;  %1895 = vadd.xlane.f32.xlu0 %v1894_v16 }
 0x90a   : > { %1898 = vadd.xlane.f32.xlu1 %v1897_v17 }
 0x90b   : > { %v20517_v18 = vpop.eup %20516 }
 0x90c   : > { %v1900_v19 = vsel %vm1118_vm4, %v20517_v18, 0.0 }
 0x90d   : > { %1901 = vadd.xlane.f32.xlu0 %v1900_v19 }
 0x91b   : > { %1913 = vrot.lane.b32.xlu1 %v21066_v41, %s25703_s27 }
 0x91f   : > { %2015 = vrot.lane.b32.xlu1 %v21176_v3, %s25701_s20 }
 0x923   : > { %2019 = vrot.lane.b32.xlu1 %v21180_v8, %s25701_s20  ;;  %1962 = vrot.lane.b32.xlu0 %v21072_v44, %s25703_s27  ;;  %s25790_s27 = smov 120  }
 0x927   : > { %2017 = vrot.lane.b32.xlu1 %v21178_v7, %s25701_s20  ;;  %2031 = vrot.lane.b32.xlu0 %v21224_v25, %s25699_s25 }
 0x92b   : > { %2033 = vrot.lane.b32.xlu1 %v1708_v29, %s25699_s25  ;;  %2035 = vrot.lane.b32.xlu0 %v1754_v30, %s25699_s25 }
 0x92f   : > { %2037 = vrot.lane.b32.xlu1 %v1757_v33, %s25699_s25  ;;  %2021 = vrot.lane.b32.xlu0 %v21182_v11, %s25701_s20  ;;  %s25787_s20 = smov 96   ;;  %s25793_s25 = smov 112  }
 0x98e   : > { %v1893_v41 = vpop.xlane.xlu1 %1892 }
 0x98f   : > { %20518 = vrcp.f32 %v1893_v41 }
 0x992   : > { %v1896_v3 = vpop.xlane.xlu0 %1895 }
 0x993   : > { %v1899_v44 = vpop.xlane.xlu1 %1898  ;;  %20520 = vrcp.f32 %v1896_v3 }
 0x994   : > { %20522 = vrcp.f32 %v1899_v44 }
 0x996   : > { %v1902_v7 = vpop.xlane.xlu0 %1901 }
 0x997   : > { %v1914_v8 = vpop.permute.xlu1 %1913  ;;  %20524 = vrcp.f32 %v1902_v7 }
 0x998   : > { %v1919_v20 = vsel %vm1167_vm5, %v1914_v8, 0 }
 0x999   : > { %19507 = vmatpush3.bf16.msra.mxu1 %v1919_v20 }
 0x99a   : > { %v1963_v21 = vpop.permute.xlu0 %1962  ;;  %19518 = vmatprep.subr.bf16.mxu1 %v19933_v34 }
 0x99b   : > { %v1968_v22 = vsel %vm1167_vm5, %v1963_v21, 0  ;;  %v2016_v46 = vpop.permute.xlu1 %2015 }
 0x99c   : > { %19513 = vmatpush3.bf16.msra.mxu0 %v1968_v22  ;;  %v20519_v23 = vpop.eup %20518  ;;  %v2059_v59 = vsel %vm997_vm2, %v21128_v52, %v2016_v46 }
 0x99d   : > { %v1907_v25 = vmul.f32 %v20519_v23, %v20511_v10 }
 0x99e   : > { %v2032_v49 = vpop.permute.xlu0 %2031 }
 0x99f   : > { %v2020_v47 = vpop.permute.xlu1 %2019  ;;  %v2064_v60 = vsel %vm2063_vm6, %v2059_v59, %v2032_v49 }
 0x9a0   : > { %v20521_v24 = vpop.eup %20520  ;;  %v2061_v61 = vsel %vm997_vm2, %v21132_v55, %v2020_v47 }
 0x9a1   : > { %v1908_v11 = vmul.f32 %v20521_v24, %v20513_v13  ;;  %v20523_v27 = vpop.eup %20522  ;;  %v20766_v24 = vld [vmem:[%s21033_s30] sm:$0xff] }
 0x9a2   : > { %v1909_v31 = vmul.f32 %v20523_v27, %v20515_v15  ;;  %v2036_v51 = vpop.permute.xlu0 %2035 }
 0x9a3   : > { %v1911_v29 = vpack.c.bf16 %v1908_v11, %v1907_v25  ;;  %v2018_v48 = vpop.permute.xlu1 %2017  ;;  %v2066_v63 = vsel %vm2063_vm6, %v2061_v61, %v2036_v51 }
 0x9a4   : > { %v20525_v30 = vpop.eup %20524  ;;  %v2060_v4 = vsel %vm997_vm2, %v21130_v54, %v2018_v48 }
 0x9a5   : > { %19509 = vmatmul.mubr.msk.bf16.vlgmr.msra.gmra.mxu1 %vm1114_vm3, %v1911_v29  ;;  %v1910_v32 = vmul.f32 %v20525_v30, %v20517_v18  ;;  %v20767_v29 = vld [vmem:[%s21033_s30 + $0x18] sm:$0xf] }
 0x9a6   : > { %19519 = vmatpush3.bf16.msra.mxu1 %v19933_v34  ;;  %v2022_v56 = vpop.permute.xlu0 %2021  ;;  %v20768_v34 = vld [vmem:[%s21033_s30 + $0x8] sm:$0xf] }
 0x9a7   : > { %v1912_v33 = vpack.c.bf16 %v1910_v32, %v1909_v31  ;;  %19520 = vmatprep.subr.bf16.mxu1 %v19934_v35  ;;  %v2034_v50 = vpop.permute.xlu1 %2033  ;;  %v2062_v9 = vsel %vm997_vm2, %v21134_v58, %v2022_v56  ;;  %v16621_v58 = vld [vmem:[%s25775_s5] ss:$0 sm:$0xff] }
 0x9a8   : > { %v2065_v52 = vsel %vm2063_vm6, %v2060_v4, %v2034_v50 }
 0x9a9   : > { %19515 = vmatmul.mubr.msk.bf16.vlgmr.msra.gmra.mxu0 %vm1114_vm3, %v1912_v33 }
 0x9aa   : > { %19521 = vmatpush3.bf16.msra.mxu1 %v19934_v35 }
 0x9ab   : > { %v2038_v53 = vpop.permute.xlu1 %2037 }
 0x9ac   : > { %v2067_v10 = vsel %vm2063_vm6, %v2062_v9, %v2038_v53 }
 0xa65   : > { %v1955_v36 = vpop.f32.mrf.mxu1 }
 0xa66   : > { %2047 = vrot.lane.b32.xlu1 %v1955_v36, %s25709_s16 }
 0xa67   : > { %v19510_v37 = vpop.f32.mrf.mxu1 }
 0xa68   : > { %v20769_v37 = vld [vmem:[%s21033_s30 + $0x10] sm:$0xff]  ;;  %s25796_s30 = smov 104  }
 0xa69   : > { %v1958_v38 = vpop.f32.mrf.mxu1  ;;  %v2004_v39 = vpop.f32.mrf.mxu0 }
 0xa6a   : > { %2051 = vrot.lane.b32.xlu0 %v2004_v39, %s25709_s16 }
 0xa6b   : > { %v19511_v40 = vpop.f32.mrf.mxu1  ;;  %v19516_v42 = vpop.f32.mrf.mxu0 }
 0xa6d   : > { %v2007_v43 = vpop.f32.mrf.mxu0 }
 0xa6e   : > { %2049 = vrot.lane.b32.xlu0 %v1958_v38, %s25709_s16  ;;  %2053 = vrot.lane.b32.xlu1 %v2007_v43, %s25709_s16  ;;  %s25785_s16 = sshll.u32 %s25840_s17, 4  ;;  %s25795_s17 = smov 72  }
 0xa6f   : > { %v19517_v45 = vpop.f32.mrf.mxu0  ;;  %s22092_s26 = scalar_lea.vmem %s25786_s1, %s25785_s16  ;;  %s25792_s16 = smov 80  }
 0xa70   : > { %s25797_s1 = smov 40  }
 0xad8   : > { %v2048_v57 = vpop.permute.xlu1 %2047 }
 0xad9   : > { %v2069_v62 = vsel %vm2068_vm7, %v2064_v60, %v2048_v57 }
 0xada   : > { %v2077_v2 = vcombine.high %v2069_v62, %v2069_v62 }
 0xadc   : > { %v2052_v0 = vpop.permute.xlu0 %2051  ;;  %v2079_v17 = vcombine.low %v2069_v62, %v2077_v2 }
 0xadd   : > { %v2071_v1 = vsel %vm2068_vm7, %v2066_v63, %v2052_v0 }
 0xade   : > { %v2078_v12 = vcombine.high %v2071_v1, %v2071_v1 }
 0xae0   : > { %v2050_v55 = vpop.permute.xlu0 %2049  ;;  %v2054_v13 = vpop.permute.xlu1 %2053 }
 0xae1   : > { %v2070_v15 = vsel %vm2068_vm7, %v2065_v52, %v2050_v55  ;;  %v2072_v16 = vsel %vm2068_vm7, %v2067_v10, %v2054_v13 }
 0xae2   : > { %v2080_v18 = vcombine.low %v2070_v15, %v2071_v1  ;;  %v2081_v19 = vcombine.low %v2078_v12, %v2072_v16 }
 0xae4   : > { %v2085_v41 = vpack.c.bf16 %v2080_v18, %v2079_v17  ;;  %v2086_v54 = vpack.c.bf16 %v2081_v19, %v2081_v19 }
 0xae6   : > { %19522 = vmatprep.mubr.msk.bf16.mxu1 %vm895_vm0, %v2085_v41 }
 0xae7   : > { %19523 = vmatmul.mubr.msk.bf16.vlgmr.msra.gmra.mxu1 %vm895_vm0, %v2086_v54 }
 0xba7   : > { %v19524_v3 = vpop.f32.mrf.mxu1 }
 0xba8   : > { %v2154_v44 = vadd.f32 %v19524_v3, %v16621_v58 }
 0xba9   : > { %v2145_v7 = vpop.f32.mrf.mxu1 }
 0xbaa   : > { %v2164_v8 = vcombine.high %v2154_v44, %v2154_v44  ;;  %v2146_v20 = vadd.f32 %v16621_v58, %v2145_v7  ;;  %v2172_v31 = vadd.f32 %v2154_v44, %v21040_v6  ;;  %v20884_v6 = vmov 1985246804  }
 0xbab   : > { %v19525_v21 = vpop.f32.mrf.mxu1  ;;  %v2210_v46 = vunpack.c.l.s4 %v20884_v6 }
 0xbac   : > { %v2162_v22 = vcombine.high %v2146_v20, %v2146_v20  ;;  %v2168_v25 = vadd.f32 %v20766_v24, %v2146_v20  ;;  %v2173_v30 = vadd.f32 %v20767_v29, %v2164_v8  ;;  %v584_v8 = vld [vmem:[%s25674_s8 + $0x80] sm:$0xff]  ;;  %v585_v21 = vld [vmem:[%s25674_s8 + $0x88] sm:$0xff] }
 0xbad   : > { %v2148_v23 = vpop.f32.mrf.mxu1  ;;  %v2211_v48 = vunpack.c.0.s8 %v2210_v46  ;;  %v592_v20 = vld [vmem:[%s25674_s8 + $0xc0] sm:$0xff] }
 0xbae   : > { %v2149_v11 = vadd.f32 %v16621_v58, %v2148_v23  ;;  %v2169_v27 = vadd.f32 %v2162_v22, %v21038_v5  ;;  %v2182_v39 = vcombine.low %v2172_v31, %v2173_v30  ;;  %v20883_v5 = vmov 839922192   ;;  %v593_v23 = vld [vmem:[%s25674_s8 + $0xc8] sm:$0xff]  ;;  %v576_v29 = vld [vmem:[%s25674_s8 + $0x40] sm:$0xff] }
 0xbaf   : > { %v2203_v45 = vunpack.c.l.s4 %v20883_v5  ;;  %v21299_v50 = vsub.s32 %v2211_v48, %v21047_v14  ;;  %v16645_v22 = vcombine.high %v584_v8, %v592_v20  ;;  %v16644_v24 = vcombine.low %v584_v8, %v592_v20 }
 0xbb0   : > { %v2163_v32 = vcombine.high %v2149_v11, %v2149_v11  ;;  %v2180_v33 = vcombine.low %v2168_v25, %v2169_v27  ;;  %v2170_v35 = vadd.f32 %v20768_v34, %v2149_v11  ;;  %v2192_v43 = vsel %vm895_vm0, %v2182_v39, 0.0  ;;  %v21373_v39 = vld [vmem:[%s25674_s8 + $0x98] sm:$0xff] }
 0xbb1   : > { %v2204_v47 = vunpack.c.0.s8 %v2203_v45  ;;  %v16647_v11 = vcombine.high %v585_v21, %v593_v23  ;;  %2651 = vmatprep.subr.bf16.mxu0 %v16645_v22 }
 0xbb2   : > { %v2186_v36 = vsel %vm895_vm0, %v2180_v33, 0.0  ;;  %v2171_v38 = vadd.f32 %v20769_v37, %v2163_v32  ;;  %2652 = vmatpush1.bf16.msra.mxu0 %v16644_v24  ;;  %v577_v32 = vld [vmem:[%s25674_s8 + $0x48] sm:$0xff]  ;;  %v21363_v37 = vld [vmem:[%s25674_s8 + $0x90] sm:$0xff] }
 0xbb3   : > { %2187 = vadd.xlane.f32.xlu0 %v2186_v36  ;;  %v21296_v49 = vsub.s32 %v2204_v47, %v21047_v14  ;;  %2702 = vmatprep.subr.bf16.mxu1 %v16647_v11  ;;  %v25728_v36 = vmov 0  }
 0xbb4   : > { %v2181_v40 = vcombine.low %v2170_v35, %v2171_v38  ;;  %2671 = vmatprep.mubr.bf16.mxu0 %v25728_v36  ;;  %2722 = vmatprep.mubr.bf16.mxu1 %v25728_v36 }
 0xbb6   : > { %v2189_v42 = vsel %vm895_vm0, %v2181_v40, 0.0 }
 0xbb7   : > { %2190 = vadd.xlane.f32.xlu1 %v2189_v42  ;;  %2193 = vadd.xlane.f32.xlu0 %v2192_v43  ;;  %v21380_v42 = vld [vmem:[%s25674_s8 + $0xd8] sm:$0xff] }
 0xbb8   : > { %v16650_v5 = vcombine.low %v21373_v39, %v21380_v42  ;;  %v16651_v45 = vcombine.high %v21373_v39, %v21380_v42  ;;  %v573_v39 = vld [vmem:[%s25674_s8 + $0x28] sm:$0xff] }
 0xbb9   : > { %v581_v42 = vld [vmem:[%s25674_s8 + $0x68] sm:$0xff] }
 0xc3c   : > { %v2188_v51 = vpop.xlane.xlu0 %2187 }
 0xc3d   : > { %v2196_v53 = vmul.f32 0.03125, %v2188_v51 }
 0xc3f   : > { %v2208_v56 = vrot.slane %v2196_v53, %v21296_v49  ;;  %v2215_v57 = vrot.slane %v2196_v53, %v21299_v50 }
 0xc40   : > { %v2191_v59 = vpop.xlane.xlu1 %2190  ;;  %v2194_v60 = vpop.xlane.xlu0 %2193 }
 0xc41   : > { %v21303_v61 = vsub.f32 %v2168_v25, %v2208_v56  ;;  %v21305_v62 = vsub.f32 %v2169_v27, %v2215_v57  ;;  %v2197_v63 = vmul.f32 0.03125, %v2191_v59  ;;  %v2198_v0 = vmul.f32 0.03125, %v2194_v60  ;;  %v568_v27 = vld [vmem:[%s25674_s8] sm:$0xff] }
 0xc42   : > { %v16646_v25 = vcombine.low %v585_v21, %v593_v23  ;;  %v16628_v33 = vcombine.low %v568_v27, %v576_v29  ;;  %v16626_v60 = vld [vmem:[%s25776_s6] ss:$0 sm:$0xff] }
 0xc43   : > { %v2222_v1 = vrot.slane %v2197_v63, %v21296_v49  ;;  %v2229_v2 = vrot.slane %v2197_v63, %v21299_v50  ;;  %v2236_v4 = vrot.slane %v2198_v0, %v21296_v49  ;;  %v2243_v9 = vrot.slane %v2198_v0, %v21299_v50  ;;  %v16627_v0 = vld [vmem:[%s25777_s7] ss:$0 sm:$0xff] }
 0xc44   : > { %v2256_v52 = vmul.f32 %v21303_v61, %v21303_v61  ;;  %v2257_v10 = vmul.f32 %v21305_v62, %v21305_v62  ;;  %2703 = vmatpush1.bf16.msra.mxu1 %v16646_v25 }
 0xc45   : > { %v21315_v12 = vsub.f32 %v2170_v35, %v2222_v1  ;;  %v21317_v55 = vsub.f32 %v2171_v38, %v2229_v2  ;;  %v21319_v13 = vsub.f32 %v2172_v31, %v2236_v4  ;;  %v21321_v15 = vsub.f32 %v2173_v30, %v2243_v9  ;;  %v569_v30 = vld [vmem:[%s25674_s8 + $0x8] sm:$0xff]  ;;  %v21368_v38 = vld [vmem:[%s25674_s8 + $0xd0] sm:$0xff] }
 0xc46   : > { %v2268_v16 = vcombine.low %v2256_v52, %v2257_v10  ;;  %v16629_v31 = vcombine.high %v568_v27, %v576_v29  ;;  %v16630_v34 = vcombine.low %v569_v30, %v577_v32  ;;  %v16631_v35 = vcombine.high %v569_v30, %v577_v32  ;;  %v571_v27 = vld [vmem:[%s25674_s8 + $0x18] sm:$0xff] }
 0xc47   : > { %v2258_v17 = vmul.f32 %v21315_v12, %v21315_v12  ;;  %v2259_v18 = vmul.f32 %v21317_v55, %v21317_v55  ;;  %v2260_v19 = vmul.f32 %v21319_v13, %v21319_v13  ;;  %v2261_v41 = vmul.f32 %v21321_v15, %v21321_v15  ;;  %v579_v29 = vld [vmem:[%s25674_s8 + $0x58] sm:$0xff] }
 0xc48   : > { %v2274_v54 = vsel %vm895_vm0, %v2268_v16, 0.0  ;;  %2653 = vmatprep.subr.bf16.mxu0 %v16629_v31  ;;  %2704 = vmatprep.subr.bf16.mxu1 %v16631_v35  ;;  %v16649_v40 = vcombine.high %v21363_v37, %v21368_v38  ;;  %v16648_v43 = vcombine.low %v21363_v37, %v21368_v38  ;;  %v2355_v1 = vcombine.high %v16626_v60, %v16626_v60  ;;  %v588_v35 = vld [vmem:[%s25674_s8 + $0xa0] sm:$0xff] }
 0xc49   : > { %2275 = vadd.xlane.f32.xlu0 %v2274_v54  ;;  %v2269_v58 = vcombine.low %v2258_v17, %v2259_v18  ;;  %v2270_v3 = vcombine.low %v2260_v19, %v2261_v41  ;;  %2654 = vmatpush1.bf16.msra.mxu0 %v16628_v33  ;;  %v2369_v17 = vcombine.high %v16627_v0, %v16627_v0  ;;  %v572_v37 = vld [vmem:[%s25674_s8 + $0x20] sm:$0xff] }
 0xc4a   : > { %2705 = vmatpush1.bf16.msra.mxu1 %v16630_v34  ;;  %2753 = vmatprep.subr.bf16.mxu0 %v16649_v40  ;;  %v16635_v34 = vcombine.high %v571_v27, %v579_v29  ;;  %v596_v40 = vld [vmem:[%s25674_s8 + $0xe0] sm:$0xff] }
 0xc4b   : > { %v2277_v44 = vsel %vm895_vm0, %v2269_v58, 0.0  ;;  %v2280_v7 = vsel %vm895_vm0, %v2270_v3, 0.0  ;;  %2804 = vmatprep.subr.bf16.mxu1 %v16651_v45  ;;  %v589_v45 = vld [vmem:[%s25674_s8 + $0xa8] sm:$0xff]  ;;  %v580_v38 = vld [vmem:[%s25674_s8 + $0x60] sm:$0xff] }
 0xc4c   : > { %2278 = vadd.xlane.f32.xlu1 %v2277_v44 }
 0xc4d   : > { %2281 = vadd.xlane.f32.xlu0 %v2280_v7 }
 0xcd2   : > { %v2276_v6 = vpop.xlane.xlu0 %2275 }
 0xcd3   : > { %v2283_v46 = vmul.f32 0.03125, %v2276_v6  ;;  %v597_v6 = vld [vmem:[%s25674_s8 + $0xe8] sm:$0xff] }
 0xcd5   : > { %v2286_v47 = vadd.f32 1e-05, %v2283_v46  ;;  %v2279_v48 = vpop.xlane.xlu1 %2278 }
 0xcd6   : > { %v2284_v51 = vmul.f32 0.03125, %v2279_v48  ;;  %v2282_v53 = vpop.xlane.xlu0 %2281  ;;  %v16634_v48 = vcombine.low %v571_v27, %v579_v29  ;;  %v19946_v27 = vld [vmem:[%s25676_s10 + $0xa8] sm:$0xff]   ;;  %v19947_v29 = vld [vmem:[%s25676_s10 + $0x60] sm:$0xff]  }
 0xcd7   : > { %20526 = vrsqrt.f32 %v2286_v47  ;;  %v2285_v56 = vmul.f32 0.03125, %v2282_v53  ;;  %v16655_v53 = vcombine.high %v589_v45, %v597_v6 }
 0xcd8   : > { %v2287_v57 = vadd.f32 1e-05, %v2284_v51  ;;  %v16653_v51 = vcombine.high %v588_v35, %v596_v40 }
 0xcd9   : > { %v2288_v59 = vadd.f32 1e-05, %v2285_v56 }
 0xcda   : > { %20528 = vrsqrt.f32 %v2287_v57  ;;  %v16637_v57 = vcombine.high %v572_v37, %v580_v38 }
 0xcdb   : > { %20530 = vrsqrt.f32 %v2288_v59  ;;  %v16639_v59 = vcombine.high %v573_v39, %v581_v42 }
 0xce4   : > { %v20527_v63 = vpop.eup %20526 }
 0xce5   : > { %v2301_v2 = vrot.slane %v20527_v63, %v21296_v49  ;;  %v2308_v4 = vrot.slane %v20527_v63, %v21299_v50  ;;  %v598_v63 = vld [vmem:[%s25674_s8 + $0xf0] sm:$0xff] }
 0xce7   : > { %v20529_v9 = vpop.eup %20528  ;;  %v2343_v52 = vmul.f32 %v2301_v2, %v21303_v61  ;;  %v2344_v10 = vmul.f32 %v2308_v4, %v21305_v62  ;;  %v16636_v2 = vcombine.low %v572_v37, %v580_v38  ;;  %v16638_v4 = vcombine.low %v573_v39, %v581_v42  ;;  %v19961_v37 = vld [vmem:[%s25676_s10 + $0x8] sm:$0xff]   ;;  %v19963_v39 = vld [vmem:[%s25676_s10 + $0x40] sm:$0xff]  }
 0xce8   : > { %v20531_v16 = vpop.eup %20530  ;;  %v2315_v18 = vrot.slane %v20529_v9, %v21296_v49  ;;  %v2322_v19 = vrot.slane %v20529_v9, %v21299_v50  ;;  %v19962_v38 = vld [vmem:[%s25676_s10 + $0x88] sm:$0xff]   ;;  %v19964_v42 = vld [vmem:[%s25676_s10 + $0xc0] sm:$0xff]  }
 0xce9   : > { %v2357_v41 = vmul.f32 %v16626_v60, %v2343_v52  ;;  %v2358_v54 = vmul.f32 %v2355_v1, %v2344_v10  ;;  %v2329_v58 = vrot.slane %v20531_v16, %v21296_v49  ;;  %v2336_v3 = vrot.slane %v20531_v16, %v21299_v50  ;;  %v574_v10 = vld [vmem:[%s25674_s8 + $0x30] sm:$0xff] }
 0xcea   : > { %v2345_v44 = vmul.f32 %v2315_v18, %v21315_v12  ;;  %v2346_v7 = vmul.f32 %v2322_v19, %v21317_v55  ;;  %v570_v12 = vld [vmem:[%s25674_s8 + $0x10] sm:$0xff]  ;;  %v583_v18 = vld [vmem:[%s25674_s8 + $0x78] sm:$0xff] }
 0xceb   : > { %v2347_v61 = vmul.f32 %v2329_v58, %v21319_v13  ;;  %v2348_v62 = vmul.f32 %v2336_v3, %v21321_v15  ;;  %v21406_v8 = vadd.f32 %v16627_v0, %v2357_v41  ;;  %v21408_v20 = vadd.f32 %v2369_v17, %v2358_v54  ;;  %v578_v15 = vld [vmem:[%s25674_s8 + $0x50] sm:$0xff] }
 0xcec   : > { %v2359_v21 = vmul.f32 %v16626_v60, %v2345_v44  ;;  %v2360_v22 = vmul.f32 %v2355_v1, %v2346_v7  ;;  %v16633_v33 = vcombine.high %v570_v12, %v578_v15  ;;  %v16632_v47 = vcombine.low %v570_v12, %v578_v15  ;;  %v582_v16 = vld [vmem:[%s25674_s8 + $0x70] sm:$0xff]  ;;  %v19935_v7 = vld [vmem:[%s25676_s10 + $0x78] sm:$0xff]   ;;  %v19945_v15 = vld [vmem:[%s25676_s10 + $0x28] sm:$0xff]  }
 0xced   : > { %v2361_v25 = vmul.f32 %v16626_v60, %v2347_v61  ;;  %v2362_v11 = vmul.f32 %v2355_v1, %v2348_v62  ;;  %v2383_v55 = vcombine.low %v21406_v8, %v21408_v20  ;;  %v590_v60 = vld [vmem:[%s25674_s8 + $0xb0] sm:$0xff]  ;;  %v599_v1 = vld [vmem:[%s25674_s8 + $0xf8] sm:$0xff]  ;;  %v16641_v54 = vcombine.high %v574_v10, %v582_v16 }
 0xcee   : > { %v21410_v23 = vadd.f32 %v16627_v0, %v2359_v21  ;;  %v21412_v24 = vadd.f32 %v2369_v17, %v2360_v22  ;;  %v16657_v9 = vcombine.high %v590_v60, %v598_v63  ;;  %v16656_v19 = vcombine.low %v590_v60, %v598_v63  ;;  %v19936_v61 = vld [vmem:[%s25676_s10 + $0xf8] sm:$0xff]   ;;  %v19939_v22 = vld [vmem:[%s25676_s10 + $0x70] sm:$0xff]  }
 0xcef   : > { %v21432_v31 = vadd.f32 %v16627_v0, %v2361_v25  ;;  %v21434_v32 = vadd.f32 %v2369_v17, %v2362_v11  ;;  %v591_v0 = vld [vmem:[%s25674_s8 + $0xb8] sm:$0xff]  ;;  %v16640_v3 = vcombine.low %v574_v10, %v582_v16  ;;  %v19940_v25 = vld [vmem:[%s25676_s10 + $0xf0] sm:$0xff]   ;;  %v21643_v60 = vsub.s32 1, %v21047_v14 }
 0xcf0   : > { %v2384_v13 = vcombine.low %v21410_v23, %v21412_v24  ;;  %v16659_v52 = vcombine.high %v591_v0, %v599_v1  ;;  %v575_v17 = vld [vmem:[%s25674_s8 + $0x38] sm:$0xff]  ;;  %v16658_v41 = vcombine.low %v591_v0, %v599_v1  ;;  %v19941_v11 = vld [vmem:[%s25676_s10 + $0x30] sm:$0xff]   ;;  %v21646_v63 = vsub.s32 3, %v21047_v14 }
 0xcf1   : > { %v2385_v46 = vcombine.low %v21432_v31, %v21434_v32  ;;  %v16643_v58 = vcombine.high %v575_v17, %v583_v18  ;;  %v16642_v44 = vcombine.low %v575_v17, %v583_v18  ;;  %v19937_v62 = vld [vmem:[%s25676_s10 + $0x38] sm:$0xff]   ;;  %v19942_v12 = vld [vmem:[%s25676_s10 + $0xb0] sm:$0xff]   ;;  %v21649_v0 = vsub.s32 0, %v21047_v14 }
 0xcf2   : > { %v21430_v30 = vpack.c.bf16 %v2384_v13, %v2383_v55  ;;  %v19938_v21 = vld [vmem:[%s25676_s10 + $0xb8] sm:$0xff]   ;;  %v19943_v55 = vld [vmem:[%s25676_s10 + $0x68] sm:$0xff]   ;;  %25778 = vst [vmem:[#allocation17_spill] sm:$0xff] %v21646_v63  ;;  %v21652_v1 = vsub.s32 2, %v21047_v14 }
 0xcf3   : > { %v21462_v56 = vpack.c.bf16 %v2385_v46, %v2385_v46  ;;  %v19944_v13 = vld [vmem:[%s25676_s10 + $0xe8] sm:$0xff]   ;;  %v19955_v46 = vld [vmem:[%s25676_s10 + $0x50] sm:$0xff]   ;;  %25779 = vst [vmem:[#allocation18_spill] sm:$0xff] %v21649_v0 }
 0xcf4   : > { %16660 = vmatmul.mubr.msk.bf16.vlgmr.msra.gmra.mxu0 %vm895_vm0, %v21430_v30  ;;  %16662 = vmatmul.mubr.msk.bf16.vlgmr.msra.gmra.mxu1 %vm895_vm0, %v21430_v30  ;;  %25780 = vst [vmem:[#allocation19_spill] sm:$0xff] %v21652_v1 }
 0xcf5   : > { %2681 = vmatprep.mubr.bf16.mxu0 %v25728_v36  ;;  %2732 = vmatprep.mubr.bf16.mxu1 %v25728_v36 }
 0xcf6   : > { %2754 = vmatpush1.bf16.msra.mxu0 %v16648_v43  ;;  %2805 = vmatpush1.bf16.msra.mxu1 %v16650_v5  ;;  %v16652_v43 = vcombine.low %v588_v35, %v596_v40  ;;  %v16654_v5 = vcombine.low %v589_v45, %v597_v6  ;;  %v19951_v35 = vld [vmem:[%s25676_s10 + $0x58] sm:$0xff]  }
 0xcf7   : > { %2755 = vmatprep.subr.bf16.mxu0 %v16633_v33  ;;  %2806 = vmatprep.subr.bf16.mxu1 %v16635_v34  ;;  %v19949_v33 = vld [vmem:[%s25676_s10 + $0x20] sm:$0xff]   ;;  %v19952_v40 = vld [vmem:[%s25676_s10 + $0xd8] sm:$0xff]  }
 0xcf8   : > { %v19950_v34 = vld [vmem:[%s25676_s10 + $0xa0] sm:$0xff]   ;;  %v19953_v45 = vld [vmem:[%s25676_s10 + $0x18] sm:$0xff]  }
 0xcf9   : > { %v19954_v6 = vld [vmem:[%s25676_s10 + $0x98] sm:$0xff]  }
 0xcfa   : > { %2756 = vmatpush1.bf16.msra.mxu0 %v16632_v47  ;;  %2807 = vmatpush1.bf16.msra.mxu1 %v16634_v48  ;;  %v19956_v47 = vld [vmem:[%s25676_s10 + $0xd0] sm:$0xff]  }
 0xcfb   : > { %2855 = vmatprep.subr.bf16.mxu0 %v16653_v51  ;;  %2906 = vmatprep.subr.bf16.mxu1 %v16655_v53  ;;  %v19957_v48 = vld [vmem:[%s25676_s10 + $0x10] sm:$0xff]   ;;  %v19959_v53 = vld [vmem:[%s25676_s10 + $0x48] sm:$0xff]  }
 0xcfc   : > { %16661 = vmatmul.mubr.msk.bf16.gmra.mxu0 %vm895_vm0, %v21462_v56  ;;  %16663 = vmatmul.mubr.msk.bf16.gmra.mxu1 %vm895_vm0, %v21462_v56  ;;  %v19958_v51 = vld [vmem:[%s25676_s10 + $0x90] sm:$0xff]  }
 0xcfd   : > { %2773 = vmatprep.mubr.bf16.mxu0 %v25728_v36  ;;  %2824 = vmatprep.mubr.bf16.mxu1 %v25728_v36 }
 0xd04   : > { %16664 = vmatmul.mubr.msk.bf16.vlgmr.msra.gmra.mxu0 %vm895_vm0, %v21430_v30  ;;  %16666 = vmatmul.mubr.msk.bf16.vlgmr.msra.gmra.mxu1 %vm895_vm0, %v21430_v30 }
 0xd05   : > { %2783 = vmatprep.mubr.bf16.mxu0 %v25728_v36  ;;  %2834 = vmatprep.mubr.bf16.mxu1 %v25728_v36 }
 0xd06   : > { %2856 = vmatpush1.bf16.msra.mxu0 %v16652_v43  ;;  %2907 = vmatpush1.bf16.msra.mxu1 %v16654_v5  ;;  %v19965_v43 = vld [vmem:[%s25676_s10] sm:$0xff]  }
 0xd07   : > { %2857 = vmatprep.subr.bf16.mxu0 %v16637_v57  ;;  %2908 = vmatprep.subr.bf16.mxu1 %v16639_v59  ;;  %v19966_v5 = vld [vmem:[%s25676_s10 + $0x80] sm:$0xff]   ;;  %v19967_v57 = vld [vmem:[%s25676_s10 + $0x178] sm:$0xff]  }
 0xd08   : > { %v19968_v59 = vld [vmem:[%s25676_s10 + $0x1f8] sm:$0xff]  }
 0xd0a   : > { %2858 = vmatpush1.bf16.msra.mxu0 %v16636_v2  ;;  %2909 = vmatpush1.bf16.msra.mxu1 %v16638_v4  ;;  %v21657_v2 = vld [vmem:[%s25675_s9] sm:$0xff] }
 0xd0b   : > { %2957 = vmatprep.subr.bf16.mxu0 %v16657_v9  ;;  %3008 = vmatprep.subr.bf16.mxu1 %v16659_v52  ;;  %v2400_v52 = vrot.slane %v21657_v2, %v21643_v60  ;;  %v2408_v10 = vrot.slane %v21657_v2, %v21646_v63  ;;  %v2396_v16 = vrot.slane %v21657_v2, %v21649_v0 }
 0xd0c   : > { %16665 = vmatmul.mubr.msk.bf16.gmra.mxu0 %vm895_vm0, %v21462_v56  ;;  %16667 = vmatmul.mubr.msk.bf16.gmra.mxu1 %vm895_vm0, %v21462_v56  ;;  %v2404_v17 = vrot.slane %v21657_v2, %v21652_v1 }
 0xd0d   : > { %2875 = vmatprep.mubr.bf16.mxu0 %v25728_v36  ;;  %2926 = vmatprep.mubr.bf16.mxu1 %v25728_v36 }
 0xd14   : > { %16668 = vmatmul.mubr.msk.bf16.vlgmr.msra.gmra.mxu0 %vm895_vm0, %v21430_v30  ;;  %16670 = vmatmul.mubr.msk.bf16.vlgmr.msra.gmra.mxu1 %vm895_vm0, %v21430_v30 }
 0xd15   : > { %2885 = vmatprep.mubr.bf16.mxu0 %v25728_v36  ;;  %2936 = vmatprep.mubr.bf16.mxu1 %v25728_v36 }
 0xd16   : > { %2958 = vmatpush1.bf16.msra.mxu0 %v16656_v19  ;;  %3009 = vmatpush1.bf16.msra.mxu1 %v16658_v41 }
 0xd17   : > { %2959 = vmatprep.subr.bf16.mxu0 %v16641_v54  ;;  %3010 = vmatprep.subr.bf16.mxu1 %v16643_v58 }
 0xd1a   : > { %2960 = vmatpush1.bf16.msra.mxu0 %v16640_v3  ;;  %3011 = vmatpush1.bf16.msra.mxu1 %v16642_v44 }
 0xd1b   : > { %18398 = vmatprep.subr.bf16.mxu0 %v19935_v7  ;;  %18426 = vmatprep.subr.bf16.mxu1 %v19936_v61 }
 0xd1c   : > { %16669 = vmatmul.mubr.msk.bf16.gmra.mxu0 %vm895_vm0, %v21462_v56  ;;  %16671 = vmatmul.mubr.msk.bf16.gmra.mxu1 %vm895_vm0, %v21462_v56 }
 0xd1d   : > { %2977 = vmatprep.mubr.bf16.mxu0 %v25728_v36  ;;  %3028 = vmatprep.mubr.bf16.mxu1 %v25728_v36 }
 0xd24   : > { %16672 = vmatmul.mubr.msk.bf16.vlgmr.msra.gmra.mxu0 %vm895_vm0, %v21430_v30  ;;  %16674 = vmatmul.mubr.msk.bf16.vlgmr.msra.gmra.mxu1 %vm895_vm0, %v21430_v30  ;;  %v19948_v30 = vld [vmem:[%s25676_s10 + $0xe0] sm:$0xff]  }
 0xd25   : > { %2987 = vmatprep.mubr.bf16.mxu0 %v25728_v36  ;;  %3038 = vmatprep.mubr.bf16.mxu1 %v25728_v36 }
 0xd26   : > { %18399 = vmatpush3.bf16.msra.mxu0 %v19937_v62  ;;  %18427 = vmatpush3.bf16.msra.mxu1 %v19938_v21 }
 0xd27   : > { %18400 = vmatprep.subr.bf16.mxu0 %v19939_v22  ;;  %18428 = vmatprep.subr.bf16.mxu1 %v19940_v25 }
 0xd2a   : > { %18401 = vmatpush3.bf16.msra.mxu0 %v19941_v11  ;;  %18429 = vmatpush3.bf16.msra.mxu1 %v19942_v12 }
 0xd2b   : > { %18402 = vmatprep.subr.bf16.mxu0 %v19943_v55  ;;  %18430 = vmatprep.subr.bf16.mxu1 %v19944_v13 }
 0xd2c   : > { %16673 = vmatmul.mubr.msk.bf16.gmra.mxu0 %vm895_vm0, %v21462_v56  ;;  %16675 = vmatmul.mubr.msk.bf16.gmra.mxu1 %vm895_vm0, %v21462_v56  ;;  %v19960_v56 = vld [vmem:[%s25676_s10 + $0xc8] sm:$0xff]  }
 0xd2e   : > { %18403 = vmatpush3.bf16.msra.mxu0 %v19945_v15  ;;  %18431 = vmatpush3.bf16.msra.mxu1 %v19946_v27 }
 0xd2f   : > { %18404 = vmatprep.subr.bf16.mxu0 %v19947_v29  ;;  %18432 = vmatprep.subr.bf16.mxu1 %v19948_v30 }
 0xd32   : > { %18405 = vmatpush3.bf16.msra.mxu0 %v19949_v33  ;;  %18433 = vmatpush3.bf16.msra.mxu1 %v19950_v34 }
 0xd33   : > { %18406 = vmatprep.subr.bf16.mxu0 %v19951_v35  ;;  %18434 = vmatprep.subr.bf16.mxu1 %v19952_v40 }
 0xd36   : > { %18407 = vmatpush3.bf16.msra.mxu0 %v19953_v45  ;;  %18435 = vmatpush3.bf16.msra.mxu1 %v19954_v6 }
 0xd37   : > { %18408 = vmatprep.subr.bf16.mxu0 %v19955_v46  ;;  %18436 = vmatprep.subr.bf16.mxu1 %v19956_v47 }
 0xd3a   : > { %18409 = vmatpush3.bf16.msra.mxu0 %v19957_v48  ;;  %18437 = vmatpush3.bf16.msra.mxu1 %v19958_v51  ;;  %v19969_v51 = vld [vmem:[%s25676_s10 + $0x138] sm:$0xff]  }
 0xd3b   : > { %18410 = vmatprep.subr.bf16.mxu0 %v19959_v53  ;;  %18438 = vmatprep.subr.bf16.mxu1 %v19960_v56  ;;  %v19970_v53 = vld [vmem:[%s25676_s10 + $0x1b8] sm:$0xff]  }
 0xd3e   : > { %18411 = vmatpush3.bf16.msra.mxu0 %v19961_v37  ;;  %18439 = vmatpush3.bf16.msra.mxu1 %v19962_v38 }
 0xd3f   : > { %18412 = vmatprep.subr.bf16.mxu0 %v19963_v39  ;;  %18440 = vmatprep.subr.bf16.mxu1 %v19964_v42 }
 0xd42   : > { %18413 = vmatpush3.bf16.msra.mxu0 %v19965_v43  ;;  %18441 = vmatpush3.bf16.msra.mxu1 %v19966_v5  ;;  %v19971_v5 = vld [vmem:[%s25676_s10 + $0x170] sm:$0xff]  }
 0xd43   : > { %18454 = vmatprep.subr.bf16.mxu0 %v19967_v57  ;;  %18482 = vmatprep.subr.bf16.mxu1 %v19968_v59  ;;  %v19972_v57 = vld [vmem:[%s25676_s10 + $0x1f0] sm:$0xff]  }
 0xdb4   : > { %v2673_v4 = vpop.f32.mrf.mxu0  ;;  %v2724_v9 = vpop.f32.mrf.mxu1 }
 0xdb5   : > { %v2674_v61 = vadd.f32 %v2673_v4, %v2396_v16  ;;  %v2725_v62 = vadd.f32 %v2724_v9, %v2404_v17  ;;  %v21680_v9 = vsub.s32 5, %v21047_v14 }
 0xdb6   : > { %v2675_v18 = vpop.f32.mrf.mxu0  ;;  %v2726_v19 = vpop.f32.mrf.mxu1 }
 0xdb7   : > { %v2676_v58 = vadd.f32 %v2675_v18, %v2400_v52  ;;  %v2727_v3 = vadd.f32 %v2726_v19, %v2408_v10  ;;  %v3047_v34 = vmax.f32 %v2674_v61, 0.0  ;;  %v3049_v35 = vmax.f32 %v2725_v62, 0.0  ;;  %25781 = vst [vmem:[#allocation20_spill] sm:$0xff] %v21680_v9  ;;  %v19973_v19 = vld [vmem:[%s25676_s10 + $0x130] sm:$0xff]   ;;  %v19976_v61 = vld [vmem:[%s25676_s10 + $0x1e8] sm:$0xff]  }
 0xdb8   : > { %v2677_v41 = vpop.f32.mrf.mxu0  ;;  %v2728_v54 = vpop.f32.mrf.mxu1  ;;  %v21703_v62 = vrot.slane %v21657_v2, %v21680_v9 }
 0xdb9   : > { %v2678_v44 = vadd.f32 %v2677_v41, %v2396_v16  ;;  %v2729_v7 = vadd.f32 %v2728_v54, %v2404_v17  ;;  %v3048_v27 = vmax.f32 %v2676_v58, 0.0  ;;  %v3050_v29 = vmax.f32 %v2727_v3, 0.0  ;;  %v19974_v41 = vld [vmem:[%s25676_s10 + $0x1b0] sm:$0xff]  }
 0xdba   : > { %v2679_v21 = vpop.f32.mrf.mxu0  ;;  %v2730_v22 = vpop.f32.mrf.mxu1 }
 0xdbb   : > { %v2680_v25 = vadd.f32 %v2679_v21, %v2400_v52  ;;  %v2731_v11 = vadd.f32 %v2730_v22, %v2408_v10  ;;  %v3063_v12 = vmax.f32 %v2678_v44, 0.0  ;;  %v3065_v55 = vmax.f32 %v2729_v7, 0.0  ;;  %v19975_v7 = vld [vmem:[%s25676_s10 + $0x168] sm:$0xff]  }
 0xdbc   : > { %v2683_v13 = vpop.f32.mrf.mxu0  ;;  %v2734_v15 = vpop.f32.mrf.mxu1 }
 0xdbd   : > { %v3064_v30 = vmax.f32 %v2680_v25, 0.0  ;;  %v3066_v33 = vmax.f32 %v2731_v11, 0.0  ;;  %v3095_v56 = vpack.c.bf16 %v3063_v12, %v3047_v34  ;;  %v3097_v37 = vpack.c.bf16 %v3065_v55, %v3049_v35  ;;  %v19977_v11 = vld [vmem:[%s25676_s10 + $0x128] sm:$0xff]  }
 0xdbe   : > { %v2685_v40 = vpop.f32.mrf.mxu0  ;;  %v2736_v45 = vpop.f32.mrf.mxu1  ;;  %v2684_v38 = vadd.f32 %v2683_v13, %v2396_v16  ;;  %v2735_v39 = vadd.f32 %v2734_v15, %v2404_v17  ;;  %v21683_v16 = vsub.s32 7, %v21047_v14  ;;  %v19978_v12 = vld [vmem:[%s25676_s10 + $0x1a8] sm:$0xff]  }
 0xdbf   : > { %v2686_v6 = vadd.f32 %v2685_v40, %v2400_v52  ;;  %v2737_v46 = vadd.f32 %v2736_v45, %v2408_v10  ;;  %v3096_v47 = vpack.c.bf16 %v3064_v30, %v3048_v27  ;;  %v3098_v48 = vpack.c.bf16 %v3066_v33, %v3050_v29  ;;  %v19979_v29 = vld [vmem:[%s25676_s10 + $0x160] sm:$0xff]  }
 0xdc0   : > { %v2687_v42 = vpop.f32.mrf.mxu0  ;;  %v2738_v43 = vpop.f32.mrf.mxu1  ;;  %25782 = vst [vmem:[#allocation21_spill] sm:$0xff] %v21683_v16  ;;  %v3079_v54 = vmax.f32 %v2684_v38, 0.0  ;;  %v3081_v58 = vmax.f32 %v2735_v39, 0.0  ;;  %v21707_v22 = vrot.slane %v21657_v2, %v21683_v16  ;;  %v19980_v30 = vld [vmem:[%s25676_s10 + $0x1e0] sm:$0xff]  }
 0xdc1   : > { %v3080_v59 = vmax.f32 %v2686_v6, 0.0  ;;  %v3082_v4 = vmax.f32 %v2737_v46, 0.0  ;;  %3933 = vmatprep.mubr.bf16.mxu0 %v3096_v47  ;;  %3981 = vmatprep.mubr.bf16.mxu1 %v3098_v48  ;;  %v19981_v46 = vld [vmem:[%s25676_s10 + $0x120] sm:$0xff]  }
 0xdc2   : > { %v2688_v52 = vpop.f32.mrf.mxu0  ;;  %v2739_v10 = vpop.f32.mrf.mxu1  ;;  %3934 = vmatmul.mubr.bf16.vlgmr.msra.gmra.mxu0 %v3095_v56  ;;  %3982 = vmatmul.mubr.bf16.vlgmr.msra.gmra.mxu1 %v3097_v37  ;;  %v3111_v55 = vpack.c.bf16 %v3079_v54, %v3079_v54  ;;  %v3113_v13 = vpack.c.bf16 %v3081_v58, %v3081_v58  ;;  %v19982_v47 = vld [vmem:[%s25676_s10 + $0x1a0] sm:$0xff]   ;;  %v19984_v56 = vld [vmem:[%s25676_s10 + $0x1d8] sm:$0xff]   ;;  %v21759_v54 = vsub.s32 6, %v21047_v14 }
 0xdc3   : > { %v3112_v17 = vpack.c.bf16 %v3080_v59, %v3080_v59  ;;  %v3114_v18 = vpack.c.bf16 %v3082_v4, %v3082_v4  ;;  %18455 = vmatpush3.bf16.msra.mxu0 %v19969_v51  ;;  %18483 = vmatpush3.bf16.msra.mxu1 %v19970_v53  ;;  %v19983_v53 = vld [vmem:[%s25676_s10 + $0x158] sm:$0xff]  }
 0xdc4   : > { %v21691_v3 = vpop.f32.mrf.mxu0  ;;  %v21693_v44 = vpop.f32.mrf.mxu1  ;;  %18456 = vmatprep.subr.bf16.mxu0 %v19971_v5  ;;  %18484 = vmatprep.subr.bf16.mxu1 %v19972_v57  ;;  %v19985_v59 = vld [vmem:[%s25676_s10 + $0x118] sm:$0xff]   ;;  %25784 = vst [vmem:[#allocation23_spill] sm:$0xff] %v21759_v54 }
 0xdc5   : > { %3941 = vmatprep.mubr.bf16.mxu0 %v3112_v17  ;;  %3989 = vmatprep.mubr.bf16.mxu1 %v3114_v18  ;;  %v19986_v4 = vld [vmem:[%s25676_s10 + $0x198] sm:$0xff]   ;;  %v19987_v18 = vld [vmem:[%s25676_s10 + $0x150] sm:$0xff]  }
 0xdc6   : > { %v2777_v21 = vpop.f32.mrf.mxu0  ;;  %v2828_v25 = vpop.f32.mrf.mxu1 }
 0xdc7   : > { %18457 = vmatpush3.bf16.msra.mxu0 %v19973_v19  ;;  %18485 = vmatpush3.bf16.msra.mxu1 %v19974_v41  ;;  %v2778_v33 = vadd.f32 %v2777_v21, %v21703_v62  ;;  %v2829_v34 = vadd.f32 %v2828_v25, %v21707_v22  ;;  %v19988_v19 = vld [vmem:[%s25676_s10 + $0x1d0] sm:$0xff]   ;;  %v21756_v41 = vsub.s32 4, %v21047_v14  ;;  %v19991_v14 = vld [vmem:[%s25676_s10 + $0x148] sm:$0xff]  }
 0xdc8   : > { %v2779_v15 = vpop.f32.mrf.mxu0  ;;  %v21715_v27 = vpop.f32.mrf.mxu1  ;;  %18458 = vmatprep.subr.bf16.mxu0 %v19975_v7  ;;  %18486 = vmatprep.subr.bf16.mxu1 %v19976_v61  ;;  %v19989_v61 = vld [vmem:[%s25676_s10 + $0x110] sm:$0xff]  }
 0xdc9   : > { %v3052_v37 = vmax.f32 %v2778_v33, 0.0  ;;  %v3054_v42 = vmax.f32 %v2829_v34, 0.0  ;;  %25783 = vst [vmem:[#allocation22_spill] sm:$0xff] %v21756_v41  ;;  %v19990_v21 = vld [vmem:[%s25676_s10 + $0x190] sm:$0xff]   ;;  %v19993_v34 = vld [vmem:[%s25676_s10 + $0x108] sm:$0xff]  }
 0xdca   : > { %v2781_v35 = vpop.f32.mrf.mxu0  ;;  %v2832_v40 = vpop.f32.mrf.mxu1  ;;  %3942 = vmatmul.mubr.bf16.gmra.mxu0 %v3111_v55  ;;  %3990 = vmatmul.mubr.bf16.gmra.mxu1 %v3113_v13  ;;  %v2412_v55 = vrot.slane %v21657_v2, %v21756_v41  ;;  %v2420_v13 = vrot.slane %v21657_v2, %v21759_v54 }
 0xdcb   : > { %v2782_v45 = vadd.f32 %v2781_v35, %v21703_v62  ;;  %v2833_v6 = vadd.f32 %v2832_v40, %v21707_v22  ;;  %18459 = vmatpush3.bf16.msra.mxu0 %v19977_v11  ;;  %18487 = vmatpush3.bf16.msra.mxu1 %v19978_v12  ;;  %v19992_v12 = vld [vmem:[%s25676_s10 + $0x1c8] sm:$0xff]  }
 0xdcc   : > { %v21733_v48 = vpop.f32.mrf.mxu0  ;;  %v21735_v51 = vpop.f32.mrf.mxu1  ;;  %18460 = vmatprep.subr.bf16.mxu0 %v19979_v29  ;;  %18488 = vmatprep.subr.bf16.mxu1 %v19980_v30  ;;  %v2780_v33 = vadd.f32 %v2779_v15, %v2412_v55  ;;  %v19994_v35 = vld [vmem:[%s25676_s10 + $0x188] sm:$0xff]   ;;  %v2831_v40 = vadd.f32 %v21715_v27, %v2420_v13  ;;  %v19995_v15 = vld [vmem:[%s25676_s10 + $0x140] sm:$0xff]  }
 0xdcd   : > { %v3068_v38 = vmax.f32 %v2782_v45, 0.0  ;;  %v3070_v39 = vmax.f32 %v2833_v6, 0.0  ;;  %v19996_v6 = vld [vmem:[%s25676_s10 + $0x1c0] sm:$0xff]  }
 0xdce   : > { %v2787_v43 = vpop.f32.mrf.mxu0  ;;  %v2838_v5 = vpop.f32.mrf.mxu1 }
 0xdcf   : > { %18461 = vmatpush3.bf16.msra.mxu0 %v19981_v46  ;;  %18489 = vmatpush3.bf16.msra.mxu1 %v19982_v47  ;;  %v3100_v57 = vpack.c.bf16 %v3068_v38, %v3052_v37  ;;  %v3102_v17 = vpack.c.bf16 %v3070_v39, %v3054_v42  ;;  %v2776_v46 = vadd.f32 %v21691_v3, %v2412_v55  ;;  %v3067_v38 = vmax.f32 %v2780_v33, 0.0  ;;  %v19997_v39 = vld [vmem:[%s25676_s10 + $0x100] sm:$0xff]   ;;  %v20001_v33 = vld [vmem:[%s25676_s10 + $0x238] sm:$0xff]  }
 0xdd0   : > { %v2789_v52 = vpop.f32.mrf.mxu0  ;;  %v2840_v10 = vpop.f32.mrf.mxu1  ;;  %18462 = vmatprep.subr.bf16.mxu0 %v19983_v53  ;;  %18490 = vmatprep.subr.bf16.mxu1 %v19984_v56  ;;  %v2788_v47 = vadd.f32 %v2787_v43, %v21703_v62  ;;  %v2839_v27 = vadd.f32 %v2838_v5, %v21707_v22  ;;  %v2827_v53 = vadd.f32 %v21693_v44, %v2420_v13  ;;  %v19998_v42 = vld [vmem:[%s25676_s10 + $0x180] sm:$0xff]   ;;  %v3069_v3 = vmax.f32 %v2831_v40, 0.0  ;;  %v19999_v44 = vld [vmem:[%s25676_s10 + $0x278] sm:$0xff]  }
 0xdd1   : > { %4029 = vmatprep.mubr.bf16.mxu0 %v3100_v57  ;;  %4077 = vmatprep.mubr.bf16.mxu1 %v3102_v17  ;;  %v20000_v22 = vld [vmem:[%s25676_s10 + $0x2f8] sm:$0xff]   ;;  %v3051_v43 = vmax.f32 %v2776_v46, 0.0  ;;  %v21825_v52 = vld [vmem:[%s25675_s9 + $0x8] sm:$0xff] }
 0xdd2   : > { %v2790_v58 = vpop.f32.mrf.mxu0  ;;  %v2841_v7 = vpop.f32.mrf.mxu1  ;;  %v3084_v5 = vmax.f32 %v2788_v47, 0.0 }
 0xdd3   : > { %18463 = vmatpush3.bf16.msra.mxu0 %v19985_v59  ;;  %18491 = vmatpush3.bf16.msra.mxu1 %v19986_v4  ;;  %v3086_v59 = vmax.f32 %v2839_v27, 0.0  ;;  %v3053_v4 = vmax.f32 %v2827_v53, 0.0  ;;  %v21837_v58 = vrot.slane %v21825_v52, %v21646_v63 }
 0xdd4   : > { %v21767_v25 = vpop.f32.mrf.mxu0  ;;  %v21769_v11 = vpop.f32.mrf.mxu1  ;;  %18464 = vmatprep.subr.bf16.mxu0 %v19987_v18  ;;  %18492 = vmatprep.subr.bf16.mxu1 %v19988_v19  ;;  %v3099_v18 = vpack.c.bf16 %v3067_v38, %v3051_v43  ;;  %v21833_v19 = vrot.slane %v21825_v52, %v21643_v60  ;;  %v20005_v38 = vld [vmem:[%s25676_s10 + $0x230] sm:$0xff]  }
 0xdd5   : > { %v3101_v7 = vpack.c.bf16 %v3069_v3, %v3053_v4  ;;  %v3118_v40 = vpack.c.bf16 %v3086_v59, %v3086_v59  ;;  %v20008_v3 = vld [vmem:[%s25676_s10 + $0x2e8] sm:$0xff]  }
 0xdd6   : > { %v21781_v29 = vpop.f32.mrf.mxu0  ;;  %v21783_v30 = vpop.f32.mrf.mxu1 }
 0xdd7   : > { %18465 = vmatpush3.bf16.msra.mxu0 %v19989_v61  ;;  %18493 = vmatpush3.bf16.msra.mxu1 %v19990_v21  ;;  %v2786_v61 = vadd.f32 %v21733_v48, %v2412_v55  ;;  %v2837_v21 = vadd.f32 %v21735_v51, %v2420_v13  ;;  %v20003_v51 = vld [vmem:[%s25676_s10 + $0x270] sm:$0xff]   ;;  %v2880_v46 = vadd.f32 %v21781_v29, %v21833_v19 }
 0xdd8   : > { %v21792_v45 = vpop.f32.mrf.mxu0  ;;  %v21794_v2 = vpop.f32.mrf.mxu1  ;;  %18466 = vmatprep.subr.bf16.mxu0 %v19991_v14  ;;  %18494 = vmatprep.subr.bf16.mxu1 %v19992_v12  ;;  %v20004_v55 = vld [vmem:[%s25676_s10 + $0x2f0] sm:$0xff]   ;;  %v2931_v47 = vadd.f32 %v21783_v30, %v21837_v58 }
 0xdd9   : > { %v3083_v27 = vmax.f32 %v2786_v61, 0.0  ;;  %v3085_v53 = vmax.f32 %v2837_v21, 0.0  ;;  %v20006_v29 = vld [vmem:[%s25676_s10 + $0x2b0] sm:$0xff]   ;;  %v3056_v43 = vmax.f32 %v2880_v46, 0.0  ;;  %v20009_v61 = vld [vmem:[%s25676_s10 + $0x228] sm:$0xff]  }
 0xdda   : > { %v2883_v56 = vpop.f32.mrf.mxu0  ;;  %v2934_v37 = vpop.f32.mrf.mxu1  ;;  %v20010_v21 = vld [vmem:[%s25676_s10 + $0x2a8] sm:$0xff]  }
 0xddb   : > { %18467 = vmatpush3.bf16.msra.mxu0 %v19993_v34  ;;  %18495 = vmatpush3.bf16.msra.mxu1 %v19994_v35  ;;  %v20002_v34 = vld [vmem:[%s25676_s10 + $0x2b8] sm:$0xff]   ;;  %v3116_v35 = vpack.c.bf16 %v3084_v5, %v3084_v5  ;;  %v2935_v48 = vadd.f32 %v2934_v37, %v21837_v58  ;;  %v3058_v5 = vmax.f32 %v2931_v47, 0.0  ;;  %v3115_v59 = vpack.c.bf16 %v3083_v27, %v3083_v27 }
 0xddc   : > { %v21812_v57 = vpop.f32.mrf.mxu0  ;;  %v21814_v62 = vpop.f32.mrf.mxu1  ;;  %18468 = vmatprep.subr.bf16.mxu0 %v19995_v15  ;;  %18496 = vmatprep.subr.bf16.mxu1 %v19996_v6  ;;  %v2884_v15 = vadd.f32 %v2883_v56, %v21833_v19  ;;  %v3117_v4 = vpack.c.bf16 %v3085_v53, %v3085_v53 }
 0xddd   : > { %v3074_v30 = vmax.f32 %v2935_v48, 0.0 }
 0xdde   : > { %v21827_v10 = vpop.f32.mrf.mxu0  ;;  %v21829_v17 = vpop.f32.mrf.mxu1 }
 0xddf   : > { %18469 = vmatpush3.bf16.msra.mxu0 %v19997_v39  ;;  %18497 = vmatpush3.bf16.msra.mxu1 %v19998_v42  ;;  %v3072_v39 = vmax.f32 %v2884_v15, 0.0  ;;  %v20007_v42 = vld [vmem:[%s25676_s10 + $0x268] sm:$0xff]  }
 0xde0   : > { %v2891_v14 = vpop.f32.mrf.mxu0  ;;  %v2942_v12 = vpop.f32.mrf.mxu1  ;;  %18510 = vmatprep.subr.bf16.mxu0 %v19999_v44  ;;  %18538 = vmatprep.subr.bf16.mxu1 %v20000_v22 }
 0xde1   : > { %v3104_v14 = vpack.c.bf16 %v3072_v39, %v3056_v43  ;;  %v3106_v12 = vpack.c.bf16 %v3074_v30, %v3058_v5  ;;  %v20019_v39 = vld [vmem:[%s25676_s10 + $0x250] sm:$0xff]  }
 0xde2   : > { %4030 = vmatmul.mubr.bf16.vlgmr.msra.gmra.mxu0 %v3099_v18  ;;  %4078 = vmatmul.mubr.bf16.vlgmr.msra.gmra.mxu1 %v3101_v7  ;;  %v2892_v13 = vpop.f32.mrf.mxu0  ;;  %v2943_v6 = vpop.f32.mrf.mxu1  ;;  %v20020_v30 = vld [vmem:[%s25676_s10 + $0x2d0] sm:$0xff]  }
 0xde3   : > { %4037 = vmatprep.mubr.bf16.mxu0 %v3116_v35  ;;  %4085 = vmatprep.mubr.bf16.mxu1 %v3118_v40  ;;  %v20015_v13 = vld [vmem:[%s25676_s10 + $0x258] sm:$0xff]   ;;  %v20021_v43 = vld [vmem:[%s25676_s10 + $0x210] sm:$0xff]  }
 0xde4   : > { %18511 = vmatpush3.bf16.msra.mxu0 %v20001_v33  ;;  %18539 = vmatpush3.bf16.msra.mxu1 %v20002_v34  ;;  %v21859_v56 = vpop.f32.mrf.mxu0  ;;  %v21861_v37 = vpop.f32.mrf.mxu1  ;;  %v20011_v33 = vld [vmem:[%s25676_s10 + $0x260] sm:$0xff]   ;;  %v20016_v6 = vld [vmem:[%s25676_s10 + $0x2d8] sm:$0xff]   ;;  %v20022_v5 = vld [vmem:[%s25676_s10 + $0x290] sm:$0xff]  }
 0xde5   : > { %18512 = vmatprep.subr.bf16.mxu0 %v20003_v51  ;;  %18540 = vmatprep.subr.bf16.mxu1 %v20004_v55  ;;  %v20012_v34 = vld [vmem:[%s25676_s10 + $0x2e0] sm:$0xff]  }
 0xde6   : > { %v21875_v44 = vpop.f32.mrf.mxu0  ;;  %v21877_v22 = vpop.f32.mrf.mxu1  ;;  %v20013_v51 = vld [vmem:[%s25676_s10 + $0x220] sm:$0xff]  }
 0xde7   : > { %v20014_v55 = vld [vmem:[%s25676_s10 + $0x2a0] sm:$0xff]  }
 0xde8   : > { %18513 = vmatpush3.bf16.msra.mxu0 %v20005_v38  ;;  %18541 = vmatpush3.bf16.msra.mxu1 %v20006_v29  ;;  %v21879_v18 = vpop.f32.mrf.mxu0  ;;  %v21881_v7 = vpop.f32.mrf.mxu1  ;;  %v20017_v38 = vld [vmem:[%s25676_s10 + $0x218] sm:$0xff]  }
 0xde9   : > { %18514 = vmatprep.subr.bf16.mxu0 %v20007_v42  ;;  %18542 = vmatprep.subr.bf16.mxu1 %v20008_v3  ;;  %v20018_v29 = vld [vmem:[%s25676_s10 + $0x298] sm:$0xff]  }
 0xdea   : > { %4038 = vmatmul.mubr.bf16.gmra.mxu0 %v3115_v59  ;;  %4086 = vmatmul.mubr.bf16.gmra.mxu1 %v3117_v4  ;;  %v21895_v35 = vpop.f32.mrf.mxu0  ;;  %v21897_v40 = vpop.f32.mrf.mxu1  ;;  %v20023_v59 = vld [vmem:[%s25676_s10 + $0x248] sm:$0xff]  }
 0xdeb   : > { %4125 = vmatprep.mubr.bf16.mxu0 %v3104_v14  ;;  %4173 = vmatprep.mubr.bf16.mxu1 %v3106_v12  ;;  %v20024_v4 = vld [vmem:[%s25676_s10 + $0x2c8] sm:$0xff]  }
 0xdec   : > { %18515 = vmatpush3.bf16.msra.mxu0 %v20009_v61  ;;  %18543 = vmatpush3.bf16.msra.mxu1 %v20010_v21  ;;  %v21899_v15 = vpop.f32.mrf.mxu0  ;;  %v21901_v48 = vpop.f32.mrf.mxu1  ;;  %v2428_v61 = vrot.slane %v21825_v52, %v21649_v0  ;;  %v2436_v21 = vrot.slane %v21825_v52, %v21652_v1  ;;  %v20025_v12 = vld [vmem:[%s25676_s10 + $0x208] sm:$0xff]  }
 0xded   : > { %18516 = vmatprep.subr.bf16.mxu0 %v20011_v33  ;;  %18544 = vmatprep.subr.bf16.mxu1 %v20012_v34  ;;  %v20026_v33 = vld [vmem:[%s25676_s10 + $0x288] sm:$0xff]  }
 0xdee   : > { %v21915_v46 = vpop.f32.mrf.mxu0  ;;  %v21917_v47 = vpop.f32.mrf.mxu1  ;;  %v2882_v14 = vadd.f32 %v21792_v45, %v2428_v61  ;;  %v2933_v34 = vadd.f32 %v21794_v2, %v2436_v21  ;;  %v20028_v45 = vld [vmem:[%s25676_s10 + $0x2c0] sm:$0xff]   ;;  %v2929_v2 = vadd.f32 %v21769_v11, %v2436_v21  ;;  %v20032_v11 = vld [vmem:[%s25676_s10 + $0x3f8] sm:$0xff]  }
 0xdf0   : > { %18517 = vmatpush3.bf16.msra.mxu0 %v20013_v51  ;;  %18545 = vmatpush3.bf16.msra.mxu1 %v20014_v55  ;;  %v2993_v27 = vpop.f32.mrf.mxu0  ;;  %v3044_v53 = vpop.f32.mrf.mxu1  ;;  %v20027_v51 = vld [vmem:[%s25676_s10 + $0x240] sm:$0xff]   ;;  %v2878_v55 = vadd.f32 %v21767_v25, %v2428_v61  ;;  %v3073_v25 = vmax.f32 %v2933_v34, 0.0 }
 0xdf1   : > { %18518 = vmatprep.subr.bf16.mxu0 %v20015_v13  ;;  %18546 = vmatprep.subr.bf16.mxu1 %v20016_v6  ;;  %v2890_v13 = vadd.f32 %v21827_v10, %v21833_v19  ;;  %v2941_v6 = vadd.f32 %v21829_v17, %v21837_v58  ;;  %v3071_v27 = vmax.f32 %v2882_v14, 0.0  ;;  %v20029_v53 = vld [vmem:[%s25676_s10 + $0x200] sm:$0xff]   ;;  %v20031_v10 = vld [vmem:[%s25676_s10 + $0x378] sm:$0xff]  }
 0xdf2   : > { %v2994_v42 = vpop.f32.mrf.mxu0  ;;  %v3045_v3 = vpop.f32.mrf.mxu1  ;;  %v3055_v17 = vmax.f32 %v2878_v55, 0.0 }
 0xdf3   : > { %v3088_v19 = vmax.f32 %v2890_v13, 0.0  ;;  %v3090_v58 = vmax.f32 %v2941_v6, 0.0  ;;  %v21985_v42 = vrot.slane %v21825_v52, %v21683_v16 }
 0xdf4   : > { %18519 = vmatpush3.bf16.msra.mxu0 %v20017_v38  ;;  %18547 = vmatpush3.bf16.msra.mxu1 %v20018_v29  ;;  %v20030_v38 = vld [vmem:[%s25676_s10 + $0x280] sm:$0xff]   ;;  %v3057_v29 = vmax.f32 %v2929_v2, 0.0 }
 0xdf5   : > { %18520 = vmatprep.subr.bf16.mxu0 %v20019_v39  ;;  %18548 = vmatprep.subr.bf16.mxu1 %v20020_v30  ;;  %v3103_v39 = vpack.c.bf16 %v3071_v27, %v3055_v17  ;;  %v21981_v30 = vrot.slane %v21825_v52, %v21680_v9  ;;  %v3120_v14 = vpack.c.bf16 %v3088_v19, %v3088_v19  ;;  %v20043_v17 = vld [vmem:[%s25676_s10 + $0x360] sm:$0xff]  }
 0xdf6   : > { %v3105_v3 = vpack.c.bf16 %v3073_v25, %v3057_v29  ;;  %v3033_v34 = vadd.f32 %v21877_v22, %v21985_v42  ;;  %v20040_v22 = vld [vmem:[%s25676_s10 + $0x3e8] sm:$0xff]   ;;  %v20044_v19 = vld [vmem:[%s25676_s10 + $0x3e0] sm:$0xff]  }
 0xdf7   : > { %v20042_v25 = vld [vmem:[%s25676_s10 + $0x3a8] sm:$0xff]   ;;  %v20046_v29 = vld [vmem:[%s25676_s10 + $0x3a0] sm:$0xff]  }
 0xdf8   : > { %18521 = vmatpush3.bf16.msra.mxu0 %v20021_v43  ;;  %18549 = vmatpush3.bf16.msra.mxu1 %v20022_v5  ;;  %v2888_v43 = vadd.f32 %v21812_v57, %v2428_v61  ;;  %v2939_v5 = vadd.f32 %v21814_v62, %v2436_v21  ;;  %v3037_v57 = vadd.f32 %v21897_v40, %v21985_v42  ;;  %v20035_v62 = vld [vmem:[%s25676_s10 + $0x370] sm:$0xff]   ;;  %v3062_v2 = vmax.f32 %v3033_v34, 0.0  ;;  %v20057_v34 = vld [vmem:[%s25676_s10 + $0x308] sm:$0xff]  }
 0xdf9   : > { %18522 = vmatprep.subr.bf16.mxu0 %v20023_v59  ;;  %18550 = vmatprep.subr.bf16.mxu1 %v20024_v4  ;;  %v20033_v59 = vld [vmem:[%s25676_s10 + $0x338] sm:$0xff]   ;;  %v20036_v61 = vld [vmem:[%s25676_s10 + $0x3f0] sm:$0xff]   ;;  %v2982_v21 = vadd.f32 %v21875_v44, %v21981_v30  ;;  %v20039_v44 = vld [vmem:[%s25676_s10 + $0x368] sm:$0xff]  }
 0xdfa   : > { %v20034_v4 = vld [vmem:[%s25676_s10 + $0x3b8] sm:$0xff]   ;;  %v3089_v40 = vmax.f32 %v2939_v5, 0.0  ;;  %v3078_v13 = vmax.f32 %v3037_v57, 0.0  ;;  %v20056_v57 = vld [vmem:[%s25676_s10 + $0x3c8] sm:$0xff]  }
 0xdfb   : > { %v3060_v6 = vmax.f32 %v2982_v21, 0.0  ;;  %v20050_v5 = vld [vmem:[%s25676_s10 + $0x398] sm:$0xff]  }
 0xdfc   : > { %18523 = vmatpush3.bf16.msra.mxu0 %v20025_v12  ;;  %18551 = vmatpush3.bf16.msra.mxu1 %v20026_v33  ;;  %v3122_v12 = vpack.c.bf16 %v3090_v58, %v3090_v58  ;;  %v2986_v33 = vadd.f32 %v21895_v35, %v21981_v30  ;;  %v3087_v35 = vmax.f32 %v2888_v43, 0.0  ;;  %v20045_v58 = vld [vmem:[%s25676_s10 + $0x320] sm:$0xff]   ;;  %v20049_v43 = vld [vmem:[%s25676_s10 + $0x318] sm:$0xff]  }
 0xdfd   : > { %18524 = vmatprep.subr.bf16.mxu0 %v20027_v51  ;;  %18552 = vmatprep.subr.bf16.mxu1 %v20028_v45  ;;  %v20037_v51 = vld [vmem:[%s25676_s10 + $0x330] sm:$0xff]  }
 0xdfe   : > { %v20038_v45 = vld [vmem:[%s25676_s10 + $0x3b0] sm:$0xff]   ;;  %v3076_v55 = vmax.f32 %v2986_v33, 0.0  ;;  %v3119_v27 = vpack.c.bf16 %v3087_v35, %v3087_v35  ;;  %v20055_v33 = vld [vmem:[%s25676_s10 + $0x348] sm:$0xff]  }
 0xdff   : > { %v20058_v35 = vld [vmem:[%s25676_s10 + $0x388] sm:$0xff]  }
 0xe00   : > { %18525 = vmatpush3.bf16.msra.mxu0 %v20029_v53  ;;  %18553 = vmatpush3.bf16.msra.mxu1 %v20030_v38  ;;  %v3121_v53 = vpack.c.bf16 %v3089_v40, %v3089_v40  ;;  %v20041_v38 = vld [vmem:[%s25676_s10 + $0x328] sm:$0xff]  }
 0xe01   : > { %18566 = vmatprep.subr.bf16.mxu0 %v20031_v10  ;;  %18594 = vmatprep.subr.bf16.mxu1 %v20032_v11  ;;  %v3108_v10 = vpack.c.bf16 %v3076_v55, %v3060_v6  ;;  %v3110_v11 = vpack.c.bf16 %v3078_v13, %v3062_v2 }
 0xe03   : > { %4126 = vmatmul.mubr.bf16.vlgmr.msra.gmra.mxu0 %v3103_v39  ;;  %4174 = vmatmul.mubr.bf16.vlgmr.msra.gmra.mxu1 %v3105_v3  ;;  %v20047_v39 = vld [vmem:[%s25676_s10 + $0x358] sm:$0xff]  }
 0xe04   : > { %4133 = vmatprep.mubr.bf16.mxu0 %v3120_v14  ;;  %4181 = vmatprep.mubr.bf16.mxu1 %v3122_v12  ;;  %v20048_v3 = vld [vmem:[%s25676_s10 + $0x3d8] sm:$0xff]   ;;  %v20053_v14 = vld [vmem:[%s25676_s10 + $0x310] sm:$0xff]  }
 0xe05   : > { %18567 = vmatpush3.bf16.msra.mxu0 %v20033_v59  ;;  %18595 = vmatpush3.bf16.msra.mxu1 %v20034_v4  ;;  %v20051_v59 = vld [vmem:[%s25676_s10 + $0x350] sm:$0xff]  }
 0xe06   : > { %18568 = vmatprep.subr.bf16.mxu0 %v20035_v62  ;;  %18596 = vmatprep.subr.bf16.mxu1 %v20036_v61  ;;  %v20052_v4 = vld [vmem:[%s25676_s10 + $0x3d0] sm:$0xff]   ;;  %v2444_v62 = vrot.slane %v21825_v52, %v21756_v41  ;;  %v2452_v61 = vrot.slane %v21825_v52, %v21759_v54  ;;  %v20059_v52 = vld [vmem:[%s25676_s10 + $0x340] sm:$0xff]  }
 0xe07   : > { %v20054_v12 = vld [vmem:[%s25676_s10 + $0x390] sm:$0xff]  }
 0xe08   : > { %v2984_v21 = vadd.f32 %v21879_v18, %v2444_v62  ;;  %v3035_v40 = vadd.f32 %v21881_v7, %v2452_v61  ;;  %v20060_v18 = vld [vmem:[%s25676_s10 + $0x3c0] sm:$0xff]   ;;  %v2992_v7 = vadd.f32 %v21915_v46, %v21981_v30  ;;  %v3031_v55 = vadd.f32 %v21861_v37, %v2452_v61  ;;  %v20063_v37 = vld [vmem:[%s25668_s2 + $0x18] sm:$0xff]  }
 0xe09   : > { %18569 = vmatpush3.bf16.msra.mxu0 %v20037_v51  ;;  %18597 = vmatpush3.bf16.msra.mxu1 %v20038_v45  ;;  %v2980_v51 = vadd.f32 %v21859_v56, %v2444_v62  ;;  %v3043_v45 = vadd.f32 %v21917_v47, %v21985_v42  ;;  %v541_v46 = vld [vmem:[%s22092_s26] sm:$0xff] }
 0xe0a   : > { %18570 = vmatprep.subr.bf16.mxu0 %v20039_v44  ;;  %18598 = vmatprep.subr.bf16.mxu1 %v20040_v22  ;;  %v3075_v13 = vmax.f32 %v2984_v21, 0.0  ;;  %v20061_v44 = vld [vmem:[%s25676_s10 + $0x300] sm:$0xff]   ;;  %v3077_v56 = vmax.f32 %v3035_v40, 0.0  ;;  %v3092_v30 = vmax.f32 %v2992_v7, 0.0  ;;  %v3061_v6 = vmax.f32 %v3031_v55, 0.0 }
 0xe0b   : > { %4134 = vmatmul.mubr.bf16.gmra.mxu0 %v3119_v27  ;;  %4182 = vmatmul.mubr.bf16.gmra.mxu1 %v3121_v53  ;;  %v20062_v22 = vld [vmem:[%s25676_s10 + $0x380] sm:$0xff]   ;;  %v3059_v47 = vmax.f32 %v2980_v51, 0.0  ;;  %v3094_v42 = vmax.f32 %v3043_v45, 0.0  ;;  %v22110_v27 = vcombine.high %v541_v46, %v541_v46 }
 0xe0c   : > { %4221 = vmatprep.mubr.bf16.mxu0 %v3108_v10  ;;  %4269 = vmatprep.mubr.bf16.mxu1 %v3110_v11  ;;  %v3109_v53 = vpack.c.bf16 %v3077_v56, %v3061_v6  ;;  %v542_v10 = vld [vmem:[%s22092_s26 + $0x8] sm:$0xf]  ;;  %v543_v11 = vld [vmem:[%s22092_s26 + $0x10] sm:$0xff] }
 0xe0d   : > { %18571 = vmatpush3.bf16.msra.mxu0 %v20041_v38  ;;  %18599 = vmatpush3.bf16.msra.mxu1 %v20042_v25  ;;  %v3107_v2 = vpack.c.bf16 %v3075_v13, %v3059_v47  ;;  %v2990_v38 = vadd.f32 %v21899_v15, %v2444_v62  ;;  %v3041_v25 = vadd.f32 %v21901_v48, %v2452_v61  ;;  %v16676_v62 = vld [vmem:[%s25677_s11] ss:$0 sm:$0xff] }
 0xe0e   : > { %18572 = vmatprep.subr.bf16.mxu0 %v20043_v17  ;;  %18600 = vmatprep.subr.bf16.mxu1 %v20044_v19  ;;  %v3124_v17 = vpack.c.bf16 %v3092_v30, %v3092_v30  ;;  %v3126_v19 = vpack.c.bf16 %v3094_v42, %v3094_v42  ;;  %v4827_v15 = vcombine.low %v541_v46, %v22110_v27 }
 0xe0f   : > { %v3091_v48 = vmax.f32 %v2990_v38, 0.0 }
 0xe11   : > { %18573 = vmatpush3.bf16.msra.mxu0 %v20045_v58  ;;  %18601 = vmatpush3.bf16.msra.mxu1 %v20046_v29  ;;  %v20064_v58 = vld [vmem:[%s25668_s2 + $0x10] sm:$0xff]   ;;  %v4828_v29 = vcombine.low %v542_v10, %v543_v11 }
 0xe12   : > { %18574 = vmatprep.subr.bf16.mxu0 %v20047_v39  ;;  %18602 = vmatprep.subr.bf16.mxu1 %v20048_v3  ;;  %v3093_v39 = vmax.f32 %v3041_v25, 0.0  ;;  %v22121_v3 = vcombine.high %v543_v11, %v543_v11 }
 0xe15   : > { %18575 = vmatpush3.bf16.msra.mxu0 %v20049_v43  ;;  %18603 = vmatpush3.bf16.msra.mxu1 %v20050_v5  ;;  %v544_v43 = vld [vmem:[%s22092_s26 + $0x18] sm:$0xf]  ;;  %v4833_v5 = vpack.c.bf16 %v4828_v29, %v4827_v15 }
 0xe16   : > { %18576 = vmatprep.subr.bf16.mxu0 %v20051_v59  ;;  %18604 = vmatprep.subr.bf16.mxu1 %v20052_v4  ;;  %v3123_v59 = vpack.c.bf16 %v3091_v48, %v3091_v48  ;;  %v3125_v4 = vpack.c.bf16 %v3093_v39, %v3093_v39 }
 0xe19   : > { %18577 = vmatpush3.bf16.msra.mxu0 %v20053_v14  ;;  %18605 = vmatpush3.bf16.msra.mxu1 %v20054_v12  ;;  %v4829_v14 = vcombine.low %v22121_v3, %v544_v43 }
 0xe1a   : > { %18578 = vmatprep.subr.bf16.mxu0 %v20055_v33  ;;  %18606 = vmatprep.subr.bf16.mxu1 %v20056_v57 }
 0xe1b   : > { %v4834_v12 = vpack.c.bf16 %v4829_v14, %v4829_v14 }
 0xe1d   : > { %18579 = vmatpush3.bf16.msra.mxu0 %v20057_v34  ;;  %18607 = vmatpush3.bf16.msra.mxu1 %v20058_v35 }
 0xe1e   : > { %18580 = vmatprep.subr.bf16.mxu0 %v20059_v52  ;;  %18608 = vmatprep.subr.bf16.mxu1 %v20060_v18 }
 0xe21   : > { %18581 = vmatpush3.bf16.msra.mxu0 %v20061_v44  ;;  %18609 = vmatpush3.bf16.msra.mxu1 %v20062_v22 }
 0xe22   : > { %19526 = vmatprep.subr.bf16.mxu0 %v20063_v37  ;;  %19534 = vmatprep.subr.bf16.mxu1 %v25730_v26 }
 0xe24   : > { %4222 = vmatmul.mubr.bf16.vlgmr.msra.gmra.mxu0 %v3107_v2  ;;  %4270 = vmatmul.mubr.bf16.vlgmr.msra.gmra.mxu1 %v3109_v53 }
 0xe25   : > { %4229 = vmatprep.mubr.bf16.mxu0 %v3124_v17  ;;  %4277 = vmatprep.mubr.bf16.mxu1 %v3126_v19 }
 0xe26   : > { %19527 = vmatpush3.bf16.msra.mxu0 %v20063_v37 }
 0xe27   : > { %19528 = vmatprep.subr.bf16.mxu0 %v20064_v58 }
 0xe2a   : > { %19529 = vmatpush3.bf16.msra.mxu0 %v20064_v58 }
 0xe2b   : > { %19540 = vmatprep.subr.bf16.mxu0 %v25730_v26 }
 0xe2c   : > { %4230 = vmatmul.mubr.bf16.gmra.mxu0 %v3123_v59  ;;  %4278 = vmatmul.mubr.bf16.gmra.mxu1 %v3125_v4 }
 0xe2d   : > { %19530 = vmatprep.mubr.msk.bf16.mxu0 %vm895_vm0, %v4833_v5  ;;  %19536 = vmatprep.mubr.msk.bf16.mxu1 %vm20868_vm1, %v25730_v26 }
 0xe34   : > { %19531 = vmatmul.mubr.msk.bf16.vlgmr.msra.gmra.mxu0 %vm895_vm0, %v4834_v12 }
 0xe35   : > { %19542 = vmatprep.mubr.msk.bf16.mxu0 %vm20868_vm1, %v25730_v26 }
 0xe82   : > { %v18414_v33 = vpop.f32.mrf.mxu0  ;;  %v18442_v57 = vpop.f32.mrf.mxu1 }
 0xe84   : > { %v18415_v61 = vpop.f32.mrf.mxu0  ;;  %v18443_v21 = vpop.f32.mrf.mxu1 }
 0xe85   : > { %v18416_v34 = vadd.f32 %v18415_v61, %v18414_v33  ;;  %v18444_v35 = vadd.f32 %v18443_v21, %v18442_v57 }
 0xe86   : > { %v18417_v40 = vpop.f32.mrf.mxu0  ;;  %v18445_v52 = vpop.f32.mrf.mxu1 }
 0xe87   : > { %v3936_v18 = vadd.f32 %v18416_v34, %v16676_v62 }
 0xe88   : > { %v18418_v51 = vpop.f32.mrf.mxu0  ;;  %v18446_v7 = vpop.f32.mrf.mxu1 }
 0xe89   : > { %v3984_v45 = vadd.f32 %v18444_v35, %v3936_v18  ;;  %v18419_v55 = vadd.f32 %v18418_v51, %v18417_v40  ;;  %v18447_v56 = vadd.f32 %v18446_v7, %v18445_v52 }
 0xe8a   : > { %v18420_v13 = vpop.f32.mrf.mxu0  ;;  %v18448_v44 = vpop.f32.mrf.mxu1 }
 0xe8b   : > { %v3939_v22 = vadd.f32 %v18419_v55, %v16676_v62 }
 0xe8c   : > { %v18421_v37 = vpop.f32.mrf.mxu0  ;;  %v18449_v46 = vpop.f32.mrf.mxu1 }
 0xe8d   : > { %v3987_v47 = vadd.f32 %v18447_v56, %v3939_v22  ;;  %v18422_v30 = vadd.f32 %v18421_v37, %v18420_v13  ;;  %v18450_v42 = vadd.f32 %v18449_v46, %v18448_v44 }
 0xe8e   : > { %v18423_v6 = vpop.f32.mrf.mxu0  ;;  %v18451_v2 = vpop.f32.mrf.mxu1 }
 0xe8f   : > { %v3944_v53 = vadd.f32 %v18422_v30, %v16676_v62 }
 0xe90   : > { %v18424_v38 = vpop.f32.mrf.mxu0  ;;  %v18452_v25 = vpop.f32.mrf.mxu1 }
 0xe91   : > { %v3992_v10 = vadd.f32 %v18450_v42, %v3944_v53 }
 0xea2   : > { %v18470_v11 = vpop.f32.mrf.mxu0  ;;  %v18498_v17 = vpop.f32.mrf.mxu1 }
 0xea4   : > { %v18471_v19 = vpop.f32.mrf.mxu0  ;;  %v18499_v58 = vpop.f32.mrf.mxu1 }
 0xea5   : > { %v18472_v15 = vadd.f32 %v18471_v19, %v18470_v11  ;;  %v18500_v29 = vadd.f32 %v18499_v58, %v18498_v17 }
 0xea6   : > { %v18473_v48 = vpop.f32.mrf.mxu0  ;;  %v18501_v39 = vpop.f32.mrf.mxu1 }
 0xea7   : > { %v4032_v43 = vadd.f32 %v18472_v15, %v3984_v45 }
 0xea8   : > { %v18474_v5 = vpop.f32.mrf.mxu0  ;;  %v18502_v59 = vpop.f32.mrf.mxu1 }
 0xea9   : > { %v4080_v4 = vadd.f32 %v18500_v29, %v4032_v43  ;;  %v18475_v14 = vadd.f32 %v18474_v5, %v18473_v48  ;;  %v18503_v62 = vadd.f32 %v18502_v59, %v18501_v39 }
 0xeaa   : > { %v18476_v12 = vpop.f32.mrf.mxu0  ;;  %v18504_v33 = vpop.f32.mrf.mxu1 }
 0xeab   : > { %v4035_v57 = vadd.f32 %v18475_v14, %v3987_v47 }
 0xeac   : > { %v18477_v61 = vpop.f32.mrf.mxu0  ;;  %v18505_v21 = vpop.f32.mrf.mxu1 }
 0xead   : > { %v4083_v34 = vadd.f32 %v18503_v62, %v4035_v57  ;;  %v18478_v35 = vadd.f32 %v18477_v61, %v18476_v12  ;;  %v18506_v40 = vadd.f32 %v18505_v21, %v18504_v33 }
 0xeae   : > { %v18479_v52 = vpop.f32.mrf.mxu0  ;;  %v18507_v18 = vpop.f32.mrf.mxu1 }
 0xeaf   : > { %v4040_v51 = vadd.f32 %v18478_v35, %v3992_v10 }
 0xeb0   : > { %v18480_v7 = vpop.f32.mrf.mxu0  ;;  %v18508_v55 = vpop.f32.mrf.mxu1 }
 0xeb1   : > { %v4088_v13 = vadd.f32 %v18506_v40, %v4040_v51 }
 0xec3   : > { %v18526_v45 = vpop.f32.mrf.mxu0  ;;  %v18554_v44 = vpop.f32.mrf.mxu1 }
 0xec5   : > { %v18527_v22 = vpop.f32.mrf.mxu0  ;;  %v18555_v56 = vpop.f32.mrf.mxu1 }
 0xec6   : > { %v18528_v37 = vadd.f32 %v18527_v22, %v18526_v45  ;;  %v18556_v46 = vadd.f32 %v18555_v56, %v18554_v44 }
 0xec7   : > { %v18529_v30 = vpop.f32.mrf.mxu0  ;;  %v18557_v47 = vpop.f32.mrf.mxu1 }
 0xec8   : > { %v4128_v42 = vadd.f32 %v18528_v37, %v4080_v4 }
 0xec9   : > { %v18530_v6 = vpop.f32.mrf.mxu0  ;;  %v18558_v2 = vpop.f32.mrf.mxu1 }
 0xeca   : > { %v4176_v53 = vadd.f32 %v18556_v46, %v4128_v42  ;;  %v18531_v38 = vadd.f32 %v18530_v6, %v18529_v30  ;;  %v18559_v10 = vadd.f32 %v18558_v2, %v18557_v47 }
 0xecb   : > { %v18532_v25 = vpop.f32.mrf.mxu0  ;;  %v18560_v11 = vpop.f32.mrf.mxu1 }
 0xecc   : > { %v4131_v17 = vadd.f32 %v18531_v38, %v4083_v34  ;;  %v17112_v38 = vld [vmem:[%s25669_s3 + $0x1] ss:$0 sm:$0xff] }
 0xecd   : > { %v18533_v19 = vpop.f32.mrf.mxu0  ;;  %v18561_v58 = vpop.f32.mrf.mxu1 }
 0xece   : > { %v4179_v15 = vadd.f32 %v18559_v10, %v4131_v17  ;;  %v18534_v29 = vadd.f32 %v18533_v19, %v18532_v25  ;;  %v18562_v48 = vadd.f32 %v18561_v58, %v18560_v11 }
 0xecf   : > { %v18535_v39 = vpop.f32.mrf.mxu0  ;;  %v18563_v43 = vpop.f32.mrf.mxu1 }
 0xed0   : > { %v4136_v5 = vadd.f32 %v18534_v29, %v4088_v13 }
 0xed1   : > { %v18536_v59 = vpop.f32.mrf.mxu0  ;;  %v18564_v14 = vpop.f32.mrf.mxu1 }
 0xed2   : > { %v4184_v12 = vadd.f32 %v18562_v48, %v4136_v5 }
 0xee4   : > { %v18582_v4 = vpop.f32.mrf.mxu0  ;;  %v18610_v33 = vpop.f32.mrf.mxu1 }
 0xee6   : > { %v18583_v57 = vpop.f32.mrf.mxu0  ;;  %v18611_v62 = vpop.f32.mrf.mxu1 }
 0xee7   : > { %v18584_v61 = vadd.f32 %v18583_v57, %v18582_v4  ;;  %v18612_v21 = vadd.f32 %v18611_v62, %v18610_v33 }
 0xee8   : > { %v18585_v35 = vpop.f32.mrf.mxu0  ;;  %v18613_v34 = vpop.f32.mrf.mxu1 }
 0xee9   : > { %v4224_v40 = vadd.f32 %v18584_v61, %v4176_v53 }
 0xeea   : > { %v18586_v52 = vpop.f32.mrf.mxu0  ;;  %v18614_v18 = vpop.f32.mrf.mxu1 }
 0xeeb   : > { %v22135_v51 = vadd.f32 %v18612_v21, %v4224_v40  ;;  %v18587_v7 = vadd.f32 %v18586_v52, %v18585_v35  ;;  %v18615_v44 = vadd.f32 %v18614_v18, %v18613_v34 }
 0xeec   : > { %v18588_v55 = vpop.f32.mrf.mxu0  ;;  %v18616_v45 = vpop.f32.mrf.mxu1 }
 0xeed   : > { %v4227_v13 = vadd.f32 %v18587_v7, %v4179_v15 }
 0xeee   : > { %v18589_v22 = vpop.f32.mrf.mxu0  ;;  %v18617_v56 = vpop.f32.mrf.mxu1 }
 0xeef   : > { %v22137_v37 = vadd.f32 %v18615_v44, %v4227_v13  ;;  %v18590_v46 = vadd.f32 %v18589_v22, %v18588_v55  ;;  %v18618_v30 = vadd.f32 %v18617_v56, %v18616_v45 }
 0xef0   : > { %v18591_v47 = vpop.f32.mrf.mxu0  ;;  %v18619_v42 = vpop.f32.mrf.mxu1 }
 0xef1   : > { %v4232_v6 = vadd.f32 %v18590_v46, %v4184_v12 }
 0xef2   : > { %v18592_v2 = vpop.f32.mrf.mxu0  ;;  %v18620_v53 = vpop.f32.mrf.mxu1 }
 0xef3   : > { %v22142_v25 = vadd.f32 %v18618_v30, %v4232_v6 }
 0xef4   : > { %v19532_v11 = vpop.f32.mrf.mxu0 }
 0xef5   : > { %v4902_v17 = vadd.f32 %v19532_v11, %v17112_v38 }
 0xef6   : > { %v4893_v10 = vpop.f32.mrf.mxu0 }
 0xef7   : > { %v4908_v58 = vpack.c.bf16 %v4902_v17, %v4902_v17  ;;  %v4894_v29 = vadd.f32 %v17112_v38, %v4893_v10 }
 0xef8   : > { %v19533_v19 = vpop.f32.mrf.mxu0 }
 0xef9   : > { %v4934_v39 = vrot.slane %v4908_v58, %v21055_v28 }
 0xefa   : > { %v4896_v15 = vpop.f32.mrf.mxu0 }
 0xefb   : > { %v4897_v48 = vadd.f32 %v17112_v38, %v4896_v15  ;;  %v4935_v12 = vcombine.high %v4934_v39, %v4934_v39 }
 0xefd   : > { %v4907_v43 = vpack.c.bf16 %v4897_v48, %v4894_v29  ;;  %v17117_v5 = vpack.c.bf16 %v4897_v48, %v4897_v48  ;;  %v5015_v61 = vrot.slane %v4935_v12, %v21055_v28 }
 0xeff   : > { %v4918_v59 = vrot.slane %v4907_v43, %v21055_v28  ;;  %v4925_v14 = vrot.slane %v17117_v5, %v21055_v28 }
 0xf01   : > { %v4926_v4 = vcombine.high %v4918_v59, %v4918_v59  ;;  %v4927_v33 = vcombine.high %v4925_v14, %v4925_v14  ;;  %v4950_v35 = vrot.slane %v4925_v14, %v21055_v28 }
 0xf03   : > { %v4936_v57 = vcombine.low %v4918_v59, %v4926_v4  ;;  %v5001_v62 = vcombine.low %v4927_v33, %v4934_v39 }
 0xf05   : > { %v4943_v21 = vrot.slane %v4936_v57, %v21055_v28  ;;  %v5008_v34 = vrot.slane %v5001_v62, %v21055_v28 }
 0xf07   : > { %v22151_v40 = vcombine.low %v4943_v21, %v4950_v35  ;;  %v22153_v52 = vcombine.low %v5008_v34, %v5015_v61 }
 0xf09   : > { %5017 = vrot.lane.b32.xlu0 %v22153_v52, %s25787_s20  ;;  %4952 = vrot.lane.b32.xlu1 %v22151_v40, %s25787_s20 }
 0xf7b   : > { %v5018_v18 = vpop.permute.xlu0 %5017  ;;  %v4953_v7 = vpop.permute.xlu1 %4952 }
 0xf7c   : > { %v5023_v55 = vsel %vm997_vm2, %v5018_v18, 0  ;;  %v4958_v45 = vsel %vm997_vm2, %v4953_v7, 0 }
 0xf7d   : > { %19535 = vmatpush3.bf16.xpose.msra.mxu1 %v4958_v45  ;;  %19541 = vmatpush3.bf16.xpose.msra.mxu0 %v5023_v55 }
 0xf7e   : > { %19546 = vmatprep.subr.bf16.mxu1 %v25730_v26  ;;  %19552 = vmatprep.subr.bf16.mxu0 %v25730_v26 }
 0xf84   : > { %19537 = vmatmul.mubr.msk.bf16.vlgmr.msra.gmra.mxu1 %vm997_vm2, %v22151_v40  ;;  %19543 = vmatmul.mubr.msk.bf16.vlgmr.msra.gmra.mxu0 %vm997_vm2, %v22153_v52 }
 0xf85   : > { %19548 = vmatprep.mubr.msk.bf16.mxu1 %vm20868_vm1, %v25730_v26  ;;  %19554 = vmatprep.mubr.msk.bf16.mxu0 %vm20868_vm1, %v25730_v26 }
0x1044   : > { %v4994_v13 = vpop.f32.mrf.mxu1  ;;  %v5059_v44 = vpop.f32.mrf.mxu0 }
0x1045   : > { %v5066_v22 = vmul.f32 0.35355338, %v4994_v13  ;;  %v5068_v30 = vmul.f32 0.35355338, %v5059_v44 }
0x1046   : > { %v19538_v56 = vpop.f32.mrf.mxu1  ;;  %v19544_v46 = vpop.f32.mrf.mxu0 }
0x1047   : > { %v5070_v47 = vsel %vm1114_vm3, %v5066_v22, -inf  ;;  %v5076_v17 = vsel %vm1114_vm3, %v5068_v30, -inf }
0x1048   : > { %v5062_v42 = vpop.f32.mrf.mxu0  ;;  %5071 = vmax.xlane.f32.xlu1 %v5070_v47  ;;  %v4997_v6 = vpop.f32.mrf.mxu1 }
0x1049   : > { %v5067_v2 = vmul.f32 0.35355338, %v4997_v6  ;;  %v5069_v11 = vmul.f32 0.35355338, %v5062_v42 }
0x104a   : > { %v19539_v53 = vpop.f32.mrf.mxu1  ;;  %v19545_v38 = vpop.f32.mrf.mxu0 }
0x104b   : > { %v5073_v10 = vsel %vm1118_vm4, %v5067_v2, -inf  ;;  %v5079_v19 = vsel %vm1118_vm4, %v5069_v11, -inf }
0x104c   : > { %5077 = vmax.xlane.f32.xlu1 %v5076_v17  ;;  %5074 = vmax.xlane.f32.xlu0 %v5073_v10 }
0x1050   : > { %5080 = vmax.xlane.f32.xlu0 %v5079_v19 }
0x105d   : > { %5116 = vrot.lane.b32.xlu1 %v22151_v40, %s25788_s24 }
0x10d1   : > { %v5072_v58 = vpop.xlane.xlu1 %5071 }
0x10d2   : > { %v5082_v15 = vsub.f32 %v5066_v22, %v5072_v58 }
0x10d4   : > { %v5086_v29 = vmul.f32 1.442695, %v5082_v15 }
0x10d5   : > { %v5078_v48 = vpop.xlane.xlu1 %5077  ;;  %v5075_v39 = vpop.xlane.xlu0 %5074 }
0x10d6   : > { %20532 = vpow2.f32 %v5086_v29  ;;  %v5084_v43 = vsub.f32 %v5068_v30, %v5078_v48  ;;  %v5083_v5 = vsub.f32 %v5067_v2, %v5075_v39 }
0x10d8   : > { %v5090_v59 = vmul.f32 1.442695, %v5084_v43  ;;  %v5088_v14 = vmul.f32 1.442695, %v5083_v5 }
0x10d9   : > { %v5117_v12 = vpop.permute.xlu1 %5116  ;;  %v5081_v4 = vpop.xlane.xlu0 %5080 }
0x10da   : > { %20534 = vpow2.f32 %v5090_v59  ;;  %v5122_v33 = vsel %vm1167_vm5, %v5117_v12, 0  ;;  %v5085_v57 = vsub.f32 %v5069_v11, %v5081_v4 }
0x10db   : > { %20536 = vpow2.f32 %v5088_v14  ;;  %19547 = vmatpush3.bf16.msra.mxu1 %v5122_v33 }
0x10dc   : > { %v5092_v62 = vmul.f32 1.442695, %v5085_v57  ;;  %19558 = vmatprep.subr.bf16.mxu1 %v25730_v26 }
0x10de   : > { %20538 = vpow2.f32 %v5092_v62 }
0x10e3   : > { %v20533_v61 = vpop.eup %20532 }
0x10e4   : > { %v5094_v21 = vsel %vm1114_vm3, %v20533_v61, 0.0 }
0x10e5   : > { %5095 = vadd.xlane.f32.xlu1 %v5094_v21 }
0x10e7   : > { %v20535_v35 = vpop.eup %20534 }
0x10e8   : > { %v20537_v34 = vpop.eup %20536  ;;  %v5100_v18 = vsel %vm1114_vm3, %v20535_v35, 0.0 }
0x10e9   : > { %5101 = vadd.xlane.f32.xlu1 %v5100_v18  ;;  %v5097_v7 = vsel %vm1118_vm4, %v20537_v34, 0.0 }
0x10ea   : > { %5098 = vadd.xlane.f32.xlu0 %v5097_v7 }
0x10eb   : > { %v20539_v55 = vpop.eup %20538 }
0x10ec   : > { %v5103_v45 = vsel %vm1118_vm4, %v20539_v55, 0.0 }
0x10ee   : > { %5104 = vadd.xlane.f32.xlu0 %v5103_v45 }
0x10fa   : > { %5216 = vrot.lane.b32.xlu1 %v22151_v40, %s25789_s29 }
0x10fe   : > { %5267 = vrot.lane.b32.xlu1 %v22153_v52, %s25789_s29 }
0x1102   : > { %5265 = vrot.lane.b32.xlu1 %v22153_v52, %s25790_s27 }
0x1104   : > { %5165 = vrot.lane.b32.xlu0 %v22153_v52, %s25788_s24 }
0x1108   : > { %5214 = vrot.lane.b32.xlu0 %v22151_v40, %s25790_s27 }
0x116e   : > { %v5096_v13 = vpop.xlane.xlu1 %5095 }
0x116f   : > { %20540 = vrcp.f32 %v5096_v13 }
0x1172   : > { %v5102_v44 = vpop.xlane.xlu1 %5101 }
0x1173   : > { %v5099_v22 = vpop.xlane.xlu0 %5098 }
0x1174   : > { %20542 = vrcp.f32 %v5099_v22 }
0x1175   : > { %20544 = vrcp.f32 %v5102_v44 }
0x1176   : > { %v5217_v6 = vpop.permute.xlu1 %5216 }
0x1177   : > { %v5105_v56 = vpop.xlane.xlu0 %5104  ;;  %v5222_v10 = vsel %vm997_vm2, %v5217_v6, 0 }
0x1178   : > { %20546 = vrcp.f32 %v5105_v56 }
0x117a   : > { %v5268_v15 = vpop.permute.xlu1 %5267 }
0x117b   : > { %v5166_v46 = vpop.permute.xlu0 %5165  ;;  %v5273_v48 = vsel %vm997_vm2, %v5268_v15, 0 }
0x117c   : > { %v5171_v30 = vsel %vm1167_vm5, %v5166_v46, 0  ;;  %v20541_v47 = vpop.eup %20540 }
0x117d   : > { %19553 = vmatpush3.bf16.msra.mxu0 %v5171_v30  ;;  %v5110_v2 = vmul.f32 %v20541_v47, %v20533_v61 }
0x117e   : > { %19564 = vmatprep.subr.bf16.mxu0 %v25730_v26  ;;  %v5266_v43 = vpop.permute.xlu1 %5265 }
0x117f   : > { %v5215_v39 = vpop.permute.xlu0 %5214 }
0x1181   : > { %v20543_v42 = vpop.eup %20542 }
0x1182   : > { %v5111_v53 = vmul.f32 %v20543_v42, %v20537_v34  ;;  %v20545_v38 = vpop.eup %20544 }
0x1183   : > { %v5112_v19 = vmul.f32 %v20545_v38, %v20535_v35 }
0x1184   : > { %v5114_v11 = vpack.c.bf16 %v5111_v53, %v5110_v2 }
0x1185   : > { %v20547_v17 = vpop.eup %20546 }
0x1186   : > { %19549 = vmatmul.mubr.msk.bf16.vlgmr.msra.gmra.mxu1 %vm1114_vm3, %v5114_v11  ;;  %v5113_v58 = vmul.f32 %v20547_v17, %v20539_v55 }
0x1187   : > { %19559 = vmatpush3.bf16.xpose.msra.mxu1 %v5222_v10  ;;  %19560 = vmatprep.mubr.msk.bf16.mxu1 %vm20868_vm1, %v25730_v26 }
0x1188   : > { %v5115_v29 = vpack.c.bf16 %v5113_v58, %v5112_v19  ;;  %19570 = vmatprep.subr.bf16.mxu1 %v25730_v26 }
0x118a   : > { %19555 = vmatmul.mubr.msk.bf16.vlgmr.msra.gmra.mxu0 %vm1114_vm3, %v5115_v29 }
0x118b   : > { %19565 = vmatpush3.bf16.xpose.msra.mxu0 %v5273_v48  ;;  %19566 = vmatprep.mubr.msk.bf16.mxu0 %vm20868_vm1, %v25730_v26 }
0x118c   : > { %19576 = vmatprep.subr.bf16.mxu0 %v25730_v26 }
0x118e   : > { %19561 = vmatmul.mubr.msk.bf16.vlgmr.msra.gmra.mxu1 %vm997_vm2, %v5215_v39 }
0x118f   : > { %19572 = vmatprep.mubr.msk.bf16.mxu1 %vm20868_vm1, %v25730_v26 }
0x1192   : > { %19567 = vmatmul.mubr.msk.bf16.vlgmr.msra.gmra.mxu0 %vm997_vm2, %v5266_v43 }
0x1193   : > { %19578 = vmatprep.mubr.msk.bf16.mxu0 %vm20868_vm1, %v25730_v26 }
0x1246   : > { %v22211_v5 = vpop.f32.mrf.mxu1 }
0x1248   : > { %v19550_v59 = vpop.f32.mrf.mxu1 }
0x124a   : > { %v22213_v14 = vpop.f32.mrf.mxu1  ;;  %v22215_v12 = vpop.f32.mrf.mxu0 }
0x124c   : > { %v19551_v4 = vpop.f32.mrf.mxu1  ;;  %v19556_v33 = vpop.f32.mrf.mxu0 }
0x124e   : > { %v22217_v57 = vpop.f32.mrf.mxu0  ;;  %v5258_v62 = vpop.f32.mrf.mxu1 }
0x124f   : > { %v5316_v61 = vmul.f32 0.35355338, %v5258_v62 }
0x1250   : > { %v19557_v21 = vpop.f32.mrf.mxu0  ;;  %v19562_v35 = vpop.f32.mrf.mxu1 }
0x1251   : > { %v5320_v34 = vsel %vm1114_vm3, %v5316_v61, -inf }
0x1252   : > { %v5309_v18 = vpop.f32.mrf.mxu0  ;;  %5321 = vmax.xlane.f32.xlu0 %v5320_v34  ;;  %v5261_v7 = vpop.f32.mrf.mxu1 }
0x1253   : > { %v5318_v55 = vmul.f32 0.35355338, %v5309_v18  ;;  %v5317_v45 = vmul.f32 0.35355338, %v5261_v7 }
0x1254   : > { %v19563_v13 = vpop.f32.mrf.mxu1  ;;  %v19568_v44 = vpop.f32.mrf.mxu0 }
0x1255   : > { %v5326_v22 = vsel %vm1114_vm3, %v5318_v55, -inf  ;;  %v5323_v56 = vsel %vm1118_vm4, %v5317_v45, -inf }
0x1256   : > { %v5312_v46 = vpop.f32.mrf.mxu0  ;;  %5327 = vmax.xlane.f32.xlu0 %v5326_v22  ;;  %5324 = vmax.xlane.f32.xlu1 %v5323_v56 }
0x1257   : > { %v5319_v30 = vmul.f32 0.35355338, %v5312_v46 }
0x1258   : > { %v19569_v47 = vpop.f32.mrf.mxu0 }
0x1259   : > { %v5329_v42 = vsel %vm1118_vm4, %v5319_v30, -inf }
0x125a   : > { %5330 = vmax.xlane.f32.xlu0 %v5329_v42 }
0x1267   : > { %5366 = vrot.lane.b32.xlu1 %v22151_v40, %s25791_s23 }
0x12db   : > { %v5322_v6 = vpop.xlane.xlu0 %5321 }
0x12dc   : > { %v5332_v2 = vsub.f32 %v5316_v61, %v5322_v6 }
0x12de   : > { %v5336_v53 = vmul.f32 1.442695, %v5332_v2 }
0x12df   : > { %v5328_v38 = vpop.xlane.xlu0 %5327  ;;  %v5325_v11 = vpop.xlane.xlu1 %5324 }
0x12e0   : > { %20548 = vpow2.f32 %v5336_v53  ;;  %v5334_v17 = vsub.f32 %v5318_v55, %v5328_v38  ;;  %v5333_v10 = vsub.f32 %v5317_v45, %v5325_v11 }
0x12e2   : > { %v5340_v19 = vmul.f32 1.442695, %v5334_v17  ;;  %v5338_v58 = vmul.f32 1.442695, %v5333_v10 }
0x12e3   : > { %v5331_v15 = vpop.xlane.xlu0 %5330  ;;  %v5367_v29 = vpop.permute.xlu1 %5366 }
0x12e4   : > { %20550 = vpow2.f32 %v5340_v19  ;;  %v5335_v48 = vsub.f32 %v5319_v30, %v5331_v15  ;;  %v5372_v39 = vsel %vm1167_vm5, %v5367_v29, 0 }
0x12e5   : > { %20552 = vpow2.f32 %v5338_v58  ;;  %19571 = vmatpush3.bf16.msra.mxu1 %v5372_v39 }
0x12e6   : > { %v5342_v43 = vmul.f32 1.442695, %v5335_v48  ;;  %19582 = vmatprep.subr.bf16.mxu1 %v25730_v26 }
0x12e8   : > { %20554 = vpow2.f32 %v5342_v43 }
0x12ed   : > { %v20549_v59 = vpop.eup %20548 }
0x12ee   : > { %v5344_v4 = vsel %vm1114_vm3, %v20549_v59, 0.0 }
0x12ef   : > { %5345 = vadd.xlane.f32.xlu1 %v5344_v4 }
0x12f1   : > { %v20551_v33 = vpop.eup %20550 }
0x12f2   : > { %v20553_v62 = vpop.eup %20552  ;;  %v5350_v61 = vsel %vm1114_vm3, %v20551_v33, 0.0 }
0x12f3   : > { %5351 = vadd.xlane.f32.xlu1 %v5350_v61  ;;  %v5347_v21 = vsel %vm1118_vm4, %v20553_v62, 0.0 }
0x12f4   : > { %5348 = vadd.xlane.f32.xlu0 %v5347_v21 }
0x12f5   : > { %v20555_v35 = vpop.eup %20554 }
0x12f6   : > { %v5353_v34 = vsel %vm1118_vm4, %v20555_v35, 0.0 }
0x12f8   : > { %5354 = vadd.xlane.f32.xlu0 %v5353_v34 }
0x1304   : > { %5466 = vrot.lane.b32.xlu1 %v22151_v40, %s25792_s16 }
0x1308   : > { %5517 = vrot.lane.b32.xlu1 %v22153_v52, %s25792_s16 }
0x130c   : > { %5515 = vrot.lane.b32.xlu1 %v22153_v52, %s25793_s25 }
0x130e   : > { %5415 = vrot.lane.b32.xlu0 %v22153_v52, %s25791_s23 }
0x1312   : > { %5464 = vrot.lane.b32.xlu0 %v22151_v40, %s25793_s25 }
0x1378   : > { %v5346_v18 = vpop.xlane.xlu1 %5345 }
0x1379   : > { %20556 = vrcp.f32 %v5346_v18 }
0x137c   : > { %v5352_v55 = vpop.xlane.xlu1 %5351 }
0x137d   : > { %v5349_v7 = vpop.xlane.xlu0 %5348 }
0x137e   : > { %20558 = vrcp.f32 %v5349_v7 }
0x137f   : > { %20560 = vrcp.f32 %v5352_v55 }
0x1380   : > { %v5467_v46 = vpop.permute.xlu1 %5466 }
0x1381   : > { %v5355_v45 = vpop.xlane.xlu0 %5354  ;;  %v5472_v11 = vsel %vm997_vm2, %v5467_v46, 0 }
0x1382   : > { %20562 = vrcp.f32 %v5355_v45 }
0x1384   : > { %v5518_v17 = vpop.permute.xlu1 %5517 }
0x1385   : > { %v5416_v13 = vpop.permute.xlu0 %5415  ;;  %v5523_v19 = vsel %vm997_vm2, %v5518_v17, 0 }
0x1386   : > { %v5421_v44 = vsel %vm1167_vm5, %v5416_v13, 0  ;;  %v20557_v22 = vpop.eup %20556 }
0x1387   : > { %19577 = vmatpush3.bf16.msra.mxu0 %v5421_v44  ;;  %v5360_v30 = vmul.f32 %v20557_v22, %v20549_v59 }
0x1388   : > { %19588 = vmatprep.subr.bf16.mxu0 %v25730_v26  ;;  %v5516_v15 = vpop.permute.xlu1 %5515 }
0x1389   : > { %v5465_v58 = vpop.permute.xlu0 %5464 }
0x138b   : > { %v20559_v56 = vpop.eup %20558 }
0x138c   : > { %v5361_v47 = vmul.f32 %v20559_v56, %v20553_v62  ;;  %v20561_v42 = vpop.eup %20560 }
0x138d   : > { %v5362_v53 = vmul.f32 %v20561_v42, %v20551_v33 }
0x138e   : > { %v5364_v6 = vpack.c.bf16 %v5361_v47, %v5360_v30 }
0x138f   : > { %v20563_v2 = vpop.eup %20562 }
0x1390   : > { %v5363_v38 = vmul.f32 %v20563_v2, %v20555_v35  ;;  %19573 = vmatmul.mubr.msk.bf16.vlgmr.msra.gmra.mxu1 %vm1114_vm3, %v5364_v6 }
0x1391   : > { %19583 = vmatpush3.bf16.xpose.msra.mxu1 %v5472_v11  ;;  %19584 = vmatprep.mubr.msk.bf16.mxu1 %vm20868_vm1, %v25730_v26 }
0x1392   : > { %v5365_v10 = vpack.c.bf16 %v5363_v38, %v5362_v53  ;;  %19594 = vmatprep.subr.bf16.mxu1 %v25730_v26 }
0x1394   : > { %19579 = vmatmul.mubr.msk.bf16.vlgmr.msra.gmra.mxu0 %vm1114_vm3, %v5365_v10 }
0x1395   : > { %19589 = vmatpush3.bf16.xpose.msra.mxu0 %v5523_v19  ;;  %19590 = vmatprep.mubr.msk.bf16.mxu0 %vm20868_vm1, %v25730_v26 }
0x1396   : > { %19600 = vmatprep.subr.bf16.mxu0 %v25730_v26 }
0x1398   : > { %19585 = vmatmul.mubr.msk.bf16.vlgmr.msra.gmra.mxu1 %vm997_vm2, %v5465_v58 }
0x1399   : > { %19596 = vmatprep.mubr.msk.bf16.mxu1 %vm20868_vm1, %v25730_v26 }
0x139c   : > { %19591 = vmatmul.mubr.msk.bf16.vlgmr.msra.gmra.mxu0 %vm997_vm2, %v5516_v15 }
0x139d   : > { %19602 = vmatprep.mubr.msk.bf16.mxu0 %vm20868_vm1, %v25730_v26 }
0x1450   : > { %v22259_v29 = vpop.f32.mrf.mxu1 }
0x1452   : > { %v19574_v48 = vpop.f32.mrf.mxu1 }
0x1454   : > { %v22261_v39 = vpop.f32.mrf.mxu1  ;;  %v22263_v43 = vpop.f32.mrf.mxu0 }
0x1456   : > { %v19575_v59 = vpop.f32.mrf.mxu1  ;;  %v19580_v4 = vpop.f32.mrf.mxu0 }
0x1458   : > { %v22265_v33 = vpop.f32.mrf.mxu0  ;;  %v5508_v62 = vpop.f32.mrf.mxu1 }
0x1459   : > { %v5566_v61 = vmul.f32 0.35355338, %v5508_v62 }
0x145a   : > { %v19581_v21 = vpop.f32.mrf.mxu0  ;;  %v19586_v35 = vpop.f32.mrf.mxu1 }
0x145b   : > { %v5570_v34 = vsel %vm1114_vm3, %v5566_v61, -inf }
0x145c   : > { %v5559_v18 = vpop.f32.mrf.mxu0  ;;  %5571 = vmax.xlane.f32.xlu0 %v5570_v34  ;;  %v5511_v7 = vpop.f32.mrf.mxu1 }
0x145d   : > { %v5568_v55 = vmul.f32 0.35355338, %v5559_v18  ;;  %v5567_v45 = vmul.f32 0.35355338, %v5511_v7 }
0x145e   : > { %v19587_v13 = vpop.f32.mrf.mxu1  ;;  %v19592_v44 = vpop.f32.mrf.mxu0 }
0x145f   : > { %v5576_v22 = vsel %vm1114_vm3, %v5568_v55, -inf  ;;  %v5573_v56 = vsel %vm1118_vm4, %v5567_v45, -inf }
0x1460   : > { %v5562_v46 = vpop.f32.mrf.mxu0  ;;  %5577 = vmax.xlane.f32.xlu0 %v5576_v22  ;;  %5574 = vmax.xlane.f32.xlu1 %v5573_v56 }
0x1461   : > { %v5569_v30 = vmul.f32 0.35355338, %v5562_v46 }
0x1462   : > { %v19593_v47 = vpop.f32.mrf.mxu0 }
0x1463   : > { %v5579_v42 = vsel %vm1118_vm4, %v5569_v30, -inf }
0x1464   : > { %5580 = vmax.xlane.f32.xlu0 %v5579_v42 }
0x1471   : > { %5616 = vrot.lane.b32.xlu1 %v22151_v40, %s25794_s0 }
0x14e5   : > { %v5572_v6 = vpop.xlane.xlu0 %5571 }
0x14e6   : > { %v5582_v2 = vsub.f32 %v5566_v61, %v5572_v6 }
0x14e8   : > { %v5586_v53 = vmul.f32 1.442695, %v5582_v2 }
0x14e9   : > { %v5578_v38 = vpop.xlane.xlu0 %5577  ;;  %v5575_v11 = vpop.xlane.xlu1 %5574 }
0x14ea   : > { %20564 = vpow2.f32 %v5586_v53  ;;  %v5584_v17 = vsub.f32 %v5568_v55, %v5578_v38  ;;  %v5583_v10 = vsub.f32 %v5567_v45, %v5575_v11 }
0x14ec   : > { %v5590_v19 = vmul.f32 1.442695, %v5584_v17  ;;  %v5588_v58 = vmul.f32 1.442695, %v5583_v10 }
0x14ed   : > { %v5581_v15 = vpop.xlane.xlu0 %5580  ;;  %v5617_v48 = vpop.permute.xlu1 %5616 }
0x14ee   : > { %20566 = vpow2.f32 %v5590_v19  ;;  %v5585_v59 = vsub.f32 %v5569_v30, %v5581_v15  ;;  %v5622_v4 = vsel %vm1167_vm5, %v5617_v48, 0 }
0x14ef   : > { %20568 = vpow2.f32 %v5588_v58  ;;  %19595 = vmatpush3.bf16.msra.mxu1 %v5622_v4 }
0x14f0   : > { %v5592_v62 = vmul.f32 1.442695, %v5585_v59  ;;  %19606 = vmatprep.subr.bf16.mxu1 %v25730_v26 }
0x14f2   : > { %20570 = vpow2.f32 %v5592_v62 }
0x14f7   : > { %v20565_v61 = vpop.eup %20564 }
0x14f8   : > { %v5594_v21 = vsel %vm1114_vm3, %v20565_v61, 0.0 }
0x14f9   : > { %5595 = vadd.xlane.f32.xlu1 %v5594_v21 }
0x14fb   : > { %v20567_v35 = vpop.eup %20566 }
0x14fc   : > { %v20569_v34 = vpop.eup %20568  ;;  %v5600_v18 = vsel %vm1114_vm3, %v20567_v35, 0.0 }
0x14fd   : > { %5601 = vadd.xlane.f32.xlu1 %v5600_v18  ;;  %v5597_v7 = vsel %vm1118_vm4, %v20569_v34, 0.0 }
0x14fe   : > { %5598 = vadd.xlane.f32.xlu0 %v5597_v7 }
0x14ff   : > { %v20571_v55 = vpop.eup %20570 }
0x1500   : > { %v5603_v45 = vsel %vm1118_vm4, %v20571_v55, 0.0 }
0x1502   : > { %5604 = vadd.xlane.f32.xlu0 %v5603_v45 }
0x150e   : > { %5716 = vrot.lane.b32.xlu1 %v22151_v40, %s25795_s17 }
0x1512   : > { %5767 = vrot.lane.b32.xlu1 %v22153_v52, %s25795_s17 }
0x1516   : > { %5765 = vrot.lane.b32.xlu1 %v22153_v52, %s25796_s30 }
0x1518   : > { %5665 = vrot.lane.b32.xlu0 %v22153_v52, %s25794_s0 }
0x151c   : > { %5714 = vrot.lane.b32.xlu0 %v22151_v40, %s25796_s30 }
0x1582   : > { %v5596_v13 = vpop.xlane.xlu1 %5595 }
0x1583   : > { %20572 = vrcp.f32 %v5596_v13 }
0x1586   : > { %v5602_v22 = vpop.xlane.xlu1 %5601 }
0x1587   : > { %v5599_v44 = vpop.xlane.xlu0 %5598 }
0x1588   : > { %20574 = vrcp.f32 %v5599_v44 }
0x1589   : > { %20576 = vrcp.f32 %v5602_v22 }
0x158a   : > { %v5717_v6 = vpop.permute.xlu1 %5716 }
0x158b   : > { %v5605_v56 = vpop.xlane.xlu0 %5604  ;;  %v5722_v58 = vsel %vm997_vm2, %v5717_v6, 0 }
0x158c   : > { %20578 = vrcp.f32 %v5605_v56 }
0x158e   : > { %v5768_v15 = vpop.permute.xlu1 %5767 }
0x158f   : > { %v5666_v46 = vpop.permute.xlu0 %5665  ;;  %v5773_v59 = vsel %vm997_vm2, %v5768_v15, 0 }
0x1590   : > { %v5671_v30 = vsel %vm1167_vm5, %v5666_v46, 0  ;;  %v20573_v47 = vpop.eup %20572 }
0x1591   : > { %19601 = vmatpush3.bf16.msra.mxu0 %v5671_v30  ;;  %v5610_v2 = vmul.f32 %v20573_v47, %v20565_v61 }
0x1592   : > { %19612 = vmatprep.subr.bf16.mxu0 %v25730_v26  ;;  %v5766_v62 = vpop.permute.xlu1 %5765 }
0x1593   : > { %v5715_v4 = vpop.permute.xlu0 %5714 }
0x1595   : > { %v20575_v42 = vpop.eup %20574 }
0x1596   : > { %v5611_v53 = vmul.f32 %v20575_v42, %v20569_v34  ;;  %v20577_v38 = vpop.eup %20576 }
0x1597   : > { %v5612_v10 = vmul.f32 %v20577_v38, %v20567_v35 }
0x1598   : > { %v5614_v11 = vpack.c.bf16 %v5611_v53, %v5610_v2 }
0x1599   : > { %v20579_v17 = vpop.eup %20578 }
0x159a   : > { %v5613_v19 = vmul.f32 %v20579_v17, %v20571_v55  ;;  %19597 = vmatmul.mubr.msk.bf16.vlgmr.msra.gmra.mxu1 %vm1114_vm3, %v5614_v11 }
0x159b   : > { %19607 = vmatpush3.bf16.xpose.msra.mxu1 %v5722_v58  ;;  %19608 = vmatprep.mubr.msk.bf16.mxu1 %vm20868_vm1, %v25730_v26 }
0x159c   : > { %v5615_v48 = vpack.c.bf16 %v5613_v19, %v5612_v10  ;;  %19618 = vmatprep.subr.bf16.mxu1 %v25730_v26 }
0x159e   : > { %19603 = vmatmul.mubr.msk.bf16.vlgmr.msra.gmra.mxu0 %vm1114_vm3, %v5615_v48 }
0x159f   : > { %19613 = vmatpush3.bf16.xpose.msra.mxu0 %v5773_v59  ;;  %19614 = vmatprep.mubr.msk.bf16.mxu0 %vm20868_vm1, %v25730_v26 }
0x15a0   : > { %19624 = vmatprep.subr.bf16.mxu0 %v25730_v26 }
0x15a2   : > { %19609 = vmatmul.mubr.msk.bf16.vlgmr.msra.gmra.mxu1 %vm997_vm2, %v5715_v4 }
0x15a3   : > { %19620 = vmatprep.mubr.msk.bf16.mxu1 %vm20868_vm1, %v25730_v26 }
0x15a6   : > { %19615 = vmatmul.mubr.msk.bf16.vlgmr.msra.gmra.mxu0 %vm997_vm2, %v5766_v62 }
0x15a7   : > { %19626 = vmatprep.mubr.msk.bf16.mxu0 %vm20868_vm1, %v25730_v26 }
0x165a   : > { %v5658_v61 = vpop.f32.mrf.mxu1 }
0x165c   : > { %v19598_v21 = vpop.f32.mrf.mxu1 }
0x165e   : > { %v5661_v35 = vpop.f32.mrf.mxu1  ;;  %v5707_v34 = vpop.f32.mrf.mxu0 }
0x1660   : > { %v19599_v18 = vpop.f32.mrf.mxu1  ;;  %v19604_v7 = vpop.f32.mrf.mxu0 }
0x1662   : > { %v5710_v55 = vpop.f32.mrf.mxu0  ;;  %v5758_v45 = vpop.f32.mrf.mxu1 }
0x1663   : > { %v5816_v13 = vmul.f32 0.35355338, %v5758_v45 }
0x1664   : > { %v19605_v44 = vpop.f32.mrf.mxu0  ;;  %v19610_v22 = vpop.f32.mrf.mxu1 }
0x1665   : > { %v5820_v56 = vsel %vm1114_vm3, %v5816_v13, -inf }
0x1666   : > { %v5809_v46 = vpop.f32.mrf.mxu0  ;;  %5821 = vmax.xlane.f32.xlu0 %v5820_v56  ;;  %v5761_v30 = vpop.f32.mrf.mxu1 }
0x1667   : > { %v5818_v47 = vmul.f32 0.35355338, %v5809_v46  ;;  %v5817_v42 = vmul.f32 0.35355338, %v5761_v30 }
0x1668   : > { %v19611_v6 = vpop.f32.mrf.mxu1  ;;  %v19616_v2 = vpop.f32.mrf.mxu0 }
0x1669   : > { %v5826_v53 = vsel %vm1114_vm3, %v5818_v47, -inf  ;;  %v5823_v38 = vsel %vm1118_vm4, %v5817_v42, -inf }
0x166a   : > { %v5812_v11 = vpop.f32.mrf.mxu0  ;;  %5827 = vmax.xlane.f32.xlu0 %v5826_v53  ;;  %5824 = vmax.xlane.f32.xlu1 %v5823_v38 }
0x166b   : > { %v5819_v17 = vmul.f32 0.35355338, %v5812_v11 }
0x166c   : > { %v19617_v10 = vpop.f32.mrf.mxu0 }
0x166d   : > { %v5829_v19 = vsel %vm1118_vm4, %v5819_v17, -inf }
0x166e   : > { %5830 = vmax.xlane.f32.xlu0 %v5829_v19 }
0x16ef   : > { %v5822_v58 = vpop.xlane.xlu0 %5821 }
0x16f0   : > { %v5832_v15 = vsub.f32 %v5816_v13, %v5822_v58 }
0x16f2   : > { %v5836_v48 = vmul.f32 1.442695, %v5832_v15 }
0x16f3   : > { %v5828_v59 = vpop.xlane.xlu0 %5827  ;;  %v5825_v4 = vpop.xlane.xlu1 %5824 }
0x16f4   : > { %20580 = vpow2.f32 %v5836_v48  ;;  %v5834_v62 = vsub.f32 %v5818_v47, %v5828_v59  ;;  %v5833_v21 = vsub.f32 %v5817_v42, %v5825_v4  ;;  %v20068_v48 = vld [vmem:[%s25774_s4 + $0x18] sm:$0xff]   ;;  %v20069_v59 = vld [vmem:[%s25774_s4 + $0x10] sm:$0xff]   ;;  %s25807_s4 = sld [smem:[#allocation28_spill]] }
0x16f6   : > { %v5840_v18 = vmul.f32 1.442695, %v5834_v62  ;;  %v5838_v7 = vmul.f32 1.442695, %v5833_v21 }
0x16f7   : > { %v5831_v45 = vpop.xlane.xlu0 %5830 }
0x16f8   : > { %20582 = vpow2.f32 %v5840_v18  ;;  %v5835_v44 = vsub.f32 %v5819_v17, %v5831_v45 }
0x16f9   : > { %20584 = vpow2.f32 %v5838_v7 }
0x16fa   : > { %v5842_v22 = vmul.f32 1.442695, %v5835_v44 }
0x16fc   : > { %20586 = vpow2.f32 %v5842_v22 }
0x1701   : > { %v20581_v56 = vpop.eup %20580 }
0x1702   : > { %v5844_v46 = vsel %vm1114_vm3, %v20581_v56, 0.0 }
0x1703   : > { %5845 = vadd.xlane.f32.xlu1 %v5844_v46 }
0x1705   : > { %v20583_v30 = vpop.eup %20582 }
0x1706   : > { %v20585_v13 = vpop.eup %20584  ;;  %v5850_v6 = vsel %vm1114_vm3, %v20583_v30, 0.0 }
0x1707   : > { %5851 = vadd.xlane.f32.xlu1 %v5850_v6  ;;  %v5847_v47 = vsel %vm1118_vm4, %v20585_v13, 0.0 }
0x1708   : > { %5848 = vadd.xlane.f32.xlu0 %v5847_v47 }
0x1709   : > { %v20587_v42 = vpop.eup %20586 }
0x170a   : > { %v5853_v2 = vsel %vm1118_vm4, %v20587_v42, 0.0 }
0x170c   : > { %5854 = vadd.xlane.f32.xlu0 %v5853_v2 }
0x1718   : > { %5866 = vrot.lane.b32.xlu1 %v22151_v40, %s25797_s1 }
0x171c   : > { %5968 = vrot.lane.b32.xlu1 %v22259_v29, %s25798_s18 }
0x1720   : > { %5972 = vrot.lane.b32.xlu1 %v22263_v43, %s25798_s18 }
0x1722   : > { %5915 = vrot.lane.b32.xlu0 %v22153_v52, %s25797_s1 }
0x1724   : > { %5970 = vrot.lane.b32.xlu1 %v22261_v39, %s25798_s18 }
0x1726   : > { %5984 = vrot.lane.b32.xlu0 %v5658_v61, %s25799_s21 }
0x1728   : > { %5986 = vrot.lane.b32.xlu1 %v5661_v35, %s25799_s21 }
0x172a   : > { %5988 = vrot.lane.b32.xlu0 %v5707_v34, %s25799_s21 }
0x172c   : > { %5990 = vrot.lane.b32.xlu1 %v5710_v55, %s25799_s21 }
0x172e   : > { %5974 = vrot.lane.b32.xlu0 %v22265_v33, %s25798_s18 }
0x178c   : > { %v5846_v40 = vpop.xlane.xlu1 %5845 }
0x178d   : > { %20588 = vrcp.f32 %v5846_v40 }
0x1790   : > { %v5852_v29 = vpop.xlane.xlu1 %5851 }
0x1791   : > { %v5849_v43 = vpop.xlane.xlu0 %5848 }
0x1792   : > { %20590 = vrcp.f32 %v5849_v43 }
0x1793   : > { %20592 = vrcp.f32 %v5852_v29 }
0x1794   : > { %v5867_v52 = vpop.permute.xlu1 %5866 }
0x1795   : > { %v5855_v53 = vpop.xlane.xlu0 %5854  ;;  %v5872_v39 = vsel %vm1167_vm5, %v5867_v52, 0 }
0x1796   : > { %20594 = vrcp.f32 %v5855_v53  ;;  %19619 = vmatpush3.bf16.msra.mxu1 %v5872_v39 }
0x1797   : > { %19630 = vmatprep.subr.bf16.mxu1 %v20068_v48 }
0x1799   : > { %v5916_v61 = vpop.permute.xlu0 %5915 }
0x179a   : > { %v5921_v35 = vsel %vm1167_vm5, %v5916_v61, 0  ;;  %v20589_v34 = vpop.eup %20588 }
0x179b   : > { %19625 = vmatpush3.bf16.msra.mxu0 %v5921_v35  ;;  %v5860_v38 = vmul.f32 %v20589_v34, %v20581_v56  ;;  %v5969_v56 = vpop.permute.xlu1 %5968 }
0x179c   : > { %v6012_v29 = vsel %vm997_vm2, %v22211_v5, %v5969_v56  ;;  %v20770_v56 = vld [vmem:[%s22092_s26 + $0x18] sm:$0xf] }
0x179f   : > { %v20591_v55 = vpop.eup %20590  ;;  %v5973_v46 = vpop.permute.xlu1 %5972 }
0x17a0   : > { %v5861_v33 = vmul.f32 %v20591_v55, %v20585_v13  ;;  %v20593_v11 = vpop.eup %20592  ;;  %v5985_v13 = vpop.permute.xlu0 %5984  ;;  %v6014_v52 = vsel %vm997_vm2, %v22215_v12, %v5973_v46 }
0x17a1   : > { %v5862_v19 = vmul.f32 %v20593_v11, %v20583_v30  ;;  %v6016_v43 = vsel %vm2063_vm6, %v6012_v29, %v5985_v13  ;;  %v20772_v29 = vld [vmem:[%s22092_s26 + $0x8] sm:$0xf] }
0x17a2   : > { %v5864_v17 = vpack.c.bf16 %v5861_v33, %v5860_v38 }
0x17a3   : > { %v20595_v10 = vpop.eup %20594  ;;  %v5971_v30 = vpop.permute.xlu1 %5970 }
0x17a4   : > { %v5863_v58 = vmul.f32 %v20595_v10, %v20587_v42  ;;  %19621 = vmatmul.mubr.msk.bf16.vlgmr.msra.gmra.mxu1 %vm1114_vm3, %v5864_v17  ;;  %v5989_v47 = vpop.permute.xlu0 %5988  ;;  %v6013_v55 = vsel %vm997_vm2, %v22213_v14, %v5971_v30  ;;  %v20771_v30 = vld [vmem:[%s22092_s26] sm:$0xff] }
0x17a5   : > { %19631 = vmatpush3.bf16.msra.mxu1 %v20068_v48  ;;  %v6018_v39 = vsel %vm2063_vm6, %v6014_v52, %v5989_v47 }
0x17a6   : > { %v5865_v15 = vpack.c.bf16 %v5863_v58, %v5862_v19  ;;  %19632 = vmatprep.subr.bf16.mxu1 %v20069_v59 }
0x17a7   : > { %v5987_v6 = vpop.permute.xlu1 %5986 }
0x17a8   : > { %19627 = vmatmul.mubr.msk.bf16.vlgmr.msra.gmra.mxu0 %vm1114_vm3, %v5865_v15  ;;  %v5975_v2 = vpop.permute.xlu0 %5974  ;;  %v6017_v5 = vsel %vm2063_vm6, %v6013_v55, %v5987_v6 }
0x17a9   : > { %6621 = vmatprep.mubr.bf16.mxu0 %v25728_v36  ;;  %19633 = vmatpush3.bf16.msra.mxu1 %v20069_v59  ;;  %v6015_v38 = vsel %vm997_vm2, %v22217_v57, %v5975_v2  ;;  %v17134_v57 = vld [vmem:[%s25775_s5 + $0x1] ss:$0 sm:$0xff] }
0x17ab   : > { %v5991_v42 = vpop.permute.xlu1 %5990 }
0x17ac   : > { %v6019_v33 = vsel %vm2063_vm6, %v6015_v38, %v5991_v42 }
0x1864   : > { %v5908_v4 = vpop.f32.mrf.mxu1 }
0x1865   : > { %6000 = vrot.lane.b32.xlu1 %v5908_v4, %s25800_s19 }
0x1866   : > { %v19622_v62 = vpop.f32.mrf.mxu1 }
0x1868   : > { %v5911_v21 = vpop.f32.mrf.mxu1  ;;  %v5957_v18 = vpop.f32.mrf.mxu0 }
0x1869   : > { %6004 = vrot.lane.b32.xlu0 %v5957_v18, %s25800_s19 }
0x186a   : > { %v19623_v7 = vpop.f32.mrf.mxu1  ;;  %v19628_v45 = vpop.f32.mrf.mxu0 }
0x186c   : > { %v5960_v44 = vpop.f32.mrf.mxu0 }
0x186d   : > { %6006 = vrot.lane.b32.xlu1 %v5960_v44, %s25800_s19  ;;  %6002 = vrot.lane.b32.xlu0 %v5911_v21, %s25800_s19 }
0x186e   : > { %v19629_v22 = vpop.f32.mrf.mxu0 }
0x18d7   : > { %v6001_v40 = vpop.permute.xlu1 %6000 }
0x18d8   : > { %v6020_v53 = vsel %vm2068_vm7, %v6016_v43, %v6001_v40 }
0x18d9   : > { %v6028_v34 = vcombine.high %v6020_v53, %v6020_v53 }
0x18db   : > { %v6005_v61 = vpop.permute.xlu0 %6004  ;;  %v6030_v58 = vcombine.low %v6020_v53, %v6028_v34  ;;  %v20773_v53 = vld [vmem:[%s22092_s26 + $0x10] sm:$0xff]  ;;  %s25809_s26 = sld [smem:[#allocation29_spill]] }
0x18dc   : > { %v6022_v35 = vsel %vm2068_vm7, %v6018_v39, %v6005_v61 }
0x18dd   : > { %v6029_v11 = vcombine.high %v6022_v35, %v6022_v35 }
0x18df   : > { %v6007_v12 = vpop.permute.xlu1 %6006  ;;  %v6003_v17 = vpop.permute.xlu0 %6002 }
0x18e0   : > { %v6023_v10 = vsel %vm2068_vm7, %v6019_v33, %v6007_v12  ;;  %v6021_v19 = vsel %vm2068_vm7, %v6017_v5, %v6003_v17 }
0x18e1   : > { %v6032_v15 = vcombine.low %v6029_v11, %v6023_v10  ;;  %v6031_v48 = vcombine.low %v6021_v19, %v6022_v35 }
0x18e3   : > { %v6037_v59 = vpack.c.bf16 %v6032_v15, %v6032_v15  ;;  %v6036_v14 = vpack.c.bf16 %v6031_v48, %v6030_v58  ;;  %v4288_v58 = vcombine.high %v22135_v51, %v22135_v51 }
0x18e5   : > { %19634 = vmatprep.mubr.msk.bf16.mxu1 %vm895_vm0, %v6036_v14 }
0x18e6   : > { %19635 = vmatmul.mubr.msk.bf16.vlgmr.msra.gmra.mxu1 %vm895_vm0, %v6037_v59 }
0x18e7   : > { %6672 = vmatprep.mubr.bf16.mxu1 %v25728_v36 }
0x19a6   : > { %v19636_v4 = vpop.f32.mrf.mxu1 }
0x19a7   : > { %v6105_v62 = vadd.f32 %v19636_v4, %v17134_v57 }
0x19a8   : > { %v6096_v21 = vpop.f32.mrf.mxu1 }
0x19a9   : > { %v6115_v18 = vcombine.high %v6105_v62, %v6105_v62  ;;  %v6097_v7 = vadd.f32 %v17134_v57, %v6096_v21  ;;  %v6123_v42 = vadd.f32 %v6105_v62, %v22121_v3 }
0x19aa   : > { %v19637_v45 = vpop.f32.mrf.mxu1 }
0x19ab   : > { %v6113_v44 = vcombine.high %v6097_v7, %v6097_v7  ;;  %v6124_v46 = vadd.f32 %v20770_v56, %v6115_v18  ;;  %v6119_v13 = vadd.f32 %v20771_v30, %v6097_v7 }
0x19ac   : > { %v6099_v22 = vpop.f32.mrf.mxu1 }
0x19ad   : > { %v6120_v6 = vadd.f32 %v6113_v44, %v22110_v27  ;;  %v6100_v47 = vadd.f32 %v17134_v57, %v6099_v22  ;;  %v6133_v61 = vcombine.low %v6123_v42, %v6124_v46  ;;  %v4289_v57 = vcombine.high %v22137_v37, %v22137_v37 }
0x19ae   : > { %v22404_v22 = vadd.f32 %v4288_v58, %v21408_v20  ;;  %v22420_v20 = vadd.f32 %v22135_v51, %v21406_v8  ;;  %v22461_v58 = vld [vmem:[%s25674_s8 + $0x190] sm:$0xff] }
0x19af   : > { %v6114_v2 = vcombine.high %v6100_v47, %v6100_v47  ;;  %v6131_v40 = vcombine.low %v6119_v13, %v6120_v6  ;;  %v6121_v43 = vadd.f32 %v20772_v29, %v6100_v47  ;;  %v6143_v55 = vsel %vm895_vm0, %v6133_v61, 0.0  ;;  %v16844_v61 = vld [vmem:[%s25674_s8 + $0x1c8] sm:$0xff] }
0x19b1   : > { %v6137_v52 = vsel %vm895_vm0, %v6131_v40, 0.0  ;;  %v6122_v39 = vadd.f32 %v20773_v53, %v6114_v2  ;;  %v22424_v40 = vadd.f32 %v22137_v37, %v21410_v23  ;;  %v16835_v23 = vld [vmem:[%s25674_s8 + $0x180] sm:$0xff]  ;;  %v16836_v53 = vld [vmem:[%s25674_s8 + $0x188] sm:$0xff] }
0x19b2   : > { %6138 = vadd.xlane.f32.xlu0 %v6137_v52  ;;  %v4306_v52 = vcombine.low %v22420_v20, %v22404_v22  ;;  %v16843_v37 = vld [vmem:[%s25674_s8 + $0x1c0] sm:$0xff] }
0x19b3   : > { %v6132_v35 = vcombine.low %v6121_v43, %v6122_v39 }
0x19b4   : > { %v4312_v8 = vsel %vm895_vm0, %v4306_v52, 0.0 }
0x19b5   : > { %v6140_v34 = vsel %vm895_vm0, %v6132_v35, 0.0  ;;  %v17157_v35 = vcombine.low %v16835_v23, %v16843_v37 }
0x19b6   : > { %6141 = vadd.xlane.f32.xlu1 %v6140_v34  ;;  %6144 = vadd.xlane.f32.xlu0 %v6143_v55  ;;  %v17159_v34 = vcombine.low %v16836_v53, %v16844_v61  ;;  %v17160_v55 = vcombine.high %v16836_v53, %v16844_v61 }
0x19b8   : > { %6652 = vmatprep.subr.bf16.mxu1 %v17160_v55 }
0x19b9   : > { %6653 = vmatpush1.bf16.msra.mxu1 %v17159_v34 }
0x1a3b   : > { %v6139_v27 = vpop.xlane.xlu0 %6138 }
0x1a3c   : > { %v6146_v38 = vmul.f32 0.03125, %v6139_v27  ;;  %v16819_v27 = vld [vmem:[%s25674_s8 + $0x100] sm:$0xff] }
0x1a3e   : > { %v6158_v3 = vrot.slane %v6146_v38, %v21296_v49  ;;  %v6165_v5 = vrot.slane %v6146_v38, %v21299_v50  ;;  %v16827_v38 = vld [vmem:[%s25674_s8 + $0x140] sm:$0xff] }
0x1a3f   : > { %v6142_v33 = vpop.xlane.xlu1 %6141  ;;  %v6145_v11 = vpop.xlane.xlu0 %6144 }
0x1a40   : > { %v22379_v12 = vsub.f32 %v6119_v13, %v6158_v3  ;;  %v22381_v17 = vsub.f32 %v6120_v6, %v6165_v5  ;;  %v6147_v10 = vmul.f32 0.03125, %v6142_v33  ;;  %v6148_v19 = vmul.f32 0.03125, %v6145_v11  ;;  %v16820_v3 = vld [vmem:[%s25674_s8 + $0x108] sm:$0xff] }
0x1a41   : > { %v17142_v5 = vcombine.high %v16819_v27, %v16827_v38  ;;  %v16828_v33 = vld [vmem:[%s25674_s8 + $0x148] sm:$0xff]  ;;  %v17141_v11 = vcombine.low %v16819_v27, %v16827_v38 }
0x1a42   : > { %v6172_v15 = vrot.slane %v6147_v10, %v21296_v49  ;;  %v6179_v48 = vrot.slane %v6147_v10, %v21299_v50  ;;  %v6186_v59 = vrot.slane %v6148_v19, %v21296_v49  ;;  %v6193_v14 = vrot.slane %v6148_v19, %v21299_v50 }
0x1a43   : > { %v6206_v4 = vmul.f32 %v22379_v12, %v22379_v12  ;;  %v6207_v62 = vmul.f32 %v22381_v17, %v22381_v17  ;;  %v17143_v10 = vcombine.low %v16820_v3, %v16828_v33  ;;  %v17144_v19 = vcombine.high %v16820_v3, %v16828_v33 }
0x1a44   : > { %v22395_v21 = vsub.f32 %v6121_v43, %v6172_v15  ;;  %v22397_v18 = vsub.f32 %v6122_v39, %v6179_v48  ;;  %v22399_v7 = vsub.f32 %v6123_v42, %v6186_v59  ;;  %v22401_v45 = vsub.f32 %v6124_v46, %v6193_v14  ;;  %v22466_v15 = vld [vmem:[%s25674_s8 + $0x1d0] sm:$0xff]  ;;  %v22471_v48 = vld [vmem:[%s25674_s8 + $0x198] sm:$0xff] }
0x1a45   : > { %v6218_v44 = vcombine.low %v6206_v4, %v6207_v62  ;;  %v22416_v46 = vadd.f32 %v4289_v57, %v21412_v24  ;;  %v17158_v39 = vcombine.high %v16835_v23, %v16843_v37  ;;  %6654 = vmatprep.subr.bf16.mxu1 %v17144_v19  ;;  %v17162_v59 = vcombine.high %v22461_v58, %v22466_v15  ;;  %v22478_v14 = vld [vmem:[%s25674_s8 + $0x1d8] sm:$0xff] }
0x1a46   : > { %v6208_v56 = vmul.f32 %v22395_v21, %v22395_v21  ;;  %v6209_v30 = vmul.f32 %v22397_v18, %v22397_v18  ;;  %v6210_v13 = vmul.f32 %v22399_v7, %v22399_v7  ;;  %v6211_v6 = vmul.f32 %v22401_v45, %v22401_v45  ;;  %6655 = vmatpush1.bf16.msra.mxu1 %v17143_v10 }
0x1a47   : > { %v6224_v47 = vsel %vm895_vm0, %v6218_v44, 0.0  ;;  %v4307_v24 = vcombine.low %v22424_v40, %v22416_v46  ;;  %6601 = vmatprep.subr.bf16.mxu0 %v17158_v39  ;;  %v17161_v57 = vcombine.low %v22461_v58, %v22466_v15  ;;  %v17163_v4 = vcombine.low %v22471_v48, %v22478_v14  ;;  %v16823_v58 = vld [vmem:[%s25674_s8 + $0x120] sm:$0xff] }
0x1a48   : > { %6225 = vadd.xlane.f32.xlu0 %v6224_v47  ;;  %v6219_v42 = vcombine.low %v6208_v56, %v6209_v30  ;;  %v6220_v2 = vcombine.low %v6210_v13, %v6211_v6  ;;  %6602 = vmatpush1.bf16.msra.mxu0 %v17157_v35  ;;  %v17164_v62 = vcombine.high %v22471_v48, %v22478_v14  ;;  %v16831_v15 = vld [vmem:[%s25674_s8 + $0x160] sm:$0xff]  ;;  %v16824_v48 = vld [vmem:[%s25674_s8 + $0x128] sm:$0xff] }
0x1a49   : > { %v4315_v51 = vsel %vm895_vm0, %v4307_v24, 0.0  ;;  %6603 = vmatprep.subr.bf16.mxu0 %v17142_v5  ;;  %v17140_v24 = vld [vmem:[%s25777_s7 + $0x1] ss:$0 sm:$0xff]  ;;  %v16832_v14 = vld [vmem:[%s25674_s8 + $0x168] sm:$0xff] }
0x1a4a   : > { %v6227_v29 = vsel %vm895_vm0, %v6219_v42, 0.0  ;;  %v6230_v43 = vsel %vm895_vm0, %v6220_v2, 0.0  ;;  %6754 = vmatprep.subr.bf16.mxu1 %v17164_v62  ;;  %v6319_v35 = vcombine.high %v17140_v24, %v17140_v24 }
0x1a4b   : > { %6228 = vadd.xlane.f32.xlu1 %v6227_v29 }
0x1a4c   : > { %6231 = vadd.xlane.f32.xlu0 %v6230_v43  ;;  %6604 = vmatpush1.bf16.msra.mxu0 %v17141_v11  ;;  %v17139_v43 = vld [vmem:[%s25776_s6 + $0x1] ss:$0 sm:$0xff]  ;;  %s25811_s6 = sld [smem:[#allocation31_spill]] }
0x1a4d   : > { %6703 = vmatprep.subr.bf16.mxu0 %v17162_v59 }
0x1a4f   : > { %4313 = vadd.xlane.f32.xlu1 %v4312_v8  ;;  %v6305_v8 = vcombine.high %v17139_v43, %v17139_v43 }
0x1a50   : > { %4316 = vadd.xlane.f32.xlu0 %v4315_v51 }
0x1ad1   : > { %v6226_v44 = vpop.xlane.xlu0 %6225 }
0x1ad2   : > { %v6233_v56 = vmul.f32 0.03125, %v6226_v44 }
0x1ad4   : > { %v6236_v30 = vadd.f32 1e-05, %v6233_v56  ;;  %v6229_v13 = vpop.xlane.xlu1 %6228 }
0x1ad5   : > { %v6234_v6 = vmul.f32 0.03125, %v6229_v13  ;;  %v6232_v47 = vpop.xlane.xlu0 %6231 }
0x1ad6   : > { %20596 = vrsqrt.f32 %v6236_v30  ;;  %v6235_v42 = vmul.f32 0.03125, %v6232_v47  ;;  %v16830_v47 = vld [vmem:[%s25674_s8 + $0x158] sm:$0xff] }
0x1ad7   : > { %v6237_v2 = vadd.f32 1e-05, %v6234_v6  ;;  %v16822_v6 = vld [vmem:[%s25674_s8 + $0x118] sm:$0xff] }
0x1ad8   : > { %v6238_v29 = vadd.f32 1e-05, %v6235_v42 }
0x1ad9   : > { %20598 = vrsqrt.f32 %v6237_v2 }
0x1ada   : > { %20600 = vrsqrt.f32 %v6238_v29 }
0x1ae3   : > { %v20597_v52 = vpop.eup %20596 }
0x1ae4   : > { %v6251_v51 = vrot.slane %v20597_v52, %v21296_v49  ;;  %v6258_v23 = vrot.slane %v20597_v52, %v21299_v50  ;;  %v17148_v52 = vcombine.high %v16822_v6, %v16830_v47 }
0x1ae6   : > { %v20599_v37 = vpop.eup %20598  ;;  %v6293_v53 = vmul.f32 %v6251_v51, %v22379_v12  ;;  %v6294_v39 = vmul.f32 %v6258_v23, %v22381_v17  ;;  %v16847_v51 = vld [vmem:[%s25674_s8 + $0x1e0] sm:$0xff]  ;;  %v16848_v23 = vld [vmem:[%s25674_s8 + $0x1e8] sm:$0xff] }
0x1ae7   : > { %v20601_v61 = vpop.eup %20600  ;;  %v6265_v34 = vrot.slane %v20599_v37, %v21296_v49  ;;  %v6272_v55 = vrot.slane %v20599_v37, %v21299_v50 }
0x1ae8   : > { %v6307_v27 = vmul.f32 %v17139_v43, %v6293_v53  ;;  %v6308_v38 = vmul.f32 %v6305_v8, %v6294_v39  ;;  %v6279_v3 = vrot.slane %v20601_v61, %v21296_v49  ;;  %v6286_v5 = vrot.slane %v20601_v61, %v21299_v50 }
0x1ae9   : > { %v6295_v33 = vmul.f32 %v6265_v34, %v22395_v21  ;;  %v6296_v11 = vmul.f32 %v6272_v55, %v22397_v18  ;;  %v16821_v21 = vld [vmem:[%s25674_s8 + $0x110] sm:$0xff]  ;;  %v17147_v39 = vcombine.low %v16822_v6, %v16830_v47  ;;  %v17150_v55 = vcombine.high %v16823_v58, %v16831_v15 }
0x1aea   : > { %v6297_v12 = vmul.f32 %v6279_v3, %v22399_v7  ;;  %v6298_v17 = vmul.f32 %v6286_v5, %v22401_v45  ;;  %v22504_v10 = vadd.f32 %v17140_v24, %v6307_v27  ;;  %v22506_v19 = vadd.f32 %v6319_v35, %v6308_v38  ;;  %v16829_v45 = vld [vmem:[%s25674_s8 + $0x150] sm:$0xff]  ;;  %v16842_v5 = vld [vmem:[%s25674_s8 + $0x1b8] sm:$0xff] }
0x1aeb   : > { %v6309_v59 = vmul.f32 %v17139_v43, %v6295_v33  ;;  %v6310_v62 = vmul.f32 %v6305_v8, %v6296_v11  ;;  %v17145_v53 = vcombine.low %v16821_v21, %v16829_v45  ;;  %v17152_v27 = vcombine.high %v16824_v48, %v16832_v14  ;;  %v16841_v38 = vld [vmem:[%s25674_s8 + $0x1b0] sm:$0xff]  ;;  %v16850_v33 = vld [vmem:[%s25674_s8 + $0x1f8] sm:$0xff] }
0x1aec   : > { %v6311_v30 = vmul.f32 %v17139_v43, %v6297_v12  ;;  %v6312_v13 = vmul.f32 %v6305_v8, %v6298_v17  ;;  %v6333_v18 = vcombine.low %v22504_v10, %v22506_v19  ;;  %v17146_v43 = vcombine.high %v16821_v21, %v16829_v45  ;;  %v16839_v8 = vld [vmem:[%s25674_s8 + $0x1a0] sm:$0xff]  ;;  %v16849_v3 = vld [vmem:[%s25674_s8 + $0x1f0] sm:$0xff]  ;;  %v16834_v21 = vld [vmem:[%s25674_s8 + $0x178] sm:$0xff] }
0x1aed   : > { %v22508_v44 = vadd.f32 %v17140_v24, %v6309_v59  ;;  %v22510_v56 = vadd.f32 %v6319_v35, %v6310_v62  ;;  %v17166_v61 = vcombine.high %v16839_v8, %v16847_v51  ;;  %v17149_v11 = vcombine.low %v16823_v58, %v16831_v15  ;;  %v16825_v62 = vld [vmem:[%s25674_s8 + $0x130] sm:$0xff]  ;;  %v20081_v58 = vld [vmem:[%s25676_s10 + $0x4a8] sm:$0xff]   ;;  %v20082_v15 = vld [vmem:[%s25676_s10 + $0x460] sm:$0xff]  }
0x1aee   : > { %v22530_v2 = vadd.f32 %v17140_v24, %v6311_v30  ;;  %v22532_v29 = vadd.f32 %v6319_v35, %v6312_v13  ;;  %v16840_v24 = vld [vmem:[%s25674_s8 + $0x1a8] sm:$0xff]  ;;  %v17151_v12 = vcombine.low %v16824_v48, %v16832_v14  ;;  %v17170_v17 = vcombine.high %v16841_v38, %v16849_v3  ;;  %v16833_v30 = vld [vmem:[%s25674_s8 + $0x170] sm:$0xff]  ;;  %v16826_v13 = vld [vmem:[%s25674_s8 + $0x138] sm:$0xff] }
0x1aef   : > { %v6334_v7 = vcombine.low %v22508_v44, %v22510_v56  ;;  %v17168_v35 = vcombine.high %v16840_v24, %v16848_v23  ;;  %v17172_v59 = vcombine.high %v16842_v5, %v16850_v33  ;;  %v17154_v45 = vcombine.high %v16825_v62, %v16833_v30  ;;  %v20083_v48 = vld [vmem:[%s25676_s10 + $0x4e0] sm:$0xff]  }
0x1af0   : > { %v6335_v37 = vcombine.low %v22530_v2, %v22532_v29  ;;  %v17156_v6 = vcombine.high %v16826_v13, %v16834_v21  ;;  %v17153_v47 = vcombine.low %v16825_v62, %v16833_v30  ;;  %v20084_v14 = vld [vmem:[%s25676_s10 + $0x420] sm:$0xff]  }
0x1af1   : > { %v22528_v42 = vpack.c.bf16 %v6334_v7, %v6333_v18  ;;  %v17169_v18 = vcombine.low %v16841_v38, %v16849_v3  ;;  %v17171_v7 = vcombine.low %v16842_v5, %v16850_v33  ;;  %v20090_v38 = vld [vmem:[%s25676_s10 + $0x450] sm:$0xff]   ;;  %v20098_v62 = vld [vmem:[%s25676_s10 + $0x440] sm:$0xff]  }
0x1af2   : > { %v22560_v34 = vpack.c.bf16 %v6335_v37, %v6335_v37  ;;  %v20075_v37 = vld [vmem:[%s25676_s10 + $0x4f0] sm:$0xff]   ;;  %v20099_v30 = vld [vmem:[%s25676_s10 + $0x4c0] sm:$0xff]  }
0x1af3   : > { %17173 = vmatmul.mubr.msk.bf16.vlgmr.msra.gmra.mxu0 %vm895_vm0, %v22528_v42  ;;  %17175 = vmatmul.mubr.msk.bf16.vlgmr.msra.gmra.mxu1 %vm895_vm0, %v22528_v42  ;;  %v20091_v3 = vld [vmem:[%s25676_s10 + $0x4d0] sm:$0xff]  }
0x1af4   : > { %6631 = vmatprep.mubr.bf16.mxu0 %v25728_v36  ;;  %6682 = vmatprep.mubr.bf16.mxu1 %v25728_v36  ;;  %v20092_v5 = vld [vmem:[%s25676_s10 + $0x410] sm:$0xff]  }
0x1af5   : > { %6704 = vmatpush1.bf16.msra.mxu0 %v17161_v57  ;;  %6755 = vmatpush1.bf16.msra.mxu1 %v17163_v4  ;;  %v17165_v57 = vcombine.low %v16839_v8, %v16847_v51  ;;  %v17167_v4 = vcombine.low %v16840_v24, %v16848_v23  ;;  %v20071_v8 = vld [vmem:[%s25676_s10 + $0x4f8] sm:$0xff]   ;;  %v20074_v23 = vld [vmem:[%s25676_s10 + $0x470] sm:$0xff]  }
0x1af6   : > { %6705 = vmatprep.subr.bf16.mxu0 %v17146_v43  ;;  %6756 = vmatprep.subr.bf16.mxu1 %v17148_v52  ;;  %v17155_v43 = vcombine.low %v16826_v13, %v16834_v21  ;;  %v20070_v52 = vld [vmem:[%s25676_s10 + $0x478] sm:$0xff]   ;;  %v20093_v33 = vld [vmem:[%s25676_s10 + $0x490] sm:$0xff]   ;;  %v20100_v13 = vld [vmem:[%s25676_s10 + $0x400] sm:$0xff]  }
0x1af7   : > { %v20072_v51 = vld [vmem:[%s25676_s10 + $0x438] sm:$0xff]   ;;  %v20101_v21 = vld [vmem:[%s25676_s10 + $0x480] sm:$0xff]  }
0x1af8   : > { %v20073_v24 = vld [vmem:[%s25676_s10 + $0x4b8] sm:$0xff]  }
0x1af9   : > { %6706 = vmatpush1.bf16.msra.mxu0 %v17145_v53  ;;  %6757 = vmatpush1.bf16.msra.mxu1 %v17147_v39  ;;  %v20076_v53 = vld [vmem:[%s25676_s10 + $0x430] sm:$0xff]  }
0x1afa   : > { %6805 = vmatprep.subr.bf16.mxu0 %v17166_v61  ;;  %6856 = vmatprep.subr.bf16.mxu1 %v17168_v35  ;;  %v20077_v39 = vld [vmem:[%s25676_s10 + $0x4b0] sm:$0xff]   ;;  %v20079_v61 = vld [vmem:[%s25676_s10 + $0x4e8] sm:$0xff]  }
0x1afb   : > { %17174 = vmatmul.mubr.msk.bf16.gmra.mxu0 %vm895_vm0, %v22560_v34  ;;  %17176 = vmatmul.mubr.msk.bf16.gmra.mxu1 %vm895_vm0, %v22560_v34  ;;  %v20080_v35 = vld [vmem:[%s25676_s10 + $0x428] sm:$0xff]  }
0x1afc   : > { %6723 = vmatprep.mubr.bf16.mxu0 %v25728_v36  ;;  %6774 = vmatprep.mubr.bf16.mxu1 %v25728_v36 }
0x1b03   : > { %17177 = vmatmul.mubr.msk.bf16.vlgmr.msra.gmra.mxu0 %vm895_vm0, %v22528_v42  ;;  %17179 = vmatmul.mubr.msk.bf16.vlgmr.msra.gmra.mxu1 %vm895_vm0, %v22528_v42 }
0x1b04   : > { %6733 = vmatprep.mubr.bf16.mxu0 %v25728_v36  ;;  %6784 = vmatprep.mubr.bf16.mxu1 %v25728_v36 }
0x1b05   : > { %6806 = vmatpush1.bf16.msra.mxu0 %v17165_v57  ;;  %6857 = vmatpush1.bf16.msra.mxu1 %v17167_v4  ;;  %v20085_v57 = vld [vmem:[%s25676_s10 + $0x4a0] sm:$0xff]   ;;  %v20086_v4 = vld [vmem:[%s25676_s10 + $0x458] sm:$0xff]  }
0x1b06   : > { %6807 = vmatprep.subr.bf16.mxu0 %v17150_v55  ;;  %6858 = vmatprep.subr.bf16.mxu1 %v17152_v27  ;;  %v20088_v55 = vld [vmem:[%s25676_s10 + $0x418] sm:$0xff]  }
0x1b07   : > { %v20089_v27 = vld [vmem:[%s25676_s10 + $0x498] sm:$0xff]  }
0x1b09   : > { %6808 = vmatpush1.bf16.msra.mxu0 %v17149_v11  ;;  %6859 = vmatpush1.bf16.msra.mxu1 %v17151_v12  ;;  %v20094_v11 = vld [vmem:[%s25676_s10 + $0x448] sm:$0xff]  }
0x1b0a   : > { %6907 = vmatprep.subr.bf16.mxu0 %v17170_v17  ;;  %6958 = vmatprep.subr.bf16.mxu1 %v17172_v59  ;;  %v20095_v12 = vld [vmem:[%s25676_s10 + $0x4c8] sm:$0xff]  }
0x1b0b   : > { %17178 = vmatmul.mubr.msk.bf16.gmra.mxu0 %vm895_vm0, %v22560_v34  ;;  %17180 = vmatmul.mubr.msk.bf16.gmra.mxu1 %vm895_vm0, %v22560_v34  ;;  %v20096_v17 = vld [vmem:[%s25676_s10 + $0x408] sm:$0xff]  }
0x1b0c   : > { %6825 = vmatprep.mubr.bf16.mxu0 %v25728_v36  ;;  %6876 = vmatprep.mubr.bf16.mxu1 %v25728_v36  ;;  %v20097_v59 = vld [vmem:[%s25676_s10 + $0x488] sm:$0xff]  }
0x1b13   : > { %17181 = vmatmul.mubr.msk.bf16.vlgmr.msra.gmra.mxu0 %vm895_vm0, %v22528_v42  ;;  %17183 = vmatmul.mubr.msk.bf16.vlgmr.msra.gmra.mxu1 %vm895_vm0, %v22528_v42 }
0x1b14   : > { %6835 = vmatprep.mubr.bf16.mxu0 %v25728_v36  ;;  %6886 = vmatprep.mubr.bf16.mxu1 %v25728_v36 }
0x1b15   : > { %6908 = vmatpush1.bf16.msra.mxu0 %v17169_v18  ;;  %6959 = vmatpush1.bf16.msra.mxu1 %v17171_v7  ;;  %v20102_v18 = vld [vmem:[%s25676_s10 + $0x578] sm:$0xff]  }
0x1b16   : > { %6909 = vmatprep.subr.bf16.mxu0 %v17154_v45  ;;  %6960 = vmatprep.subr.bf16.mxu1 %v17156_v6  ;;  %v20103_v7 = vld [vmem:[%s25676_s10 + $0x5f8] sm:$0xff]   ;;  %v22743_v45 = vld [vmem:[%s25675_s9 + $0x10] sm:$0xff] }
0x1b19   : > { %6910 = vmatpush1.bf16.msra.mxu0 %v17153_v47  ;;  %6961 = vmatpush1.bf16.msra.mxu1 %v17155_v43  ;;  %v6350_v43 = vrot.slane %v22743_v45, %v21643_v60 }
0x1b1a   : > { %18662 = vmatprep.subr.bf16.mxu0 %v20070_v52  ;;  %18690 = vmatprep.subr.bf16.mxu1 %v20071_v8  ;;  %v6358_v52 = vrot.slane %v22743_v45, %v21646_v63  ;;  %v6346_v8 = vrot.slane %v22743_v45, %v21649_v0 }
0x1b1b   : > { %17182 = vmatmul.mubr.msk.bf16.gmra.mxu0 %vm895_vm0, %v22560_v34  ;;  %17184 = vmatmul.mubr.msk.bf16.gmra.mxu1 %vm895_vm0, %v22560_v34 }
0x1b1c   : > { %6927 = vmatprep.mubr.bf16.mxu0 %v25728_v36  ;;  %6978 = vmatprep.mubr.bf16.mxu1 %v25728_v36 }
0x1b23   : > { %17185 = vmatmul.mubr.msk.bf16.vlgmr.msra.gmra.mxu0 %vm895_vm0, %v22528_v42  ;;  %17187 = vmatmul.mubr.msk.bf16.vlgmr.msra.gmra.mxu1 %vm895_vm0, %v22528_v42  ;;  %v20078_v42 = vld [vmem:[%s25676_s10 + $0x468] sm:$0xff]  }
0x1b24   : > { %6937 = vmatprep.mubr.bf16.mxu0 %v25728_v36  ;;  %6988 = vmatprep.mubr.bf16.mxu1 %v25728_v36 }
0x1b25   : > { %18663 = vmatpush3.bf16.msra.mxu0 %v20072_v51  ;;  %18691 = vmatpush3.bf16.msra.mxu1 %v20073_v24  ;;  %v6354_v51 = vrot.slane %v22743_v45, %v21652_v1 }
0x1b26   : > { %18664 = vmatprep.subr.bf16.mxu0 %v20074_v23  ;;  %18692 = vmatprep.subr.bf16.mxu1 %v20075_v37 }
0x1b29   : > { %18665 = vmatpush3.bf16.msra.mxu0 %v20076_v53  ;;  %18693 = vmatpush3.bf16.msra.mxu1 %v20077_v39 }
0x1b2a   : > { %18666 = vmatprep.subr.bf16.mxu0 %v20078_v42  ;;  %18694 = vmatprep.subr.bf16.mxu1 %v20079_v61 }
0x1b2b   : > { %17186 = vmatmul.mubr.msk.bf16.gmra.mxu0 %vm895_vm0, %v22560_v34  ;;  %17188 = vmatmul.mubr.msk.bf16.gmra.mxu1 %vm895_vm0, %v22560_v34  ;;  %v20087_v34 = vld [vmem:[%s25676_s10 + $0x4d8] sm:$0xff]  }
0x1b2d   : > { %18667 = vmatpush3.bf16.msra.mxu0 %v20080_v35  ;;  %18695 = vmatpush3.bf16.msra.mxu1 %v20081_v58 }
0x1b2e   : > { %18668 = vmatprep.subr.bf16.mxu0 %v20082_v15  ;;  %18696 = vmatprep.subr.bf16.mxu1 %v20083_v48 }
0x1b31   : > { %18669 = vmatpush3.bf16.msra.mxu0 %v20084_v14  ;;  %18697 = vmatpush3.bf16.msra.mxu1 %v20085_v57 }
0x1b32   : > { %18670 = vmatprep.subr.bf16.mxu0 %v20086_v4  ;;  %18698 = vmatprep.subr.bf16.mxu1 %v20087_v34 }
0x1b35   : > { %18671 = vmatpush3.bf16.msra.mxu0 %v20088_v55  ;;  %18699 = vmatpush3.bf16.msra.mxu1 %v20089_v27 }
0x1b36   : > { %18672 = vmatprep.subr.bf16.mxu0 %v20090_v38  ;;  %18700 = vmatprep.subr.bf16.mxu1 %v20091_v3 }
0x1b39   : > { %18673 = vmatpush3.bf16.msra.mxu0 %v20092_v5  ;;  %18701 = vmatpush3.bf16.msra.mxu1 %v20093_v33 }
0x1b3a   : > { %18674 = vmatprep.subr.bf16.mxu0 %v20094_v11  ;;  %18702 = vmatprep.subr.bf16.mxu1 %v20095_v12 }
0x1b3d   : > { %18675 = vmatpush3.bf16.msra.mxu0 %v20096_v17  ;;  %18703 = vmatpush3.bf16.msra.mxu1 %v20097_v59 }
0x1b3e   : > { %18676 = vmatprep.subr.bf16.mxu0 %v20098_v62  ;;  %18704 = vmatprep.subr.bf16.mxu1 %v20099_v30 }
0x1b41   : > { %18677 = vmatpush3.bf16.msra.mxu0 %v20100_v13  ;;  %18705 = vmatpush3.bf16.msra.mxu1 %v20101_v21 }
0x1b42   : > { %18718 = vmatprep.subr.bf16.mxu0 %v20102_v18  ;;  %18746 = vmatprep.subr.bf16.mxu1 %v20103_v7  ;;  %v20104_v7 = vld [vmem:[%s25676_s10 + $0x538] sm:$0xff]  }
0x1bb3   : > { %v6623_v6 = vpop.f32.mrf.mxu0  ;;  %v6674_v47 = vpop.f32.mrf.mxu1 }
0x1bb4   : > { %v6624_v58 = vadd.f32 %v6623_v6, %v6346_v8  ;;  %v6675_v15 = vadd.f32 %v6674_v47, %v6354_v51  ;;  %v20105_v6 = vld [vmem:[%s25676_s10 + $0x5b8] sm:$0xff]  }
0x1bb5   : > { %v6625_v24 = vpop.f32.mrf.mxu0  ;;  %v6676_v23 = vpop.f32.mrf.mxu1 }
0x1bb6   : > { %v6626_v39 = vadd.f32 %v6625_v24, %v6350_v43  ;;  %v6677_v42 = vadd.f32 %v6676_v23, %v6358_v52  ;;  %v6997_v12 = vmax.f32 %v6624_v58, 0.0  ;;  %v6999_v17 = vmax.f32 %v6675_v15, 0.0  ;;  %v20108_v15 = vld [vmem:[%s25676_s10 + $0x530] sm:$0xff]  }
0x1bb7   : > { %v6627_v37 = vpop.f32.mrf.mxu0  ;;  %v6678_v53 = vpop.f32.mrf.mxu1 }
0x1bb8   : > { %v6628_v61 = vadd.f32 %v6627_v37, %v6346_v8  ;;  %v6679_v35 = vadd.f32 %v6678_v53, %v6354_v51  ;;  %v6998_v3 = vmax.f32 %v6626_v39, 0.0  ;;  %v7000_v5 = vmax.f32 %v6677_v42, 0.0 }
0x1bb9   : > { %v6629_v48 = vpop.f32.mrf.mxu0  ;;  %v6680_v14 = vpop.f32.mrf.mxu1 }
0x1bba   : > { %v6630_v57 = vadd.f32 %v6629_v48, %v6350_v43  ;;  %v6681_v4 = vadd.f32 %v6680_v14, %v6358_v52  ;;  %v7013_v34 = vmax.f32 %v6628_v61, 0.0  ;;  %v7015_v55 = vmax.f32 %v6679_v35, 0.0  ;;  %v20109_v48 = vld [vmem:[%s25676_s10 + $0x5b0] sm:$0xff]  }
0x1bbb   : > { %v6633_v27 = vpop.f32.mrf.mxu0  ;;  %v6684_v38 = vpop.f32.mrf.mxu1 }
0x1bbc   : > { %v7014_v33 = vmax.f32 %v6630_v57, 0.0  ;;  %v7016_v11 = vmax.f32 %v6681_v4, 0.0  ;;  %v7045_v47 = vpack.c.bf16 %v7013_v34, %v6997_v12  ;;  %v7047_v24 = vpack.c.bf16 %v7015_v55, %v6999_v17  ;;  %v20110_v55 = vld [vmem:[%s25676_s10 + $0x568] sm:$0xff]  }
0x1bbd   : > { %v6635_v59 = vpop.f32.mrf.mxu0  ;;  %v6686_v62 = vpop.f32.mrf.mxu1  ;;  %v6634_v23 = vadd.f32 %v6633_v27, %v6346_v8  ;;  %v6685_v37 = vadd.f32 %v6684_v38, %v6354_v51  ;;  %v20111_v27 = vld [vmem:[%s25676_s10 + $0x5e8] sm:$0xff]   ;;  %v22783_v38 = vrot.slane %v22743_v45, %v21680_v9 }
0x1bbe   : > { %v6636_v30 = vadd.f32 %v6635_v59, %v6350_v43  ;;  %v6687_v13 = vadd.f32 %v6686_v62, %v6358_v52  ;;  %v7046_v21 = vpack.c.bf16 %v7014_v33, %v6998_v3  ;;  %v7048_v18 = vpack.c.bf16 %v7016_v11, %v7000_v5  ;;  %v20106_v43 = vld [vmem:[%s25676_s10 + $0x570] sm:$0xff]   ;;  %v20112_v11 = vld [vmem:[%s25676_s10 + $0x528] sm:$0xff]  }
0x1bbf   : > { %v6637_v53 = vpop.f32.mrf.mxu0  ;;  %v6688_v39 = vpop.f32.mrf.mxu1  ;;  %v20107_v52 = vld [vmem:[%s25676_s10 + $0x5f0] sm:$0xff]   ;;  %v7029_v14 = vmax.f32 %v6634_v23, 0.0  ;;  %v7031_v57 = vmax.f32 %v6685_v37, 0.0  ;;  %v22787_v5 = vrot.slane %v22743_v45, %v21683_v16  ;;  %v20113_v12 = vld [vmem:[%s25676_s10 + $0x5a8] sm:$0xff]   ;;  %v20116_v37 = vld [vmem:[%s25676_s10 + $0x520] sm:$0xff]  }
0x1bc0   : > { %v7030_v42 = vmax.f32 %v6636_v30, 0.0  ;;  %v7032_v61 = vmax.f32 %v6687_v13, 0.0  ;;  %7883 = vmatprep.mubr.bf16.mxu0 %v7046_v21  ;;  %7931 = vmatprep.mubr.bf16.mxu1 %v7048_v18  ;;  %v20114_v13 = vld [vmem:[%s25676_s10 + $0x560] sm:$0xff]  }
0x1bc1   : > { %v6638_v35 = vpop.f32.mrf.mxu0  ;;  %v6689_v58 = vpop.f32.mrf.mxu1  ;;  %7884 = vmatmul.mubr.bf16.vlgmr.msra.gmra.mxu0 %v7045_v47  ;;  %7932 = vmatmul.mubr.bf16.vlgmr.msra.gmra.mxu1 %v7047_v24  ;;  %v7061_v17 = vpack.c.bf16 %v7029_v14, %v7029_v14  ;;  %v7063_v59 = vpack.c.bf16 %v7031_v57, %v7031_v57  ;;  %v20115_v21 = vld [vmem:[%s25676_s10 + $0x5e0] sm:$0xff]   ;;  %v20120_v14 = vld [vmem:[%s25676_s10 + $0x518] sm:$0xff]  }
0x1bc2   : > { %v7062_v8 = vpack.c.bf16 %v7030_v42, %v7030_v42  ;;  %v7064_v51 = vpack.c.bf16 %v7032_v61, %v7032_v61  ;;  %18719 = vmatpush3.bf16.msra.mxu0 %v20104_v7  ;;  %18747 = vmatpush3.bf16.msra.mxu1 %v20105_v6  ;;  %v20117_v53 = vld [vmem:[%s25676_s10 + $0x5a0] sm:$0xff]   ;;  %v20119_v42 = vld [vmem:[%s25676_s10 + $0x5d8] sm:$0xff]  }
0x1bc3   : > { %v22771_v4 = vpop.f32.mrf.mxu0  ;;  %v22773_v34 = vpop.f32.mrf.mxu1  ;;  %18720 = vmatprep.subr.bf16.mxu0 %v20106_v43  ;;  %18748 = vmatprep.subr.bf16.mxu1 %v20107_v52  ;;  %v20118_v52 = vld [vmem:[%s25676_s10 + $0x558] sm:$0xff]  }
0x1bc4   : > { %7891 = vmatprep.mubr.bf16.mxu0 %v7062_v8  ;;  %7939 = vmatprep.mubr.bf16.mxu1 %v7064_v51  ;;  %v20121_v57 = vld [vmem:[%s25676_s10 + $0x598] sm:$0xff]  }
0x1bc5   : > { %v6727_v3 = vpop.f32.mrf.mxu0  ;;  %v6778_v33 = vpop.f32.mrf.mxu1 }
0x1bc6   : > { %18721 = vmatpush3.bf16.msra.mxu0 %v20108_v15  ;;  %18749 = vmatpush3.bf16.msra.mxu1 %v20109_v48  ;;  %v6728_v18 = vadd.f32 %v6727_v3, %v22783_v38  ;;  %v6779_v7 = vadd.f32 %v6778_v33, %v22787_v5  ;;  %v20122_v33 = vld [vmem:[%s25676_s10 + $0x550] sm:$0xff]  }
0x1bc7   : > { %v6729_v62 = vpop.f32.mrf.mxu0  ;;  %v22795_v30 = vpop.f32.mrf.mxu1  ;;  %18722 = vmatprep.subr.bf16.mxu0 %v20110_v55  ;;  %18750 = vmatprep.subr.bf16.mxu1 %v20111_v27 }
0x1bc8   : > { %v7002_v61 = vmax.f32 %v6728_v18, 0.0  ;;  %v7004_v8 = vmax.f32 %v6779_v7, 0.0  ;;  %v20126_v7 = vld [vmem:[%s25676_s10 + $0x548] sm:$0xff]  }
0x1bc9   : > { %v6731_v6 = vpop.f32.mrf.mxu0  ;;  %v6782_v47 = vpop.f32.mrf.mxu1  ;;  %7892 = vmatmul.mubr.bf16.gmra.mxu0 %v7061_v17  ;;  %7940 = vmatmul.mubr.bf16.gmra.mxu1 %v7063_v59  ;;  %v20124_v59 = vld [vmem:[%s25676_s10 + $0x510] sm:$0xff]  }
0x1bca   : > { %v6732_v24 = vadd.f32 %v6731_v6, %v22783_v38  ;;  %v6783_v23 = vadd.f32 %v6782_v47, %v22787_v5  ;;  %18723 = vmatpush3.bf16.msra.mxu0 %v20112_v11  ;;  %18751 = vmatpush3.bf16.msra.mxu1 %v20113_v12  ;;  %v20123_v11 = vld [vmem:[%s25676_s10 + $0x5d0] sm:$0xff]   ;;  %v20127_v6 = vld [vmem:[%s25676_s10 + $0x5c8] sm:$0xff]   ;;  %v6362_v47 = vrot.slane %v22743_v45, %v21756_v41 }
0x1bcb   : > { %v22813_v39 = vpop.f32.mrf.mxu0  ;;  %v22815_v43 = vpop.f32.mrf.mxu1  ;;  %18724 = vmatprep.subr.bf16.mxu0 %v20114_v13  ;;  %18752 = vmatprep.subr.bf16.mxu1 %v20115_v21  ;;  %v20125_v13 = vld [vmem:[%s25676_s10 + $0x590] sm:$0xff]  }
0x1bcc   : > { %v7018_v35 = vmax.f32 %v6732_v24, 0.0  ;;  %v7020_v58 = vmax.f32 %v6783_v23, 0.0  ;;  %v6370_v24 = vrot.slane %v22743_v45, %v21759_v54 }
0x1bcd   : > { %v6737_v51 = vpop.f32.mrf.mxu0  ;;  %v6788_v15 = vpop.f32.mrf.mxu1 }
0x1bce   : > { %18725 = vmatpush3.bf16.msra.mxu0 %v20116_v37  ;;  %18753 = vmatpush3.bf16.msra.mxu1 %v20117_v53  ;;  %v7050_v48 = vpack.c.bf16 %v7018_v35, %v7002_v61  ;;  %v7052_v3 = vpack.c.bf16 %v7020_v58, %v7004_v8  ;;  %v6730_v53 = vadd.f32 %v6729_v62, %v6362_v47  ;;  %v20130_v62 = vld [vmem:[%s25676_s10 + $0x540] sm:$0xff]  }
0x1bcf   : > { %v6739_v55 = vpop.f32.mrf.mxu0  ;;  %v6790_v27 = vpop.f32.mrf.mxu1  ;;  %18726 = vmatprep.subr.bf16.mxu0 %v20118_v52  ;;  %18754 = vmatprep.subr.bf16.mxu1 %v20119_v42  ;;  %v20128_v52 = vld [vmem:[%s25676_s10 + $0x508] sm:$0xff]   ;;  %v6781_v61 = vadd.f32 %v22795_v30, %v6370_v24  ;;  %v20131_v58 = vld [vmem:[%s25676_s10 + $0x5c0] sm:$0xff]   ;;  %v6726_v8 = vadd.f32 %v22771_v4, %v6362_v47  ;;  %v6789_v30 = vadd.f32 %v6788_v15, %v22787_v5  ;;  %v20135_v5 = vld [vmem:[%s25676_s10 + $0x6f8] sm:$0xff]  }
0x1bd0   : > { %7979 = vmatprep.mubr.bf16.mxu0 %v7050_v48  ;;  %8027 = vmatprep.mubr.bf16.mxu1 %v7052_v3  ;;  %v20129_v42 = vld [vmem:[%s25676_s10 + $0x588] sm:$0xff]   ;;  %v6738_v48 = vadd.f32 %v6737_v51, %v22783_v38  ;;  %v7017_v27 = vmax.f32 %v6730_v53, 0.0  ;;  %v20132_v3 = vld [vmem:[%s25676_s10 + $0x500] sm:$0xff]  }
0x1bd1   : > { %v6740_v12 = vpop.f32.mrf.mxu0  ;;  %v6791_v17 = vpop.f32.mrf.mxu1  ;;  %v7019_v4 = vmax.f32 %v6781_v61, 0.0  ;;  %v7001_v51 = vmax.f32 %v6726_v8, 0.0  ;;  %v6736_v61 = vadd.f32 %v22813_v39, %v6362_v47  ;;  %v20139_v47 = vld [vmem:[%s25676_s10 + $0x6f0] sm:$0xff]  }
0x1bd2   : > { %18727 = vmatpush3.bf16.msra.mxu0 %v20120_v14  ;;  %18755 = vmatpush3.bf16.msra.mxu1 %v20121_v57  ;;  %v6777_v14 = vadd.f32 %v22773_v34, %v6370_v24  ;;  %v20134_v34 = vld [vmem:[%s25676_s10 + $0x678] sm:$0xff]   ;;  %v7034_v15 = vmax.f32 %v6738_v48, 0.0  ;;  %v7036_v12 = vmax.f32 %v6789_v30, 0.0 }
0x1bd3   : > { %v22841_v21 = vpop.f32.mrf.mxu0  ;;  %v22843_v18 = vpop.f32.mrf.mxu1  ;;  %18728 = vmatprep.subr.bf16.mxu0 %v20122_v33  ;;  %18756 = vmatprep.subr.bf16.mxu1 %v20123_v11  ;;  %v20133_v33 = vld [vmem:[%s25676_s10 + $0x580] sm:$0xff]   ;;  %v20136_v48 = vld [vmem:[%s25676_s10 + $0x638] sm:$0xff]  }
0x1bd4   : > { %v7003_v17 = vmax.f32 %v6777_v14, 0.0  ;;  %v20137_v30 = vld [vmem:[%s25676_s10 + $0x6b8] sm:$0xff]   ;;  %v7066_v14 = vpack.c.bf16 %v7034_v15, %v7034_v15  ;;  %v20140_v15 = vld [vmem:[%s25676_s10 + $0x630] sm:$0xff]  }
0x1bd5   : > { %v22855_v23 = vpop.f32.mrf.mxu0  ;;  %v22857_v37 = vpop.f32.mrf.mxu1 }
0x1bd6   : > { %18729 = vmatpush3.bf16.msra.mxu0 %v20124_v59  ;;  %18757 = vmatpush3.bf16.msra.mxu1 %v20125_v13  ;;  %v22899_v59 = vld [vmem:[%s25675_s9 + $0x18] sm:$0xff] }
0x1bd7   : > { %v22866_v35 = vpop.f32.mrf.mxu0  ;;  %v22868_v45 = vpop.f32.mrf.mxu1  ;;  %18730 = vmatprep.subr.bf16.mxu0 %v20126_v7  ;;  %18758 = vmatprep.subr.bf16.mxu1 %v20127_v6  ;;  %v7049_v6 = vpack.c.bf16 %v7017_v27, %v7001_v51  ;;  %v22907_v53 = vrot.slane %v22899_v59, %v21643_v60  ;;  %v7068_v27 = vpack.c.bf16 %v7036_v12, %v7036_v12 }
0x1bd9   : > { %v6833_v57 = vpop.f32.mrf.mxu0  ;;  %v6884_v55 = vpop.f32.mrf.mxu1 }
0x1bda   : > { %18731 = vmatpush3.bf16.msra.mxu0 %v20128_v52  ;;  %18759 = vmatpush3.bf16.msra.mxu1 %v20129_v42  ;;  %v22911_v52 = vrot.slane %v22899_v59, %v21646_v63  ;;  %v7051_v42 = vpack.c.bf16 %v7019_v4, %v7003_v17  ;;  %v6830_v4 = vadd.f32 %v22855_v23, %v22907_v53  ;;  %v20141_v23 = vld [vmem:[%s25676_s10 + $0x6b0] sm:$0xff]   ;;  %v20142_v17 = vld [vmem:[%s25676_s10 + $0x668] sm:$0xff]   ;;  %v4317_v63 = vpop.xlane.xlu0 %4316 }
0x1bdb   : > { %v22886_v11 = vpop.f32.mrf.mxu0  ;;  %v22888_v38 = vpop.f32.mrf.mxu1  ;;  %18732 = vmatprep.subr.bf16.mxu0 %v20130_v62  ;;  %18760 = vmatprep.subr.bf16.mxu1 %v20131_v58  ;;  %v6787_v62 = vadd.f32 %v22815_v43, %v6370_v24  ;;  %v20138_v43 = vld [vmem:[%s25676_s10 + $0x670] sm:$0xff]  }
0x1bdc   : > { %v6885_v39 = vadd.f32 %v6884_v55, %v22911_v52  ;;  %v7033_v55 = vmax.f32 %v6736_v61, 0.0 }
0x1bdd   : > { %v22901_v13 = vpop.f32.mrf.mxu0  ;;  %v22903_v7 = vpop.f32.mrf.mxu1 }
0x1bde   : > { %18733 = vmatpush3.bf16.msra.mxu0 %v20132_v3  ;;  %18761 = vmatpush3.bf16.msra.mxu1 %v20133_v33  ;;  %v6834_v3 = vadd.f32 %v6833_v57, %v22907_v53  ;;  %v6881_v57 = vadd.f32 %v22857_v37, %v22911_v52  ;;  %v7024_v37 = vmax.f32 %v6885_v39, 0.0 }
0x1bdf   : > { %v6841_v58 = vpop.f32.mrf.mxu0  ;;  %v6892_v8 = vpop.f32.mrf.mxu1  ;;  %18774 = vmatprep.subr.bf16.mxu0 %v20134_v34  ;;  %18802 = vmatprep.subr.bf16.mxu1 %v20135_v5  ;;  %v7035_v34 = vmax.f32 %v6787_v62, 0.0  ;;  %v7006_v62 = vmax.f32 %v6830_v4, 0.0 }
0x1be0   : > { %v7022_v12 = vmax.f32 %v6834_v3, 0.0  ;;  %v7008_v58 = vmax.f32 %v6881_v57, 0.0  ;;  %v7065_v8 = vpack.c.bf16 %v7033_v55, %v7033_v55  ;;  %v20145_v3 = vld [vmem:[%s25676_s10 + $0x6a8] sm:$0xff]  }
0x1be1   : > { %7980 = vmatmul.mubr.bf16.vlgmr.msra.gmra.mxu0 %v7049_v6  ;;  %8028 = vmatmul.mubr.bf16.vlgmr.msra.gmra.mxu1 %v7051_v42  ;;  %v6842_v24 = vpop.f32.mrf.mxu0  ;;  %v6893_v33 = vpop.f32.mrf.mxu1  ;;  %v20143_v6 = vld [vmem:[%s25676_s10 + $0x6e8] sm:$0xff]  }
0x1be2   : > { %7987 = vmatprep.mubr.bf16.mxu0 %v7066_v14  ;;  %8035 = vmatprep.mubr.bf16.mxu1 %v7068_v27  ;;  %v20144_v27 = vld [vmem:[%s25676_s10 + $0x628] sm:$0xff]   ;;  %v7054_v39 = vpack.c.bf16 %v7022_v12, %v7006_v62  ;;  %v20147_v24 = vld [vmem:[%s25676_s10 + $0x6e0] sm:$0xff]   ;;  %v20151_v12 = vld [vmem:[%s25676_s10 + $0x6d8] sm:$0xff]  }
0x1be3   : > { %18775 = vmatpush3.bf16.msra.mxu0 %v20136_v48  ;;  %18803 = vmatpush3.bf16.msra.mxu1 %v20137_v30  ;;  %v22933_v5 = vpop.f32.mrf.mxu0  ;;  %v22935_v51 = vpop.f32.mrf.mxu1  ;;  %v7067_v48 = vpack.c.bf16 %v7035_v34, %v7035_v34  ;;  %v20148_v34 = vld [vmem:[%s25676_s10 + $0x620] sm:$0xff]  }
0x1be4   : > { %18776 = vmatprep.subr.bf16.mxu0 %v20138_v43  ;;  %18804 = vmatprep.subr.bf16.mxu1 %v20139_v47  ;;  %v7056_v43 = vpack.c.bf16 %v7024_v37, %v7008_v58  ;;  %v20146_v47 = vld [vmem:[%s25676_s10 + $0x660] sm:$0xff]   ;;  %v20152_v58 = vld [vmem:[%s25676_s10 + $0x618] sm:$0xff]  }
0x1be5   : > { %v22949_v42 = vpop.f32.mrf.mxu0  ;;  %v22951_v61 = vpop.f32.mrf.mxu1 }
0x1be7   : > { %18777 = vmatpush3.bf16.msra.mxu0 %v20140_v15  ;;  %18805 = vmatpush3.bf16.msra.mxu1 %v20141_v23  ;;  %v22953_v30 = vpop.f32.mrf.mxu0  ;;  %v22955_v14 = vpop.f32.mrf.mxu1  ;;  %v20149_v15 = vld [vmem:[%s25676_s10 + $0x6a0] sm:$0xff]   ;;  %v20150_v23 = vld [vmem:[%s25676_s10 + $0x658] sm:$0xff]  }
0x1be8   : > { %18778 = vmatprep.subr.bf16.mxu0 %v20142_v17  ;;  %18806 = vmatprep.subr.bf16.mxu1 %v20143_v6 }
0x1be9   : > { %7988 = vmatmul.mubr.bf16.gmra.mxu0 %v7065_v8  ;;  %8036 = vmatmul.mubr.bf16.gmra.mxu1 %v7067_v48  ;;  %v22969_v33 = vpop.f32.mrf.mxu0  ;;  %v22971_v4 = vpop.f32.mrf.mxu1  ;;  %v20153_v8 = vld [vmem:[%s25676_s10 + $0x698] sm:$0xff]   ;;  %v20154_v48 = vld [vmem:[%s25676_s10 + $0x650] sm:$0xff]  }
0x1bea   : > { %8075 = vmatprep.mubr.bf16.mxu0 %v7054_v39  ;;  %8123 = vmatprep.mubr.bf16.mxu1 %v7056_v43  ;;  %v20156_v43 = vld [vmem:[%s25676_s10 + $0x610] sm:$0xff]  }
0x1beb   : > { %18779 = vmatpush3.bf16.msra.mxu0 %v20144_v27  ;;  %18807 = vmatpush3.bf16.msra.mxu1 %v20145_v3  ;;  %v22973_v57 = vpop.f32.mrf.mxu0  ;;  %v22975_v55 = vpop.f32.mrf.mxu1  ;;  %v20155_v27 = vld [vmem:[%s25676_s10 + $0x6d0] sm:$0xff]  }
0x1bec   : > { %18780 = vmatprep.subr.bf16.mxu0 %v20146_v47  ;;  %18808 = vmatprep.subr.bf16.mxu1 %v20147_v24  ;;  %v20157_v47 = vld [vmem:[%s25676_s10 + $0x690] sm:$0xff]   ;;  %v20158_v24 = vld [vmem:[%s25676_s10 + $0x648] sm:$0xff]  }
0x1bed   : > { %v22989_v37 = vpop.f32.mrf.mxu0  ;;  %v22991_v17 = vpop.f32.mrf.mxu1 }
0x1bef   : > { %18781 = vmatpush3.bf16.msra.mxu0 %v20148_v34  ;;  %18809 = vmatpush3.bf16.msra.mxu1 %v20149_v15  ;;  %v6943_v6 = vpop.f32.mrf.mxu0  ;;  %v6994_v62 = vpop.f32.mrf.mxu1  ;;  %v20159_v34 = vld [vmem:[%s25676_s10 + $0x6c8] sm:$0xff]   ;;  %v6378_v15 = vrot.slane %v22899_v59, %v21649_v0 }
0x1bf0   : > { %18782 = vmatprep.subr.bf16.mxu0 %v20150_v23  ;;  %18810 = vmatprep.subr.bf16.mxu1 %v20151_v12  ;;  %v6386_v23 = vrot.slane %v22899_v59, %v21652_v1  ;;  %v20160_v6 = vld [vmem:[%s25676_s10 + $0x608] sm:$0xff]  }
0x1bf1   : > { %v6944_v3 = vpop.f32.mrf.mxu0  ;;  %v6995_v39 = vpop.f32.mrf.mxu1  ;;  %v6832_v12 = vadd.f32 %v22866_v35, %v6378_v15  ;;  %v20161_v62 = vld [vmem:[%s25676_s10 + $0x688] sm:$0xff]   ;;  %v20163_v35 = vld [vmem:[%s25676_s10 + $0x6c0] sm:$0xff]  }
0x1bf2   : > { %v6891_v3 = vadd.f32 %v22903_v7, %v22911_v52 }
0x1bf3   : > { %18783 = vmatpush3.bf16.msra.mxu0 %v20152_v58  ;;  %18811 = vmatpush3.bf16.msra.mxu1 %v20153_v8  ;;  %v6883_v58 = vadd.f32 %v22868_v45, %v6386_v23  ;;  %v20162_v8 = vld [vmem:[%s25676_s10 + $0x640] sm:$0xff]   ;;  %v6879_v45 = vadd.f32 %v22843_v18, %v6386_v23  ;;  %v7021_v39 = vmax.f32 %v6832_v12, 0.0  ;;  %v20167_v18 = vld [vmem:[%s25676_s10 + $0x7f8] sm:$0xff]   ;;  %v23055_v12 = vrot.slane %v22899_v59, %v21680_v9 }
0x1bf4   : > { %18784 = vmatprep.subr.bf16.mxu0 %v20154_v48  ;;  %18812 = vmatprep.subr.bf16.mxu1 %v20155_v27  ;;  %v6828_v48 = vadd.f32 %v22841_v21, %v6378_v15  ;;  %v6840_v27 = vadd.f32 %v22901_v13, %v22907_v53  ;;  %v20166_v13 = vld [vmem:[%s25676_s10 + $0x778] sm:$0xff]   ;;  %v7040_v52 = vmax.f32 %v6891_v3, 0.0 }
0x1bf5   : > { %v7023_v21 = vmax.f32 %v6883_v58, 0.0  ;;  %v6838_v58 = vadd.f32 %v22886_v11, %v6378_v15  ;;  %v20171_v15 = vld [vmem:[%s25676_s10 + $0x7f0] sm:$0xff]  }
0x1bf6   : > { %v7005_v7 = vmax.f32 %v6828_v48, 0.0  ;;  %v7038_v53 = vmax.f32 %v6840_v27, 0.0  ;;  %v20169_v48 = vld [vmem:[%s25676_s10 + $0x7b8] sm:$0xff]   ;;  %v7072_v3 = vpack.c.bf16 %v7040_v52, %v7040_v52 }
0x1bf7   : > { %18785 = vmatpush3.bf16.msra.mxu0 %v20156_v43  ;;  %18813 = vmatpush3.bf16.msra.mxu1 %v20157_v47  ;;  %v20164_v43 = vld [vmem:[%s25676_s10 + $0x600] sm:$0xff]  }
0x1bf8   : > { %18786 = vmatprep.subr.bf16.mxu0 %v20158_v24  ;;  %18814 = vmatprep.subr.bf16.mxu1 %v20159_v34  ;;  %v20165_v47 = vld [vmem:[%s25676_s10 + $0x680] sm:$0xff]   ;;  %v7007_v24 = vmax.f32 %v6879_v45, 0.0  ;;  %v7053_v34 = vpack.c.bf16 %v7021_v39, %v7005_v7  ;;  %v7070_v27 = vpack.c.bf16 %v7038_v53, %v7038_v53  ;;  %v6936_v45 = vadd.f32 %v22969_v33, %v23055_v12 }
0x1bf9   : > { %v7037_v33 = vmax.f32 %v6838_v58, 0.0 }
0x1bfb   : > { %18787 = vmatpush3.bf16.msra.mxu0 %v20160_v6  ;;  %18815 = vmatpush3.bf16.msra.mxu1 %v20161_v62  ;;  %v23059_v6 = vrot.slane %v22899_v59, %v21683_v16  ;;  %v7055_v62 = vpack.c.bf16 %v7023_v21, %v7007_v24  ;;  %v7026_v21 = vmax.f32 %v6936_v45, 0.0  ;;  %v7069_v53 = vpack.c.bf16 %v7037_v33, %v7037_v33  ;;  %v20176_v24 = vld [vmem:[%s25676_s10 + $0x728] sm:$0xff]   ;;  %v20183_v45 = vld [vmem:[%s25676_s10 + $0x7d8] sm:$0xff]   ;;  %v20189_v33 = vld [vmem:[%s25676_s10 + $0x790] sm:$0xff]  }
0x1bfc   : > { %18788 = vmatprep.subr.bf16.mxu0 %v20162_v8  ;;  %18816 = vmatprep.subr.bf16.mxu1 %v20163_v35  ;;  %v6889_v8 = vadd.f32 %v22888_v38, %v6386_v23  ;;  %v20168_v35 = vld [vmem:[%s25676_s10 + $0x738] sm:$0xff]   ;;  %v20170_v38 = vld [vmem:[%s25676_s10 + $0x770] sm:$0xff]   ;;  %v6932_v23 = vadd.f32 %v22949_v42, %v23055_v12  ;;  %v20174_v42 = vld [vmem:[%s25676_s10 + $0x768] sm:$0xff]  }
0x1bfd   : > { %v6987_v11 = vadd.f32 %v22971_v4, %v23059_v6  ;;  %v6983_v39 = vadd.f32 %v22951_v61, %v23059_v6  ;;  %v20175_v61 = vld [vmem:[%s25676_s10 + $0x7e8] sm:$0xff]  }
0x1bfe   : > { %v7039_v4 = vmax.f32 %v6889_v8, 0.0  ;;  %v20178_v8 = vld [vmem:[%s25676_s10 + $0x760] sm:$0xff]  }
0x1bff   : > { %18789 = vmatpush3.bf16.msra.mxu0 %v20164_v43  ;;  %18817 = vmatpush3.bf16.msra.mxu1 %v20165_v47  ;;  %v20172_v43 = vld [vmem:[%s25676_s10 + $0x730] sm:$0xff]   ;;  %v7012_v7 = vmax.f32 %v6983_v39, 0.0 }
0x1c00   : > { %18830 = vmatprep.subr.bf16.mxu0 %v20166_v13  ;;  %18858 = vmatprep.subr.bf16.mxu1 %v20167_v18  ;;  %v20173_v47 = vld [vmem:[%s25676_s10 + $0x7b0] sm:$0xff]   ;;  %v7028_v13 = vmax.f32 %v6987_v11, 0.0  ;;  %v7010_v18 = vmax.f32 %v6932_v23, 0.0  ;;  %v7071_v52 = vpack.c.bf16 %v7039_v4, %v7039_v4  ;;  %v20184_v11 = vld [vmem:[%s25676_s10 + $0x718] sm:$0xff]   ;;  %v20190_v4 = vld [vmem:[%s25676_s10 + $0x748] sm:$0xff]  }
0x1c01   : > { %v20187_v23 = vld [vmem:[%s25676_s10 + $0x7d0] sm:$0xff]  }
0x1c02   : > { %8076 = vmatmul.mubr.bf16.vlgmr.msra.gmra.mxu0 %v7053_v34  ;;  %8124 = vmatmul.mubr.bf16.vlgmr.msra.gmra.mxu1 %v7055_v62  ;;  %v20177_v34 = vld [vmem:[%s25676_s10 + $0x7a8] sm:$0xff]   ;;  %v7058_v62 = vpack.c.bf16 %v7026_v21, %v7010_v18  ;;  %v7060_v58 = vpack.c.bf16 %v7028_v13, %v7012_v7  ;;  %v20188_v39 = vld [vmem:[%s25676_s10 + $0x710] sm:$0xff]   ;;  %v6402_v21 = vrot.slane %v22899_v59, %v21759_v54  ;;  %v20195_v7 = vld [vmem:[%s25676_s10 + $0x7c0] sm:$0xff]  }
0x1c03   : > { %8083 = vmatprep.mubr.bf16.mxu0 %v7070_v27  ;;  %8131 = vmatprep.mubr.bf16.mxu1 %v7072_v3  ;;  %v20181_v27 = vld [vmem:[%s25676_s10 + $0x7a0] sm:$0xff]   ;;  %v20182_v3 = vld [vmem:[%s25676_s10 + $0x758] sm:$0xff]   ;;  %v20192_v13 = vld [vmem:[%s25676_s10 + $0x708] sm:$0xff]  }
0x1c04   : > { %18831 = vmatpush3.bf16.msra.mxu0 %v20168_v35  ;;  %18859 = vmatpush3.bf16.msra.mxu1 %v20169_v48  ;;  %v20179_v35 = vld [vmem:[%s25676_s10 + $0x7e0] sm:$0xff]   ;;  %v6985_v18 = vadd.f32 %v22955_v14, %v6402_v21  ;;  %v6981_v14 = vadd.f32 %v22935_v51, %v6402_v21 }
0x1c05   : > { %18832 = vmatprep.subr.bf16.mxu0 %v20170_v38  ;;  %18860 = vmatprep.subr.bf16.mxu1 %v20171_v15  ;;  %v20180_v48 = vld [vmem:[%s25676_s10 + $0x720] sm:$0xff]   ;;  %v20185_v38 = vld [vmem:[%s25676_s10 + $0x798] sm:$0xff]   ;;  %v20186_v15 = vld [vmem:[%s25676_s10 + $0x750] sm:$0xff]  }
0x1c08   : > { %18833 = vmatpush3.bf16.msra.mxu0 %v20172_v43  ;;  %18861 = vmatpush3.bf16.msra.mxu1 %v20173_v47  ;;  %v20191_v43 = vld [vmem:[%s25676_s10 + $0x7c8] sm:$0xff]   ;;  %v6394_v47 = vrot.slane %v22899_v59, %v21756_v41  ;;  %v20194_v59 = vld [vmem:[%s25676_s10 + $0x740] sm:$0xff]  }
0x1c09   : > { %18834 = vmatprep.subr.bf16.mxu0 %v20174_v42  ;;  %18862 = vmatprep.subr.bf16.mxu1 %v20175_v61  ;;  %v20193_v42 = vld [vmem:[%s25676_s10 + $0x788] sm:$0xff]  }
0x1c0a   : > { %8084 = vmatmul.mubr.bf16.gmra.mxu0 %v7069_v53  ;;  %8132 = vmatmul.mubr.bf16.gmra.mxu1 %v7071_v52  ;;  %v6934_v61 = vadd.f32 %v22953_v30, %v6394_v47  ;;  %v6942_v53 = vadd.f32 %v22989_v37, %v23055_v12  ;;  %v6993_v52 = vadd.f32 %v22991_v17, %v23059_v6 }
0x1c0b   : > { %8171 = vmatprep.mubr.bf16.mxu0 %v7058_v62  ;;  %8219 = vmatprep.mubr.bf16.mxu1 %v7060_v58  ;;  %v6930_v30 = vadd.f32 %v22933_v5, %v6394_v47  ;;  %v7027_v58 = vmax.f32 %v6985_v18, 0.0  ;;  %v7011_v5 = vmax.f32 %v6981_v14, 0.0 }
0x1c0c   : > { %18835 = vmatpush3.bf16.msra.mxu0 %v20176_v24  ;;  %18863 = vmatpush3.bf16.msra.mxu1 %v20177_v34  ;;  %v20196_v24 = vld [vmem:[%s25676_s10 + $0x700] sm:$0xff]   ;;  %v7025_v62 = vmax.f32 %v6934_v61, 0.0  ;;  %v7042_v37 = vmax.f32 %v6942_v53, 0.0  ;;  %v7044_v17 = vmax.f32 %v6993_v52, 0.0 }
0x1c0d   : > { %18836 = vmatprep.subr.bf16.mxu0 %v20178_v8  ;;  %18864 = vmatprep.subr.bf16.mxu1 %v20179_v35  ;;  %v20197_v34 = vld [vmem:[%s25676_s10 + $0x780] sm:$0xff]   ;;  %v7009_v12 = vmax.f32 %v6930_v30, 0.0  ;;  %v7059_v6 = vpack.c.bf16 %v7027_v58, %v7011_v5  ;;  %v6940_v8 = vadd.f32 %v22973_v57, %v6394_v47  ;;  %v6991_v35 = vadd.f32 %v22975_v55, %v6402_v21 }
0x1c0e   : > { %v17189_v55 = vld [vmem:[%s25677_s11 + $0x1] ss:$0 sm:$0xff] }
0x1c0f   : > { %v7057_v51 = vpack.c.bf16 %v7025_v62, %v7009_v12 }
0x1c10   : > { %18837 = vmatpush3.bf16.msra.mxu0 %v20180_v48  ;;  %18865 = vmatpush3.bf16.msra.mxu1 %v20181_v27  ;;  %v7074_v48 = vpack.c.bf16 %v7042_v37, %v7042_v37  ;;  %v7076_v27 = vpack.c.bf16 %v7044_v17, %v7044_v17 }
0x1c11   : > { %18838 = vmatprep.subr.bf16.mxu0 %v20182_v3  ;;  %18866 = vmatprep.subr.bf16.mxu1 %v20183_v45  ;;  %v7041_v3 = vmax.f32 %v6940_v8, 0.0  ;;  %v7043_v45 = vmax.f32 %v6991_v35, 0.0 }
0x1c14   : > { %18839 = vmatpush3.bf16.msra.mxu0 %v20184_v11  ;;  %18867 = vmatpush3.bf16.msra.mxu1 %v20185_v38  ;;  %v7073_v11 = vpack.c.bf16 %v7041_v3, %v7041_v3  ;;  %v7075_v38 = vpack.c.bf16 %v7043_v45, %v7043_v45 }
0x1c15   : > { %18840 = vmatprep.subr.bf16.mxu0 %v20186_v15  ;;  %18868 = vmatprep.subr.bf16.mxu1 %v20187_v23 }
0x1c18   : > { %18841 = vmatpush3.bf16.msra.mxu0 %v20188_v39  ;;  %18869 = vmatpush3.bf16.msra.mxu1 %v20189_v33 }
0x1c19   : > { %18842 = vmatprep.subr.bf16.mxu0 %v20190_v4  ;;  %18870 = vmatprep.subr.bf16.mxu1 %v20191_v43 }
0x1c1c   : > { %18843 = vmatpush3.bf16.msra.mxu0 %v20192_v13  ;;  %18871 = vmatpush3.bf16.msra.mxu1 %v20193_v42 }
0x1c1d   : > { %18844 = vmatprep.subr.bf16.mxu0 %v20194_v59  ;;  %18872 = vmatprep.subr.bf16.mxu1 %v20195_v7 }
0x1c20   : > { %18845 = vmatpush3.bf16.msra.mxu0 %v20196_v24  ;;  %18873 = vmatpush3.bf16.msra.mxu1 %v20197_v34 }
0x1c21   : > { %19646 = vmatprep.subr.bf16.mxu1 %v25730_v26 }
0x1c23   : > { %8172 = vmatmul.mubr.bf16.vlgmr.msra.gmra.mxu0 %v7057_v51  ;;  %8220 = vmatmul.mubr.bf16.vlgmr.msra.gmra.mxu1 %v7059_v6 }
0x1c24   : > { %8179 = vmatprep.mubr.bf16.mxu0 %v7074_v48  ;;  %8227 = vmatprep.mubr.bf16.mxu1 %v7076_v27 }
0x1c2b   : > { %8180 = vmatmul.mubr.bf16.gmra.mxu0 %v7073_v11  ;;  %8228 = vmatmul.mubr.bf16.gmra.mxu1 %v7075_v38 }
0x1c2c   : > { %19648 = vmatprep.mubr.msk.bf16.mxu1 %vm20868_vm1, %v25730_v26  ;;  %v4314_v26 = vpop.xlane.xlu1 %4313 }
0x1c81   : > { %v18678_v57 = vpop.f32.mrf.mxu0  ;;  %v18706_v15 = vpop.f32.mrf.mxu1 }
0x1c83   : > { %v18679_v23 = vpop.f32.mrf.mxu0  ;;  %v18707_v39 = vpop.f32.mrf.mxu1 }
0x1c84   : > { %v18680_v33 = vadd.f32 %v18679_v23, %v18678_v57  ;;  %v18708_v4 = vadd.f32 %v18707_v39, %v18706_v15 }
0x1c85   : > { %v18681_v43 = vpop.f32.mrf.mxu0  ;;  %v18709_v47 = vpop.f32.mrf.mxu1 }
0x1c86   : > { %v7886_v21 = vadd.f32 %v18680_v33, %v17189_v55 }
0x1c87   : > { %v18682_v13 = vpop.f32.mrf.mxu0  ;;  %v18710_v42 = vpop.f32.mrf.mxu1 }
0x1c88   : > { %v7934_v61 = vadd.f32 %v18708_v4, %v7886_v21  ;;  %v18683_v18 = vadd.f32 %v18682_v13, %v18681_v43  ;;  %v18711_v52 = vadd.f32 %v18710_v42, %v18709_v47 }
0x1c89   : > { %v18684_v59 = vpop.f32.mrf.mxu0  ;;  %v18712_v7 = vpop.f32.mrf.mxu1 }
0x1c8a   : > { %v7889_v53 = vadd.f32 %v18683_v18, %v17189_v55 }
0x1c8b   : > { %v18685_v30 = vpop.f32.mrf.mxu0  ;;  %v18713_v14 = vpop.f32.mrf.mxu1 }
0x1c8c   : > { %v7937_v24 = vadd.f32 %v18711_v52, %v7889_v53  ;;  %v18686_v34 = vadd.f32 %v18685_v30, %v18684_v59  ;;  %v18714_v62 = vadd.f32 %v18713_v14, %v18712_v7 }
0x1c8d   : > { %v18687_v58 = vpop.f32.mrf.mxu0  ;;  %v18715_v37 = vpop.f32.mrf.mxu1 }
0x1c8e   : > { %v7894_v17 = vadd.f32 %v18686_v34, %v17189_v55 }
0x1c8f   : > { %v18688_v12 = vpop.f32.mrf.mxu0  ;;  %v18716_v5 = vpop.f32.mrf.mxu1 }
0x1c90   : > { %v7942_v51 = vadd.f32 %v18714_v62, %v7894_v17 }
0x1ca1   : > { %v18734_v6 = vpop.f32.mrf.mxu0  ;;  %v18762_v8 = vpop.f32.mrf.mxu1 }
0x1ca3   : > { %v18735_v35 = vpop.f32.mrf.mxu0  ;;  %v18763_v48 = vpop.f32.mrf.mxu1 }
0x1ca4   : > { %v18736_v17 = vadd.f32 %v18735_v35, %v18734_v6 }
0x1ca5   : > { %v18737_v27 = vpop.f32.mrf.mxu0  ;;  %v18765_v3 = vpop.f32.mrf.mxu1 }
0x1ca6   : > { %v7982_v12 = vadd.f32 %v18736_v17, %v7934_v61 }
0x1ca7   : > { %v18738_v45 = vpop.f32.mrf.mxu0  ;;  %v18766_v11 = vpop.f32.mrf.mxu1 }
0x1ca8   : > { %v18739_v5 = vadd.f32 %v18738_v45, %v18737_v27  ;;  %v18767_v54 = vadd.f32 %v18766_v11, %v18765_v3 }
0x1ca9   : > { %v18740_v38 = vpop.f32.mrf.mxu0  ;;  %v18768_v57 = vpop.f32.mrf.mxu1 }
0x1caa   : > { %v7985_v36 = vadd.f32 %v18739_v5, %v7937_v24  ;;  %v4290_v24 = vcombine.high %v22142_v25, %v22142_v25 }
0x1cab   : > { %v18741_v15 = vpop.f32.mrf.mxu0  ;;  %v18769_v23 = vpop.f32.mrf.mxu1 }
0x1cad   : > { %v18743_v39 = vpop.f32.mrf.mxu0  ;;  %v18771_v33 = vpop.f32.mrf.mxu1 }
0x1cae   : > { %v18764_v39 = vadd.f32 %v18763_v48, %v18762_v8 }
0x1caf   : > { %v18744_v4 = vpop.f32.mrf.mxu0  ;;  %v18772_v43 = vpop.f32.mrf.mxu1 }
0x1cb0   : > { %v18742_v4 = vadd.f32 %v18741_v15, %v18740_v38  ;;  %v8030_v43 = vadd.f32 %v18764_v39, %v7982_v12 }
0x1cb2   : > { %v7990_v9 = vadd.f32 %v18742_v4, %v7942_v51  ;;  %v4322_v51 = vmul.f32 0.03125, %v4317_v63 }
0x1cc2   : > { %v18790_v55 = vpop.f32.mrf.mxu0  ;;  %v18818_v47 = vpop.f32.mrf.mxu1 }
0x1cc4   : > { %v18791_v21 = vpop.f32.mrf.mxu0  ;;  %v18819_v13 = vpop.f32.mrf.mxu1 }
0x1cc5   : > { %v18792_v33 = vadd.f32 %v18791_v21, %v18790_v55 }
0x1cc6   : > { %v18793_v42 = vpop.f32.mrf.mxu0  ;;  %v18821_v18 = vpop.f32.mrf.mxu1 }
0x1cc7   : > { %v8078_v41 = vadd.f32 %v18792_v33, %v8030_v43 }
0x1cc8   : > { %v18794_v59 = vpop.f32.mrf.mxu0  ;;  %v18822_v7 = vpop.f32.mrf.mxu1 }
0x1cc9   : > { %v18795_v16 = vadd.f32 %v18794_v59, %v18793_v42  ;;  %v18823_v38 = vadd.f32 %v18822_v7, %v18821_v18  ;;  %v4354_v7 = vrot.slane %v4322_v51, %v21299_v50 }
0x1cca   : > { %v18796_v53 = vpop.f32.mrf.mxu0  ;;  %v18824_v52 = vpop.f32.mrf.mxu1 }
0x1ccc   : > { %v18797_v30 = vpop.f32.mrf.mxu0  ;;  %v18825_v14 = vpop.f32.mrf.mxu1 }
0x1ccd   : > { %v18798_v6 = vadd.f32 %v18797_v30, %v18796_v53 }
0x1cce   : > { %v18799_v34 = vpop.f32.mrf.mxu0  ;;  %v18827_v62 = vpop.f32.mrf.mxu1 }
0x1ccf   : > { %v8033_v34 = vadd.f32 %v18767_v54, %v7985_v36  ;;  %v18820_v62 = vadd.f32 %v18819_v13, %v18818_v47  ;;  %v23187_v47 = vadd.f32 %v22142_v25, %v21432_v31  ;;  %v23190_v13 = vadd.f32 %v4290_v24, %v21434_v32 }
0x1cd0   : > { %v18800_v58 = vpop.f32.mrf.mxu0  ;;  %v18828_v37 = vpop.f32.mrf.mxu1 }
0x1cd1   : > { %v4321_v58 = vmul.f32 0.03125, %v4314_v26  ;;  %v18770_v37 = vadd.f32 %v18769_v23, %v18768_v57  ;;  %v8126_v8 = vadd.f32 %v18820_v62, %v8078_v41  ;;  %v8081_v48 = vadd.f32 %v18795_v16, %v8033_v34 }
0x1cd2   : > { %v4308_v33 = vcombine.low %v23187_v47, %v23190_v13  ;;  %v23208_v62 = vsub.f32 %v22416_v46, %v4354_v7 }
0x1cd3   : > { %v8038_v3 = vadd.f32 %v18770_v37, %v7990_v9  ;;  %v4333_v36 = vrot.slane %v4321_v58, %v21296_v49  ;;  %v4340_v26 = vrot.slane %v4321_v58, %v21299_v50  ;;  %v8129_v41 = vadd.f32 %v18823_v38, %v8081_v48 }
0x1cd4   : > { %v18826_v9 = vadd.f32 %v18825_v14, %v18824_v52  ;;  %v4318_v46 = vsel %vm895_vm0, %v4308_v33, 0.0  ;;  %v4384_v24 = vmul.f32 %v23208_v62, %v23208_v62 }
0x1cd5   : > { %v8086_v54 = vadd.f32 %v18798_v6, %v8038_v3  ;;  %v23195_v53 = vsub.f32 %v22420_v20, %v4333_v36  ;;  %v23198_v30 = vsub.f32 %v22404_v22, %v4340_v26 }
0x1cd7   : > { %v8134_v31 = vadd.f32 %v18826_v9, %v8086_v54  ;;  %v4382_v37 = vmul.f32 %v23198_v30, %v23198_v30 }
0x1ce3   : > { %v18846_v1 = vpop.f32.mrf.mxu0  ;;  %v18874_v0 = vpop.f32.mrf.mxu1 }
0x1ce5   : > { %v18847_v61 = vpop.f32.mrf.mxu0  ;;  %v18875_v35 = vpop.f32.mrf.mxu1 }
0x1ce6   : > { %v18848_v27 = vadd.f32 %v18847_v61, %v18846_v1  ;;  %v18876_v55 = vadd.f32 %v18875_v35, %v18874_v0  ;;  %v4347_v0 = vrot.slane %v4322_v51, %v21296_v49 }
0x1ce7   : > { %v18849_v45 = vpop.f32.mrf.mxu0  ;;  %v18877_v11 = vpop.f32.mrf.mxu1 }
0x1ce8   : > { %v8174_v15 = vadd.f32 %v18848_v27, %v8126_v8  ;;  %v23205_v22 = vsub.f32 %v22424_v40, %v4347_v0 }
0x1ce9   : > { %v18850_v57 = vpop.f32.mrf.mxu0  ;;  %v18878_v23 = vpop.f32.mrf.mxu1 }
0x1cea   : > { %v8222_v16 = vadd.f32 %v18876_v55, %v8174_v15  ;;  %v18851_v1 = vadd.f32 %v18850_v57, %v18849_v45  ;;  %v18879_v59 = vadd.f32 %v18878_v23, %v18877_v11  ;;  %v4383_v27 = vmul.f32 %v23205_v22, %v23205_v22 }
0x1ceb   : > { %v18852_v21 = vpop.f32.mrf.mxu0  ;;  %v18880_v63 = vpop.f32.mrf.mxu1 }
0x1cec   : > { %v8238_v42 = vcombine.high %v8222_v16, %v8222_v16  ;;  %v8177_v18 = vadd.f32 %v18851_v1, %v8129_v41  ;;  %v8244_v14 = vadd.f32 %v8222_v16, %v22504_v10  ;;  %v4394_v15 = vcombine.low %v4383_v27, %v4384_v24 }
0x1ced   : > { %v18853_v25 = vpop.f32.mrf.mxu0  ;;  %v18881_v52 = vpop.f32.mrf.mxu1 }
0x1cee   : > { %v8225_v32 = vadd.f32 %v18879_v59, %v8177_v18  ;;  %v18854_v17 = vadd.f32 %v18853_v25, %v18852_v21  ;;  %v8245_v12 = vadd.f32 %v8238_v42, %v22506_v19  ;;  %v18882_v43 = vadd.f32 %v18881_v52, %v18880_v63 }
0x1cef   : > { %v18855_v5 = vpop.f32.mrf.mxu0  ;;  %v18883_v39 = vpop.f32.mrf.mxu1  ;;  %v4381_v19 = vmul.f32 %v23195_v53, %v23195_v53  ;;  %v4402_v55 = vsel %vm895_vm0, %v4394_v15, 0.0 }
0x1cf0   : > { %v8239_v4 = vcombine.high %v8225_v32, %v8225_v32  ;;  %v8182_v20 = vadd.f32 %v18854_v17, %v8134_v31  ;;  %v8256_v34 = vcombine.low %v8244_v14, %v8245_v12  ;;  %v8246_v35 = vadd.f32 %v8225_v32, %v22508_v44 }
0x1cf1   : > { %v18856_v10 = vpop.f32.mrf.mxu0  ;;  %v18884_v58 = vpop.f32.mrf.mxu1  ;;  %v4393_v44 = vcombine.low %v4381_v19, %v4382_v37 }
0x1cf2   : > { %v8230_v6 = vadd.f32 %v18882_v43, %v8182_v20  ;;  %v8262_v61 = vsel %vm895_vm0, %v8256_v34, 0.0  ;;  %v8247_v8 = vadd.f32 %v8239_v4, %v22510_v56 }
0x1cf3   : > { %8263 = vadd.xlane.f32.xlu1 %v8262_v61  ;;  %v4399_v38 = vsel %vm895_vm0, %v4393_v44, 0.0 }
0x1cf4   : > { %v8240_v40 = vcombine.high %v8230_v6, %v8230_v6  ;;  %v8257_v48 = vcombine.low %v8246_v35, %v8247_v8  ;;  %v8248_v3 = vadd.f32 %v8230_v6, %v22530_v2 }
0x1cf6   : > { %v8265_v45 = vsel %vm895_vm0, %v8257_v48, 0.0  ;;  %v8249_v11 = vadd.f32 %v8240_v40, %v22532_v29  ;;  %v25801_v40 = vmov 0.0  }
0x1cf7   : > { %8266 = vadd.xlane.f32.xlu0 %v8265_v45  ;;  %4319 = vadd.xlane.f32.xlu1 %v4318_v46 }
0x1cf8   : > { %v8258_v56 = vcombine.low %v8248_v3, %v8249_v11 }
0x1cfa   : > { %v8268_v51 = vsel %vm895_vm0, %v8258_v56, 0.0 }
0x1cfb   : > { %8269 = vadd.xlane.f32.xlu0 %v8268_v51  ;;  %4400 = vadd.xlane.f32.xlu1 %v4399_v38 }
0x1cff   : > { %4403 = vadd.xlane.f32.xlu0 %v4402_v55 }
0x1d7c   : > { %v8264_v36 = vpop.xlane.xlu1 %8263 }
0x1d7d   : > { %v8271_v2 = vmul.f32 0.03125, %v8264_v36 }
0x1d7f   : > { %v8283_v26 = vrot.slane %v8271_v2, %v21296_v49  ;;  %v8290_v29 = vrot.slane %v8271_v2, %v21299_v50 }
0x1d80   : > { %v8267_v54 = vpop.xlane.xlu0 %8266  ;;  %v4320_v57 = vpop.xlane.xlu1 %4319 }
0x1d81   : > { %v23230_v23 = vsub.f32 %v8244_v14, %v8283_v26  ;;  %v23232_v41 = vsub.f32 %v8245_v12, %v8290_v29  ;;  %v8272_v16 = vmul.f32 0.03125, %v8267_v54  ;;  %v4323_v1 = vmul.f32 0.03125, %v4320_v57 }
0x1d83   : > { %v8297_v9 = vrot.slane %v8272_v16, %v21296_v49  ;;  %v8304_v21 = vrot.slane %v8272_v16, %v21299_v50  ;;  %v4361_v63 = vrot.slane %v4323_v1, %v21296_v49  ;;  %v4368_v0 = vrot.slane %v4323_v1, %v21299_v50  ;;  %v16805_v1 = vld [vmem:[%s25802_s12] ss:$0 sm:$0xff] }
0x1d84   : > { %v8270_v42 = vpop.xlane.xlu0 %8269  ;;  %v8331_v18 = vmul.f32 %v23230_v23, %v23230_v23  ;;  %v8332_v59 = vmul.f32 %v23232_v41, %v23232_v41  ;;  %v4401_v48 = vpop.xlane.xlu1 %4400 }
0x1d85   : > { %v23242_v7 = vsub.f32 %v8246_v35, %v8297_v9  ;;  %v23244_v31 = vsub.f32 %v8247_v8, %v8304_v21  ;;  %v23247_v25 = vsub.f32 %v23187_v47, %v4361_v63  ;;  %v23250_v52 = vsub.f32 %v23190_v13, %v4368_v0  ;;  %v20198_v35 = vld [vmem:[%s25668_s2 + $0x28] sm:$0xff]   ;;  %v20199_v8 = vld [vmem:[%s25668_s2 + $0x20] sm:$0xff]  }
0x1d86   : > { %v8273_v14 = vmul.f32 0.03125, %v8270_v42  ;;  %v8343_v32 = vcombine.low %v8331_v18, %v8332_v59  ;;  %19638 = vmatprep.subr.bf16.mxu0 %v20198_v35  ;;  %v4408_v46 = vmul.f32 0.03125, %v4401_v48  ;;  %v4480_v18 = vcombine.high %v16805_v1, %v16805_v1  ;;  %v16806_v59 = vld [vmem:[%s25803_s13] ss:$0 sm:$0xff] }
0x1d87   : > { %v8333_v17 = vmul.f32 %v23242_v7, %v23242_v7  ;;  %v8334_v12 = vmul.f32 %v23244_v31, %v23244_v31  ;;  %v4385_v5 = vmul.f32 %v23247_v25, %v23247_v25  ;;  %v4386_v39 = vmul.f32 %v23250_v52, %v23250_v52  ;;  %19639 = vmatpush3.bf16.msra.mxu0 %v20198_v35 }
0x1d88   : > { %v8311_v47 = vrot.slane %v8273_v14, %v21296_v49  ;;  %v8318_v33 = vrot.slane %v8273_v14, %v21299_v50  ;;  %v8349_v13 = vsel %vm895_vm0, %v8343_v32, 0.0  ;;  %19640 = vmatprep.subr.bf16.mxu0 %v20199_v8  ;;  %v4404_v27 = vpop.xlane.xlu0 %4403  ;;  %v4411_v24 = vadd.f32 1e-05, %v4408_v46 }
0x1d89   : > { %8350 = vadd.xlane.f32.xlu1 %v8349_v13  ;;  %v8344_v4 = vcombine.low %v8333_v17, %v8334_v12  ;;  %v4395_v20 = vcombine.low %v4385_v5, %v4386_v39  ;;  %v4494_v5 = vcombine.high %v16806_v59, %v16806_v59  ;;  %v20886_v13 = vmov 1.0  }
0x1d8a   : > { %v23263_v43 = vsub.f32 %v8248_v3, %v8311_v47  ;;  %v23265_v34 = vsub.f32 %v8249_v11, %v8318_v33  ;;  %v4409_v3 = vmul.f32 0.03125, %v4404_v27  ;;  %20602 = vrsqrt.f32 %v4411_v24  ;;  %v17319_v33 = vld [vmem:[%s25803_s13 + $0x1] ss:$0 sm:$0xff] }
0x1d8b   : > { %v8352_v10 = vsel %vm895_vm0, %v8344_v4, 0.0  ;;  %v4405_v58 = vsel %vm895_vm0, %v4395_v20, 0.0  ;;  %19641 = vmatpush3.bf16.msra.mxu0 %v20199_v8  ;;  %v23302_v4 = vrot.slane %v20886_v13, %v21296_v49  ;;  %v8444_v35 = vcombine.high %v17319_v33, %v17319_v33 }
0x1d8c   : > { %8353 = vadd.xlane.f32.xlu0 %v8352_v10  ;;  %v8335_v19 = vmul.f32 %v23263_v43, %v23263_v43  ;;  %v8336_v37 = vmul.f32 %v23265_v34, %v23265_v34  ;;  %19652 = vmatprep.subr.bf16.mxu0 %v25801_v40  ;;  %v4412_v45 = vadd.f32 1e-05, %v4409_v3  ;;  %v23313_v8 = vrot.slane %v25801_v40, %v21296_v49 }
0x1d8d   : > { %4406 = vadd.xlane.f32.xlu1 %v4405_v58 }
0x1d8e   : > { %v8345_v6 = vcombine.low %v8335_v19, %v8336_v37  ;;  %20604 = vrsqrt.f32 %v4412_v45  ;;  %v23307_v37 = vrot.slane %v20886_v13, %v21299_v50  ;;  %25804 = vst [vmem:[#allocation24_spill] sm:$0xff] %v23313_v8 }
0x1d90   : > { %v8355_v61 = vsel %vm895_vm0, %v8345_v6, 0.0 }
0x1d91   : > { %8356 = vadd.xlane.f32.xlu0 %v8355_v61 }
0x1d97   : > { %v20603_v56 = vpop.eup %20602 }
0x1d98   : > { %v4426_v2 = vrot.slane %v20603_v56, %v21296_v49  ;;  %v4433_v54 = vrot.slane %v20603_v56, %v21299_v50 }
0x1d9a   : > { %v4468_v21 = vmul.f32 %v4426_v2, %v23195_v53  ;;  %v4469_v0 = vmul.f32 %v4433_v54, %v23198_v30  ;;  %v17318_v53 = vld [vmem:[%s25802_s12 + $0x1] ss:$0 sm:$0xff] }
0x1d9b   : > { %v20605_v16 = vpop.eup %20604  ;;  %v8430_v10 = vcombine.high %v17318_v53, %v17318_v53 }
0x1d9c   : > { %v4440_v42 = vrot.slane %v20605_v16, %v21296_v49  ;;  %v4447_v14 = vrot.slane %v20605_v16, %v21299_v50  ;;  %v4482_v32 = vmul.f32 %v16805_v1, %v4468_v21  ;;  %v4483_v12 = vmul.f32 %v4480_v18, %v4469_v0 }
0x1d9d   : > { %v23327_v16 = vrot.slane %v25801_v40, %v21299_v50 }
0x1d9e   : > { %v4470_v17 = vmul.f32 %v4440_v42, %v23205_v22  ;;  %v4471_v39 = vmul.f32 %v4447_v14, %v23208_v62  ;;  %v4496_v47 = vadd.f32 %v16806_v59, %v4482_v32  ;;  %v4497_v19 = vadd.f32 %v4494_v5, %v4483_v12 }
0x1d9f   : > { %25805 = vst [vmem:[#allocation25_spill] sm:$0xff] %v23327_v16 }
0x1da0   : > { %v4484_v58 = vmul.f32 %v16805_v1, %v4470_v17  ;;  %v4485_v24 = vmul.f32 %v4480_v18, %v4471_v39  ;;  %v8490_v3 = vmul.f32 %v23302_v4, %v4496_v47 }
0x1e12   : > { %v8351_v11 = vpop.xlane.xlu1 %8350 }
0x1e13   : > { %v8358_v44 = vmul.f32 0.03125, %v8351_v11 }
0x1e15   : > { %v8361_v51 = vadd.f32 1e-05, %v8358_v44  ;;  %v8354_v38 = vpop.xlane.xlu0 %8353 }
0x1e16   : > { %v8359_v15 = vmul.f32 0.03125, %v8354_v38  ;;  %v4407_v55 = vpop.xlane.xlu1 %4406  ;;  %v8491_v38 = vmul.f32 %v23307_v37, %v4497_v19 }
0x1e17   : > { %20606 = vrsqrt.f32 %v8361_v51  ;;  %v4410_v36 = vmul.f32 0.03125, %v4407_v55  ;;  %v4498_v51 = vadd.f32 %v16806_v59, %v4484_v58 }
0x1e18   : > { %v8362_v26 = vadd.f32 1e-05, %v8359_v15 }
0x1e19   : > { %v4413_v29 = vadd.f32 1e-05, %v4410_v36 }
0x1e1a   : > { %20608 = vrsqrt.f32 %v8362_v26  ;;  %v8357_v57 = vpop.xlane.xlu0 %8356 }
0x1e1b   : > { %20610 = vrsqrt.f32 %v4413_v29  ;;  %v8360_v9 = vmul.f32 0.03125, %v8357_v57  ;;  %v4499_v29 = vadd.f32 %v4494_v5, %v4485_v24 }
0x1e1d   : > { %v8363_v63 = vadd.f32 1e-05, %v8360_v9 }
0x1e1f   : > { %20612 = vrsqrt.f32 %v8363_v63 }
0x1e24   : > { %v20607_v30 = vpop.eup %20606 }
0x1e25   : > { %v8376_v22 = vrot.slane %v20607_v30, %v21296_v49  ;;  %v8383_v20 = vrot.slane %v20607_v30, %v21299_v50 }
0x1e27   : > { %v20609_v62 = vpop.eup %20608  ;;  %v8418_v6 = vmul.f32 %v8376_v22, %v23230_v23  ;;  %v8419_v61 = vmul.f32 %v8383_v20, %v23232_v41  ;;  %v8492_v22 = vmul.f32 %v23313_v8, %v4498_v51  ;;  %v8493_v20 = vmul.f32 %v23302_v4, %v4499_v29 }
0x1e28   : > { %v20611_v48 = vpop.eup %20610  ;;  %v8390_v46 = vrot.slane %v20609_v62, %v21296_v49  ;;  %v8397_v27 = vrot.slane %v20609_v62, %v21299_v50 }
0x1e29   : > { %v4454_v45 = vrot.slane %v20611_v48, %v21296_v49  ;;  %v4461_v11 = vrot.slane %v20611_v48, %v21299_v50  ;;  %v8432_v23 = vmul.f32 %v17318_v53, %v8418_v6  ;;  %v8433_v44 = vmul.f32 %v8430_v10, %v8419_v61 }
0x1e2a   : > { %v8420_v41 = vmul.f32 %v8390_v46, %v23242_v7  ;;  %v8421_v56 = vmul.f32 %v8397_v27, %v23244_v31 }
0x1e2b   : > { %v4472_v15 = vmul.f32 %v4454_v45, %v23247_v25  ;;  %v4473_v55 = vmul.f32 %v4461_v11, %v23250_v52  ;;  %v8446_v36 = vadd.f32 %v17319_v33, %v8432_v23  ;;  %v8447_v2 = vadd.f32 %v8444_v35, %v8433_v44 }
0x1e2c   : > { %v20613_v26 = vpop.eup %20612  ;;  %v8434_v54 = vmul.f32 %v17318_v53, %v8420_v41  ;;  %v8435_v57 = vmul.f32 %v8430_v10, %v8421_v56 }
0x1e2d   : > { %v4486_v7 = vmul.f32 %v16805_v1, %v4472_v15  ;;  %v4487_v9 = vmul.f32 %v4480_v18, %v4473_v55  ;;  %v8404_v31 = vrot.slane %v20613_v26, %v21296_v49  ;;  %v8411_v21 = vrot.slane %v20613_v26, %v21299_v50 }
0x1e2e   : > { %v8448_v63 = vadd.f32 %v17319_v33, %v8434_v54  ;;  %v8449_v25 = vadd.f32 %v8444_v35, %v8435_v57  ;;  %v8452_v0 = vadd.f32 %v8446_v36, %v4496_v47  ;;  %v8453_v52 = vadd.f32 %v8447_v2, %v4497_v19 }
0x1e2f   : > { %v8422_v42 = vmul.f32 %v8404_v31, %v23263_v43  ;;  %v8423_v14 = vmul.f32 %v8411_v21, %v23265_v34  ;;  %v4500_v32 = vadd.f32 %v16806_v59, %v4486_v7  ;;  %v4501_v17 = vadd.f32 %v4494_v5, %v4487_v9 }
0x1e30   : > { %v8454_v12 = vadd.f32 %v8448_v63, %v4498_v51  ;;  %v8455_v30 = vadd.f32 %v8449_v25, %v4499_v29  ;;  %v8458_v39 = vmul.f32 0.5, %v8452_v0  ;;  %v8459_v13 = vmul.f32 0.5, %v8453_v52 }
0x1e31   : > { %v8436_v1 = vmul.f32 %v17318_v53, %v8422_v42  ;;  %v8437_v18 = vmul.f32 %v8430_v10, %v8423_v14  ;;  %v8494_v59 = vmul.f32 %v23307_v37, %v4500_v32  ;;  %v8495_v5 = vmul.f32 %v23313_v8, %v4501_v17 }
0x1e32   : > { %v8460_v58 = vmul.f32 0.5, %v8454_v12  ;;  %v8461_v62 = vmul.f32 0.5, %v8455_v30  ;;  %v8522_v47 = vmul.f32 %v23313_v8, %v8458_v39  ;;  %v8523_v43 = vmul.f32 %v23327_v16, %v8459_v13 }
0x1e33   : > { %v8450_v19 = vadd.f32 %v17319_v33, %v8436_v1  ;;  %v8451_v34 = vadd.f32 %v8444_v35, %v8437_v18  ;;  %v8534_v27 = vmul.f32 %v23302_v4, %v8446_v36  ;;  %v8535_v24 = vmul.f32 %v23307_v37, %v8447_v2 }
0x1e34   : > { %v8524_v6 = vmul.f32 %v23302_v4, %v8460_v58  ;;  %v8525_v53 = vmul.f32 %v23313_v8, %v8461_v62  ;;  %v23341_v10 = vadd.f32 %v8522_v47, %v8490_v3  ;;  %v23343_v61 = vadd.f32 %v8523_v43, %v8491_v38 }
0x1e35   : > { %v8456_v48 = vadd.f32 %v8450_v19, %v4500_v32  ;;  %v8457_v46 = vadd.f32 %v8451_v34, %v4501_v17  ;;  %v8536_v45 = vmul.f32 %v23313_v8, %v8448_v63  ;;  %v8537_v11 = vmul.f32 %v23302_v4, %v8449_v25  ;;  %v17625_v63 = vld [vmem:[%s25669_s3 + $0x2] ss:$0 sm:$0xff] }
0x1e36   : > { %v23347_v33 = vadd.f32 %v8524_v6, %v8492_v22  ;;  %v23349_v35 = vadd.f32 %v8525_v53, %v8493_v20  ;;  %v23353_v3 = vadd.f32 %v8534_v27, %v8522_v47  ;;  %v23355_v41 = vadd.f32 %v8535_v24, %v8523_v43 }
0x1e37   : > { %v8462_v23 = vmul.f32 0.5, %v8456_v48  ;;  %v8463_v44 = vmul.f32 0.5, %v8457_v46  ;;  %v8869_v56 = vcombine.low %v23341_v10, %v23343_v61  ;;  %v23361_v38 = vadd.f32 %v8536_v45, %v8524_v6 }
0x1e38   : > { %v8870_v51 = vcombine.low %v23347_v33, %v23349_v35  ;;  %v23363_v15 = vadd.f32 %v8537_v11, %v8525_v53  ;;  %v8538_v36 = vmul.f32 %v23307_v37, %v8450_v19  ;;  %v8539_v26 = vmul.f32 %v23313_v8, %v8451_v34 }
0x1e39   : > { %v8526_v55 = vmul.f32 %v23327_v16, %v8462_v23  ;;  %v8527_v2 = vmul.f32 %v23302_v4, %v8463_v44 }
0x1e3a   : > { %v8875_v29 = vpack.c.bf16 %v8870_v51, %v8869_v56 }
0x1e3b   : > { %v23369_v54 = vadd.f32 %v8526_v55, %v8494_v59  ;;  %v23371_v57 = vadd.f32 %v8527_v2, %v8495_v5  ;;  %v23373_v7 = vadd.f32 %v8538_v36, %v8526_v55  ;;  %v23375_v9 = vadd.f32 %v8539_v26, %v8527_v2 }
0x1e3c   : > { %19642 = vmatprep.mubr.msk.bf16.mxu0 %vm895_vm0, %v8875_v29 }
0x1e3d   : > { %v8871_v31 = vcombine.low %v23369_v54, %v23371_v57 }
0x1e3f   : > { %v8876_v21 = vpack.c.bf16 %v8871_v31, %v8871_v31 }
0x1e41   : > { %19643 = vmatmul.mubr.msk.bf16.vlgmr.msra.gmra.mxu0 %vm895_vm0, %v8876_v21 }
0x1e42   : > { %19654 = vmatprep.mubr.msk.bf16.mxu0 %vm20868_vm1, %v25801_v40 }
0x1f01   : > { %v19644_v25 = vpop.f32.mrf.mxu0 }
0x1f02   : > { %v8944_v0 = vadd.f32 %v19644_v25, %v17625_v63 }
0x1f03   : > { %v8935_v52 = vpop.f32.mrf.mxu0 }
0x1f04   : > { %v8950_v14 = vpack.c.bf16 %v8944_v0, %v8944_v0  ;;  %v8936_v17 = vadd.f32 %v17625_v63, %v8935_v52 }
0x1f05   : > { %v19645_v42 = vpop.f32.mrf.mxu0 }
0x1f06   : > { %v8976_v30 = vrot.slane %v8950_v14, %v21055_v28 }
0x1f07   : > { %v8938_v32 = vpop.f32.mrf.mxu0 }
0x1f08   : > { %v8939_v12 = vadd.f32 %v17625_v63, %v8938_v32  ;;  %v8977_v22 = vcombine.high %v8976_v30, %v8976_v30 }
0x1f0a   : > { %v8949_v39 = vpack.c.bf16 %v8939_v12, %v8936_v17  ;;  %v17630_v13 = vpack.c.bf16 %v8939_v12, %v8939_v12  ;;  %v9057_v43 = vrot.slane %v8977_v22, %v21055_v28 }
0x1f0c   : > { %v8960_v1 = vrot.slane %v8949_v39, %v21055_v28  ;;  %v8967_v18 = vrot.slane %v17630_v13, %v21055_v28 }
0x1f0e   : > { %v8968_v20 = vcombine.high %v8960_v1, %v8960_v1  ;;  %v8969_v58 = vcombine.high %v8967_v18, %v8967_v18  ;;  %v8992_v34 = vrot.slane %v8967_v18, %v21055_v28 }
0x1f10   : > { %v8978_v62 = vcombine.low %v8960_v1, %v8968_v20  ;;  %v9043_v47 = vcombine.low %v8969_v58, %v8976_v30 }
0x1f12   : > { %v8985_v19 = vrot.slane %v8978_v62, %v21055_v28  ;;  %v9050_v59 = vrot.slane %v9043_v47, %v21055_v28 }
0x1f14   : > { %v23393_v5 = vcombine.low %v8985_v19, %v8992_v34  ;;  %v23395_v6 = vcombine.low %v9050_v59, %v9057_v43 }
0x1f16   : > { %9059 = vrot.lane.b32.xlu0 %v23395_v6, %s25787_s20  ;;  %8994 = vrot.lane.b32.xlu1 %v23393_v5, %s25787_s20 }
0x1f88   : > { %v9060_v53 = vpop.permute.xlu0 %9059  ;;  %v8995_v48 = vpop.permute.xlu1 %8994 }
0x1f89   : > { %v9065_v46 = vsel %vm997_vm2, %v9060_v53, 0  ;;  %v9000_v27 = vsel %vm997_vm2, %v8995_v48, 0 }
0x1f8a   : > { %19647 = vmatpush3.bf16.xpose.msra.mxu1 %v9000_v27  ;;  %19653 = vmatpush3.bf16.xpose.msra.mxu0 %v9065_v46 }
0x1f8b   : > { %19658 = vmatprep.subr.bf16.mxu1 %v25801_v40  ;;  %19664 = vmatprep.subr.bf16.mxu0 %v25801_v40 }
0x1f91   : > { %19649 = vmatmul.mubr.msk.bf16.vlgmr.msra.gmra.mxu1 %vm997_vm2, %v23393_v5  ;;  %19655 = vmatmul.mubr.msk.bf16.vlgmr.msra.gmra.mxu0 %vm997_vm2, %v23395_v6 }
0x1f92   : > { %19660 = vmatprep.mubr.msk.bf16.mxu1 %vm20868_vm1, %v25801_v40  ;;  %19666 = vmatprep.mubr.msk.bf16.mxu0 %vm20868_vm1, %v25801_v40 }
0x2051   : > { %v9036_v24 = vpop.f32.mrf.mxu1  ;;  %v9101_v45 = vpop.f32.mrf.mxu0 }
0x2052   : > { %v9108_v11 = vmul.f32 0.35355338, %v9036_v24  ;;  %v9110_v56 = vmul.f32 0.35355338, %v9101_v45 }
0x2053   : > { %v19650_v23 = vpop.f32.mrf.mxu1  ;;  %v19656_v44 = vpop.f32.mrf.mxu0 }
0x2054   : > { %v9112_v51 = vsel %vm1114_vm3, %v9108_v11, -inf  ;;  %v9118_v21 = vsel %vm1114_vm3, %v9110_v56, -inf }
0x2055   : > { %v9104_v55 = vpop.f32.mrf.mxu0  ;;  %9113 = vmax.xlane.f32.xlu1 %v9112_v51  ;;  %v9039_v36 = vpop.f32.mrf.mxu1 }
0x2056   : > { %v9109_v2 = vmul.f32 0.35355338, %v9039_v36  ;;  %v9111_v31 = vmul.f32 0.35355338, %v9104_v55 }
0x2057   : > { %v19651_v26 = vpop.f32.mrf.mxu1  ;;  %v19657_v29 = vpop.f32.mrf.mxu0 }
0x2058   : > { %v9115_v63 = vsel %vm1118_vm4, %v9109_v2, -inf  ;;  %v9121_v25 = vsel %vm1118_vm4, %v9111_v31, -inf }
0x2059   : > { %9119 = vmax.xlane.f32.xlu1 %v9118_v21  ;;  %9116 = vmax.xlane.f32.xlu0 %v9115_v63 }
0x205d   : > { %9122 = vmax.xlane.f32.xlu0 %v9121_v25 }
0x206a   : > { %9158 = vrot.lane.b32.xlu1 %v23393_v5, %s25788_s24 }
0x20de   : > { %v9114_v0 = vpop.xlane.xlu1 %9113 }
0x20df   : > { %v9124_v52 = vsub.f32 %v9108_v11, %v9114_v0 }
0x20e1   : > { %v9128_v42 = vmul.f32 1.442695, %v9124_v52 }
0x20e2   : > { %v9120_v14 = vpop.xlane.xlu1 %9119  ;;  %v9117_v32 = vpop.xlane.xlu0 %9116 }
0x20e3   : > { %20614 = vpow2.f32 %v9128_v42  ;;  %v9126_v17 = vsub.f32 %v9110_v56, %v9120_v14  ;;  %v9125_v12 = vsub.f32 %v9109_v2, %v9117_v32 }
0x20e5   : > { %v9132_v30 = vmul.f32 1.442695, %v9126_v17  ;;  %v9130_v39 = vmul.f32 1.442695, %v9125_v12 }
0x20e6   : > { %v9159_v13 = vpop.permute.xlu1 %9158  ;;  %v9123_v1 = vpop.xlane.xlu0 %9122 }
0x20e7   : > { %20616 = vpow2.f32 %v9132_v30  ;;  %v9164_v18 = vsel %vm1167_vm5, %v9159_v13, 0  ;;  %v9127_v22 = vsub.f32 %v9111_v31, %v9123_v1 }
0x20e8   : > { %20618 = vpow2.f32 %v9130_v39  ;;  %19659 = vmatpush3.bf16.msra.mxu1 %v9164_v18 }
0x20e9   : > { %v9134_v20 = vmul.f32 1.442695, %v9127_v22  ;;  %19670 = vmatprep.subr.bf16.mxu1 %v25801_v40 }
0x20eb   : > { %20620 = vpow2.f32 %v9134_v20 }
0x20f0   : > { %v20615_v58 = vpop.eup %20614 }
0x20f1   : > { %v9136_v62 = vsel %vm1114_vm3, %v20615_v58, 0.0 }
0x20f2   : > { %9137 = vadd.xlane.f32.xlu1 %v9136_v62 }
0x20f4   : > { %v20617_v47 = vpop.eup %20616 }
0x20f5   : > { %v20619_v43 = vpop.eup %20618  ;;  %v9142_v19 = vsel %vm1114_vm3, %v20617_v47, 0.0 }
0x20f6   : > { %9143 = vadd.xlane.f32.xlu1 %v9142_v19  ;;  %v9139_v34 = vsel %vm1118_vm4, %v20619_v43, 0.0 }
0x20f7   : > { %9140 = vadd.xlane.f32.xlu0 %v9139_v34 }
0x20f8   : > { %v20621_v59 = vpop.eup %20620 }
0x20f9   : > { %v9145_v53 = vsel %vm1118_vm4, %v20621_v59, 0.0 }
0x20fb   : > { %9146 = vadd.xlane.f32.xlu0 %v9145_v53 }
0x2107   : > { %9258 = vrot.lane.b32.xlu1 %v23393_v5, %s25789_s29 }
0x210b   : > { %9309 = vrot.lane.b32.xlu1 %v23395_v6, %s25789_s29 }
0x210f   : > { %9307 = vrot.lane.b32.xlu1 %v23395_v6, %s25790_s27 }
0x2111   : > { %9207 = vrot.lane.b32.xlu0 %v23395_v6, %s25788_s24 }
0x2115   : > { %9256 = vrot.lane.b32.xlu0 %v23393_v5, %s25790_s27 }
0x217b   : > { %v9138_v48 = vpop.xlane.xlu1 %9137 }
0x217c   : > { %20622 = vrcp.f32 %v9138_v48 }
0x217f   : > { %v9144_v46 = vpop.xlane.xlu1 %9143 }
0x2180   : > { %v9141_v27 = vpop.xlane.xlu0 %9140 }
0x2181   : > { %20624 = vrcp.f32 %v9141_v27 }
0x2182   : > { %20626 = vrcp.f32 %v9144_v46 }
0x2183   : > { %v9259_v56 = vpop.permute.xlu1 %9258 }
0x2184   : > { %v9147_v24 = vpop.xlane.xlu0 %9146  ;;  %v9264_v31 = vsel %vm997_vm2, %v9259_v56, 0 }
0x2185   : > { %20628 = vrcp.f32 %v9147_v24 }
0x2187   : > { %v9310_v63 = vpop.permute.xlu1 %9309 }
0x2188   : > { %v9208_v45 = vpop.permute.xlu0 %9207  ;;  %v9315_v0 = vsel %vm997_vm2, %v9310_v63, 0 }
0x2189   : > { %v9213_v11 = vsel %vm1167_vm5, %v9208_v45, 0  ;;  %v20623_v23 = vpop.eup %20622 }
0x218a   : > { %19665 = vmatpush3.bf16.msra.mxu0 %v9213_v11  ;;  %v9152_v51 = vmul.f32 %v20623_v23, %v20615_v58 }
0x218b   : > { %19676 = vmatprep.subr.bf16.mxu0 %v25801_v40  ;;  %v9308_v42 = vpop.permute.xlu1 %9307 }
0x218c   : > { %v9257_v52 = vpop.permute.xlu0 %9256 }
0x218e   : > { %v20625_v44 = vpop.eup %20624 }
0x218f   : > { %v9153_v55 = vmul.f32 %v20625_v44, %v20619_v43  ;;  %v20627_v36 = vpop.eup %20626 }
0x2190   : > { %v9154_v29 = vmul.f32 %v20627_v36, %v20617_v47 }
0x2191   : > { %v9156_v2 = vpack.c.bf16 %v9153_v55, %v9152_v51 }
0x2192   : > { %v20629_v26 = vpop.eup %20628 }
0x2193   : > { %v9155_v21 = vmul.f32 %v20629_v26, %v20621_v59  ;;  %19661 = vmatmul.mubr.msk.bf16.vlgmr.msra.gmra.mxu1 %vm1114_vm3, %v9156_v2 }
0x2194   : > { %19671 = vmatpush3.bf16.xpose.msra.mxu1 %v9264_v31  ;;  %19672 = vmatprep.mubr.msk.bf16.mxu1 %vm20868_vm1, %v25801_v40 }
0x2195   : > { %v9157_v25 = vpack.c.bf16 %v9155_v21, %v9154_v29  ;;  %19682 = vmatprep.subr.bf16.mxu1 %v25801_v40 }
0x2197   : > { %19667 = vmatmul.mubr.msk.bf16.vlgmr.msra.gmra.mxu0 %vm1114_vm3, %v9157_v25 }
0x2198   : > { %19677 = vmatpush3.bf16.xpose.msra.mxu0 %v9315_v0  ;;  %19678 = vmatprep.mubr.msk.bf16.mxu0 %vm20868_vm1, %v25801_v40 }
0x2199   : > { %19688 = vmatprep.subr.bf16.mxu0 %v25801_v40 }
0x219b   : > { %19673 = vmatmul.mubr.msk.bf16.vlgmr.msra.gmra.mxu1 %vm997_vm2, %v9257_v52 }
0x219c   : > { %19684 = vmatprep.mubr.msk.bf16.mxu1 %vm20868_vm1, %v25801_v40 }
0x219f   : > { %19679 = vmatmul.mubr.msk.bf16.vlgmr.msra.gmra.mxu0 %vm997_vm2, %v9308_v42 }
0x21a0   : > { %19690 = vmatprep.mubr.msk.bf16.mxu0 %vm20868_vm1, %v25801_v40 }
0x2253   : > { %v23453_v14 = vpop.f32.mrf.mxu1 }
0x2255   : > { %v19662_v32 = vpop.f32.mrf.mxu1 }
0x2257   : > { %v23455_v17 = vpop.f32.mrf.mxu1  ;;  %v23457_v12 = vpop.f32.mrf.mxu0 }
0x2259   : > { %v19663_v30 = vpop.f32.mrf.mxu1  ;;  %v19668_v39 = vpop.f32.mrf.mxu0 }
0x225b   : > { %v23459_v13 = vpop.f32.mrf.mxu0  ;;  %v9300_v1 = vpop.f32.mrf.mxu1 }
0x225c   : > { %v9358_v18 = vmul.f32 0.35355338, %v9300_v1 }
0x225d   : > { %v19669_v22 = vpop.f32.mrf.mxu0  ;;  %v19674_v20 = vpop.f32.mrf.mxu1 }
0x225e   : > { %v9362_v58 = vsel %vm1114_vm3, %v9358_v18, -inf }
0x225f   : > { %v9351_v62 = vpop.f32.mrf.mxu0  ;;  %9363 = vmax.xlane.f32.xlu0 %v9362_v58  ;;  %v9303_v47 = vpop.f32.mrf.mxu1 }
0x2260   : > { %v9360_v43 = vmul.f32 0.35355338, %v9351_v62  ;;  %v9359_v19 = vmul.f32 0.35355338, %v9303_v47 }
0x2261   : > { %v19675_v34 = vpop.f32.mrf.mxu1  ;;  %v19680_v59 = vpop.f32.mrf.mxu0 }
0x2262   : > { %v9368_v53 = vsel %vm1114_vm3, %v9360_v43, -inf  ;;  %v9365_v48 = vsel %vm1118_vm4, %v9359_v19, -inf }
0x2263   : > { %v9354_v46 = vpop.f32.mrf.mxu0  ;;  %9369 = vmax.xlane.f32.xlu0 %v9368_v53  ;;  %9366 = vmax.xlane.f32.xlu1 %v9365_v48 }
0x2264   : > { %v9361_v27 = vmul.f32 0.35355338, %v9354_v46 }
0x2265   : > { %v19681_v24 = vpop.f32.mrf.mxu0 }
0x2266   : > { %v9371_v45 = vsel %vm1118_vm4, %v9361_v27, -inf }
0x2267   : > { %9372 = vmax.xlane.f32.xlu0 %v9371_v45 }
0x2274   : > { %9408 = vrot.lane.b32.xlu1 %v23393_v5, %s25791_s23 }
0x22e8   : > { %v9364_v11 = vpop.xlane.xlu0 %9363 }
0x22e9   : > { %v9374_v23 = vsub.f32 %v9358_v18, %v9364_v11 }
0x22eb   : > { %v9378_v44 = vmul.f32 1.442695, %v9374_v23 }
0x22ec   : > { %v9370_v56 = vpop.xlane.xlu0 %9369  ;;  %v9367_v51 = vpop.xlane.xlu1 %9366 }
0x22ed   : > { %20630 = vpow2.f32 %v9378_v44  ;;  %v9376_v55 = vsub.f32 %v9360_v43, %v9370_v56  ;;  %v9375_v36 = vsub.f32 %v9359_v19, %v9367_v51 }
0x22ef   : > { %v9382_v2 = vmul.f32 1.442695, %v9376_v55  ;;  %v9380_v26 = vmul.f32 1.442695, %v9375_v36 }
0x22f0   : > { %v9373_v29 = vpop.xlane.xlu0 %9372  ;;  %v9409_v31 = vpop.permute.xlu1 %9408 }
0x22f1   : > { %20632 = vpow2.f32 %v9382_v2  ;;  %v9377_v21 = vsub.f32 %v9361_v27, %v9373_v29  ;;  %v9414_v63 = vsel %vm1167_vm5, %v9409_v31, 0 }
0x22f2   : > { %20634 = vpow2.f32 %v9380_v26  ;;  %19683 = vmatpush3.bf16.msra.mxu1 %v9414_v63 }
0x22f3   : > { %v9384_v25 = vmul.f32 1.442695, %v9377_v21  ;;  %19694 = vmatprep.subr.bf16.mxu1 %v25801_v40 }
0x22f5   : > { %20636 = vpow2.f32 %v9384_v25 }
0x22fa   : > { %v20631_v0 = vpop.eup %20630 }
0x22fb   : > { %v9386_v52 = vsel %vm1114_vm3, %v20631_v0, 0.0 }
0x22fc   : > { %9387 = vadd.xlane.f32.xlu1 %v9386_v52 }
0x22fe   : > { %v20633_v42 = vpop.eup %20632 }
0x22ff   : > { %v20635_v32 = vpop.eup %20634  ;;  %v9392_v30 = vsel %vm1114_vm3, %v20633_v42, 0.0 }
0x2300   : > { %9393 = vadd.xlane.f32.xlu1 %v9392_v30  ;;  %v9389_v39 = vsel %vm1118_vm4, %v20635_v32, 0.0 }
0x2301   : > { %9390 = vadd.xlane.f32.xlu0 %v9389_v39 }
0x2302   : > { %v20637_v1 = vpop.eup %20636 }
0x2303   : > { %v9395_v18 = vsel %vm1118_vm4, %v20637_v1, 0.0 }
0x2305   : > { %9396 = vadd.xlane.f32.xlu0 %v9395_v18 }
0x2311   : > { %9508 = vrot.lane.b32.xlu1 %v23393_v5, %s25792_s16 }
0x2315   : > { %9559 = vrot.lane.b32.xlu1 %v23395_v6, %s25792_s16 }
0x2319   : > { %9557 = vrot.lane.b32.xlu1 %v23395_v6, %s25793_s25 }
0x231b   : > { %9457 = vrot.lane.b32.xlu0 %v23395_v6, %s25791_s23 }
0x231f   : > { %9506 = vrot.lane.b32.xlu0 %v23393_v5, %s25793_s25 }
0x2385   : > { %v9388_v22 = vpop.xlane.xlu1 %9387 }
0x2386   : > { %20638 = vrcp.f32 %v9388_v22 }
0x2389   : > { %v9394_v58 = vpop.xlane.xlu1 %9393 }
0x238a   : > { %v9391_v20 = vpop.xlane.xlu0 %9390 }
0x238b   : > { %20640 = vrcp.f32 %v9391_v20 }
0x238c   : > { %20642 = vrcp.f32 %v9394_v58 }
0x238d   : > { %v9509_v59 = vpop.permute.xlu1 %9508 }
0x238e   : > { %v9397_v62 = vpop.xlane.xlu0 %9396  ;;  %v9514_v23 = vsel %vm997_vm2, %v9509_v59, 0 }
0x238f   : > { %20644 = vrcp.f32 %v9397_v62 }
0x2391   : > { %v9560_v44 = vpop.permute.xlu1 %9559 }
0x2392   : > { %v9458_v47 = vpop.permute.xlu0 %9457  ;;  %v9565_v51 = vsel %vm997_vm2, %v9560_v44, 0 }
0x2393   : > { %v9463_v43 = vsel %vm1167_vm5, %v9458_v47, 0  ;;  %v20639_v19 = vpop.eup %20638 }
0x2394   : > { %19689 = vmatpush3.bf16.msra.mxu0 %v9463_v43  ;;  %v9402_v53 = vmul.f32 %v20639_v19, %v20631_v0 }
0x2395   : > { %19700 = vmatprep.subr.bf16.mxu0 %v25801_v40  ;;  %v9558_v36 = vpop.permute.xlu1 %9557 }
0x2396   : > { %v9507_v55 = vpop.permute.xlu0 %9506 }
0x2398   : > { %v20641_v34 = vpop.eup %20640 }
0x2399   : > { %v9403_v48 = vmul.f32 %v20641_v34, %v20635_v32  ;;  %v20643_v46 = vpop.eup %20642 }
0x239a   : > { %v9404_v45 = vmul.f32 %v20643_v46, %v20633_v42 }
0x239b   : > { %v9406_v27 = vpack.c.bf16 %v9403_v48, %v9402_v53 }
0x239c   : > { %v20645_v24 = vpop.eup %20644 }
0x239d   : > { %v9405_v11 = vmul.f32 %v20645_v24, %v20637_v1  ;;  %19685 = vmatmul.mubr.msk.bf16.vlgmr.msra.gmra.mxu1 %vm1114_vm3, %v9406_v27 }
0x239e   : > { %19695 = vmatpush3.bf16.xpose.msra.mxu1 %v9514_v23  ;;  %19696 = vmatprep.mubr.msk.bf16.mxu1 %vm20868_vm1, %v25801_v40 }
0x239f   : > { %v9407_v56 = vpack.c.bf16 %v9405_v11, %v9404_v45  ;;  %19706 = vmatprep.subr.bf16.mxu1 %v25801_v40 }
0x23a1   : > { %19691 = vmatmul.mubr.msk.bf16.vlgmr.msra.gmra.mxu0 %vm1114_vm3, %v9407_v56 }
0x23a2   : > { %19701 = vmatpush3.bf16.xpose.msra.mxu0 %v9565_v51  ;;  %19702 = vmatprep.mubr.msk.bf16.mxu0 %vm20868_vm1, %v25801_v40 }
0x23a3   : > { %19712 = vmatprep.subr.bf16.mxu0 %v25801_v40 }
0x23a5   : > { %19697 = vmatmul.mubr.msk.bf16.vlgmr.msra.gmra.mxu1 %vm997_vm2, %v9507_v55 }
0x23a6   : > { %19708 = vmatprep.mubr.msk.bf16.mxu1 %vm20868_vm1, %v25801_v40 }
0x23a9   : > { %19703 = vmatmul.mubr.msk.bf16.vlgmr.msra.gmra.mxu0 %vm997_vm2, %v9558_v36 }
0x23aa   : > { %19714 = vmatprep.mubr.msk.bf16.mxu0 %vm20868_vm1, %v25801_v40 }
0x245d   : > { %v23501_v2 = vpop.f32.mrf.mxu1 }
0x245f   : > { %v19686_v26 = vpop.f32.mrf.mxu1 }
0x2461   : > { %v23503_v29 = vpop.f32.mrf.mxu1  ;;  %v23505_v31 = vpop.f32.mrf.mxu0 }
0x2463   : > { %v19687_v21 = vpop.f32.mrf.mxu1  ;;  %v19692_v63 = vpop.f32.mrf.mxu0 }
0x2465   : > { %v23507_v25 = vpop.f32.mrf.mxu0  ;;  %v9550_v0 = vpop.f32.mrf.mxu1 }
0x2466   : > { %v9608_v52 = vmul.f32 0.35355338, %v9550_v0 }
0x2467   : > { %v19693_v42 = vpop.f32.mrf.mxu0  ;;  %v19698_v32 = vpop.f32.mrf.mxu1 }
0x2468   : > { %v9612_v30 = vsel %vm1114_vm3, %v9608_v52, -inf }
0x2469   : > { %v9601_v39 = vpop.f32.mrf.mxu0  ;;  %9613 = vmax.xlane.f32.xlu0 %v9612_v30  ;;  %v9553_v1 = vpop.f32.mrf.mxu1 }
0x246a   : > { %v9610_v18 = vmul.f32 0.35355338, %v9601_v39  ;;  %v9609_v22 = vmul.f32 0.35355338, %v9553_v1 }
0x246b   : > { %v19699_v20 = vpop.f32.mrf.mxu1  ;;  %v19704_v58 = vpop.f32.mrf.mxu0 }
0x246c   : > { %v9618_v62 = vsel %vm1114_vm3, %v9610_v18, -inf  ;;  %v9615_v47 = vsel %vm1118_vm4, %v9609_v22, -inf }
0x246d   : > { %v9604_v43 = vpop.f32.mrf.mxu0  ;;  %9619 = vmax.xlane.f32.xlu0 %v9618_v62  ;;  %9616 = vmax.xlane.f32.xlu1 %v9615_v47 }
0x246e   : > { %v9611_v19 = vmul.f32 0.35355338, %v9604_v43 }
0x246f   : > { %v19705_v34 = vpop.f32.mrf.mxu0 }
0x2470   : > { %v9621_v59 = vsel %vm1118_vm4, %v9611_v19, -inf }
0x2471   : > { %9622 = vmax.xlane.f32.xlu0 %v9621_v59 }
0x247e   : > { %9658 = vrot.lane.b32.xlu1 %v23393_v5, %s25794_s0 }
0x24f2   : > { %v9614_v53 = vpop.xlane.xlu0 %9613 }
0x24f3   : > { %v9624_v48 = vsub.f32 %v9608_v52, %v9614_v53 }
0x24f5   : > { %v9628_v46 = vmul.f32 1.442695, %v9624_v48 }
0x24f6   : > { %v9620_v27 = vpop.xlane.xlu0 %9619  ;;  %v9617_v24 = vpop.xlane.xlu1 %9616 }
0x24f7   : > { %20646 = vpow2.f32 %v9628_v46  ;;  %v9626_v45 = vsub.f32 %v9610_v18, %v9620_v27  ;;  %v9625_v11 = vsub.f32 %v9609_v22, %v9617_v24 }
0x24f9   : > { %v9632_v23 = vmul.f32 1.442695, %v9626_v45  ;;  %v9630_v44 = vmul.f32 1.442695, %v9625_v11 }
0x24fa   : > { %v9623_v56 = vpop.xlane.xlu0 %9622  ;;  %v9659_v51 = vpop.permute.xlu1 %9658 }
0x24fb   : > { %20648 = vpow2.f32 %v9632_v23  ;;  %v9627_v55 = vsub.f32 %v9611_v19, %v9623_v56  ;;  %v9664_v36 = vsel %vm1167_vm5, %v9659_v51, 0 }
0x24fc   : > { %20650 = vpow2.f32 %v9630_v44  ;;  %19707 = vmatpush3.bf16.msra.mxu1 %v9664_v36 }
0x24fd   : > { %v9634_v26 = vmul.f32 1.442695, %v9627_v55  ;;  %19718 = vmatprep.subr.bf16.mxu1 %v25801_v40 }
0x24ff   : > { %20652 = vpow2.f32 %v9634_v26 }
0x2504   : > { %v20647_v21 = vpop.eup %20646 }
0x2505   : > { %v9636_v63 = vsel %vm1114_vm3, %v20647_v21, 0.0 }
0x2506   : > { %9637 = vadd.xlane.f32.xlu1 %v9636_v63 }
0x2508   : > { %v20649_v0 = vpop.eup %20648 }
0x2509   : > { %v20651_v52 = vpop.eup %20650  ;;  %v9642_v42 = vsel %vm1114_vm3, %v20649_v0, 0.0 }
0x250a   : > { %9643 = vadd.xlane.f32.xlu1 %v9642_v42  ;;  %v9639_v32 = vsel %vm1118_vm4, %v20651_v52, 0.0 }
0x250b   : > { %9640 = vadd.xlane.f32.xlu0 %v9639_v32 }
0x250c   : > { %v20653_v30 = vpop.eup %20652 }
0x250d   : > { %v9645_v39 = vsel %vm1118_vm4, %v20653_v30, 0.0 }
0x250f   : > { %9646 = vadd.xlane.f32.xlu0 %v9645_v39 }
0x251b   : > { %9758 = vrot.lane.b32.xlu1 %v23393_v5, %s25795_s17 }
0x251f   : > { %9809 = vrot.lane.b32.xlu1 %v23395_v6, %s25795_s17 }
0x2523   : > { %9807 = vrot.lane.b32.xlu1 %v23395_v6, %s25796_s30 }
0x2525   : > { %9707 = vrot.lane.b32.xlu0 %v23395_v6, %s25794_s0 }
0x2529   : > { %9756 = vrot.lane.b32.xlu0 %v23393_v5, %s25796_s30 }
0x258f   : > { %v9638_v1 = vpop.xlane.xlu1 %9637 }
0x2590   : > { %20654 = vrcp.f32 %v9638_v1 }
0x2593   : > { %v9644_v22 = vpop.xlane.xlu1 %9643 }
0x2594   : > { %v9641_v18 = vpop.xlane.xlu0 %9640 }
0x2595   : > { %20656 = vrcp.f32 %v9641_v18 }
0x2596   : > { %20658 = vrcp.f32 %v9644_v22 }
0x2597   : > { %v9759_v19 = vpop.permute.xlu1 %9758 }
0x2598   : > { %v9647_v20 = vpop.xlane.xlu0 %9646  ;;  %v9764_v45 = vsel %vm997_vm2, %v9759_v19, 0 }
0x2599   : > { %20660 = vrcp.f32 %v9647_v20 }
0x259b   : > { %v9810_v11 = vpop.permute.xlu1 %9809 }
0x259c   : > { %v9708_v58 = vpop.permute.xlu0 %9707  ;;  %v9815_v44 = vsel %vm997_vm2, %v9810_v11, 0 }
0x259d   : > { %v9713_v62 = vsel %vm1167_vm5, %v9708_v58, 0  ;;  %v20655_v47 = vpop.eup %20654 }
0x259e   : > { %19713 = vmatpush3.bf16.msra.mxu0 %v9713_v62  ;;  %v9652_v34 = vmul.f32 %v20655_v47, %v20647_v21 }
0x259f   : > { %19724 = vmatprep.subr.bf16.mxu0 %v25801_v40  ;;  %v9808_v51 = vpop.permute.xlu1 %9807 }
0x25a0   : > { %v9757_v56 = vpop.permute.xlu0 %9756 }
0x25a2   : > { %v20657_v43 = vpop.eup %20656 }
0x25a3   : > { %v9653_v59 = vmul.f32 %v20657_v43, %v20651_v52  ;;  %v20659_v53 = vpop.eup %20658 }
0x25a4   : > { %v9654_v27 = vmul.f32 %v20659_v53, %v20649_v0 }
0x25a5   : > { %v9656_v48 = vpack.c.bf16 %v9653_v59, %v9652_v34 }
0x25a6   : > { %v20661_v46 = vpop.eup %20660 }
0x25a7   : > { %v9655_v24 = vmul.f32 %v20661_v46, %v20653_v30  ;;  %19709 = vmatmul.mubr.msk.bf16.vlgmr.msra.gmra.mxu1 %vm1114_vm3, %v9656_v48 }
0x25a8   : > { %19719 = vmatpush3.bf16.xpose.msra.mxu1 %v9764_v45  ;;  %19720 = vmatprep.mubr.msk.bf16.mxu1 %vm20868_vm1, %v25801_v40 }
0x25a9   : > { %v9657_v23 = vpack.c.bf16 %v9655_v24, %v9654_v27  ;;  %19730 = vmatprep.subr.bf16.mxu1 %v25801_v40 }
0x25ab   : > { %19715 = vmatmul.mubr.msk.bf16.vlgmr.msra.gmra.mxu0 %vm1114_vm3, %v9657_v23 }
0x25ac   : > { %19725 = vmatpush3.bf16.xpose.msra.mxu0 %v9815_v44  ;;  %19726 = vmatprep.mubr.msk.bf16.mxu0 %vm20868_vm1, %v25801_v40 }
0x25ad   : > { %19736 = vmatprep.subr.bf16.mxu0 %v25801_v40 }
0x25af   : > { %19721 = vmatmul.mubr.msk.bf16.vlgmr.msra.gmra.mxu1 %vm997_vm2, %v9757_v56 }
0x25b0   : > { %19732 = vmatprep.mubr.msk.bf16.mxu1 %vm20868_vm1, %v25801_v40 }
0x25b3   : > { %19727 = vmatmul.mubr.msk.bf16.vlgmr.msra.gmra.mxu0 %vm997_vm2, %v9808_v51 }
0x25b4   : > { %19738 = vmatprep.mubr.msk.bf16.mxu0 %vm20868_vm1, %v25801_v40 }
0x2667   : > { %v9700_v55 = vpop.f32.mrf.mxu1 }
0x2669   : > { %v19710_v36 = vpop.f32.mrf.mxu1 }
0x266b   : > { %v9703_v26 = vpop.f32.mrf.mxu1  ;;  %v9749_v21 = vpop.f32.mrf.mxu0 }
0x266d   : > { %v19711_v63 = vpop.f32.mrf.mxu1  ;;  %v19716_v0 = vpop.f32.mrf.mxu0 }
0x266f   : > { %v9752_v52 = vpop.f32.mrf.mxu0  ;;  %v9800_v42 = vpop.f32.mrf.mxu1 }
0x2670   : > { %v9858_v32 = vmul.f32 0.35355338, %v9800_v42 }
0x2671   : > { %v19717_v30 = vpop.f32.mrf.mxu0  ;;  %v19722_v39 = vpop.f32.mrf.mxu1 }
0x2672   : > { %v9862_v1 = vsel %vm1114_vm3, %v9858_v32, -inf }
0x2673   : > { %v9851_v18 = vpop.f32.mrf.mxu0  ;;  %9863 = vmax.xlane.f32.xlu0 %v9862_v1  ;;  %v9803_v22 = vpop.f32.mrf.mxu1 }
0x2674   : > { %v9860_v20 = vmul.f32 0.35355338, %v9851_v18  ;;  %v9859_v58 = vmul.f32 0.35355338, %v9803_v22 }
0x2675   : > { %v19723_v62 = vpop.f32.mrf.mxu1  ;;  %v19728_v47 = vpop.f32.mrf.mxu0 }
0x2676   : > { %v9868_v43 = vsel %vm1114_vm3, %v9860_v20, -inf  ;;  %v9865_v19 = vsel %vm1118_vm4, %v9859_v58, -inf }
0x2677   : > { %v9854_v34 = vpop.f32.mrf.mxu0  ;;  %9869 = vmax.xlane.f32.xlu0 %v9868_v43  ;;  %9866 = vmax.xlane.f32.xlu1 %v9865_v19 }
0x2678   : > { %v9861_v59 = vmul.f32 0.35355338, %v9854_v34 }
0x2679   : > { %v19729_v53 = vpop.f32.mrf.mxu0 }
0x267a   : > { %v9871_v48 = vsel %vm1118_vm4, %v9861_v59, -inf }
0x267b   : > { %9872 = vmax.xlane.f32.xlu0 %v9871_v48  ;;  %v25806_v48 = vmov 0  }
0x26fc   : > { %v9864_v46 = vpop.xlane.xlu0 %9863 }
0x26fd   : > { %v9874_v27 = vsub.f32 %v9858_v32, %v9864_v46  ;;  %v20200_v46 = vld [vmem:[%s25807_s4 + $0x28] sm:$0xff]  }
0x26ff   : > { %v9878_v24 = vmul.f32 1.442695, %v9874_v27  ;;  %v20201_v27 = vld [vmem:[%s25807_s4 + $0x20] sm:$0xff]  }
0x2700   : > { %v9870_v45 = vpop.xlane.xlu0 %9869  ;;  %v9867_v11 = vpop.xlane.xlu1 %9866 }
0x2701   : > { %20662 = vpow2.f32 %v9878_v24  ;;  %v9876_v23 = vsub.f32 %v9860_v20, %v9870_v45  ;;  %v9875_v44 = vsub.f32 %v9859_v58, %v9867_v11 }
0x2703   : > { %v9882_v56 = vmul.f32 1.442695, %v9876_v23  ;;  %v9880_v51 = vmul.f32 1.442695, %v9875_v44 }
0x2704   : > { %v9873_v36 = vpop.xlane.xlu0 %9872 }
0x2705   : > { %20664 = vpow2.f32 %v9882_v56  ;;  %v9877_v63 = vsub.f32 %v9861_v59, %v9873_v36 }
0x2706   : > { %20666 = vpow2.f32 %v9880_v51 }
0x2707   : > { %v9884_v0 = vmul.f32 1.442695, %v9877_v63 }
0x2709   : > { %20668 = vpow2.f32 %v9884_v0 }
0x270e   : > { %v20663_v42 = vpop.eup %20662 }
0x270f   : > { %v9886_v30 = vsel %vm1114_vm3, %v20663_v42, 0.0 }
0x2710   : > { %9887 = vadd.xlane.f32.xlu1 %v9886_v30 }
0x2712   : > { %v20665_v39 = vpop.eup %20664 }
0x2713   : > { %v20667_v32 = vpop.eup %20666  ;;  %v9892_v1 = vsel %vm1114_vm3, %v20665_v39, 0.0 }
0x2714   : > { %9893 = vadd.xlane.f32.xlu1 %v9892_v1  ;;  %v9889_v18 = vsel %vm1118_vm4, %v20667_v32, 0.0 }
0x2715   : > { %9890 = vadd.xlane.f32.xlu0 %v9889_v18 }
0x2716   : > { %v20669_v22 = vpop.eup %20668 }
0x2717   : > { %v9895_v20 = vsel %vm1118_vm4, %v20669_v22, 0.0 }
0x2719   : > { %9896 = vadd.xlane.f32.xlu0 %v9895_v20 }
0x2725   : > { %9908 = vrot.lane.b32.xlu1 %v23393_v5, %s25797_s1 }
0x2729   : > { %10010 = vrot.lane.b32.xlu1 %v23501_v2, %s25798_s18 }
0x272d   : > { %10014 = vrot.lane.b32.xlu1 %v23505_v31, %s25798_s18 }
0x272f   : > { %9957 = vrot.lane.b32.xlu0 %v23395_v6, %s25797_s1 }
0x2731   : > { %10012 = vrot.lane.b32.xlu1 %v23503_v29, %s25798_s18 }
0x2733   : > { %10026 = vrot.lane.b32.xlu0 %v9700_v55, %s25799_s21 }
0x2735   : > { %10028 = vrot.lane.b32.xlu1 %v9703_v26, %s25799_s21 }
0x2737   : > { %10030 = vrot.lane.b32.xlu0 %v9749_v21, %s25799_s21 }
0x2739   : > { %10032 = vrot.lane.b32.xlu1 %v9752_v52, %s25799_s21 }
0x273b   : > { %10016 = vrot.lane.b32.xlu0 %v23507_v25, %s25798_s18 }
0x2799   : > { %v9888_v5 = vpop.xlane.xlu1 %9887 }
0x279a   : > { %20670 = vrcp.f32 %v9888_v5 }
0x279d   : > { %v9894_v2 = vpop.xlane.xlu1 %9893 }
0x279e   : > { %v9891_v31 = vpop.xlane.xlu0 %9890 }
0x279f   : > { %20672 = vrcp.f32 %v9891_v31 }
0x27a0   : > { %20674 = vrcp.f32 %v9894_v2 }
0x27a1   : > { %v9909_v6 = vpop.permute.xlu1 %9908 }
0x27a2   : > { %v9897_v58 = vpop.xlane.xlu0 %9896  ;;  %v9914_v29 = vsel %vm1167_vm5, %v9909_v6, 0 }
0x27a3   : > { %20676 = vrcp.f32 %v9897_v58  ;;  %19731 = vmatpush3.bf16.msra.mxu1 %v9914_v29 }
0x27a4   : > { %19742 = vmatprep.subr.bf16.mxu1 %v20200_v46 }
0x27a5   : > { %v10011_v63 = vpop.permute.xlu1 %10010 }
0x27a6   : > { %v9958_v55 = vpop.permute.xlu0 %9957  ;;  %v10054_v20 = vsel %vm997_vm2, %v23453_v14, %v10011_v63 }
0x27a7   : > { %v9963_v26 = vsel %vm1167_vm5, %v9958_v55, 0  ;;  %v20671_v21 = vpop.eup %20670 }
0x27a8   : > { %19737 = vmatpush3.bf16.msra.mxu0 %v9963_v26  ;;  %v9902_v62 = vmul.f32 %v20671_v21, %v20663_v42 }
0x27a9   : > { %v10015_v0 = vpop.permute.xlu1 %10014 }
0x27aa   : > { %v10027_v30 = vpop.permute.xlu0 %10026  ;;  %v10056_v2 = vsel %vm997_vm2, %v23457_v12, %v10015_v0 }
0x27ab   : > { %v10058_v5 = vsel %vm2063_vm6, %v10054_v20, %v10027_v30 }
0x27ac   : > { %v20673_v52 = vpop.eup %20672 }
0x27ad   : > { %v9903_v25 = vmul.f32 %v20673_v52, %v20667_v32  ;;  %v20675_v47 = vpop.eup %20674  ;;  %v10013_v42 = vpop.permute.xlu1 %10012 }
0x27ae   : > { %v9904_v34 = vmul.f32 %v20675_v47, %v20665_v39  ;;  %v10031_v32 = vpop.permute.xlu0 %10030  ;;  %v10055_v26 = vsel %vm997_vm2, %v23455_v17, %v10013_v42  ;;  %v17647_v17 = vld [vmem:[%s25809_s26 + $0x2] ss:$0 sm:$0xff]  ;;  %s18356_s26 = sshll.u32 %s25827_s14, 8 }
0x27af   : > { %v9906_v43 = vpack.c.bf16 %v9903_v25, %v9902_v62  ;;  %v10060_v6 = vsel %vm2063_vm6, %v10056_v2, %v10031_v32 }
0x27b0   : > { %v20677_v19 = vpop.eup %20676 }
0x27b1   : > { %v9905_v59 = vmul.f32 %v20677_v19, %v20669_v22  ;;  %19733 = vmatmul.mubr.msk.bf16.vlgmr.msra.gmra.mxu1 %vm1114_vm3, %v9906_v43  ;;  %v10029_v39 = vpop.permute.xlu1 %10028 }
0x27b2   : > { %19743 = vmatpush3.bf16.msra.mxu1 %v20200_v46  ;;  %v10017_v18 = vpop.permute.xlu0 %10016  ;;  %v10059_v14 = vsel %vm2063_vm6, %v10055_v26, %v10029_v39 }
0x27b3   : > { %v9907_v53 = vpack.c.bf16 %v9905_v59, %v9904_v34  ;;  %19744 = vmatprep.subr.bf16.mxu1 %v20201_v27  ;;  %v10057_v21 = vsel %vm997_vm2, %v23459_v13, %v10017_v18 }
0x27b5   : > { %19739 = vmatmul.mubr.msk.bf16.vlgmr.msra.gmra.mxu0 %vm1114_vm3, %v9907_v53  ;;  %v10033_v1 = vpop.permute.xlu1 %10032 }
0x27b6   : > { %10663 = vmatprep.mubr.bf16.mxu0 %v25806_v48  ;;  %19745 = vmatpush3.bf16.msra.mxu1 %v20201_v27  ;;  %v10061_v52 = vsel %vm2063_vm6, %v10057_v21, %v10033_v1 }
0x2871   : > { %v9950_v24 = vpop.f32.mrf.mxu1 }
0x2872   : > { %10042 = vrot.lane.b32.xlu1 %v9950_v24, %s25808_s28 }
0x2873   : > { %v19734_v45 = vpop.f32.mrf.mxu1 }
0x2875   : > { %v9953_v11 = vpop.f32.mrf.mxu1  ;;  %v9999_v23 = vpop.f32.mrf.mxu0 }
0x2876   : > { %10046 = vrot.lane.b32.xlu0 %v9999_v23, %s25808_s28 }
0x2877   : > { %v19735_v44 = vpop.f32.mrf.mxu1  ;;  %v19740_v56 = vpop.f32.mrf.mxu0 }
0x2879   : > { %v10002_v51 = vpop.f32.mrf.mxu0 }
0x287a   : > { %10048 = vrot.lane.b32.xlu1 %v10002_v51, %s25808_s28  ;;  %10044 = vrot.lane.b32.xlu0 %v9953_v11, %s25808_s28 }
0x287b   : > { %v19741_v36 = vpop.f32.mrf.mxu0 }
0x28e4   : > { %v10043_v22 = vpop.permute.xlu1 %10042 }
0x28e5   : > { %v10062_v31 = vsel %vm2068_vm7, %v10058_v5, %v10043_v22 }
0x28e6   : > { %v10070_v55 = vcombine.high %v10062_v31, %v10062_v31 }
0x28e8   : > { %v10047_v58 = vpop.permute.xlu0 %10046  ;;  %v10072_v19 = vcombine.low %v10062_v31, %v10070_v55 }
0x28e9   : > { %v10064_v29 = vsel %vm2068_vm7, %v10060_v6, %v10047_v58 }
0x28ea   : > { %v10071_v62 = vcombine.high %v10064_v29, %v10064_v29 }
0x28ec   : > { %v10049_v12 = vpop.permute.xlu1 %10048  ;;  %v10045_v25 = vpop.permute.xlu0 %10044 }
0x28ed   : > { %v10065_v47 = vsel %vm2068_vm7, %v10061_v52, %v10049_v12  ;;  %v10063_v43 = vsel %vm2068_vm7, %v10059_v14, %v10045_v25 }
0x28ee   : > { %v10074_v34 = vcombine.low %v10071_v62, %v10065_v47  ;;  %v10073_v59 = vcombine.low %v10063_v43, %v10064_v29 }
0x28f0   : > { %v10079_v53 = vpack.c.bf16 %v10074_v34, %v10074_v34  ;;  %v10078_v46 = vpack.c.bf16 %v10073_v59, %v10072_v19 }
0x28f2   : > { %19746 = vmatprep.mubr.msk.bf16.mxu1 %vm895_vm0, %v10078_v46 }
0x28f3   : > { %19747 = vmatmul.mubr.msk.bf16.vlgmr.msra.gmra.mxu1 %vm895_vm0, %v10079_v53 }
0x28f4   : > { %10714 = vmatprep.mubr.bf16.mxu1 %v25806_v48 }
0x29b3   : > { %v19748_v13 = vpop.f32.mrf.mxu1 }
0x29b4   : > { %v10147_v27 = vadd.f32 %v19748_v13, %v17647_v17 }
0x29b5   : > { %v10138_v24 = vpop.f32.mrf.mxu1 }
0x29b6   : > { %v10157_v45 = vcombine.high %v10147_v27, %v10147_v27  ;;  %v10139_v11 = vadd.f32 %v17647_v17, %v10138_v24  ;;  %v10165_v42 = vadd.f32 %v10147_v27, %v23369_v54 }
0x29b7   : > { %v19749_v23 = vpop.f32.mrf.mxu1 }
0x29b8   : > { %v10155_v44 = vcombine.high %v10139_v11, %v10139_v11  ;;  %v10166_v51 = vadd.f32 %v10157_v45, %v23371_v57  ;;  %v10161_v36 = vadd.f32 %v10139_v11, %v23341_v10  ;;  %v17348_v11 = vld [vmem:[%s25674_s8 + $0x280] sm:$0xff] }
0x29b9   : > { %v10141_v56 = vpop.f32.mrf.mxu1  ;;  %v17356_v23 = vld [vmem:[%s25674_s8 + $0x2c0] sm:$0xff] }
0x29ba   : > { %v10162_v63 = vadd.f32 %v10155_v44, %v23343_v61  ;;  %v10142_v0 = vadd.f32 %v17647_v17, %v10141_v56  ;;  %v10175_v22 = vcombine.low %v10165_v42, %v10166_v51  ;;  %v17349_v44 = vld [vmem:[%s25674_s8 + $0x288] sm:$0xff]  ;;  %v17671_v56 = vcombine.high %v17348_v11, %v17356_v23 }
0x29bc   : > { %v10156_v30 = vcombine.high %v10142_v0, %v10142_v0  ;;  %v10173_v39 = vcombine.low %v10161_v36, %v10162_v63  ;;  %v10163_v32 = vadd.f32 %v10142_v0, %v23347_v33  ;;  %v10185_v10 = vsel %vm895_vm0, %v10175_v22, 0.0  ;;  %10643 = vmatprep.subr.bf16.mxu0 %v17671_v56 }
0x29be   : > { %v10179_v1 = vsel %vm895_vm0, %v10173_v39, 0.0  ;;  %v10164_v18 = vadd.f32 %v10156_v30, %v23349_v35  ;;  %v17340_v30 = vld [vmem:[%s25674_s8 + $0x240] sm:$0xff]  ;;  %v17333_v39 = vld [vmem:[%s25674_s8 + $0x208] sm:$0xff] }
0x29bf   : > { %10180 = vadd.xlane.f32.xlu0 %v10179_v1  ;;  %v17341_v1 = vld [vmem:[%s25674_s8 + $0x248] sm:$0xff] }
0x29c0   : > { %v10174_v20 = vcombine.low %v10163_v32, %v10164_v18  ;;  %v17656_v22 = vcombine.low %v17333_v39, %v17341_v1 }
0x29c2   : > { %v10182_v57 = vsel %vm895_vm0, %v10174_v20, 0.0  ;;  %v17657_v20 = vcombine.high %v17333_v39, %v17341_v1 }
0x29c3   : > { %10183 = vadd.xlane.f32.xlu1 %v10182_v57  ;;  %10186 = vadd.xlane.f32.xlu0 %v10185_v10  ;;  %v23679_v57 = vld [vmem:[%s25674_s8 + $0x290] sm:$0xff] }
0x29c4   : > { %v23684_v10 = vld [vmem:[%s25674_s8 + $0x2d0] sm:$0xff] }
0x2a48   : > { %v10181_v61 = vpop.xlane.xlu0 %10180 }
0x2a49   : > { %v10188_v5 = vmul.f32 0.03125, %v10181_v61  ;;  %v23689_v61 = vld [vmem:[%s25674_s8 + $0x298] sm:$0xff] }
0x2a4b   : > { %v10200_v54 = vrot.slane %v10188_v5, %v21296_v49  ;;  %v10207_v2 = vrot.slane %v10188_v5, %v21299_v50  ;;  %v17675_v5 = vcombine.high %v23679_v57, %v23684_v10 }
0x2a4c   : > { %v10184_v33 = vpop.xlane.xlu1 %10183  ;;  %v10187_v31 = vpop.xlane.xlu0 %10186 }
0x2a4d   : > { %v23621_v6 = vsub.f32 %v10161_v36, %v10200_v54  ;;  %v23623_v35 = vsub.f32 %v10162_v63, %v10207_v2  ;;  %v10189_v58 = vmul.f32 0.03125, %v10184_v33  ;;  %v10190_v29 = vmul.f32 0.03125, %v10187_v31  ;;  %v23696_v54 = vld [vmem:[%s25674_s8 + $0x2d8] sm:$0xff] }
0x2a4e   : > { %v17670_v36 = vcombine.low %v17348_v11, %v17356_v23  ;;  %v17674_v2 = vcombine.low %v23679_v57, %v23684_v10  ;;  %v17676_v33 = vcombine.low %v23689_v61, %v23696_v54  ;;  %v17677_v31 = vcombine.high %v23689_v61, %v23696_v54  ;;  %v17336_v57 = vld [vmem:[%s25674_s8 + $0x220] sm:$0xff]  ;;  %v17337_v61 = vld [vmem:[%s25674_s8 + $0x228] sm:$0xff] }
0x2a4f   : > { %v10214_v55 = vrot.slane %v10189_v58, %v21296_v49  ;;  %v10221_v26 = vrot.slane %v10189_v58, %v21299_v50  ;;  %v10228_v21 = vrot.slane %v10190_v29, %v21296_v49  ;;  %v10235_v14 = vrot.slane %v10190_v29, %v21299_v50  ;;  %v17344_v10 = vld [vmem:[%s25674_s8 + $0x260] sm:$0xff]  ;;  %v17345_v54 = vld [vmem:[%s25674_s8 + $0x268] sm:$0xff] }
0x2a50   : > { %v10248_v52 = vmul.f32 %v23621_v6, %v23621_v6  ;;  %v10249_v62 = vmul.f32 %v23623_v35, %v23623_v35  ;;  %10644 = vmatpush1.bf16.msra.mxu0 %v17670_v36 }
0x2a51   : > { %v23633_v12 = vsub.f32 %v10163_v32, %v10214_v55  ;;  %v23635_v25 = vsub.f32 %v10164_v18, %v10221_v26  ;;  %v23637_v47 = vsub.f32 %v10165_v42, %v10228_v21  ;;  %v23639_v43 = vsub.f32 %v10166_v51, %v10235_v14  ;;  %v17357_v51 = vld [vmem:[%s25674_s8 + $0x2c8] sm:$0xff]  ;;  %v17332_v42 = vld [vmem:[%s25674_s8 + $0x200] sm:$0xff] }
0x2a52   : > { %v10260_v19 = vcombine.low %v10248_v52, %v10249_v62  ;;  %v17672_v63 = vcombine.low %v17349_v44, %v17357_v51  ;;  %v17673_v0 = vcombine.high %v17349_v44, %v17357_v51  ;;  %v17655_v32 = vcombine.high %v17332_v42, %v17340_v30 }
0x2a53   : > { %v10250_v34 = vmul.f32 %v23633_v12, %v23633_v12  ;;  %v10251_v59 = vmul.f32 %v23635_v25, %v23635_v25  ;;  %v10252_v53 = vmul.f32 %v23637_v47, %v23637_v47  ;;  %v10253_v46 = vmul.f32 %v23639_v43, %v23639_v43 }
0x2a54   : > { %v10266_v17 = vsel %vm895_vm0, %v10260_v19, 0.0  ;;  %10694 = vmatprep.subr.bf16.mxu1 %v17673_v0  ;;  %v17654_v18 = vcombine.low %v17332_v42, %v17340_v30  ;;  %10645 = vmatprep.subr.bf16.mxu0 %v17655_v32 }
0x2a55   : > { %10267 = vadd.xlane.f32.xlu0 %v10266_v17  ;;  %v10261_v13 = vcombine.low %v10250_v34, %v10251_v59  ;;  %v10262_v27 = vcombine.low %v10252_v53, %v10253_v46  ;;  %10695 = vmatpush1.bf16.msra.mxu1 %v17672_v63  ;;  %v17652_v34 = vld [vmem:[%s25810_s15 + $0x2] ss:$0 sm:$0xff] }
0x2a56   : > { %10696 = vmatprep.subr.bf16.mxu1 %v17657_v20  ;;  %10646 = vmatpush1.bf16.msra.mxu0 %v17654_v18  ;;  %v17653_v53 = vld [vmem:[%s25811_s6 + $0x2] ss:$0 sm:$0xff]  ;;  %v10347_v46 = vcombine.high %v17652_v34, %v17652_v34 }
0x2a57   : > { %v10269_v24 = vsel %vm895_vm0, %v10261_v13, 0.0  ;;  %v10272_v45 = vsel %vm895_vm0, %v10262_v27, 0.0  ;;  %10745 = vmatprep.subr.bf16.mxu0 %v17675_v5  ;;  %v10361_v23 = vcombine.high %v17653_v53, %v17653_v53 }
0x2a58   : > { %10270 = vadd.xlane.f32.xlu1 %v10269_v24 }
0x2a59   : > { %10273 = vadd.xlane.f32.xlu0 %v10272_v45  ;;  %10697 = vmatpush1.bf16.msra.mxu1 %v17656_v22 }
0x2a5a   : > { %10796 = vmatprep.subr.bf16.mxu1 %v17677_v31 }
0x2ade   : > { %v10268_v58 = vpop.xlane.xlu0 %10267 }
0x2adf   : > { %v10275_v29 = vmul.f32 0.03125, %v10268_v58  ;;  %v17335_v58 = vld [vmem:[%s25674_s8 + $0x218] sm:$0xff] }
0x2ae1   : > { %v10278_v55 = vadd.f32 1e-05, %v10275_v29  ;;  %v10271_v26 = vpop.xlane.xlu1 %10270  ;;  %v17343_v29 = vld [vmem:[%s25674_s8 + $0x258] sm:$0xff] }
0x2ae2   : > { %v10276_v21 = vmul.f32 0.03125, %v10271_v26  ;;  %v10274_v14 = vpop.xlane.xlu0 %10273 }
0x2ae3   : > { %20678 = vrsqrt.f32 %v10278_v55  ;;  %v10277_v52 = vmul.f32 0.03125, %v10274_v14 }
0x2ae4   : > { %v10279_v62 = vadd.f32 1e-05, %v10276_v21 }
0x2ae5   : > { %v10280_v19 = vadd.f32 1e-05, %v10277_v52  ;;  %v17661_v52 = vcombine.high %v17335_v58, %v17343_v29 }
0x2ae6   : > { %20680 = vrsqrt.f32 %v10279_v62  ;;  %v17352_v62 = vld [vmem:[%s25674_s8 + $0x2a0] sm:$0xff] }
0x2ae7   : > { %20682 = vrsqrt.f32 %v10280_v19  ;;  %v17360_v19 = vld [vmem:[%s25674_s8 + $0x2e0] sm:$0xff] }
0x2af0   : > { %v20679_v59 = vpop.eup %20678 }
0x2af1   : > { %v10293_v17 = vrot.slane %v20679_v59, %v21296_v49  ;;  %v10300_v13 = vrot.slane %v20679_v59, %v21299_v50  ;;  %v17361_v59 = vld [vmem:[%s25674_s8 + $0x2e8] sm:$0xff] }
0x2af3   : > { %v20681_v27 = vpop.eup %20680  ;;  %v10335_v24 = vmul.f32 %v10293_v17, %v23621_v6  ;;  %v10336_v45 = vmul.f32 %v10300_v13, %v23623_v35  ;;  %v17660_v17 = vcombine.low %v17335_v58, %v17343_v29  ;;  %v17679_v13 = vcombine.high %v17352_v62, %v17360_v19  ;;  %v20203_v58 = vld [vmem:[%s25676_s10 + $0x8f8] sm:$0xff]  }
0x2af4   : > { %v20683_v11 = vpop.eup %20682  ;;  %v10307_v44 = vrot.slane %v20681_v27, %v21296_v49  ;;  %v10314_v56 = vrot.slane %v20681_v27, %v21299_v50  ;;  %v20204_v29 = vld [vmem:[%s25676_s10 + $0x838] sm:$0xff]  }
0x2af5   : > { %v10349_v51 = vmul.f32 %v17652_v34, %v10335_v24  ;;  %v10350_v36 = vmul.f32 %v10347_v46, %v10336_v45  ;;  %v10321_v63 = vrot.slane %v20683_v11, %v21296_v49  ;;  %v10328_v0 = vrot.slane %v20683_v11, %v21299_v50 }
0x2af6   : > { %v10337_v42 = vmul.f32 %v10307_v44, %v23633_v12  ;;  %v10338_v30 = vmul.f32 %v10314_v56, %v23635_v25  ;;  %v17334_v12 = vld [vmem:[%s25674_s8 + $0x210] sm:$0xff]  ;;  %v17663_v45 = vcombine.high %v17336_v57, %v17344_v10  ;;  %v17665_v11 = vcombine.high %v17337_v61, %v17345_v54  ;;  %v17355_v56 = vld [vmem:[%s25674_s8 + $0x2b8] sm:$0xff] }
0x2af7   : > { %v10339_v6 = vmul.f32 %v10321_v63, %v23637_v47  ;;  %v10340_v35 = vmul.f32 %v10328_v0, %v23639_v43  ;;  %v23722_v39 = vadd.f32 %v17653_v53, %v10349_v51  ;;  %v23724_v32 = vadd.f32 %v10361_v23, %v10350_v36  ;;  %v17342_v43 = vld [vmem:[%s25674_s8 + $0x250] sm:$0xff]  ;;  %v17363_v51 = vld [vmem:[%s25674_s8 + $0x2f8] sm:$0xff] }
0x2af8   : > { %v10351_v1 = vmul.f32 %v17652_v34, %v10337_v42  ;;  %v10352_v18 = vmul.f32 %v10347_v46, %v10338_v30  ;;  %v17659_v14 = vcombine.high %v17334_v12, %v17342_v43  ;;  %v17362_v44 = vld [vmem:[%s25674_s8 + $0x2f0] sm:$0xff]  ;;  %v17662_v36 = vcombine.low %v17336_v57, %v17344_v10  ;;  %v20217_v57 = vld [vmem:[%s25676_s10 + $0x8a0] sm:$0xff]   ;;  %v20218_v10 = vld [vmem:[%s25676_s10 + $0x858] sm:$0xff]  }
0x2af9   : > { %v10353_v5 = vmul.f32 %v17652_v34, %v10339_v6  ;;  %v10354_v31 = vmul.f32 %v10347_v46, %v10340_v35  ;;  %v10375_v25 = vcombine.low %v23722_v39, %v23724_v32  ;;  %v17353_v34 = vld [vmem:[%s25674_s8 + $0x2a8] sm:$0xff]  ;;  %v17658_v46 = vcombine.low %v17334_v12, %v17342_v43  ;;  %v17338_v30 = vld [vmem:[%s25674_s8 + $0x230] sm:$0xff]  ;;  %v17339_v35 = vld [vmem:[%s25674_s8 + $0x238] sm:$0xff] }
0x2afa   : > { %v23726_v22 = vadd.f32 %v17653_v53, %v10351_v1  ;;  %v23728_v20 = vadd.f32 %v10361_v23, %v10352_v18  ;;  %v17681_v27 = vcombine.high %v17353_v34, %v17361_v59  ;;  %v17664_v63 = vcombine.low %v17337_v61, %v17345_v54  ;;  %v17346_v6 = vld [vmem:[%s25674_s8 + $0x270] sm:$0xff]  ;;  %v17347_v1 = vld [vmem:[%s25674_s8 + $0x278] sm:$0xff] }
0x2afb   : > { %v23748_v26 = vadd.f32 %v17653_v53, %v10353_v5  ;;  %v23750_v21 = vadd.f32 %v10361_v23, %v10354_v31  ;;  %v17354_v23 = vld [vmem:[%s25674_s8 + $0x2b0] sm:$0xff]  ;;  %v17685_v42 = vcombine.high %v17355_v56, %v17363_v51  ;;  %v17684_v5 = vcombine.low %v17355_v56, %v17363_v51  ;;  %v20202_v43 = vld [vmem:[%s25676_s10 + $0x878] sm:$0xff]   ;;  %v20228_v56 = vld [vmem:[%s25676_s10 + $0x808] sm:$0xff]  }
0x2afc   : > { %v10376_v47 = vcombine.low %v23726_v22, %v23728_v20  ;;  %v17683_v0 = vcombine.high %v17354_v23, %v17362_v44  ;;  %v17682_v18 = vcombine.low %v17354_v23, %v17362_v44  ;;  %v17667_v31 = vcombine.high %v17338_v30, %v17346_v6  ;;  %v20220_v61 = vld [vmem:[%s25676_s10 + $0x818] sm:$0xff]   ;;  %v20226_v23 = vld [vmem:[%s25676_s10 + $0x848] sm:$0xff]  }
0x2afd   : > { %v10377_v53 = vcombine.low %v23748_v26, %v23750_v21  ;;  %v17669_v12 = vcombine.high %v17339_v35, %v17347_v1  ;;  %v20221_v54 = vld [vmem:[%s25676_s10 + $0x898] sm:$0xff]   ;;  %v20227_v44 = vld [vmem:[%s25676_s10 + $0x8c8] sm:$0xff]  }
0x2afe   : > { %v23746_v55 = vpack.c.bf16 %v10376_v47, %v10375_v25  ;;  %v17666_v25 = vcombine.low %v17338_v30, %v17346_v6  ;;  %v17668_v47 = vcombine.low %v17339_v35, %v17347_v1  ;;  %v20229_v51 = vld [vmem:[%s25676_s10 + $0x888] sm:$0xff]   ;;  %v20234_v30 = vld [vmem:[%s25676_s10 + $0x978] sm:$0xff]   ;;  %v23961_v35 = vld [vmem:[%s25675_s9 + $0x20] sm:$0xff] }
0x2aff   : > { %v23778_v24 = vpack.c.bf16 %v10377_v53, %v10377_v53  ;;  %v20212_v53 = vld [vmem:[%s25676_s10 + $0x828] sm:$0xff]   ;;  %v20235_v6 = vld [vmem:[%s25676_s10 + $0x9f8] sm:$0xff]  }
0x2b00   : > { %17686 = vmatmul.mubr.msk.bf16.vlgmr.msra.gmra.mxu0 %vm895_vm0, %v23746_v55  ;;  %17688 = vmatmul.mubr.msk.bf16.vlgmr.msra.gmra.mxu1 %vm895_vm0, %v23746_v55 }
0x2b01   : > { %10673 = vmatprep.mubr.bf16.mxu0 %v25806_v48  ;;  %10724 = vmatprep.mubr.bf16.mxu1 %v25806_v48 }
0x2b02   : > { %10746 = vmatpush1.bf16.msra.mxu0 %v17674_v2  ;;  %10797 = vmatpush1.bf16.msra.mxu1 %v17676_v33  ;;  %v17678_v2 = vcombine.low %v17352_v62, %v17360_v19  ;;  %v17680_v33 = vcombine.low %v17353_v34, %v17361_v59  ;;  %v20207_v62 = vld [vmem:[%s25676_s10 + $0x8f0] sm:$0xff]   ;;  %v20211_v59 = vld [vmem:[%s25676_s10 + $0x8e8] sm:$0xff]  }
0x2b03   : > { %10747 = vmatprep.subr.bf16.mxu0 %v17659_v14  ;;  %10798 = vmatprep.subr.bf16.mxu1 %v17661_v52  ;;  %v20205_v14 = vld [vmem:[%s25676_s10 + $0x8b8] sm:$0xff]   ;;  %v20206_v52 = vld [vmem:[%s25676_s10 + $0x870] sm:$0xff]  }
0x2b04   : > { %v20208_v19 = vld [vmem:[%s25676_s10 + $0x830] sm:$0xff]  }
0x2b05   : > { %v20209_v34 = vld [vmem:[%s25676_s10 + $0x8b0] sm:$0xff]  }
0x2b06   : > { %10748 = vmatpush1.bf16.msra.mxu0 %v17658_v46  ;;  %10799 = vmatpush1.bf16.msra.mxu1 %v17660_v17  ;;  %v20213_v46 = vld [vmem:[%s25676_s10 + $0x8a8] sm:$0xff]   ;;  %v20214_v17 = vld [vmem:[%s25676_s10 + $0x860] sm:$0xff]  }
0x2b07   : > { %10847 = vmatprep.subr.bf16.mxu0 %v17679_v13  ;;  %10898 = vmatprep.subr.bf16.mxu1 %v17681_v27  ;;  %v20215_v13 = vld [vmem:[%s25676_s10 + $0x8e0] sm:$0xff]  }
0x2b08   : > { %17687 = vmatmul.mubr.msk.bf16.gmra.mxu0 %vm895_vm0, %v23778_v24  ;;  %17689 = vmatmul.mubr.msk.bf16.gmra.mxu1 %vm895_vm0, %v23778_v24  ;;  %v20216_v27 = vld [vmem:[%s25676_s10 + $0x820] sm:$0xff]  }
0x2b09   : > { %10765 = vmatprep.mubr.bf16.mxu0 %v25806_v48  ;;  %10816 = vmatprep.mubr.bf16.mxu1 %v25806_v48 }
0x2b10   : > { %17690 = vmatmul.mubr.msk.bf16.vlgmr.msra.gmra.mxu0 %vm895_vm0, %v23746_v55  ;;  %17692 = vmatmul.mubr.msk.bf16.vlgmr.msra.gmra.mxu1 %vm895_vm0, %v23746_v55 }
0x2b11   : > { %10775 = vmatprep.mubr.bf16.mxu0 %v25806_v48  ;;  %10826 = vmatprep.mubr.bf16.mxu1 %v25806_v48 }
0x2b12   : > { %10848 = vmatpush1.bf16.msra.mxu0 %v17678_v2  ;;  %10899 = vmatpush1.bf16.msra.mxu1 %v17680_v33  ;;  %v20222_v2 = vld [vmem:[%s25676_s10 + $0x850] sm:$0xff]  }
0x2b13   : > { %10849 = vmatprep.subr.bf16.mxu0 %v17663_v45  ;;  %10900 = vmatprep.subr.bf16.mxu1 %v17665_v11  ;;  %v20223_v33 = vld [vmem:[%s25676_s10 + $0x8d0] sm:$0xff]  }
0x2b14   : > { %v20224_v45 = vld [vmem:[%s25676_s10 + $0x810] sm:$0xff]  }
0x2b15   : > { %v20225_v11 = vld [vmem:[%s25676_s10 + $0x890] sm:$0xff]  }
0x2b16   : > { %10850 = vmatpush1.bf16.msra.mxu0 %v17662_v36  ;;  %10901 = vmatpush1.bf16.msra.mxu1 %v17664_v63  ;;  %v20230_v36 = vld [vmem:[%s25676_s10 + $0x840] sm:$0xff]  }
0x2b17   : > { %10949 = vmatprep.subr.bf16.mxu0 %v17683_v0  ;;  %11000 = vmatprep.subr.bf16.mxu1 %v17685_v42  ;;  %v20231_v63 = vld [vmem:[%s25676_s10 + $0x8c0] sm:$0xff]  }
0x2b18   : > { %17691 = vmatmul.mubr.msk.bf16.gmra.mxu0 %vm895_vm0, %v23778_v24  ;;  %17693 = vmatmul.mubr.msk.bf16.gmra.mxu1 %vm895_vm0, %v23778_v24  ;;  %v20232_v0 = vld [vmem:[%s25676_s10 + $0x800] sm:$0xff]  }
0x2b19   : > { %10867 = vmatprep.mubr.bf16.mxu0 %v25806_v48  ;;  %10918 = vmatprep.mubr.bf16.mxu1 %v25806_v48  ;;  %v20233_v42 = vld [vmem:[%s25676_s10 + $0x880] sm:$0xff]  }
0x2b20   : > { %17694 = vmatmul.mubr.msk.bf16.vlgmr.msra.gmra.mxu0 %vm895_vm0, %v23746_v55  ;;  %17696 = vmatmul.mubr.msk.bf16.vlgmr.msra.gmra.mxu1 %vm895_vm0, %v23746_v55 }
0x2b21   : > { %10877 = vmatprep.mubr.bf16.mxu0 %v25806_v48  ;;  %10928 = vmatprep.mubr.bf16.mxu1 %v25806_v48 }
0x2b22   : > { %10950 = vmatpush1.bf16.msra.mxu0 %v17682_v18  ;;  %11001 = vmatpush1.bf16.msra.mxu1 %v17684_v5  ;;  %v10392_v5 = vrot.slane %v23961_v35, %v21643_v60 }
0x2b23   : > { %10951 = vmatprep.subr.bf16.mxu0 %v17667_v31  ;;  %11002 = vmatprep.subr.bf16.mxu1 %v17669_v12  ;;  %v25812_v31 = vld [vmem:[#allocation17_spill] sm:$0xff] }
0x2b24   : > { %v10400_v12 = vrot.slane %v23961_v35, %v25812_v31 }
0x2b26   : > { %10952 = vmatpush1.bf16.msra.mxu0 %v17666_v25  ;;  %11003 = vmatpush1.bf16.msra.mxu1 %v17668_v47  ;;  %v25813_v25 = vld [vmem:[#allocation18_spill] sm:$0xff] }
0x2b27   : > { %18926 = vmatprep.subr.bf16.mxu0 %v20202_v43  ;;  %18954 = vmatprep.subr.bf16.mxu1 %v20203_v58  ;;  %v10388_v47 = vrot.slane %v23961_v35, %v25813_v25  ;;  %v25814_v43 = vld [vmem:[#allocation19_spill] sm:$0xff] }
0x2b28   : > { %17695 = vmatmul.mubr.msk.bf16.gmra.mxu0 %vm895_vm0, %v23778_v24  ;;  %17697 = vmatmul.mubr.msk.bf16.gmra.mxu1 %vm895_vm0, %v23778_v24  ;;  %v10396_v58 = vrot.slane %v23961_v35, %v25814_v43 }
0x2b29   : > { %10969 = vmatprep.mubr.bf16.mxu0 %v25806_v48  ;;  %11020 = vmatprep.mubr.bf16.mxu1 %v25806_v48 }
0x2b30   : > { %17698 = vmatmul.mubr.msk.bf16.vlgmr.msra.gmra.mxu0 %vm895_vm0, %v23746_v55  ;;  %17700 = vmatmul.mubr.msk.bf16.vlgmr.msra.gmra.mxu1 %vm895_vm0, %v23746_v55  ;;  %v20210_v55 = vld [vmem:[%s25676_s10 + $0x868] sm:$0xff]  }
0x2b31   : > { %10979 = vmatprep.mubr.bf16.mxu0 %v25806_v48  ;;  %11030 = vmatprep.mubr.bf16.mxu1 %v25806_v48 }
0x2b32   : > { %18927 = vmatpush3.bf16.msra.mxu0 %v20204_v29  ;;  %18955 = vmatpush3.bf16.msra.mxu1 %v20205_v14 }
0x2b33   : > { %18928 = vmatprep.subr.bf16.mxu0 %v20206_v52  ;;  %18956 = vmatprep.subr.bf16.mxu1 %v20207_v62 }
0x2b36   : > { %18929 = vmatpush3.bf16.msra.mxu0 %v20208_v19  ;;  %18957 = vmatpush3.bf16.msra.mxu1 %v20209_v34 }
0x2b37   : > { %18930 = vmatprep.subr.bf16.mxu0 %v20210_v55  ;;  %18958 = vmatprep.subr.bf16.mxu1 %v20211_v59 }
0x2b38   : > { %17699 = vmatmul.mubr.msk.bf16.gmra.mxu0 %vm895_vm0, %v23778_v24  ;;  %17701 = vmatmul.mubr.msk.bf16.gmra.mxu1 %vm895_vm0, %v23778_v24  ;;  %v20219_v24 = vld [vmem:[%s25676_s10 + $0x8d8] sm:$0xff]  }
0x2b3a   : > { %18931 = vmatpush3.bf16.msra.mxu0 %v20212_v53  ;;  %18959 = vmatpush3.bf16.msra.mxu1 %v20213_v46 }
0x2b3b   : > { %18932 = vmatprep.subr.bf16.mxu0 %v20214_v17  ;;  %18960 = vmatprep.subr.bf16.mxu1 %v20215_v13 }
0x2b3e   : > { %18933 = vmatpush3.bf16.msra.mxu0 %v20216_v27  ;;  %18961 = vmatpush3.bf16.msra.mxu1 %v20217_v57 }
0x2b3f   : > { %18934 = vmatprep.subr.bf16.mxu0 %v20218_v10  ;;  %18962 = vmatprep.subr.bf16.mxu1 %v20219_v24 }
0x2b42   : > { %18935 = vmatpush3.bf16.msra.mxu0 %v20220_v61  ;;  %18963 = vmatpush3.bf16.msra.mxu1 %v20221_v54 }
0x2b43   : > { %18936 = vmatprep.subr.bf16.mxu0 %v20222_v2  ;;  %18964 = vmatprep.subr.bf16.mxu1 %v20223_v33 }
0x2b46   : > { %18937 = vmatpush3.bf16.msra.mxu0 %v20224_v45  ;;  %18965 = vmatpush3.bf16.msra.mxu1 %v20225_v11 }
0x2b47   : > { %18938 = vmatprep.subr.bf16.mxu0 %v20226_v23  ;;  %18966 = vmatprep.subr.bf16.mxu1 %v20227_v44 }
0x2b4a   : > { %18939 = vmatpush3.bf16.msra.mxu0 %v20228_v56  ;;  %18967 = vmatpush3.bf16.msra.mxu1 %v20229_v51 }
0x2b4b   : > { %18940 = vmatprep.subr.bf16.mxu0 %v20230_v36  ;;  %18968 = vmatprep.subr.bf16.mxu1 %v20231_v63 }
0x2b4e   : > { %18941 = vmatpush3.bf16.msra.mxu0 %v20232_v0  ;;  %18969 = vmatpush3.bf16.msra.mxu1 %v20233_v42 }
0x2b4f   : > { %18982 = vmatprep.subr.bf16.mxu0 %v20234_v30  ;;  %19010 = vmatprep.subr.bf16.mxu1 %v20235_v6  ;;  %v20236_v30 = vld [vmem:[%s25676_s10 + $0x938] sm:$0xff]  }
0x2b50   : > { %v20237_v6 = vld [vmem:[%s25676_s10 + $0x9b8] sm:$0xff]  }
0x2bc0   : > { %v10665_v1 = vpop.f32.mrf.mxu0  ;;  %v10716_v18 = vpop.f32.mrf.mxu1 }
0x2bc1   : > { %v10666_v53 = vadd.f32 %v10665_v1, %v10388_v47  ;;  %v10717_v46 = vadd.f32 %v10716_v18, %v10396_v58 }
0x2bc2   : > { %v10667_v29 = vpop.f32.mrf.mxu0  ;;  %v10718_v14 = vpop.f32.mrf.mxu1 }
0x2bc3   : > { %v10668_v19 = vadd.f32 %v10667_v29, %v10392_v5  ;;  %v10719_v34 = vadd.f32 %v10718_v14, %v10400_v12  ;;  %v11039_v23 = vmax.f32 %v10666_v53, 0.0  ;;  %v11041_v44 = vmax.f32 %v10717_v46, 0.0  ;;  %v20240_v53 = vld [vmem:[%s25676_s10 + $0x930] sm:$0xff]  }
0x2bc4   : > { %v10669_v52 = vpop.f32.mrf.mxu0  ;;  %v10720_v62 = vpop.f32.mrf.mxu1  ;;  %v20241_v46 = vld [vmem:[%s25676_s10 + $0x9b0] sm:$0xff]  }
0x2bc5   : > { %v10670_v55 = vadd.f32 %v10669_v52, %v10388_v47  ;;  %v10721_v59 = vadd.f32 %v10720_v62, %v10396_v58  ;;  %v11040_v2 = vmax.f32 %v10668_v19, 0.0  ;;  %v11042_v33 = vmax.f32 %v10719_v34, 0.0 }
0x2bc6   : > { %v10671_v17 = vpop.f32.mrf.mxu0  ;;  %v10722_v13 = vpop.f32.mrf.mxu1 }
0x2bc7   : > { %v10672_v27 = vadd.f32 %v10671_v17, %v10392_v5  ;;  %v10723_v57 = vadd.f32 %v10722_v13, %v10400_v12  ;;  %v11055_v10 = vmax.f32 %v10670_v55, 0.0  ;;  %v11057_v24 = vmax.f32 %v10721_v59, 0.0 }
0x2bc8   : > { %v10675_v61 = vpop.f32.mrf.mxu0  ;;  %v10726_v54 = vpop.f32.mrf.mxu1 }
0x2bc9   : > { %v11056_v45 = vmax.f32 %v10672_v27, 0.0  ;;  %v11058_v11 = vmax.f32 %v10723_v57, 0.0  ;;  %v11087_v1 = vpack.c.bf16 %v11055_v10, %v11039_v23  ;;  %v11089_v18 = vpack.c.bf16 %v11057_v24, %v11041_v44  ;;  %v20242_v10 = vld [vmem:[%s25676_s10 + $0x968] sm:$0xff]  }
0x2bca   : > { %v10677_v56 = vpop.f32.mrf.mxu0  ;;  %v10728_v51 = vpop.f32.mrf.mxu1  ;;  %v10676_v29 = vadd.f32 %v10675_v61, %v10388_v47  ;;  %v10727_v14 = vadd.f32 %v10726_v54, %v10396_v58  ;;  %v20243_v24 = vld [vmem:[%s25676_s10 + $0x9e8] sm:$0xff]   ;;  %v25815_v61 = vld [vmem:[#allocation20_spill] sm:$0xff] }
0x2bcb   : > { %v10678_v36 = vadd.f32 %v10677_v56, %v10392_v5  ;;  %v10729_v63 = vadd.f32 %v10728_v51, %v10400_v12  ;;  %v11088_v0 = vpack.c.bf16 %v11056_v45, %v11040_v2  ;;  %v11090_v42 = vpack.c.bf16 %v11058_v11, %v11042_v33  ;;  %v20238_v5 = vld [vmem:[%s25676_s10 + $0x970] sm:$0xff]   ;;  %v25816_v33 = vld [vmem:[#allocation21_spill] sm:$0xff]  ;;  %v20244_v23 = vld [vmem:[%s25676_s10 + $0x928] sm:$0xff]  }
0x2bcc   : > { %v10679_v52 = vpop.f32.mrf.mxu0  ;;  %v10730_v62 = vpop.f32.mrf.mxu1  ;;  %v20239_v12 = vld [vmem:[%s25676_s10 + $0x9f0] sm:$0xff]   ;;  %v11071_v17 = vmax.f32 %v10676_v29, 0.0  ;;  %v11073_v13 = vmax.f32 %v10727_v14, 0.0  ;;  %v24001_v54 = vrot.slane %v23961_v35, %v25815_v61  ;;  %v24005_v45 = vrot.slane %v23961_v35, %v25816_v33  ;;  %v20245_v44 = vld [vmem:[%s25676_s10 + $0x9a8] sm:$0xff]  }
0x2bcd   : > { %v11072_v19 = vmax.f32 %v10678_v36, 0.0  ;;  %v11074_v34 = vmax.f32 %v10729_v63, 0.0  ;;  %11925 = vmatprep.mubr.bf16.mxu0 %v11088_v0  ;;  %11973 = vmatprep.mubr.bf16.mxu1 %v11090_v42  ;;  %v20246_v0 = vld [vmem:[%s25676_s10 + $0x960] sm:$0xff]  }
0x2bce   : > { %v10680_v55 = vpop.f32.mrf.mxu0  ;;  %v10731_v59 = vpop.f32.mrf.mxu1  ;;  %11926 = vmatmul.mubr.bf16.vlgmr.msra.gmra.mxu0 %v11087_v1  ;;  %11974 = vmatmul.mubr.bf16.vlgmr.msra.gmra.mxu1 %v11089_v18  ;;  %v11103_v56 = vpack.c.bf16 %v11071_v17, %v11071_v17  ;;  %v11105_v51 = vpack.c.bf16 %v11073_v13, %v11073_v13  ;;  %v20247_v42 = vld [vmem:[%s25676_s10 + $0x9e0] sm:$0xff]   ;;  %v20252_v13 = vld [vmem:[%s25676_s10 + $0x918] sm:$0xff]  }
0x2bcf   : > { %v11104_v47 = vpack.c.bf16 %v11072_v19, %v11072_v19  ;;  %v11106_v58 = vpack.c.bf16 %v11074_v34, %v11074_v34  ;;  %18983 = vmatpush3.bf16.msra.mxu0 %v20236_v30  ;;  %19011 = vmatpush3.bf16.msra.mxu1 %v20237_v6  ;;  %v20248_v52 = vld [vmem:[%s25676_s10 + $0x920] sm:$0xff]   ;;  %v20250_v19 = vld [vmem:[%s25676_s10 + $0x958] sm:$0xff]  }
0x2bd0   : > { %v23989_v27 = vpop.f32.mrf.mxu0  ;;  %v23991_v57 = vpop.f32.mrf.mxu1  ;;  %18984 = vmatprep.subr.bf16.mxu0 %v20238_v5  ;;  %19012 = vmatprep.subr.bf16.mxu1 %v20239_v12  ;;  %v20249_v62 = vld [vmem:[%s25676_s10 + $0x9a0] sm:$0xff]   ;;  %v20251_v34 = vld [vmem:[%s25676_s10 + $0x9d8] sm:$0xff]  }
0x2bd1   : > { %11933 = vmatprep.mubr.bf16.mxu0 %v11104_v47  ;;  %11981 = vmatprep.mubr.bf16.mxu1 %v11106_v58 }
0x2bd2   : > { %v10769_v2 = vpop.f32.mrf.mxu0  ;;  %v10820_v11 = vpop.f32.mrf.mxu1 }
0x2bd3   : > { %18985 = vmatpush3.bf16.msra.mxu0 %v20240_v53  ;;  %19013 = vmatpush3.bf16.msra.mxu1 %v20241_v46  ;;  %v10770_v30 = vadd.f32 %v10769_v2, %v24001_v54  ;;  %v10821_v6 = vadd.f32 %v10820_v11, %v24005_v45 }
0x2bd4   : > { %v10771_v36 = vpop.f32.mrf.mxu0  ;;  %v24013_v63 = vpop.f32.mrf.mxu1  ;;  %18986 = vmatprep.subr.bf16.mxu0 %v20242_v10  ;;  %19014 = vmatprep.subr.bf16.mxu1 %v20243_v24  ;;  %v20253_v10 = vld [vmem:[%s25676_s10 + $0x998] sm:$0xff]  }
0x2bd5   : > { %v11044_v55 = vmax.f32 %v10770_v30, 0.0  ;;  %v11046_v58 = vmax.f32 %v10821_v6, 0.0 }
0x2bd6   : > { %v10773_v1 = vpop.f32.mrf.mxu0  ;;  %v10824_v18 = vpop.f32.mrf.mxu1  ;;  %11934 = vmatmul.mubr.bf16.gmra.mxu0 %v11103_v56  ;;  %11982 = vmatmul.mubr.bf16.gmra.mxu1 %v11105_v51 }
0x2bd7   : > { %v10774_v29 = vadd.f32 %v10773_v1, %v24001_v54  ;;  %v10825_v14 = vadd.f32 %v10824_v18, %v24005_v45  ;;  %18987 = vmatpush3.bf16.msra.mxu0 %v20244_v23  ;;  %19015 = vmatpush3.bf16.msra.mxu1 %v20245_v44  ;;  %v20254_v23 = vld [vmem:[%s25676_s10 + $0x950] sm:$0xff]   ;;  %v20258_v1 = vld [vmem:[%s25676_s10 + $0x948] sm:$0xff]  }
0x2bd8   : > { %v24031_v5 = vpop.f32.mrf.mxu0  ;;  %v24033_v12 = vpop.f32.mrf.mxu1  ;;  %18988 = vmatprep.subr.bf16.mxu0 %v20246_v0  ;;  %19016 = vmatprep.subr.bf16.mxu1 %v20247_v42  ;;  %v20255_v44 = vld [vmem:[%s25676_s10 + $0x9d0] sm:$0xff]   ;;  %v20259_v18 = vld [vmem:[%s25676_s10 + $0x9c8] sm:$0xff]  }
0x2bd9   : > { %v11060_v59 = vmax.f32 %v10774_v29, 0.0  ;;  %v11062_v47 = vmax.f32 %v10825_v14, 0.0  ;;  %v20256_v0 = vld [vmem:[%s25676_s10 + $0x910] sm:$0xff]   ;;  %v25817_v29 = vld [vmem:[#allocation22_spill] sm:$0xff] }
0x2bda   : > { %v10779_v53 = vpop.f32.mrf.mxu0  ;;  %v10830_v46 = vpop.f32.mrf.mxu1  ;;  %v20257_v42 = vld [vmem:[%s25676_s10 + $0x990] sm:$0xff]   ;;  %v10404_v14 = vrot.slane %v23961_v35, %v25817_v29 }
0x2bdb   : > { %18989 = vmatpush3.bf16.msra.mxu0 %v20248_v52  ;;  %19017 = vmatpush3.bf16.msra.mxu1 %v20249_v62  ;;  %v11092_v17 = vpack.c.bf16 %v11060_v59, %v11044_v55  ;;  %v11094_v11 = vpack.c.bf16 %v11062_v47, %v11046_v58  ;;  %v25818_v52 = vld [vmem:[#allocation23_spill] sm:$0xff]  ;;  %v20260_v59 = vld [vmem:[%s25676_s10 + $0x908] sm:$0xff]  }
0x2bdc   : > { %v10781_v24 = vpop.f32.mrf.mxu0  ;;  %v10832_v2 = vpop.f32.mrf.mxu1  ;;  %18990 = vmatprep.subr.bf16.mxu0 %v20250_v19  ;;  %19018 = vmatprep.subr.bf16.mxu1 %v20251_v34  ;;  %v10412_v62 = vrot.slane %v23961_v35, %v25818_v52  ;;  %v10772_v55 = vadd.f32 %v10771_v36, %v10404_v14  ;;  %v20261_v47 = vld [vmem:[%s25676_s10 + $0x988] sm:$0xff]   ;;  %v20262_v36 = vld [vmem:[%s25676_s10 + $0x940] sm:$0xff]  }
0x2bdd   : > { %12021 = vmatprep.mubr.bf16.mxu0 %v11092_v17  ;;  %12069 = vmatprep.mubr.bf16.mxu1 %v11094_v11  ;;  %v10780_v24 = vadd.f32 %v10779_v53, %v24001_v54 }
0x2bde   : > { %v10782_v56 = vpop.f32.mrf.mxu0  ;;  %v10833_v51 = vpop.f32.mrf.mxu1  ;;  %v10823_v58 = vadd.f32 %v24013_v63, %v10412_v62  ;;  %v10831_v63 = vadd.f32 %v10830_v46, %v24005_v45  ;;  %v10819_v2 = vadd.f32 %v23991_v57, %v10412_v62  ;;  %v20266_v57 = vld [vmem:[%s25676_s10 + $0xa78] sm:$0xff]  }
0x2bdf   : > { %18991 = vmatpush3.bf16.msra.mxu0 %v20252_v13  ;;  %19019 = vmatpush3.bf16.msra.mxu1 %v20253_v10  ;;  %v20263_v13 = vld [vmem:[%s25676_s10 + $0x9c0] sm:$0xff]   ;;  %v10768_v10 = vadd.f32 %v23989_v27, %v10404_v14  ;;  %v20267_v45 = vld [vmem:[%s25676_s10 + $0xaf8] sm:$0xff]   ;;  %v11076_v46 = vmax.f32 %v10780_v24, 0.0  ;;  %v10829_v24 = vadd.f32 %v24033_v12, %v10412_v62  ;;  %v20270_v12 = vld [vmem:[%s25676_s10 + $0xa70] sm:$0xff]  }
0x2be0   : > { %v24059_v30 = vpop.f32.mrf.mxu0  ;;  %v24061_v6 = vpop.f32.mrf.mxu1  ;;  %18992 = vmatprep.subr.bf16.mxu0 %v20254_v23  ;;  %19020 = vmatprep.subr.bf16.mxu1 %v20255_v44  ;;  %v11059_v44 = vmax.f32 %v10772_v55, 0.0  ;;  %v20264_v56 = vld [vmem:[%s25676_s10 + $0x900] sm:$0xff]   ;;  %v11061_v27 = vmax.f32 %v10823_v58, 0.0 }
0x2be1   : > { %v20265_v51 = vld [vmem:[%s25676_s10 + $0x980] sm:$0xff]   ;;  %v11043_v53 = vmax.f32 %v10768_v10, 0.0  ;;  %v10778_v10 = vadd.f32 %v24031_v5, %v10404_v14  ;;  %v11108_v16 = vpack.c.bf16 %v11076_v46, %v11076_v46  ;;  %v20271_v14 = vld [vmem:[%s25676_s10 + $0xaf0] sm:$0xff]  }
0x2be2   : > { %v24073_v19 = vpop.f32.mrf.mxu0  ;;  %v24075_v34 = vpop.f32.mrf.mxu1 }
0x2be3   : > { %18993 = vmatpush3.bf16.msra.mxu0 %v20256_v0  ;;  %19021 = vmatpush3.bf16.msra.mxu1 %v20257_v42  ;;  %v11078_v42 = vmax.f32 %v10831_v63, 0.0 }
0x2be4   : > { %v24084_v17 = vpop.f32.mrf.mxu0  ;;  %v24086_v35 = vpop.f32.mrf.mxu1  ;;  %18994 = vmatprep.subr.bf16.mxu0 %v20258_v1  ;;  %19022 = vmatprep.subr.bf16.mxu1 %v20259_v18  ;;  %v11045_v1 = vmax.f32 %v10819_v2, 0.0  ;;  %v24117_v18 = vld [vmem:[%s25675_s9 + $0x28] sm:$0xff] }
0x2be5   : > { %v24125_v58 = vrot.slane %v24117_v18, %v21643_v60 }
0x2be6   : > { %v10875_v11 = vpop.f32.mrf.mxu0  ;;  %v10926_v23 = vpop.f32.mrf.mxu1 }
0x2be7   : > { %18995 = vmatpush3.bf16.msra.mxu0 %v20260_v59  ;;  %19023 = vmatpush3.bf16.msra.mxu1 %v20261_v47  ;;  %v11091_v47 = vpack.c.bf16 %v11059_v44, %v11043_v53  ;;  %v20268_v44 = vld [vmem:[%s25676_s10 + $0xa38] sm:$0xff]  }
0x2be8   : > { %v24104_v0 = vpop.f32.mrf.mxu0  ;;  %v24106_v54 = vpop.f32.mrf.mxu1  ;;  %18996 = vmatprep.subr.bf16.mxu0 %v20262_v36  ;;  %19024 = vmatprep.subr.bf16.mxu1 %v20263_v13  ;;  %v24129_v36 = vrot.slane %v24117_v18, %v25812_v31  ;;  %v11093_v13 = vpack.c.bf16 %v11061_v27, %v11045_v1  ;;  %v20269_v53 = vld [vmem:[%s25676_s10 + $0xab8] sm:$0xff]   ;;  %v20272_v1 = vld [vmem:[%s25676_s10 + $0xa30] sm:$0xff]  }
0x2bea   : > { %v24119_v55 = vpop.f32.mrf.mxu0  ;;  %v24121_v59 = vpop.f32.mrf.mxu1  ;;  %v10927_v5 = vadd.f32 %v10926_v23, %v24129_v36  ;;  %v11075_v23 = vmax.f32 %v10778_v10, 0.0 }
0x2beb   : > { %18997 = vmatpush3.bf16.msra.mxu0 %v20264_v56  ;;  %19025 = vmatpush3.bf16.msra.mxu1 %v20265_v51  ;;  %v11110_v56 = vpack.c.bf16 %v11078_v42, %v11078_v42  ;;  %v10876_v51 = vadd.f32 %v10875_v11, %v24125_v58  ;;  %v10923_v11 = vadd.f32 %v24075_v34, %v24129_v36 }
0x2bec   : > { %v10883_v63 = vpop.f32.mrf.mxu0  ;;  %v10934_v2 = vpop.f32.mrf.mxu1  ;;  %19038 = vmatprep.subr.bf16.mxu0 %v20266_v57  ;;  %19066 = vmatprep.subr.bf16.mxu1 %v20267_v45  ;;  %v10872_v57 = vadd.f32 %v24073_v19, %v24125_v58  ;;  %v11077_v45 = vmax.f32 %v10829_v24, 0.0  ;;  %v20273_v19 = vld [vmem:[%s25676_s10 + $0xab0] sm:$0xff]   ;;  %v11066_v34 = vmax.f32 %v10927_v5, 0.0  ;;  %v20276_v5 = vld [vmem:[%s25676_s10 + $0xa28] sm:$0xff]  }
0x2bed   : > { %v11050_v2 = vmax.f32 %v10923_v11, 0.0 }
0x2bee   : > { %12022 = vmatmul.mubr.bf16.vlgmr.msra.gmra.mxu0 %v11091_v47  ;;  %12070 = vmatmul.mubr.bf16.vlgmr.msra.gmra.mxu1 %v11093_v13  ;;  %v10884_v62 = vpop.f32.mrf.mxu0  ;;  %v10935_v27 = vpop.f32.mrf.mxu1  ;;  %v11064_v47 = vmax.f32 %v10876_v51, 0.0  ;;  %v20275_v13 = vld [vmem:[%s25676_s10 + $0xae8] sm:$0xff]   ;;  %v11048_v63 = vmax.f32 %v10872_v57, 0.0  ;;  %v20279_v57 = vld [vmem:[%s25676_s10 + $0xae0] sm:$0xff]  }
0x2bef   : > { %12029 = vmatprep.mubr.bf16.mxu0 %v11108_v16  ;;  %12077 = vmatprep.mubr.bf16.mxu1 %v11110_v56  ;;  %v20274_v16 = vld [vmem:[%s25676_s10 + $0xa68] sm:$0xff]   ;;  %v11098_v62 = vpack.c.bf16 %v11066_v34, %v11050_v2  ;;  %v20278_v27 = vld [vmem:[%s25676_s10 + $0xa60] sm:$0xff]   ;;  %v20282_v34 = vld [vmem:[%s25676_s10 + $0xa58] sm:$0xff]  }
0x2bf0   : > { %19039 = vmatpush3.bf16.msra.mxu0 %v20268_v44  ;;  %19067 = vmatpush3.bf16.msra.mxu1 %v20269_v53  ;;  %v24151_v46 = vpop.f32.mrf.mxu0  ;;  %v24153_v42 = vpop.f32.mrf.mxu1  ;;  %v11107_v44 = vpack.c.bf16 %v11075_v23, %v11075_v23  ;;  %v11109_v53 = vpack.c.bf16 %v11077_v45, %v11077_v45 }
0x2bf1   : > { %19040 = vmatprep.subr.bf16.mxu0 %v20270_v12  ;;  %19068 = vmatprep.subr.bf16.mxu1 %v20271_v14  ;;  %v20277_v12 = vld [vmem:[%s25676_s10 + $0xaa8] sm:$0xff]   ;;  %v11096_v14 = vpack.c.bf16 %v11064_v47, %v11048_v63  ;;  %v20281_v47 = vld [vmem:[%s25676_s10 + $0xaa0] sm:$0xff]  }
0x2bf2   : > { %v24167_v10 = vpop.f32.mrf.mxu0  ;;  %v24169_v24 = vpop.f32.mrf.mxu1 }
0x2bf4   : > { %19041 = vmatpush3.bf16.msra.mxu0 %v20272_v1  ;;  %19069 = vmatpush3.bf16.msra.mxu1 %v20273_v19  ;;  %v24171_v56 = vpop.f32.mrf.mxu0  ;;  %v24173_v51 = vpop.f32.mrf.mxu1  ;;  %v20280_v19 = vld [vmem:[%s25676_s10 + $0xa20] sm:$0xff]  }
0x2bf5   : > { %19042 = vmatprep.subr.bf16.mxu0 %v20274_v16  ;;  %19070 = vmatprep.subr.bf16.mxu1 %v20275_v13  ;;  %v20283_v16 = vld [vmem:[%s25676_s10 + $0xad8] sm:$0xff]  }
0x2bf6   : > { %12030 = vmatmul.mubr.bf16.gmra.mxu0 %v11107_v44  ;;  %12078 = vmatmul.mubr.bf16.gmra.mxu1 %v11109_v53  ;;  %v24187_v11 = vpop.f32.mrf.mxu0  ;;  %v24189_v23 = vpop.f32.mrf.mxu1  ;;  %v20284_v53 = vld [vmem:[%s25676_s10 + $0xa18] sm:$0xff]  }
0x2bf7   : > { %12117 = vmatprep.mubr.bf16.mxu0 %v11096_v14  ;;  %12165 = vmatprep.mubr.bf16.mxu1 %v11098_v62  ;;  %v20287_v14 = vld [vmem:[%s25676_s10 + $0xad0] sm:$0xff]  }
0x2bf8   : > { %19043 = vmatpush3.bf16.msra.mxu0 %v20276_v5  ;;  %19071 = vmatpush3.bf16.msra.mxu1 %v20277_v12  ;;  %v24191_v45 = vpop.f32.mrf.mxu0  ;;  %v24193_v1 = vpop.f32.mrf.mxu1  ;;  %v20285_v5 = vld [vmem:[%s25676_s10 + $0xa98] sm:$0xff]   ;;  %v20286_v12 = vld [vmem:[%s25676_s10 + $0xa50] sm:$0xff]  }
0x2bf9   : > { %19044 = vmatprep.subr.bf16.mxu0 %v20278_v27  ;;  %19072 = vmatprep.subr.bf16.mxu1 %v20279_v57  ;;  %v20288_v57 = vld [vmem:[%s25676_s10 + $0xa10] sm:$0xff]  }
0x2bfa   : > { %v24207_v13 = vpop.f32.mrf.mxu0  ;;  %v24209_v63 = vpop.f32.mrf.mxu1 }
0x2bfc   : > { %19045 = vmatpush3.bf16.msra.mxu0 %v20280_v19  ;;  %19073 = vmatpush3.bf16.msra.mxu1 %v20281_v47  ;;  %v10985_v2 = vpop.f32.mrf.mxu0  ;;  %v11036_v44 = vpop.f32.mrf.mxu1  ;;  %v20289_v19 = vld [vmem:[%s25676_s10 + $0xa90] sm:$0xff]   ;;  %v20290_v47 = vld [vmem:[%s25676_s10 + $0xa48] sm:$0xff]  }
0x2bfd   : > { %19046 = vmatprep.subr.bf16.mxu0 %v20282_v34  ;;  %19074 = vmatprep.subr.bf16.mxu1 %v20283_v16  ;;  %v20291_v34 = vld [vmem:[%s25676_s10 + $0xac8] sm:$0xff]   ;;  %v10420_v16 = vrot.slane %v24117_v18, %v25813_v25  ;;  %v10428_v2 = vrot.slane %v24117_v18, %v25814_v43 }
0x2bfe   : > { %v10986_v62 = vpop.f32.mrf.mxu0  ;;  %v11037_v27 = vpop.f32.mrf.mxu1 }
0x2bff   : > { %v10874_v44 = vadd.f32 %v24084_v17, %v10420_v16  ;;  %v20295_v17 = vld [vmem:[%s25676_s10 + $0xac0] sm:$0xff]   ;;  %v10870_v62 = vadd.f32 %v24059_v30, %v10420_v16  ;;  %v10882_v27 = vadd.f32 %v24119_v55, %v24125_v58  ;;  %v20298_v55 = vld [vmem:[%s25676_s10 + $0xb78] sm:$0xff]   ;;  %v10931_v8 = vadd.f32 %v24106_v54, %v10428_v2  ;;  %v20302_v54 = vld [vmem:[%s25676_s10 + $0xb70] sm:$0xff]  }
0x2c00   : > { %19047 = vmatpush3.bf16.msra.mxu0 %v20284_v53  ;;  %19075 = vmatpush3.bf16.msra.mxu1 %v20285_v5  ;;  %v20292_v53 = vld [vmem:[%s25676_s10 + $0xa08] sm:$0xff]  }
0x2c01   : > { %19048 = vmatprep.subr.bf16.mxu0 %v20286_v12  ;;  %19076 = vmatprep.subr.bf16.mxu1 %v20287_v14  ;;  %v20293_v5 = vld [vmem:[%s25676_s10 + $0xa88] sm:$0xff]   ;;  %v10925_v12 = vadd.f32 %v24086_v35, %v10428_v2  ;;  %v20294_v14 = vld [vmem:[%s25676_s10 + $0xa40] sm:$0xff]   ;;  %v10921_v35 = vadd.f32 %v24061_v6, %v10428_v2  ;;  %v20299_v6 = vld [vmem:[%s25676_s10 + $0xbf8] sm:$0xff]   ;;  %v11080_v58 = vmax.f32 %v10882_v27, 0.0 }
0x2c02   : > { %v20301_v27 = vld [vmem:[%s25676_s10 + $0xbb8] sm:$0xff]  }
0x2c03   : > { %v11065_v30 = vmax.f32 %v10925_v12, 0.0  ;;  %v24277_v12 = vrot.slane %v24117_v18, %v25816_v33 }
0x2c04   : > { %19049 = vmatpush3.bf16.msra.mxu0 %v20288_v57  ;;  %19077 = vmatpush3.bf16.msra.mxu1 %v20289_v19  ;;  %v10933_v57 = vadd.f32 %v24121_v59, %v24129_v36  ;;  %v11063_v19 = vmax.f32 %v10874_v44, 0.0  ;;  %v11047_v59 = vmax.f32 %v10870_v62, 0.0  ;;  %v11049_v44 = vmax.f32 %v10921_v35, 0.0  ;;  %v20300_v62 = vld [vmem:[%s25676_s10 + $0xb38] sm:$0xff]  }
0x2c05   : > { %19050 = vmatprep.subr.bf16.mxu0 %v20290_v47  ;;  %19078 = vmatprep.subr.bf16.mxu1 %v20291_v34  ;;  %v20296_v47 = vld [vmem:[%s25676_s10 + $0xa00] sm:$0xff]  }
0x2c06   : > { %v20297_v34 = vld [vmem:[%s25676_s10 + $0xa80] sm:$0xff]   ;;  %v11082_v36 = vmax.f32 %v10933_v57, 0.0  ;;  %v11112_v57 = vpack.c.bf16 %v11080_v58, %v11080_v58 }
0x2c08   : > { %19051 = vmatpush3.bf16.msra.mxu0 %v20292_v53  ;;  %19079 = vmatpush3.bf16.msra.mxu1 %v20293_v5  ;;  %v11095_v53 = vpack.c.bf16 %v11063_v19, %v11047_v59  ;;  %v24273_v5 = vrot.slane %v24117_v18, %v25815_v61  ;;  %v11114_v35 = vpack.c.bf16 %v11082_v36, %v11082_v36 }
0x2c09   : > { %19052 = vmatprep.subr.bf16.mxu0 %v20294_v14  ;;  %19080 = vmatprep.subr.bf16.mxu1 %v20295_v17  ;;  %v11097_v14 = vpack.c.bf16 %v11065_v30, %v11049_v44  ;;  %v10880_v17 = vadd.f32 %v24104_v0, %v10420_v16  ;;  %v11029_v0 = vadd.f32 %v24189_v23, %v24277_v12  ;;  %v20303_v16 = vld [vmem:[%s25676_s10 + $0xbf0] sm:$0xff]   ;;  %v11081_v23 = vmax.f32 %v10931_v8, 0.0  ;;  %v20307_v8 = vld [vmem:[%s25676_s10 + $0xbe8] sm:$0xff]  }
0x2c0a   : > { %v10978_v19 = vadd.f32 %v24187_v11, %v24273_v5  ;;  %v10974_v2 = vadd.f32 %v24167_v10, %v24273_v5  ;;  %v20305_v30 = vld [vmem:[%s25676_s10 + $0xbb0] sm:$0xff]   ;;  %v20306_v10 = vld [vmem:[%s25676_s10 + $0xb68] sm:$0xff]  }
0x2c0b   : > { %v11079_v11 = vmax.f32 %v10880_v17, 0.0  ;;  %v11113_v36 = vpack.c.bf16 %v11081_v23, %v11081_v23  ;;  %v20308_v44 = vld [vmem:[%s25676_s10 + $0xb28] sm:$0xff]   ;;  %v20321_v23 = vld [vmem:[%s25676_s10 + $0xb90] sm:$0xff]  }
0x2c0c   : > { %19053 = vmatpush3.bf16.msra.mxu0 %v20296_v47  ;;  %19081 = vmatpush3.bf16.msra.mxu1 %v20297_v34  ;;  %v11025_v47 = vadd.f32 %v24169_v24, %v24277_v12  ;;  %v20304_v34 = vld [vmem:[%s25676_s10 + $0xb30] sm:$0xff]   ;;  %v11052_v24 = vmax.f32 %v10974_v2, 0.0 }
0x2c0d   : > { %19094 = vmatprep.subr.bf16.mxu0 %v20298_v55  ;;  %19122 = vmatprep.subr.bf16.mxu1 %v20299_v6  ;;  %v11068_v55 = vmax.f32 %v10978_v19, 0.0  ;;  %v11070_v6 = vmax.f32 %v11029_v0, 0.0  ;;  %v11111_v58 = vpack.c.bf16 %v11079_v11, %v11079_v11  ;;  %v20314_v19 = vld [vmem:[%s25676_s10 + $0xb58] sm:$0xff]   ;;  %v20318_v2 = vld [vmem:[%s25676_s10 + $0xb50] sm:$0xff]  }
0x2c0e   : > { %v11054_v59 = vmax.f32 %v11025_v47, 0.0  ;;  %v20315_v0 = vld [vmem:[%s25676_s10 + $0xbd8] sm:$0xff]   ;;  %v20319_v47 = vld [vmem:[%s25676_s10 + $0xbd0] sm:$0xff]  }
0x2c0f   : > { %12118 = vmatmul.mubr.bf16.vlgmr.msra.gmra.mxu0 %v11095_v53  ;;  %12166 = vmatmul.mubr.bf16.vlgmr.msra.gmra.mxu1 %v11097_v14  ;;  %v20309_v53 = vld [vmem:[%s25676_s10 + $0xba8] sm:$0xff]   ;;  %v11100_v14 = vpack.c.bf16 %v11068_v55, %v11052_v24  ;;  %v20320_v11 = vld [vmem:[%s25676_s10 + $0xb10] sm:$0xff]   ;;  %v10436_v55 = vrot.slane %v24117_v18, %v25817_v29 }
0x2c10   : > { %12125 = vmatprep.mubr.bf16.mxu0 %v11112_v57  ;;  %12173 = vmatprep.mubr.bf16.mxu1 %v11114_v35  ;;  %v11102_v17 = vpack.c.bf16 %v11070_v6, %v11054_v59  ;;  %v20312_v57 = vld [vmem:[%s25676_s10 + $0xb20] sm:$0xff]   ;;  %v10444_v6 = vrot.slane %v24117_v18, %v25818_v52  ;;  %v20325_v24 = vld [vmem:[%s25676_s10 + $0xb88] sm:$0xff]  }
0x2c11   : > { %19095 = vmatpush3.bf16.msra.mxu0 %v20300_v62  ;;  %19123 = vmatpush3.bf16.msra.mxu1 %v20301_v27  ;;  %v20310_v62 = vld [vmem:[%s25676_s10 + $0xb60] sm:$0xff]  }
0x2c12   : > { %19096 = vmatprep.subr.bf16.mxu0 %v20302_v54  ;;  %19124 = vmatprep.subr.bf16.mxu1 %v20303_v16  ;;  %v20311_v27 = vld [vmem:[%s25676_s10 + $0xbe0] sm:$0xff]   ;;  %v20316_v54 = vld [vmem:[%s25676_s10 + $0xb18] sm:$0xff]   ;;  %v11027_v59 = vadd.f32 %v24173_v51, %v10444_v6  ;;  %v11023_v51 = vadd.f32 %v24153_v42, %v10444_v6 }
0x2c13   : > { %v20313_v35 = vld [vmem:[%s25676_s10 + $0xba0] sm:$0xff]   ;;  %v20317_v16 = vld [vmem:[%s25676_s10 + $0xb98] sm:$0xff]  }
0x2c14   : > { %v20326_v18 = vld [vmem:[%s25676_s10 + $0xb40] sm:$0xff]  }
0x2c15   : > { %19097 = vmatpush3.bf16.msra.mxu0 %v20304_v34  ;;  %19125 = vmatpush3.bf16.msra.mxu1 %v20305_v30  ;;  %v20322_v34 = vld [vmem:[%s25676_s10 + $0xb48] sm:$0xff]  }
0x2c16   : > { %19098 = vmatprep.subr.bf16.mxu0 %v20306_v10  ;;  %19126 = vmatprep.subr.bf16.mxu1 %v20307_v8  ;;  %v20323_v30 = vld [vmem:[%s25676_s10 + $0xbc8] sm:$0xff]   ;;  %v10976_v10 = vadd.f32 %v24171_v56, %v10436_v55  ;;  %v20327_v56 = vld [vmem:[%s25676_s10 + $0xbc0] sm:$0xff]  }
0x2c17   : > { %12126 = vmatmul.mubr.bf16.gmra.mxu0 %v11111_v58  ;;  %12174 = vmatmul.mubr.bf16.gmra.mxu1 %v11113_v36  ;;  %v20324_v8 = vld [vmem:[%s25676_s10 + $0xb08] sm:$0xff]   ;;  %v10972_v58 = vadd.f32 %v24151_v46, %v10436_v55  ;;  %v10984_v36 = vadd.f32 %v24207_v13, %v24273_v5  ;;  %v11069_v46 = vmax.f32 %v11027_v59, 0.0  ;;  %v20330_v13 = vld [vmem:[%s25668_s2 + $0x38] sm:$0xff]  }
0x2c18   : > { %12213 = vmatprep.mubr.bf16.mxu0 %v11100_v14  ;;  %12261 = vmatprep.mubr.bf16.mxu1 %v11102_v17  ;;  %v20328_v14 = vld [vmem:[%s25676_s10 + $0xb00] sm:$0xff]  }
0x2c19   : > { %19099 = vmatpush3.bf16.msra.mxu0 %v20308_v44  ;;  %19127 = vmatpush3.bf16.msra.mxu1 %v20309_v53  ;;  %v11035_v44 = vadd.f32 %v24209_v63, %v24277_v12  ;;  %v11067_v53 = vmax.f32 %v10976_v10, 0.0  ;;  %v20329_v17 = vld [vmem:[%s25676_s10 + $0xb80] sm:$0xff]   ;;  %v11051_v63 = vmax.f32 %v10972_v58, 0.0  ;;  %v11084_v42 = vmax.f32 %v10984_v36, 0.0 }
0x2c1a   : > { %19100 = vmatprep.subr.bf16.mxu0 %v20310_v62  ;;  %19128 = vmatprep.subr.bf16.mxu1 %v20311_v27  ;;  %v11053_v12 = vmax.f32 %v11023_v51, 0.0  ;;  %v17702_v10 = vld [vmem:[%s25677_s11 + $0x2] ss:$0 sm:$0xff] }
0x2c1b   : > { %v11086_v5 = vmax.f32 %v11035_v44, 0.0  ;;  %v11099_v62 = vpack.c.bf16 %v11067_v53, %v11051_v63 }
0x2c1c   : > { %v11101_v27 = vpack.c.bf16 %v11069_v46, %v11053_v12 }
0x2c1d   : > { %19101 = vmatpush3.bf16.msra.mxu0 %v20312_v57  ;;  %19129 = vmatpush3.bf16.msra.mxu1 %v20313_v35  ;;  %v10982_v57 = vadd.f32 %v24191_v45, %v10436_v55  ;;  %v11033_v35 = vadd.f32 %v24193_v1, %v10444_v6  ;;  %v12796_v45 = vcombine.low %v23361_v38, %v23363_v15 }
0x2c1e   : > { %19102 = vmatprep.subr.bf16.mxu0 %v20314_v19  ;;  %19130 = vmatprep.subr.bf16.mxu1 %v20315_v0  ;;  %v11116_v19 = vpack.c.bf16 %v11084_v42, %v11084_v42  ;;  %v11118_v0 = vpack.c.bf16 %v11086_v5, %v11086_v5  ;;  %v12795_v1 = vcombine.low %v23353_v3, %v23355_v41 }
0x2c21   : > { %19103 = vmatpush3.bf16.msra.mxu0 %v20316_v54  ;;  %19131 = vmatpush3.bf16.msra.mxu1 %v20317_v16  ;;  %v20331_v54 = vld [vmem:[%s25668_s2 + $0x30] sm:$0xff]   ;;  %v11083_v16 = vmax.f32 %v10982_v57, 0.0 }
0x2c22   : > { %19104 = vmatprep.subr.bf16.mxu0 %v20318_v2  ;;  %19132 = vmatprep.subr.bf16.mxu1 %v20319_v47  ;;  %v11085_v2 = vmax.f32 %v11033_v35, 0.0 }
0x2c23   : > { %v11115_v47 = vpack.c.bf16 %v11083_v16, %v11083_v16 }
0x2c25   : > { %19105 = vmatpush3.bf16.msra.mxu0 %v20320_v11  ;;  %19133 = vmatpush3.bf16.msra.mxu1 %v20321_v23  ;;  %v11117_v11 = vpack.c.bf16 %v11085_v2, %v11085_v2  ;;  %v12801_v23 = vpack.c.bf16 %v12796_v45, %v12795_v1 }
0x2c26   : > { %19106 = vmatprep.subr.bf16.mxu0 %v20322_v34  ;;  %19134 = vmatprep.subr.bf16.mxu1 %v20323_v30  ;;  %v12797_v34 = vcombine.low %v23373_v7, %v23375_v9 }
0x2c28   : > { %v12802_v30 = vpack.c.bf16 %v12797_v34, %v12797_v34 }
0x2c29   : > { %19107 = vmatpush3.bf16.msra.mxu0 %v20324_v8  ;;  %19135 = vmatpush3.bf16.msra.mxu1 %v20325_v24 }
0x2c2a   : > { %19108 = vmatprep.subr.bf16.mxu0 %v20326_v18  ;;  %19136 = vmatprep.subr.bf16.mxu1 %v20327_v56 }
0x2c2d   : > { %19109 = vmatpush3.bf16.msra.mxu0 %v20328_v14  ;;  %19137 = vmatpush3.bf16.msra.mxu1 %v20329_v17 }
0x2c2e   : > { %19750 = vmatprep.subr.bf16.mxu0 %v20330_v13  ;;  %19758 = vmatprep.subr.bf16.mxu1 %v25801_v40 }
0x2c30   : > { %12214 = vmatmul.mubr.bf16.vlgmr.msra.gmra.mxu0 %v11099_v62  ;;  %12262 = vmatmul.mubr.bf16.vlgmr.msra.gmra.mxu1 %v11101_v27 }
0x2c31   : > { %12221 = vmatprep.mubr.bf16.mxu0 %v11116_v19  ;;  %12269 = vmatprep.mubr.bf16.mxu1 %v11118_v0 }
0x2c32   : > { %19751 = vmatpush3.bf16.msra.mxu0 %v20330_v13 }
0x2c33   : > { %19752 = vmatprep.subr.bf16.mxu0 %v20331_v54 }
0x2c36   : > { %19753 = vmatpush3.bf16.msra.mxu0 %v20331_v54 }
0x2c37   : > { %19764 = vmatprep.subr.bf16.mxu0 %v25801_v40 }
0x2c38   : > { %12222 = vmatmul.mubr.bf16.gmra.mxu0 %v11115_v47  ;;  %12270 = vmatmul.mubr.bf16.gmra.mxu1 %v11117_v11 }
0x2c39   : > { %19754 = vmatprep.mubr.msk.bf16.mxu0 %vm895_vm0, %v12801_v23  ;;  %19760 = vmatprep.mubr.msk.bf16.mxu1 %vm20868_vm1, %v25801_v40 }
0x2c40   : > { %19755 = vmatmul.mubr.msk.bf16.vlgmr.msra.gmra.mxu0 %vm895_vm0, %v12802_v30 }
0x2c41   : > { %19766 = vmatprep.mubr.msk.bf16.mxu0 %vm20868_vm1, %v25801_v40 }
0x2c8e   : > { %v18942_v55 = vpop.f32.mrf.mxu0  ;;  %v18970_v6 = vpop.f32.mrf.mxu1 }
0x2c90   : > { %v18943_v8 = vpop.f32.mrf.mxu0  ;;  %v18971_v24 = vpop.f32.mrf.mxu1 }
0x2c91   : > { %v18944_v59 = vadd.f32 %v18943_v8, %v18942_v55  ;;  %v18972_v18 = vadd.f32 %v18971_v24, %v18970_v6 }
0x2c92   : > { %v18945_v56 = vpop.f32.mrf.mxu0  ;;  %v18973_v58 = vpop.f32.mrf.mxu1 }
0x2c93   : > { %v11928_v36 = vadd.f32 %v18944_v59, %v17702_v10 }
0x2c94   : > { %v18946_v44 = vpop.f32.mrf.mxu0  ;;  %v18974_v51 = vpop.f32.mrf.mxu1 }
0x2c95   : > { %v11976_v53 = vadd.f32 %v18972_v18, %v11928_v36  ;;  %v18947_v14 = vadd.f32 %v18946_v44, %v18945_v56  ;;  %v18975_v63 = vadd.f32 %v18974_v51, %v18973_v58 }
0x2c96   : > { %v18948_v17 = vpop.f32.mrf.mxu0  ;;  %v18976_v46 = vpop.f32.mrf.mxu1 }
0x2c97   : > { %v11931_v13 = vadd.f32 %v18947_v14, %v17702_v10 }
0x2c98   : > { %v18949_v42 = vpop.f32.mrf.mxu0  ;;  %v18977_v5 = vpop.f32.mrf.mxu1 }
0x2c99   : > { %v11979_v12 = vadd.f32 %v18975_v63, %v11931_v13  ;;  %v18950_v62 = vadd.f32 %v18949_v42, %v18948_v17  ;;  %v18978_v27 = vadd.f32 %v18977_v5, %v18976_v46 }
0x2c9a   : > { %v18951_v57 = vpop.f32.mrf.mxu0  ;;  %v18979_v35 = vpop.f32.mrf.mxu1 }
0x2c9b   : > { %v11936_v19 = vadd.f32 %v18950_v62, %v17702_v10 }
0x2c9c   : > { %v18952_v0 = vpop.f32.mrf.mxu0  ;;  %v18980_v54 = vpop.f32.mrf.mxu1 }
0x2c9d   : > { %v11984_v16 = vadd.f32 %v18978_v27, %v11936_v19 }
0x2cae   : > { %v18998_v2 = vpop.f32.mrf.mxu0  ;;  %v19026_v45 = vpop.f32.mrf.mxu1 }
0x2cb0   : > { %v18999_v1 = vpop.f32.mrf.mxu0  ;;  %v19027_v47 = vpop.f32.mrf.mxu1 }
0x2cb1   : > { %v19000_v11 = vadd.f32 %v18999_v1, %v18998_v2  ;;  %v19028_v23 = vadd.f32 %v19027_v47, %v19026_v45 }
0x2cb2   : > { %v19001_v34 = vpop.f32.mrf.mxu0  ;;  %v19029_v30 = vpop.f32.mrf.mxu1 }
0x2cb3   : > { %v12024_v55 = vadd.f32 %v19000_v11, %v11976_v53 }
0x2cb4   : > { %v19002_v6 = vpop.f32.mrf.mxu0  ;;  %v19030_v8 = vpop.f32.mrf.mxu1 }
0x2cb5   : > { %v12072_v24 = vadd.f32 %v19028_v23, %v12024_v55  ;;  %v19003_v59 = vadd.f32 %v19002_v6, %v19001_v34  ;;  %v19031_v10 = vadd.f32 %v19030_v8, %v19029_v30 }
0x2cb6   : > { %v19004_v18 = vpop.f32.mrf.mxu0  ;;  %v19032_v56 = vpop.f32.mrf.mxu1 }
0x2cb7   : > { %v12027_v58 = vadd.f32 %v19003_v59, %v11979_v12 }
0x2cb8   : > { %v19005_v36 = vpop.f32.mrf.mxu0  ;;  %v19033_v44 = vpop.f32.mrf.mxu1 }
0x2cb9   : > { %v12075_v51 = vadd.f32 %v19031_v10, %v12027_v58  ;;  %v19006_v14 = vadd.f32 %v19005_v36, %v19004_v18  ;;  %v19034_v17 = vadd.f32 %v19033_v44, %v19032_v56 }
0x2cba   : > { %v19007_v46 = vpop.f32.mrf.mxu0  ;;  %v19035_v13 = vpop.f32.mrf.mxu1 }
0x2cbb   : > { %v12032_v63 = vadd.f32 %v19006_v14, %v11984_v16 }
0x2cbc   : > { %v19008_v42 = vpop.f32.mrf.mxu0  ;;  %v19036_v5 = vpop.f32.mrf.mxu1 }
0x2cbd   : > { %v12080_v62 = vadd.f32 %v19034_v17, %v12032_v63 }
0x2ccf   : > { %v19054_v53 = vpop.f32.mrf.mxu0  ;;  %v19082_v27 = vpop.f32.mrf.mxu1 }
0x2cd1   : > { %v19055_v57 = vpop.f32.mrf.mxu0  ;;  %v19083_v35 = vpop.f32.mrf.mxu1 }
0x2cd2   : > { %v19056_v19 = vadd.f32 %v19055_v57, %v19054_v53  ;;  %v19084_v0 = vadd.f32 %v19083_v35, %v19082_v27 }
0x2cd3   : > { %v19057_v54 = vpop.f32.mrf.mxu0  ;;  %v19085_v12 = vpop.f32.mrf.mxu1 }
0x2cd4   : > { %v12120_v2 = vadd.f32 %v19056_v19, %v12072_v24 }
0x2cd5   : > { %v19058_v45 = vpop.f32.mrf.mxu0  ;;  %v19086_v1 = vpop.f32.mrf.mxu1 }
0x2cd6   : > { %v12168_v47 = vadd.f32 %v19084_v0, %v12120_v2  ;;  %v19059_v11 = vadd.f32 %v19058_v45, %v19057_v54  ;;  %v19087_v16 = vadd.f32 %v19086_v1, %v19085_v12 }
0x2cd7   : > { %v19060_v23 = vpop.f32.mrf.mxu0  ;;  %v19088_v34 = vpop.f32.mrf.mxu1 }
0x2cd8   : > { %v12123_v30 = vadd.f32 %v19059_v11, %v12075_v51 }
0x2cd9   : > { %v19061_v55 = vpop.f32.mrf.mxu0  ;;  %v19089_v6 = vpop.f32.mrf.mxu1 }
0x2cda   : > { %v12171_v8 = vadd.f32 %v19087_v16, %v12123_v30  ;;  %v19062_v59 = vadd.f32 %v19061_v55, %v19060_v23  ;;  %v19090_v18 = vadd.f32 %v19089_v6, %v19088_v34  ;;  %v18138_v6 = vld [vmem:[%s25669_s3 + $0x3] ss:$0 sm:$0xff] }
0x2cdb   : > { %v19063_v56 = vpop.f32.mrf.mxu0  ;;  %v19091_v58 = vpop.f32.mrf.mxu1 }
0x2cdc   : > { %v12128_v10 = vadd.f32 %v19062_v59, %v12080_v62 }
0x2cdd   : > { %v19064_v36 = vpop.f32.mrf.mxu0  ;;  %v19092_v44 = vpop.f32.mrf.mxu1 }
0x2cde   : > { %v12176_v14 = vadd.f32 %v19090_v18, %v12128_v10 }
0x2cf0   : > { %v19110_v24 = vpop.f32.mrf.mxu0  ;;  %v19138_v17 = vpop.f32.mrf.mxu1 }
0x2cf2   : > { %v19111_v46 = vpop.f32.mrf.mxu0  ;;  %v19139_v13 = vpop.f32.mrf.mxu1 }
0x2cf3   : > { %v19112_v63 = vadd.f32 %v19111_v46, %v19110_v24  ;;  %v19140_v42 = vadd.f32 %v19139_v13, %v19138_v17 }
0x2cf4   : > { %v19113_v5 = vpop.f32.mrf.mxu0  ;;  %v19141_v51 = vpop.f32.mrf.mxu1 }
0x2cf5   : > { %v12216_v53 = vadd.f32 %v19112_v63, %v12168_v47 }
0x2cf6   : > { %v19114_v27 = vpop.f32.mrf.mxu0  ;;  %v19142_v57 = vpop.f32.mrf.mxu1 }
0x2cf7   : > { %v24416_v35 = vadd.f32 %v19140_v42, %v12216_v53  ;;  %v19115_v19 = vadd.f32 %v19114_v27, %v19113_v5  ;;  %v19143_v0 = vadd.f32 %v19142_v57, %v19141_v51 }
0x2cf8   : > { %v19116_v54 = vpop.f32.mrf.mxu0  ;;  %v19144_v62 = vpop.f32.mrf.mxu1 }
0x2cf9   : > { %v12219_v12 = vadd.f32 %v19115_v19, %v12171_v8 }
0x2cfa   : > { %v19117_v2 = vpop.f32.mrf.mxu0  ;;  %v19145_v45 = vpop.f32.mrf.mxu1 }
0x2cfb   : > { %v24418_v1 = vadd.f32 %v19143_v0, %v12219_v12  ;;  %v19118_v11 = vadd.f32 %v19117_v2, %v19116_v54  ;;  %v19146_v23 = vadd.f32 %v19145_v45, %v19144_v62 }
0x2cfc   : > { %v19119_v34 = vpop.f32.mrf.mxu0  ;;  %v19147_v30 = vpop.f32.mrf.mxu1 }
0x2cfd   : > { %v12224_v16 = vadd.f32 %v19118_v11, %v12176_v14 }
0x2cfe   : > { %v19120_v55 = vpop.f32.mrf.mxu0  ;;  %v19148_v47 = vpop.f32.mrf.mxu1 }
0x2cff   : > { %v24423_v59 = vadd.f32 %v19146_v23, %v12224_v16 }
0x2d00   : > { %v19756_v18 = vpop.f32.mrf.mxu0 }
0x2d01   : > { %v12870_v56 = vadd.f32 %v19756_v18, %v18138_v6 }
0x2d02   : > { %v12861_v8 = vpop.f32.mrf.mxu0 }
0x2d03   : > { %v12876_v10 = vpack.c.bf16 %v12870_v56, %v12870_v56  ;;  %v12862_v44 = vadd.f32 %v18138_v6, %v12861_v8 }
0x2d04   : > { %v19757_v58 = vpop.f32.mrf.mxu0 }
0x2d05   : > { %v12902_v17 = vrot.slane %v12876_v10, %v21055_v28 }
0x2d06   : > { %v12864_v36 = vpop.f32.mrf.mxu0 }
0x2d07   : > { %v12865_v24 = vadd.f32 %v18138_v6, %v12864_v36  ;;  %v12903_v42 = vcombine.high %v12902_v17, %v12902_v17 }
0x2d09   : > { %v12875_v46 = vpack.c.bf16 %v12865_v24, %v12862_v44  ;;  %v18143_v14 = vpack.c.bf16 %v12865_v24, %v12865_v24  ;;  %v12983_v57 = vrot.slane %v12903_v42, %v21055_v28 }
0x2d0b   : > { %v12886_v13 = vrot.slane %v12875_v46, %v21055_v28  ;;  %v12893_v63 = vrot.slane %v18143_v14, %v21055_v28 }
0x2d0d   : > { %v12894_v5 = vcombine.high %v12886_v13, %v12886_v13  ;;  %v12895_v51 = vcombine.high %v12893_v63, %v12893_v63  ;;  %v12918_v0 = vrot.slane %v12893_v63, %v21055_v28 }
0x2d0f   : > { %v12904_v53 = vcombine.low %v12886_v13, %v12894_v5  ;;  %v12969_v27 = vcombine.low %v12895_v51, %v12902_v17 }
0x2d11   : > { %v12911_v19 = vrot.slane %v12904_v53, %v21055_v28  ;;  %v12976_v54 = vrot.slane %v12969_v27, %v21055_v28 }
0x2d13   : > { %v24432_v62 = vcombine.low %v12911_v19, %v12918_v0  ;;  %v24434_v12 = vcombine.low %v12976_v54, %v12983_v57 }
0x2d15   : > { %12985 = vrot.lane.b32.xlu0 %v24434_v12, %s25787_s20  ;;  %12920 = vrot.lane.b32.xlu1 %v24432_v62, %s25787_s20 }
0x2d87   : > { %v12986_v2 = vpop.permute.xlu0 %12985  ;;  %v12921_v45 = vpop.permute.xlu1 %12920 }
0x2d88   : > { %v12991_v11 = vsel %vm997_vm2, %v12986_v2, 0  ;;  %v12926_v23 = vsel %vm997_vm2, %v12921_v45, 0 }
0x2d89   : > { %19759 = vmatpush3.bf16.xpose.msra.mxu1 %v12926_v23  ;;  %19765 = vmatpush3.bf16.xpose.msra.mxu0 %v12991_v11 }
0x2d8a   : > { %19770 = vmatprep.subr.bf16.mxu1 %v25801_v40  ;;  %19776 = vmatprep.subr.bf16.mxu0 %v25801_v40 }
0x2d90   : > { %19761 = vmatmul.mubr.msk.bf16.vlgmr.msra.gmra.mxu1 %vm997_vm2, %v24432_v62  ;;  %19767 = vmatmul.mubr.msk.bf16.vlgmr.msra.gmra.mxu0 %vm997_vm2, %v24434_v12 }
0x2d91   : > { %19772 = vmatprep.mubr.msk.bf16.mxu1 %vm20868_vm1, %v25801_v40  ;;  %19778 = vmatprep.mubr.msk.bf16.mxu0 %vm20868_vm1, %v25801_v40 }
0x2e50   : > { %v12962_v28 = vpop.f32.mrf.mxu1  ;;  %v13027_v34 = vpop.f32.mrf.mxu0 }
0x2e51   : > { %v13034_v30 = vmul.f32 0.35355338, %v12962_v28  ;;  %v13036_v47 = vmul.f32 0.35355338, %v13027_v34 }
0x2e52   : > { %v19762_v16 = vpop.f32.mrf.mxu1  ;;  %v19768_v55 = vpop.f32.mrf.mxu0 }
0x2e53   : > { %v13038_v6 = vsel %vm1114_vm3, %v13034_v30, -inf  ;;  %v13044_v44 = vsel %vm1114_vm3, %v13036_v47, -inf }
0x2e54   : > { %v13030_v18 = vpop.f32.mrf.mxu0  ;;  %13039 = vmax.xlane.f32.xlu1 %v13038_v6  ;;  %v12965_v56 = vpop.f32.mrf.mxu1 }
0x2e55   : > { %v13035_v8 = vmul.f32 0.35355338, %v12965_v56  ;;  %v13037_v36 = vmul.f32 0.35355338, %v13030_v18 }
0x2e56   : > { %v19763_v58 = vpop.f32.mrf.mxu1  ;;  %v19769_v10 = vpop.f32.mrf.mxu0 }
0x2e57   : > { %v13041_v24 = vsel %vm1118_vm4, %v13035_v8, -inf  ;;  %v13047_v17 = vsel %vm1118_vm4, %v13037_v36, -inf }
0x2e58   : > { %13045 = vmax.xlane.f32.xlu1 %v13044_v44  ;;  %13042 = vmax.xlane.f32.xlu0 %v13041_v24 }
0x2e5c   : > { %13048 = vmax.xlane.f32.xlu0 %v13047_v17 }
0x2e69   : > { %13084 = vrot.lane.b32.xlu1 %v24432_v62, %s25788_s24 }
0x2edd   : > { %v13040_v46 = vpop.xlane.xlu1 %13039 }
0x2ede   : > { %v13050_v14 = vsub.f32 %v13034_v30, %v13040_v46 }
0x2ee0   : > { %v13054_v13 = vmul.f32 1.442695, %v13050_v14 }
0x2ee1   : > { %v13046_v63 = vpop.xlane.xlu1 %13045  ;;  %v13043_v42 = vpop.xlane.xlu0 %13042 }
0x2ee2   : > { %20684 = vpow2.f32 %v13054_v13  ;;  %v13052_v5 = vsub.f32 %v13036_v47, %v13046_v63  ;;  %v13051_v51 = vsub.f32 %v13035_v8, %v13043_v42 }
0x2ee4   : > { %v13058_v53 = vmul.f32 1.442695, %v13052_v5  ;;  %v13056_v27 = vmul.f32 1.442695, %v13051_v51 }
0x2ee5   : > { %v13085_v57 = vpop.permute.xlu1 %13084  ;;  %v13049_v19 = vpop.xlane.xlu0 %13048 }
0x2ee6   : > { %20686 = vpow2.f32 %v13058_v53  ;;  %v13090_v0 = vsel %vm1167_vm5, %v13085_v57, 0  ;;  %v13053_v54 = vsub.f32 %v13037_v36, %v13049_v19 }
0x2ee7   : > { %20688 = vpow2.f32 %v13056_v27  ;;  %19771 = vmatpush3.bf16.msra.mxu1 %v13090_v0 }
0x2ee8   : > { %v13060_v2 = vmul.f32 1.442695, %v13053_v54  ;;  %19782 = vmatprep.subr.bf16.mxu1 %v25801_v40 }
0x2eea   : > { %20690 = vpow2.f32 %v13060_v2 }
0x2eef   : > { %v20685_v45 = vpop.eup %20684 }
0x2ef0   : > { %v13062_v11 = vsel %vm1114_vm3, %v20685_v45, 0.0 }
0x2ef1   : > { %13063 = vadd.xlane.f32.xlu1 %v13062_v11 }
0x2ef3   : > { %v20687_v23 = vpop.eup %20686 }
0x2ef4   : > { %v20689_v28 = vpop.eup %20688  ;;  %v13068_v34 = vsel %vm1114_vm3, %v20687_v23, 0.0 }
0x2ef5   : > { %13069 = vadd.xlane.f32.xlu1 %v13068_v34  ;;  %v13065_v30 = vsel %vm1118_vm4, %v20689_v28, 0.0 }
0x2ef6   : > { %13066 = vadd.xlane.f32.xlu0 %v13065_v30 }
0x2ef7   : > { %v20691_v16 = vpop.eup %20690 }
0x2ef8   : > { %v13071_v55 = vsel %vm1118_vm4, %v20691_v16, 0.0 }
0x2efa   : > { %13072 = vadd.xlane.f32.xlu0 %v13071_v55 }
0x2f06   : > { %13184 = vrot.lane.b32.xlu1 %v24432_v62, %s25789_s29 }
0x2f0a   : > { %13235 = vrot.lane.b32.xlu1 %v24434_v12, %s25789_s29 }
0x2f0e   : > { %13233 = vrot.lane.b32.xlu1 %v24434_v12, %s25790_s27 }
0x2f10   : > { %13133 = vrot.lane.b32.xlu0 %v24434_v12, %s25788_s24 }
0x2f14   : > { %13182 = vrot.lane.b32.xlu0 %v24432_v62, %s25790_s27  ;;  %s25822_s27 = sld [smem:[#allocation32_spill]] }
0x2f7a   : > { %v13064_v47 = vpop.xlane.xlu1 %13063 }
0x2f7b   : > { %20692 = vrcp.f32 %v13064_v47 }
0x2f7e   : > { %v13070_v6 = vpop.xlane.xlu1 %13069 }
0x2f7f   : > { %v13067_v18 = vpop.xlane.xlu0 %13066 }
0x2f80   : > { %20694 = vrcp.f32 %v13067_v18 }
0x2f81   : > { %20696 = vrcp.f32 %v13070_v6 }
0x2f82   : > { %v13185_v44 = vpop.permute.xlu1 %13184 }
0x2f83   : > { %v13073_v56 = vpop.xlane.xlu0 %13072  ;;  %v13190_v42 = vsel %vm997_vm2, %v13185_v44, 0 }
0x2f84   : > { %20698 = vrcp.f32 %v13073_v56 }
0x2f86   : > { %v13236_v51 = vpop.permute.xlu1 %13235 }
0x2f87   : > { %v13134_v8 = vpop.permute.xlu0 %13133  ;;  %v13241_v27 = vsel %vm997_vm2, %v13236_v51, 0 }
0x2f88   : > { %v13139_v58 = vsel %vm1167_vm5, %v13134_v8, 0  ;;  %v20693_v10 = vpop.eup %20692 }
0x2f89   : > { %19777 = vmatpush3.bf16.msra.mxu0 %v13139_v58  ;;  %v13078_v24 = vmul.f32 %v20693_v10, %v20685_v45 }
0x2f8a   : > { %19788 = vmatprep.subr.bf16.mxu0 %v25801_v40  ;;  %v13234_v19 = vpop.permute.xlu1 %13233 }
0x2f8b   : > { %v13183_v57 = vpop.permute.xlu0 %13182 }
0x2f8d   : > { %v20695_v36 = vpop.eup %20694 }
0x2f8e   : > { %v13079_v17 = vmul.f32 %v20695_v36, %v20689_v28  ;;  %v20697_v46 = vpop.eup %20696 }
0x2f8f   : > { %v13080_v63 = vmul.f32 %v20697_v46, %v20687_v23 }
0x2f90   : > { %v13082_v14 = vpack.c.bf16 %v13079_v17, %v13078_v24 }
0x2f91   : > { %v20699_v13 = vpop.eup %20698 }
0x2f92   : > { %v13081_v5 = vmul.f32 %v20699_v13, %v20691_v16  ;;  %19773 = vmatmul.mubr.msk.bf16.vlgmr.msra.gmra.mxu1 %vm1114_vm3, %v13082_v14 }
0x2f93   : > { %19783 = vmatpush3.bf16.xpose.msra.mxu1 %v13190_v42  ;;  %19784 = vmatprep.mubr.msk.bf16.mxu1 %vm20868_vm1, %v25801_v40 }
0x2f94   : > { %v13083_v53 = vpack.c.bf16 %v13081_v5, %v13080_v63  ;;  %19794 = vmatprep.subr.bf16.mxu1 %v25801_v40 }
0x2f96   : > { %19779 = vmatmul.mubr.msk.bf16.vlgmr.msra.gmra.mxu0 %vm1114_vm3, %v13083_v53 }
0x2f97   : > { %19789 = vmatpush3.bf16.xpose.msra.mxu0 %v13241_v27  ;;  %19790 = vmatprep.mubr.msk.bf16.mxu0 %vm20868_vm1, %v25801_v40 }
0x2f98   : > { %19800 = vmatprep.subr.bf16.mxu0 %v25801_v40 }
0x2f9a   : > { %19785 = vmatmul.mubr.msk.bf16.vlgmr.msra.gmra.mxu1 %vm997_vm2, %v13183_v57 }
0x2f9b   : > { %19796 = vmatprep.mubr.msk.bf16.mxu1 %vm20868_vm1, %v25801_v40 }
0x2f9e   : > { %19791 = vmatmul.mubr.msk.bf16.vlgmr.msra.gmra.mxu0 %vm997_vm2, %v13234_v19 }
0x2f9f   : > { %19802 = vmatprep.mubr.msk.bf16.mxu0 %vm20868_vm1, %v25801_v40 }
0x3052   : > { %v24492_v0 = vpop.f32.mrf.mxu1 }
0x3054   : > { %v19774_v54 = vpop.f32.mrf.mxu1 }
0x3056   : > { %v24494_v2 = vpop.f32.mrf.mxu1  ;;  %v24496_v45 = vpop.f32.mrf.mxu0 }
0x3058   : > { %v19775_v11 = vpop.f32.mrf.mxu1  ;;  %v19780_v23 = vpop.f32.mrf.mxu0 }
0x305a   : > { %v24498_v28 = vpop.f32.mrf.mxu0  ;;  %v13226_v34 = vpop.f32.mrf.mxu1 }
0x305b   : > { %v13284_v30 = vmul.f32 0.35355338, %v13226_v34 }
0x305c   : > { %v19781_v16 = vpop.f32.mrf.mxu0  ;;  %v19786_v55 = vpop.f32.mrf.mxu1 }
0x305d   : > { %v13288_v47 = vsel %vm1114_vm3, %v13284_v30, -inf }
0x305e   : > { %v13277_v6 = vpop.f32.mrf.mxu0  ;;  %13289 = vmax.xlane.f32.xlu0 %v13288_v47  ;;  %v13229_v18 = vpop.f32.mrf.mxu1 }
0x305f   : > { %v13286_v56 = vmul.f32 0.35355338, %v13277_v6  ;;  %v13285_v8 = vmul.f32 0.35355338, %v13229_v18 }
0x3060   : > { %v19787_v58 = vpop.f32.mrf.mxu1  ;;  %v19792_v10 = vpop.f32.mrf.mxu0 }
0x3061   : > { %v13294_v36 = vsel %vm1114_vm3, %v13286_v56, -inf  ;;  %v13291_v44 = vsel %vm1118_vm4, %v13285_v8, -inf }
0x3062   : > { %v13280_v24 = vpop.f32.mrf.mxu0  ;;  %13295 = vmax.xlane.f32.xlu0 %v13294_v36  ;;  %13292 = vmax.xlane.f32.xlu1 %v13291_v44 }
0x3063   : > { %v13287_v17 = vmul.f32 0.35355338, %v13280_v24 }
0x3064   : > { %v19793_v46 = vpop.f32.mrf.mxu0 }
0x3065   : > { %v13297_v14 = vsel %vm1118_vm4, %v13287_v17, -inf }
0x3066   : > { %13298 = vmax.xlane.f32.xlu0 %v13297_v14 }
0x3073   : > { %13334 = vrot.lane.b32.xlu1 %v24432_v62, %s25791_s23 }
0x30e7   : > { %v13290_v13 = vpop.xlane.xlu0 %13289 }
0x30e8   : > { %v13300_v63 = vsub.f32 %v13284_v30, %v13290_v13 }
0x30ea   : > { %v13304_v42 = vmul.f32 1.442695, %v13300_v63 }
0x30eb   : > { %v13296_v5 = vpop.xlane.xlu0 %13295  ;;  %v13293_v51 = vpop.xlane.xlu1 %13292 }
0x30ec   : > { %20700 = vpow2.f32 %v13304_v42  ;;  %v13302_v53 = vsub.f32 %v13286_v56, %v13296_v5  ;;  %v13301_v27 = vsub.f32 %v13285_v8, %v13293_v51 }
0x30ee   : > { %v13308_v57 = vmul.f32 1.442695, %v13302_v53  ;;  %v13306_v19 = vmul.f32 1.442695, %v13301_v27 }
0x30ef   : > { %v13299_v54 = vpop.xlane.xlu0 %13298  ;;  %v13335_v11 = vpop.permute.xlu1 %13334 }
0x30f0   : > { %20702 = vpow2.f32 %v13308_v57  ;;  %v13303_v23 = vsub.f32 %v13287_v17, %v13299_v54  ;;  %v13340_v34 = vsel %vm1167_vm5, %v13335_v11, 0 }
0x30f1   : > { %20704 = vpow2.f32 %v13306_v19  ;;  %19795 = vmatpush3.bf16.msra.mxu1 %v13340_v34 }
0x30f2   : > { %v13310_v16 = vmul.f32 1.442695, %v13303_v23  ;;  %19806 = vmatprep.subr.bf16.mxu1 %v25801_v40 }
0x30f4   : > { %20706 = vpow2.f32 %v13310_v16 }
0x30f9   : > { %v20701_v30 = vpop.eup %20700 }
0x30fa   : > { %v13312_v55 = vsel %vm1114_vm3, %v20701_v30, 0.0 }
0x30fb   : > { %13313 = vadd.xlane.f32.xlu1 %v13312_v55 }
0x30fd   : > { %v20703_v47 = vpop.eup %20702 }
0x30fe   : > { %v20705_v6 = vpop.eup %20704  ;;  %v13318_v18 = vsel %vm1114_vm3, %v20703_v47, 0.0 }
0x30ff   : > { %13319 = vadd.xlane.f32.xlu1 %v13318_v18  ;;  %v13315_v56 = vsel %vm1118_vm4, %v20705_v6, 0.0 }
0x3100   : > { %13316 = vadd.xlane.f32.xlu0 %v13315_v56 }
0x3101   : > { %v20707_v8 = vpop.eup %20706 }
0x3102   : > { %v13321_v58 = vsel %vm1118_vm4, %v20707_v8, 0.0 }
0x3104   : > { %13322 = vadd.xlane.f32.xlu0 %v13321_v58 }
0x3110   : > { %13434 = vrot.lane.b32.xlu1 %v24432_v62, %s25792_s16 }
0x3114   : > { %13485 = vrot.lane.b32.xlu1 %v24434_v12, %s25792_s16 }
0x3118   : > { %13483 = vrot.lane.b32.xlu1 %v24434_v12, %s25793_s25 }
0x311a   : > { %13383 = vrot.lane.b32.xlu0 %v24434_v12, %s25791_s23  ;;  %s25819_s23 = sld [smem:[#allocation29_spill]] }
0x311e   : > { %13432 = vrot.lane.b32.xlu0 %v24432_v62, %s25793_s25 }
0x3184   : > { %v13314_v10 = vpop.xlane.xlu1 %13313 }
0x3185   : > { %20708 = vrcp.f32 %v13314_v10 }
0x3188   : > { %v13320_v44 = vpop.xlane.xlu1 %13319 }
0x3189   : > { %v13317_v36 = vpop.xlane.xlu0 %13316 }
0x318a   : > { %20710 = vrcp.f32 %v13317_v36 }
0x318b   : > { %20712 = vrcp.f32 %v13320_v44 }
0x318c   : > { %v13435_v63 = vpop.permute.xlu1 %13434 }
0x318d   : > { %v13323_v24 = vpop.xlane.xlu0 %13322  ;;  %v13440_v54 = vsel %vm997_vm2, %v13435_v63, 0 }
0x318e   : > { %20714 = vrcp.f32 %v13323_v24 }
0x3190   : > { %v13486_v11 = vpop.permute.xlu1 %13485 }
0x3191   : > { %v13384_v17 = vpop.permute.xlu0 %13383  ;;  %v13491_v34 = vsel %vm997_vm2, %v13486_v11, 0 }
0x3192   : > { %v13389_v46 = vsel %vm1167_vm5, %v13384_v17, 0  ;;  %v20709_v14 = vpop.eup %20708 }
0x3193   : > { %19801 = vmatpush3.bf16.msra.mxu0 %v13389_v46  ;;  %v13328_v42 = vmul.f32 %v20709_v14, %v20701_v30 }
0x3194   : > { %19812 = vmatprep.subr.bf16.mxu0 %v25801_v40  ;;  %v13484_v30 = vpop.permute.xlu1 %13483 }
0x3195   : > { %v13433_v16 = vpop.permute.xlu0 %13432 }
0x3197   : > { %v20711_v13 = vpop.eup %20710 }
0x3198   : > { %v13329_v5 = vmul.f32 %v20711_v13, %v20705_v6  ;;  %v20713_v51 = vpop.eup %20712 }
0x3199   : > { %v13330_v57 = vmul.f32 %v20713_v51, %v20703_v47 }
0x319a   : > { %v13332_v53 = vpack.c.bf16 %v13329_v5, %v13328_v42 }
0x319b   : > { %v20715_v27 = vpop.eup %20714 }
0x319c   : > { %v13331_v19 = vmul.f32 %v20715_v27, %v20707_v8  ;;  %19797 = vmatmul.mubr.msk.bf16.vlgmr.msra.gmra.mxu1 %vm1114_vm3, %v13332_v53 }
0x319d   : > { %19807 = vmatpush3.bf16.xpose.msra.mxu1 %v13440_v54  ;;  %19808 = vmatprep.mubr.msk.bf16.mxu1 %vm20868_vm1, %v25801_v40 }
0x319e   : > { %v13333_v23 = vpack.c.bf16 %v13331_v19, %v13330_v57  ;;  %19818 = vmatprep.subr.bf16.mxu1 %v25801_v40 }
0x31a0   : > { %19803 = vmatmul.mubr.msk.bf16.vlgmr.msra.gmra.mxu0 %vm1114_vm3, %v13333_v23 }
0x31a1   : > { %19813 = vmatpush3.bf16.xpose.msra.mxu0 %v13491_v34  ;;  %19814 = vmatprep.mubr.msk.bf16.mxu0 %vm20868_vm1, %v25801_v40 }
0x31a2   : > { %19824 = vmatprep.subr.bf16.mxu0 %v25801_v40 }
0x31a4   : > { %19809 = vmatmul.mubr.msk.bf16.vlgmr.msra.gmra.mxu1 %vm997_vm2, %v13433_v16 }
0x31a5   : > { %19820 = vmatprep.mubr.msk.bf16.mxu1 %vm20868_vm1, %v25801_v40 }
0x31a8   : > { %19815 = vmatmul.mubr.msk.bf16.vlgmr.msra.gmra.mxu0 %vm997_vm2, %v13484_v30 }
0x31a9   : > { %19826 = vmatprep.mubr.msk.bf16.mxu0 %vm20868_vm1, %v25801_v40 }
0x325c   : > { %v24540_v55 = vpop.f32.mrf.mxu1 }
0x325e   : > { %v19798_v47 = vpop.f32.mrf.mxu1 }
0x3260   : > { %v24542_v6 = vpop.f32.mrf.mxu1  ;;  %v24544_v18 = vpop.f32.mrf.mxu0 }
0x3262   : > { %v19799_v56 = vpop.f32.mrf.mxu1  ;;  %v19804_v8 = vpop.f32.mrf.mxu0 }
0x3264   : > { %v24546_v58 = vpop.f32.mrf.mxu0  ;;  %v13476_v10 = vpop.f32.mrf.mxu1 }
0x3265   : > { %v13534_v36 = vmul.f32 0.35355338, %v13476_v10 }
0x3266   : > { %v19805_v44 = vpop.f32.mrf.mxu0  ;;  %v19810_v24 = vpop.f32.mrf.mxu1 }
0x3267   : > { %v13538_v17 = vsel %vm1114_vm3, %v13534_v36, -inf }
0x3268   : > { %v13527_v46 = vpop.f32.mrf.mxu0  ;;  %13539 = vmax.xlane.f32.xlu0 %v13538_v17  ;;  %v13479_v14 = vpop.f32.mrf.mxu1 }
0x3269   : > { %v13536_v13 = vmul.f32 0.35355338, %v13527_v46  ;;  %v13535_v63 = vmul.f32 0.35355338, %v13479_v14 }
0x326a   : > { %v19811_v42 = vpop.f32.mrf.mxu1  ;;  %v19816_v5 = vpop.f32.mrf.mxu0 }
0x326b   : > { %v13544_v51 = vsel %vm1114_vm3, %v13536_v13, -inf  ;;  %v13541_v53 = vsel %vm1118_vm4, %v13535_v63, -inf }
0x326c   : > { %v13530_v27 = vpop.f32.mrf.mxu0  ;;  %13545 = vmax.xlane.f32.xlu0 %v13544_v51  ;;  %13542 = vmax.xlane.f32.xlu1 %v13541_v53 }
0x326d   : > { %v13537_v57 = vmul.f32 0.35355338, %v13530_v27 }
0x326e   : > { %v19817_v19 = vpop.f32.mrf.mxu0 }
0x326f   : > { %v13547_v54 = vsel %vm1118_vm4, %v13537_v57, -inf }
0x3270   : > { %13548 = vmax.xlane.f32.xlu0 %v13547_v54 }
0x327d   : > { %13584 = vrot.lane.b32.xlu1 %v24432_v62, %s25794_s0 }
0x32f1   : > { %v13540_v11 = vpop.xlane.xlu0 %13539 }
0x32f2   : > { %v13550_v23 = vsub.f32 %v13534_v36, %v13540_v11 }
0x32f4   : > { %v13554_v34 = vmul.f32 1.442695, %v13550_v23 }
0x32f5   : > { %v13546_v16 = vpop.xlane.xlu0 %13545  ;;  %v13543_v30 = vpop.xlane.xlu1 %13542 }
0x32f6   : > { %20716 = vpow2.f32 %v13554_v34  ;;  %v13552_v47 = vsub.f32 %v13536_v13, %v13546_v16  ;;  %v13551_v56 = vsub.f32 %v13535_v63, %v13543_v30 }
0x32f8   : > { %v13558_v8 = vmul.f32 1.442695, %v13552_v47  ;;  %v13556_v10 = vmul.f32 1.442695, %v13551_v56 }
0x32f9   : > { %v13549_v44 = vpop.xlane.xlu0 %13548  ;;  %v13585_v24 = vpop.permute.xlu1 %13584 }
0x32fa   : > { %20718 = vpow2.f32 %v13558_v8  ;;  %v13553_v17 = vsub.f32 %v13537_v57, %v13549_v44  ;;  %v13590_v46 = vsel %vm1167_vm5, %v13585_v24, 0 }
0x32fb   : > { %20720 = vpow2.f32 %v13556_v10  ;;  %19819 = vmatpush3.bf16.msra.mxu1 %v13590_v46 }
0x32fc   : > { %v13560_v14 = vmul.f32 1.442695, %v13553_v17  ;;  %19830 = vmatprep.subr.bf16.mxu1 %v25801_v40 }
0x32fe   : > { %20722 = vpow2.f32 %v13560_v14 }
0x3303   : > { %v20717_v36 = vpop.eup %20716 }
0x3304   : > { %v13562_v42 = vsel %vm1114_vm3, %v20717_v36, 0.0 }
0x3305   : > { %13563 = vadd.xlane.f32.xlu1 %v13562_v42 }
0x3307   : > { %v20719_v13 = vpop.eup %20718 }
0x3308   : > { %v20721_v63 = vpop.eup %20720  ;;  %v13568_v5 = vsel %vm1114_vm3, %v20719_v13, 0.0 }
0x3309   : > { %13569 = vadd.xlane.f32.xlu1 %v13568_v5  ;;  %v13565_v51 = vsel %vm1118_vm4, %v20721_v63, 0.0 }
0x330a   : > { %13566 = vadd.xlane.f32.xlu0 %v13565_v51 }
0x330b   : > { %v20723_v53 = vpop.eup %20722 }
0x330c   : > { %v13571_v27 = vsel %vm1118_vm4, %v20723_v53, 0.0 }
0x330e   : > { %13572 = vadd.xlane.f32.xlu0 %v13571_v27 }
0x331a   : > { %13684 = vrot.lane.b32.xlu1 %v24432_v62, %s25795_s17 }
0x331e   : > { %13735 = vrot.lane.b32.xlu1 %v24434_v12, %s25795_s17  ;;  %s25823_s17 = sld [smem:[#allocation33_spill]] }
0x3322   : > { %13733 = vrot.lane.b32.xlu1 %v24434_v12, %s25796_s30 }
0x3324   : > { %13633 = vrot.lane.b32.xlu0 %v24434_v12, %s25794_s0  ;;  %s25820_s0 = sld [smem:[#allocation30_spill]] }
0x3328   : > { %13682 = vrot.lane.b32.xlu0 %v24432_v62, %s25796_s30 }
0x338e   : > { %v13564_v57 = vpop.xlane.xlu1 %13563 }
0x338f   : > { %20724 = vrcp.f32 %v13564_v57 }
0x3392   : > { %v13570_v54 = vpop.xlane.xlu1 %13569 }
0x3393   : > { %v13567_v19 = vpop.xlane.xlu0 %13566 }
0x3394   : > { %20726 = vrcp.f32 %v13567_v19 }
0x3395   : > { %20728 = vrcp.f32 %v13570_v54 }
0x3396   : > { %v13685_v47 = vpop.permute.xlu1 %13684 }
0x3397   : > { %v13573_v11 = vpop.xlane.xlu0 %13572  ;;  %v13690_v14 = vsel %vm997_vm2, %v13685_v47, 0 }
0x3398   : > { %20730 = vrcp.f32 %v13573_v11 }
0x339a   : > { %v13736_v42 = vpop.permute.xlu1 %13735 }
0x339b   : > { %v13634_v23 = vpop.permute.xlu0 %13633 }
0x339c   : > { %v13639_v34 = vsel %vm1167_vm5, %v13634_v23, 0  ;;  %v20725_v16 = vpop.eup %20724 }
0x339d   : > { %19825 = vmatpush3.bf16.msra.mxu0 %v13639_v34  ;;  %v13578_v56 = vmul.f32 %v20725_v16, %v20717_v36  ;;  %v13741_v36 = vsel %vm997_vm2, %v13736_v42, 0 }
0x339e   : > { %19836 = vmatprep.subr.bf16.mxu0 %v25801_v40 }
0x33a1   : > { %v20727_v30 = vpop.eup %20726 }
0x33a2   : > { %v13579_v8 = vmul.f32 %v20727_v30, %v20721_v63  ;;  %v20729_v10 = vpop.eup %20728  ;;  %v13734_v63 = vpop.permute.xlu1 %13733 }
0x33a3   : > { %v13580_v17 = vmul.f32 %v20729_v10, %v20719_v13  ;;  %v13683_v13 = vpop.permute.xlu0 %13682 }
0x33a4   : > { %v13582_v44 = vpack.c.bf16 %v13579_v8, %v13578_v56 }
0x33a5   : > { %v20731_v24 = vpop.eup %20730 }
0x33a6   : > { %v13581_v46 = vmul.f32 %v20731_v24, %v20723_v53  ;;  %19821 = vmatmul.mubr.msk.bf16.vlgmr.msra.gmra.mxu1 %vm1114_vm3, %v13582_v44 }
0x33a7   : > { %19831 = vmatpush3.bf16.xpose.msra.mxu1 %v13690_v14  ;;  %19832 = vmatprep.mubr.msk.bf16.mxu1 %vm20868_vm1, %v25801_v40 }
0x33a8   : > { %v13583_v5 = vpack.c.bf16 %v13581_v46, %v13580_v17  ;;  %19842 = vmatprep.subr.bf16.mxu1 %v25801_v40 }
0x33aa   : > { %19827 = vmatmul.mubr.msk.bf16.vlgmr.msra.gmra.mxu0 %vm1114_vm3, %v13583_v5 }
0x33ab   : > { %19837 = vmatpush3.bf16.xpose.msra.mxu0 %v13741_v36  ;;  %19838 = vmatprep.mubr.msk.bf16.mxu0 %vm20868_vm1, %v25801_v40 }
0x33ac   : > { %19848 = vmatprep.subr.bf16.mxu0 %v25801_v40 }
0x33ae   : > { %19833 = vmatmul.mubr.msk.bf16.vlgmr.msra.gmra.mxu1 %vm997_vm2, %v13683_v13 }
0x33af   : > { %19844 = vmatprep.mubr.msk.bf16.mxu1 %vm20868_vm1, %v25801_v40 }
0x33b2   : > { %19839 = vmatmul.mubr.msk.bf16.vlgmr.msra.gmra.mxu0 %vm997_vm2, %v13734_v63 }
0x33b3   : > { %19850 = vmatprep.mubr.msk.bf16.mxu0 %vm20868_vm1, %v25801_v40 }
0x3466   : > { %v13626_v51 = vpop.f32.mrf.mxu1 }
0x3468   : > { %v19822_v53 = vpop.f32.mrf.mxu1 }
0x346a   : > { %v13629_v27 = vpop.f32.mrf.mxu1  ;;  %v13675_v57 = vpop.f32.mrf.mxu0 }
0x346c   : > { %v19823_v19 = vpop.f32.mrf.mxu1  ;;  %v19828_v54 = vpop.f32.mrf.mxu0 }
0x346e   : > { %v13678_v11 = vpop.f32.mrf.mxu0  ;;  %v13726_v23 = vpop.f32.mrf.mxu1 }
0x346f   : > { %v13784_v34 = vmul.f32 0.35355338, %v13726_v23 }
0x3470   : > { %v19829_v16 = vpop.f32.mrf.mxu0  ;;  %v19834_v30 = vpop.f32.mrf.mxu1 }
0x3471   : > { %v13788_v47 = vsel %vm1114_vm3, %v13784_v34, -inf }
0x3472   : > { %v13777_v56 = vpop.f32.mrf.mxu0  ;;  %13789 = vmax.xlane.f32.xlu0 %v13788_v47  ;;  %v13729_v8 = vpop.f32.mrf.mxu1 }
0x3473   : > { %v13786_v10 = vmul.f32 0.35355338, %v13777_v56  ;;  %v13785_v44 = vmul.f32 0.35355338, %v13729_v8 }
0x3474   : > { %v19835_v24 = vpop.f32.mrf.mxu1  ;;  %v19840_v40 = vpop.f32.mrf.mxu0 }
0x3475   : > { %v13794_v17 = vsel %vm1114_vm3, %v13786_v10, -inf  ;;  %v13791_v46 = vsel %vm1118_vm4, %v13785_v44, -inf }
0x3476   : > { %v13780_v14 = vpop.f32.mrf.mxu0  ;;  %13795 = vmax.xlane.f32.xlu0 %v13794_v17  ;;  %13792 = vmax.xlane.f32.xlu1 %v13791_v46 }
0x3477   : > { %v13787_v42 = vmul.f32 0.35355338, %v13780_v14 }
0x3478   : > { %v19841_v5 = vpop.f32.mrf.mxu0 }
0x3479   : > { %v13797_v36 = vsel %vm1118_vm4, %v13787_v42, -inf }
0x347a   : > { %13798 = vmax.xlane.f32.xlu0 %v13797_v36 }
0x34fb   : > { %v13790_v13 = vpop.xlane.xlu0 %13789 }
0x34fc   : > { %v13800_v63 = vsub.f32 %v13784_v34, %v13790_v13 }
0x34fe   : > { %v13804_v53 = vmul.f32 1.442695, %v13800_v63 }
0x34ff   : > { %v13796_v19 = vpop.xlane.xlu0 %13795  ;;  %v13793_v54 = vpop.xlane.xlu1 %13792 }
0x3500   : > { %20732 = vpow2.f32 %v13804_v53  ;;  %v13802_v23 = vsub.f32 %v13786_v10, %v13796_v19  ;;  %v13801_v16 = vsub.f32 %v13785_v44, %v13793_v54 }
0x3502   : > { %v13808_v30 = vmul.f32 1.442695, %v13802_v23  ;;  %v13806_v47 = vmul.f32 1.442695, %v13801_v16  ;;  %v20332_v16 = vld [vmem:[%s25807_s4 + $0x38] sm:$0xff]  }
0x3503   : > { %v13799_v56 = vpop.xlane.xlu0 %13798 }
0x3504   : > { %20734 = vpow2.f32 %v13808_v30  ;;  %v13803_v8 = vsub.f32 %v13787_v42, %v13799_v56  ;;  %v20333_v30 = vld [vmem:[%s25807_s4 + $0x30] sm:$0xff]   ;;  %s25821_s4 = sld [smem:[#allocation31_spill]] }
0x3505   : > { %20736 = vpow2.f32 %v13806_v47 }
0x3506   : > { %v13810_v24 = vmul.f32 1.442695, %v13803_v8 }
0x3508   : > { %20738 = vpow2.f32 %v13810_v24 }
0x350d   : > { %v20733_v40 = vpop.eup %20732 }
0x350e   : > { %v13812_v17 = vsel %vm1114_vm3, %v20733_v40, 0.0 }
0x350f   : > { %13813 = vadd.xlane.f32.xlu1 %v13812_v17 }
0x3511   : > { %v20735_v46 = vpop.eup %20734 }
0x3512   : > { %v20737_v34 = vpop.eup %20736  ;;  %v13818_v14 = vsel %vm1114_vm3, %v20735_v46, 0.0 }
0x3513   : > { %13819 = vadd.xlane.f32.xlu1 %v13818_v14  ;;  %v13815_v10 = vsel %vm1118_vm4, %v20737_v34, 0.0 }
0x3514   : > { %13816 = vadd.xlane.f32.xlu0 %v13815_v10 }
0x3515   : > { %v20739_v44 = vpop.eup %20738 }
0x3516   : > { %v13821_v5 = vsel %vm1118_vm4, %v20739_v44, 0.0 }
0x3518   : > { %13822 = vadd.xlane.f32.xlu0 %v13821_v5 }
0x3524   : > { %13834 = vrot.lane.b32.xlu1 %v24432_v62, %s25797_s1 }
0x3528   : > { %13936 = vrot.lane.b32.xlu1 %v24540_v55, %s25798_s18 }
0x352c   : > { %13940 = vrot.lane.b32.xlu1 %v24544_v18, %s25798_s18 }
0x352e   : > { %13883 = vrot.lane.b32.xlu0 %v24434_v12, %s25797_s1 }
0x3530   : > { %13938 = vrot.lane.b32.xlu1 %v24542_v6, %s25798_s18 }
0x3532   : > { %13952 = vrot.lane.b32.xlu0 %v13626_v51, %s25799_s21 }
0x3534   : > { %13954 = vrot.lane.b32.xlu1 %v13629_v27, %s25799_s21 }
0x3536   : > { %13956 = vrot.lane.b32.xlu0 %v13675_v57, %s25799_s21 }
0x3538   : > { %13958 = vrot.lane.b32.xlu1 %v13678_v11, %s25799_s21  ;;  %s25829_s21 = sld [smem:[#allocation34_spill]] }
0x353a   : > { %13942 = vrot.lane.b32.xlu0 %v24546_v58, %s25798_s18 }
0x353e   : > { %s25830_s24 = smov %s25829_s21  ;;  %s25586_s20 = scalar_lea.hbm %s25829_s21, %s18356_s26 }
0x3598   : > { %v13814_v62 = vpop.xlane.xlu1 %13813 }
0x3599   : > { %20740 = vrcp.f32 %v13814_v62 }
0x359c   : > { %v13820_v55 = vpop.xlane.xlu1 %13819 }
0x359d   : > { %v13817_v18 = vpop.xlane.xlu0 %13816 }
0x359e   : > { %20742 = vrcp.f32 %v13817_v18 }
0x359f   : > { %20744 = vrcp.f32 %v13820_v55 }
0x35a0   : > { %v13835_v12 = vpop.permute.xlu1 %13834 }
0x35a1   : > { %v13823_v42 = vpop.xlane.xlu0 %13822  ;;  %v13840_v6 = vsel %vm1167_vm5, %v13835_v12, 0 }
0x35a2   : > { %20746 = vrcp.f32 %v13823_v42  ;;  %19843 = vmatpush3.bf16.msra.mxu1 %v13840_v6 }
0x35a3   : > { %19854 = vmatprep.subr.bf16.mxu1 %v20332_v16 }
0x35a4   : > { %v13937_v14 = vpop.permute.xlu1 %13936 }
0x35a5   : > { %v13884_v51 = vpop.permute.xlu0 %13883  ;;  %v13980_v6 = vsel %vm997_vm2, %v24492_v0, %v13937_v14 }
0x35a6   : > { %v13889_v27 = vsel %vm1167_vm5, %v13884_v51, 0  ;;  %v20741_v57 = vpop.eup %20740 }
0x35a7   : > { %19849 = vmatpush3.bf16.msra.mxu0 %v13889_v27  ;;  %v13828_v36 = vmul.f32 %v20741_v57, %v20733_v40 }
0x35a8   : > { %v13941_v10 = vpop.permute.xlu1 %13940 }
0x35a9   : > { %v13953_v5 = vpop.permute.xlu0 %13952  ;;  %v13982_v27 = vsel %vm997_vm2, %v24496_v45, %v13941_v10 }
0x35aa   : > { %v13984_v51 = vsel %vm2063_vm6, %v13980_v6, %v13953_v5 }
0x35ab   : > { %v20743_v11 = vpop.eup %20742 }
0x35ac   : > { %v13829_v58 = vmul.f32 %v20743_v11, %v20737_v34  ;;  %v20745_v13 = vpop.eup %20744 }
0x35ad   : > { %v13830_v19 = vmul.f32 %v20745_v13, %v20735_v46  ;;  %v13957_v55 = vpop.permute.xlu0 %13956 }
0x35ae   : > { %v13832_v63 = vpack.c.bf16 %v13829_v58, %v13828_v36  ;;  %v13986_v11 = vsel %vm2063_vm6, %v13982_v27, %v13957_v55 }
0x35af   : > { %v20747_v53 = vpop.eup %20746 }
0x35b0   : > { %v13831_v54 = vmul.f32 %v20747_v53, %v20739_v44  ;;  %19845 = vmatmul.mubr.msk.bf16.vlgmr.msra.gmra.mxu1 %vm1114_vm3, %v13832_v63  ;;  %v13939_v44 = vpop.permute.xlu1 %13938 }
0x35b1   : > { %19855 = vmatpush3.bf16.msra.mxu1 %v20332_v16  ;;  %v13943_v12 = vpop.permute.xlu0 %13942  ;;  %v13981_v63 = vsel %vm997_vm2, %v24494_v2, %v13939_v44  ;;  %v18160_v2 = vld [vmem:[%s25819_s23 + $0x3] ss:$0 sm:$0xff]  ;;  %s25831_s23 = sld [smem:[#allocation35_spill]] }
0x35b2   : > { %v13833_v23 = vpack.c.bf16 %v13831_v54, %v13830_v19  ;;  %19856 = vmatprep.subr.bf16.mxu1 %v20333_v30  ;;  %v13983_v53 = vsel %vm997_vm2, %v24498_v28, %v13943_v12 }
0x35b4   : > { %19851 = vmatmul.mubr.msk.bf16.vlgmr.msra.gmra.mxu0 %vm1114_vm3, %v13833_v23  ;;  %v13955_v62 = vpop.permute.xlu1 %13954 }
0x35b5   : > { %14589 = vmatprep.mubr.bf16.mxu0 %v25806_v48  ;;  %19857 = vmatpush3.bf16.msra.mxu1 %v20333_v30  ;;  %v13985_v0 = vsel %vm2063_vm6, %v13981_v63, %v13955_v62 }
0x35b7   : > { %s25593_s16 = scalar_lea.hbm %s25831_s23, %s18356_s26 }
0x35b8   : > { %v13959_v18 = vpop.permute.xlu1 %13958 }
0x35b9   : > { %v13987_v19 = vsel %vm2063_vm6, %v13983_v53, %v13959_v18 }
0x3670   : > { %v13876_v47 = vpop.f32.mrf.mxu1 }
0x3671   : > { %13968 = vrot.lane.b32.xlu1 %v13876_v47, %s25808_s28 }
0x3672   : > { %v19846_v56 = vpop.f32.mrf.mxu1 }
0x3674   : > { %v13879_v8 = vpop.f32.mrf.mxu1  ;;  %v13925_v24 = vpop.f32.mrf.mxu0 }
0x3675   : > { %13972 = vrot.lane.b32.xlu0 %v13925_v24, %s25808_s28 }
0x3676   : > { %v19847_v40 = vpop.f32.mrf.mxu1  ;;  %v19852_v17 = vpop.f32.mrf.mxu0 }
0x3678   : > { %v13928_v46 = vpop.f32.mrf.mxu0 }
0x3679   : > { %13974 = vrot.lane.b32.xlu1 %v13928_v46, %s25808_s28  ;;  %13970 = vrot.lane.b32.xlu0 %v13879_v8, %s25808_s28  ;;  %s25824_s28 = sld [smem:[#allocation9_spill]] }
0x367a   : > { %v19853_v34 = vpop.f32.mrf.mxu0 }
0x367f   : > { %s25565_s12 = sand.u32 1, %s25824_s28  }
0x3680   : > { %s16591_s6 = sshll.u32 %s25565_s12, 4  ;;  %s16447_s25 = scalar_lea.sflag [#allocation3], %s25565_s12 }
0x3681   : > { %s512_s5 = scalar_lea.vmem [#allocation2], %s16591_s6  ;;  %s519_s19 = scalar_lea.vmem [#allocation4], %s16591_s6 }
0x3682   : > { %s16465_s15 = sshll.u32 %s512_s5, 4  ;;  %s16481_s13 = sshll.u32 %s519_s19, 4  ;;  %s25588_s15 = int_to_ptr.vmem [resolvable:$true] %s16465_s15  ;;  %s25595_s13 = int_to_ptr.vmem [resolvable:$true] %s16481_s13 }
0x36e3   : > { %v13969_v42 = vpop.permute.xlu1 %13968 }
0x36e4   : > { %v13988_v57 = vsel %vm2068_vm7, %v13984_v51, %v13969_v42 }
0x36e5   : > { %v13996_v13 = vcombine.high %v13988_v57, %v13988_v57 }
0x36e7   : > { %v13973_v36 = vpop.permute.xlu0 %13972  ;;  %v13998_v47 = vcombine.low %v13988_v57, %v13996_v13 }
0x36e8   : > { %v13990_v58 = vsel %vm2068_vm7, %v13986_v11, %v13973_v36 }
0x36e9   : > { %v13997_v54 = vcombine.high %v13990_v58, %v13990_v58 }
0x36eb   : > { %v13975_v45 = vpop.permute.xlu1 %13974  ;;  %v13971_v23 = vpop.permute.xlu0 %13970 }
0x36ec   : > { %v13991_v16 = vsel %vm2068_vm7, %v13987_v19, %v13975_v45  ;;  %v13989_v30 = vsel %vm2068_vm7, %v13985_v0, %v13971_v23  ;;  %v12280_v45 = vcombine.high %v24416_v35, %v24416_v35 }
0x36ed   : > { %v14000_v56 = vcombine.low %v13997_v54, %v13991_v16  ;;  %v13999_v8 = vcombine.low %v13989_v30, %v13990_v58 }
0x36ef   : > { %v14005_v24 = vpack.c.bf16 %v14000_v56, %v14000_v56  ;;  %v14004_v40 = vpack.c.bf16 %v13999_v8, %v13998_v47  ;;  %v12281_v56 = vcombine.high %v24418_v1, %v24418_v1 }
0x36f1   : > { %19858 = vmatprep.mubr.msk.bf16.mxu1 %vm895_vm0, %v14004_v40 }
0x36f2   : > { %19859 = vmatmul.mubr.msk.bf16.vlgmr.msra.gmra.mxu1 %vm895_vm0, %v14005_v24 }
0x36f3   : > { %14640 = vmatprep.mubr.bf16.mxu1 %v25806_v48 }
0x37b2   : > { %v19860_v28 = vpop.f32.mrf.mxu1 }
0x37b3   : > { %v14073_v17 = vadd.f32 %v19860_v28, %v18160_v2 }
0x37b4   : > { %v14064_v46 = vpop.f32.mrf.mxu1 }
0x37b5   : > { %v14083_v34 = vcombine.high %v14073_v17, %v14073_v17  ;;  %v14065_v14 = vadd.f32 %v18160_v2, %v14064_v46  ;;  %v14091_v42 = vadd.f32 %v14073_v17, %v23373_v7  ;;  %v12282_v46 = vcombine.high %v24423_v59, %v24423_v59 }
0x37b6   : > { %v19861_v10 = vpop.f32.mrf.mxu1 }
0x37b7   : > { %v14081_v44 = vcombine.high %v14065_v14, %v14065_v14  ;;  %v14092_v62 = vadd.f32 %v14083_v34, %v23375_v9  ;;  %v14087_v55 = vadd.f32 %v14065_v14, %v23353_v3  ;;  %v24687_v14 = vadd.f32 %v12280_v45, %v23724_v32 }
0x37b8   : > { %v14067_v5 = vpop.f32.mrf.mxu1  ;;  %v24703_v32 = vadd.f32 %v24416_v35, %v23722_v39  ;;  %v24720_v35 = vadd.f32 %v24423_v59, %v23748_v26  ;;  %v17869_v26 = vld [vmem:[%s25674_s8 + $0x3c0] sm:$0xff]  ;;  %v17862_v59 = vld [vmem:[%s25674_s8 + $0x388] sm:$0xff] }
0x37b9   : > { %v14088_v18 = vadd.f32 %v14081_v44, %v23355_v41  ;;  %v14068_v12 = vadd.f32 %v18160_v2, %v14067_v5  ;;  %v14101_v36 = vcombine.low %v14091_v42, %v14092_v62 }
0x37bb   : > { %v14082_v6 = vcombine.high %v14068_v12, %v14068_v12  ;;  %v14099_v51 = vcombine.low %v14087_v55, %v14088_v18  ;;  %v14089_v27 = vadd.f32 %v14068_v12, %v23361_v38  ;;  %v14111_v3 = vsel %vm895_vm0, %v14101_v36, 0.0  ;;  %v17861_v36 = vld [vmem:[%s25674_s8 + $0x380] sm:$0xff] }
0x37bd   : > { %v14090_v57 = vadd.f32 %v14082_v6, %v23363_v15  ;;  %v14105_v11 = vsel %vm895_vm0, %v14099_v51, 0.0  ;;  %v24707_v6 = vadd.f32 %v24418_v1, %v23726_v22 }
0x37be   : > { %14106 = vadd.xlane.f32.xlu0 %v14105_v11 }
0x37bf   : > { %v14100_v58 = vcombine.low %v14089_v27, %v14090_v57 }
0x37c1   : > { %v14108_v9 = vsel %vm895_vm0, %v14100_v58, 0.0  ;;  %v18184_v58 = vcombine.high %v17861_v36, %v17869_v26 }
0x37c2   : > { %14109 = vadd.xlane.f32.xlu1 %v14108_v9  ;;  %14112 = vadd.xlane.f32.xlu0 %v14111_v3  ;;  %v17870_v9 = vld [vmem:[%s25674_s8 + $0x3c8] sm:$0xff]  ;;  %v18183_v3 = vcombine.low %v17861_v36, %v17869_v26 }
0x37c3   : > { %14569 = vmatprep.subr.bf16.mxu0 %v18184_v58 }
0x37c4   : > { %14570 = vmatpush1.bf16.msra.mxu0 %v18183_v3 }
0x3847   : > { %v14107_v41 = vpop.xlane.xlu0 %14106 }
0x3848   : > { %v14114_v13 = vmul.f32 0.03125, %v14107_v41  ;;  %v18185_v41 = vcombine.low %v17862_v59, %v17870_v9 }
0x384a   : > { %v14126_v7 = vrot.slane %v14114_v13, %v21296_v49  ;;  %v14133_v63 = vrot.slane %v14114_v13, %v21299_v50  ;;  %v18186_v13 = vcombine.high %v17862_v59, %v17870_v9 }
0x384b   : > { %v14110_v38 = vpop.xlane.xlu1 %14109  ;;  %v14113_v53 = vpop.xlane.xlu0 %14112 }
0x384c   : > { %v24660_v15 = vsub.f32 %v14087_v55, %v14126_v7  ;;  %v24662_v0 = vsub.f32 %v14088_v18, %v14133_v63  ;;  %v14115_v19 = vmul.f32 0.03125, %v14110_v38  ;;  %v14116_v54 = vmul.f32 0.03125, %v14113_v53  ;;  %14620 = vmatprep.subr.bf16.mxu1 %v18186_v13  ;;  %v17845_v7 = vld [vmem:[%s25674_s8 + $0x300] sm:$0xff]  ;;  %v17846_v38 = vld [vmem:[%s25674_s8 + $0x308] sm:$0xff] }
0x384d   : > { %v24699_v18 = vadd.f32 %v12281_v56, %v23728_v20  ;;  %v24714_v20 = vadd.f32 %v12282_v46, %v23750_v21  ;;  %v17853_v63 = vld [vmem:[%s25674_s8 + $0x340] sm:$0xff]  ;;  %14621 = vmatpush1.bf16.msra.mxu1 %v18185_v41 }
0x384e   : > { %v14140_v23 = vrot.slane %v14115_v19, %v21296_v49  ;;  %v14147_v16 = vrot.slane %v14115_v19, %v21299_v50  ;;  %v14154_v30 = vrot.slane %v14116_v54, %v21296_v49  ;;  %v14161_v47 = vrot.slane %v14116_v54, %v21299_v50  ;;  %v17854_v19 = vld [vmem:[%s25674_s8 + $0x348] sm:$0xff] }
0x384f   : > { %v14174_v8 = vmul.f32 %v24660_v15, %v24660_v15  ;;  %v14175_v24 = vmul.f32 %v24662_v0, %v24662_v0  ;;  %v12299_v39 = vcombine.low %v24707_v6, %v24699_v18  ;;  %v12300_v1 = vcombine.low %v24720_v35, %v24714_v20 }
0x3850   : > { %v24676_v40 = vsub.f32 %v14089_v27, %v14140_v23  ;;  %v24678_v2 = vsub.f32 %v14090_v57, %v14147_v16  ;;  %v24680_v28 = vsub.f32 %v14091_v42, %v14154_v30  ;;  %v24682_v17 = vsub.f32 %v14092_v62, %v14161_v47  ;;  %v24754_v16 = vld [vmem:[%s25674_s8 + $0x390] sm:$0xff]  ;;  %v24764_v47 = vld [vmem:[%s25674_s8 + $0x398] sm:$0xff] }
0x3851   : > { %v14186_v34 = vcombine.low %v14174_v8, %v14175_v24  ;;  %v12298_v57 = vcombine.low %v24703_v32, %v24687_v14  ;;  %v12307_v11 = vsel %vm895_vm0, %v12299_v39, 0.0  ;;  %v12310_v21 = vsel %vm895_vm0, %v12300_v1, 0.0  ;;  %v24759_v30 = vld [vmem:[%s25674_s8 + $0x3d0] sm:$0xff]  ;;  %v24771_v8 = vld [vmem:[%s25674_s8 + $0x3d8] sm:$0xff] }
0x3852   : > { %v14176_v10 = vmul.f32 %v24676_v40, %v24676_v40  ;;  %v14177_v44 = vmul.f32 %v24678_v2, %v24678_v2  ;;  %v14178_v5 = vmul.f32 %v24680_v28, %v24680_v28  ;;  %v14179_v62 = vmul.f32 %v24682_v17, %v24682_v17 }
0x3853   : > { %v14192_v55 = vsel %vm895_vm0, %v14186_v34, 0.0  ;;  %v12304_v22 = vsel %vm895_vm0, %v12298_v57, 0.0  ;;  %v18168_v53 = vcombine.high %v17845_v7, %v17853_v63  ;;  %v18167_v54 = vcombine.low %v17845_v7, %v17853_v63  ;;  %v18165_v57 = vld [vmem:[%s25820_s0 + $0x3] ss:$0 sm:$0xff]  ;;  %s20774_s0 = scalar_lea.vmem %s25588_s15, 256 }
0x3854   : > { %14193 = vadd.xlane.f32.xlu0 %v14192_v55  ;;  %v14187_v12 = vcombine.low %v14176_v10, %v14177_v44  ;;  %v14188_v42 = vcombine.low %v14178_v5, %v14179_v62  ;;  %v18169_v45 = vcombine.low %v17846_v38, %v17854_v19  ;;  %v18170_v23 = vcombine.high %v17846_v38, %v17854_v19  ;;  %p20775_p11 = scmp.ne.s32.totalorder %s25588_s15, %s20774_s0 }
0x3855   : > { %14571 = vmatprep.subr.bf16.mxu0 %v18168_v53  ;;  %v18188_v56 = vcombine.high %v24754_v16, %v24759_v30  ;;  %v18187_v24 = vcombine.low %v24754_v16, %v24759_v30  ;;  %v18189_v46 = vcombine.low %v24764_v47, %v24771_v8  ;;  %v18190_v34 = vcombine.high %v24764_v47, %v24771_v8  ;;  %v17849_v16 = vld [vmem:[%s25674_s8 + $0x320] sm:$0xff]  ;;  %v17850_v47 = vld [vmem:[%s25674_s8 + $0x328] sm:$0xff] }
0x3856   : > { %v14195_v51 = vsel %vm895_vm0, %v14187_v12, 0.0  ;;  %v14198_v27 = vsel %vm895_vm0, %v14188_v42, 0.0  ;;  %14622 = vmatprep.subr.bf16.mxu1 %v18170_v23  ;;  %14572 = vmatpush1.bf16.msra.mxu0 %v18167_v54  ;;  %v14273_v1 = vcombine.high %v18165_v57, %v18165_v57  ;;  %v17857_v30 = vld [vmem:[%s25674_s8 + $0x360] sm:$0xff]  ;;  %v17858_v8 = vld [vmem:[%s25674_s8 + $0x368] sm:$0xff]  ;;  %p20776_p12 = pnand %p20775_p11, %p21008_p5 }
0x3857   : > { %14196 = vadd.xlane.f32.xlu1 %v14195_v51  ;;  %14623 = vmatpush1.bf16.msra.mxu1 %v18169_v45 }
0x3858   : > { %14199 = vadd.xlane.f32.xlu0 %v14198_v27  ;;  %14671 = vmatprep.subr.bf16.mxu0 %v18188_v56  ;;  %p20777_p13 = pneg %p20776_p12 }
0x3859   : > { %14722 = vmatprep.subr.bf16.mxu1 %v18190_v34 }
0x385b   : > { %12305 = vadd.xlane.f32.xlu1 %v12304_v22  ;;  %v18166_v22 = vld [vmem:[%s25821_s4 + $0x3] ss:$0 sm:$0xff] }
0x385c   : > { %12308 = vadd.xlane.f32.xlu0 %v12307_v11  ;;  %v14287_v9 = vcombine.high %v18166_v22, %v18166_v22 }
0x385f   : > { %12311 = vadd.xlane.f32.xlu1 %v12310_v21 }
0x38dd   : > { %v14194_v10 = vpop.xlane.xlu0 %14193 }
0x38de   : > { %v14201_v44 = vmul.f32 0.03125, %v14194_v10 }
0x38e0   : > { %v14204_v5 = vadd.f32 1e-05, %v14201_v44  ;;  %v14197_v62 = vpop.xlane.xlu1 %14196 }
0x38e1   : > { %v14202_v55 = vmul.f32 0.03125, %v14197_v62  ;;  %v14200_v12 = vpop.xlane.xlu0 %14199  ;;  %v17848_v62 = vld [vmem:[%s25674_s8 + $0x318] sm:$0xff] }
0x38e2   : > { %20748 = vrsqrt.f32 %v14204_v5  ;;  %v14203_v42 = vmul.f32 0.03125, %v14200_v12 }
0x38e3   : > { %v14205_v51 = vadd.f32 1e-05, %v14202_v55  ;;  %v17856_v55 = vld [vmem:[%s25674_s8 + $0x358] sm:$0xff] }
0x38e4   : > { %v14206_v27 = vadd.f32 1e-05, %v14203_v42 }
0x38e5   : > { %20750 = vrsqrt.f32 %v14205_v51 }
0x38e6   : > { %20752 = vrsqrt.f32 %v14206_v27 }
0x38ef   : > { %v20749_v39 = vpop.eup %20748 }
0x38f0   : > { %v14219_v11 = vrot.slane %v20749_v39, %v21296_v49  ;;  %v14226_v21 = vrot.slane %v20749_v39, %v21299_v50  ;;  %v17865_v39 = vld [vmem:[%s25674_s8 + $0x3a0] sm:$0xff] }
0x38f2   : > { %v20751_v36 = vpop.eup %20750  ;;  %v14261_v26 = vmul.f32 %v14219_v11, %v24660_v15  ;;  %v14262_v59 = vmul.f32 %v14226_v21, %v24662_v0  ;;  %v17874_v11 = vld [vmem:[%s25674_s8 + $0x3e8] sm:$0xff] }
0x38f3   : > { %v20753_v58 = vpop.eup %20752  ;;  %v14233_v3 = vrot.slane %v20751_v36, %v21296_v49  ;;  %v14240_v41 = vrot.slane %v20751_v36, %v21299_v50 }
0x38f4   : > { %v14275_v13 = vmul.f32 %v18165_v57, %v14261_v26  ;;  %v14276_v7 = vmul.f32 %v14273_v1, %v14262_v59  ;;  %v14247_v63 = vrot.slane %v20753_v58, %v21296_v49  ;;  %v14254_v38 = vrot.slane %v20753_v58, %v21299_v50 }
0x38f5   : > { %v14263_v53 = vmul.f32 %v14233_v3, %v24676_v40  ;;  %v14264_v19 = vmul.f32 %v14240_v41, %v24678_v2  ;;  %v17847_v40 = vld [vmem:[%s25674_s8 + $0x310] sm:$0xff]  ;;  %v18173_v26 = vcombine.low %v17848_v62, %v17856_v55  ;;  %v18176_v3 = vcombine.high %v17849_v16, %v17857_v30 }
0x38f6   : > { %v14265_v15 = vmul.f32 %v14247_v63, %v24680_v28  ;;  %v14266_v0 = vmul.f32 %v14254_v38, %v24682_v17  ;;  %v24797_v54 = vadd.f32 %v18166_v22, %v14275_v13  ;;  %v24799_v45 = vadd.f32 %v14287_v9, %v14276_v7  ;;  %v17855_v17 = vld [vmem:[%s25674_s8 + $0x350] sm:$0xff]  ;;  %v17868_v63 = vld [vmem:[%s25674_s8 + $0x3b8] sm:$0xff] }
0x38f7   : > { %v14277_v23 = vmul.f32 %v18165_v57, %v14263_v53  ;;  %v14278_v56 = vmul.f32 %v14273_v1, %v14264_v19  ;;  %v18172_v27 = vcombine.high %v17847_v40, %v17855_v17  ;;  %v18171_v36 = vcombine.low %v17847_v40, %v17855_v17  ;;  %v17867_v13 = vld [vmem:[%s25674_s8 + $0x3b0] sm:$0xff]  ;;  %v17876_v38 = vld [vmem:[%s25674_s8 + $0x3f8] sm:$0xff] }
0x38f8   : > { %v14279_v44 = vmul.f32 %v18165_v57, %v14265_v15  ;;  %v14280_v5 = vmul.f32 %v14273_v1, %v14266_v0  ;;  %v14301_v2 = vcombine.low %v24797_v54, %v24799_v45  ;;  %v18174_v57 = vcombine.high %v17848_v62, %v17856_v55  ;;  %v17873_v1 = vld [vmem:[%s25674_s8 + $0x3e0] sm:$0xff]  ;;  %v17875_v7 = vld [vmem:[%s25674_s8 + $0x3f0] sm:$0xff] }
0x38f9   : > { %v24801_v34 = vadd.f32 %v18166_v22, %v14277_v23  ;;  %v24803_v10 = vadd.f32 %v14287_v9, %v14278_v56  ;;  %v18192_v59 = vcombine.high %v17865_v39, %v17873_v1  ;;  %v18178_v41 = vcombine.high %v17850_v47, %v17858_v8  ;;  %v17851_v23 = vld [vmem:[%s25674_s8 + $0x330] sm:$0xff] }
0x38fa   : > { %v24823_v42 = vadd.f32 %v18166_v22, %v14279_v44  ;;  %v24825_v51 = vadd.f32 %v14287_v9, %v14280_v5  ;;  %v17866_v22 = vld [vmem:[%s25674_s8 + $0x3a8] sm:$0xff]  ;;  %v18175_v53 = vcombine.low %v17849_v16, %v17857_v30  ;;  %v18177_v19 = vcombine.low %v17850_v47, %v17858_v8  ;;  %v17859_v56 = vld [vmem:[%s25674_s8 + $0x370] sm:$0xff]  ;;  %v17852_v44 = vld [vmem:[%s25674_s8 + $0x338] sm:$0xff] }
0x38fb   : > { %v14302_v28 = vcombine.low %v24801_v34, %v24803_v10  ;;  %v18194_v58 = vcombine.high %v17866_v22, %v17874_v11  ;;  %v18196_v15 = vcombine.high %v17867_v13, %v17875_v7  ;;  %v18198_v0 = vcombine.high %v17868_v63, %v17876_v38  ;;  %v17860_v5 = vld [vmem:[%s25674_s8 + $0x378] sm:$0xff]  ;;  %v20347_v16 = vld [vmem:[%s25676_s10 + $0xce0] sm:$0xff]  }
0x38fc   : > { %v14303_v21 = vcombine.low %v24823_v42, %v24825_v51  ;;  %v18195_v40 = vcombine.low %v17867_v13, %v17875_v7  ;;  %v18182_v17 = vcombine.high %v17852_v44, %v17860_v5  ;;  %v18179_v62 = vcombine.low %v17851_v23, %v17859_v56  ;;  %v20348_v30 = vld [vmem:[%s25676_s10 + $0xc20] sm:$0xff]   ;;  %v20350_v8 = vld [vmem:[%s25676_s10 + $0xc58] sm:$0xff]   ;;  %v20356_v13 = vld [vmem:[%s25676_s10 + $0xc10] sm:$0xff]  }
0x38fd   : > { %v24821_v12 = vpack.c.bf16 %v14302_v28, %v14301_v2  ;;  %v18197_v2 = vcombine.low %v17868_v63, %v17876_v38  ;;  %v18180_v28 = vcombine.high %v17851_v23, %v17859_v56  ;;  %v18181_v55 = vcombine.low %v17852_v44, %v17860_v5  ;;  %v20349_v47 = vld [vmem:[%s25676_s10 + $0xca0] sm:$0xff]   ;;  %v20357_v7 = vld [vmem:[%s25676_s10 + $0xc90] sm:$0xff]   ;;  %v20358_v63 = vld [vmem:[%s25676_s10 + $0xc48] sm:$0xff]  }
0x38fe   : > { %v24853_v9 = vpack.c.bf16 %v14303_v21, %v14303_v21  ;;  %v20340_v21 = vld [vmem:[%s25676_s10 + $0xc30] sm:$0xff]   ;;  %v20359_v38 = vld [vmem:[%s25676_s10 + $0xcc8] sm:$0xff]   ;;  %v20364_v23 = vld [vmem:[%s25676_s10 + $0xc00] sm:$0xff]  }
0x38ff   : > { %18199 = vmatmul.mubr.msk.bf16.vlgmr.msra.gmra.mxu0 %vm895_vm0, %v24821_v12  ;;  %18201 = vmatmul.mubr.msk.bf16.vlgmr.msra.gmra.mxu1 %vm895_vm0, %v24821_v12  ;;  %v20365_v56 = vld [vmem:[%s25676_s10 + $0xc80] sm:$0xff]   ;;  %v20366_v44 = vld [vmem:[%s25676_s10 + $0xd78] sm:$0xff]  }
0x3900   : > { %14599 = vmatprep.mubr.bf16.mxu0 %v25806_v48  ;;  %14650 = vmatprep.mubr.bf16.mxu1 %v25806_v48  ;;  %v20367_v5 = vld [vmem:[%s25676_s10 + $0xdf8] sm:$0xff]  }
0x3901   : > { %14672 = vmatpush1.bf16.msra.mxu0 %v18187_v24  ;;  %14723 = vmatpush1.bf16.msra.mxu1 %v18189_v46  ;;  %v18191_v24 = vcombine.low %v17865_v39, %v17873_v1  ;;  %v18193_v46 = vcombine.low %v17866_v22, %v17874_v11  ;;  %v20336_v39 = vld [vmem:[%s25676_s10 + $0xc38] sm:$0xff]   ;;  %v20338_v22 = vld [vmem:[%s25676_s10 + $0xc70] sm:$0xff]  }
0x3902   : > { %14673 = vmatprep.subr.bf16.mxu0 %v18172_v27  ;;  %14724 = vmatprep.subr.bf16.mxu1 %v18174_v57  ;;  %v20334_v27 = vld [vmem:[%s25676_s10 + $0xc78] sm:$0xff]   ;;  %v20339_v11 = vld [vmem:[%s25676_s10 + $0xcf0] sm:$0xff]  }
0x3903   : > { %v20335_v57 = vld [vmem:[%s25676_s10 + $0xcf8] sm:$0xff]  }
0x3904   : > { %v20337_v1 = vld [vmem:[%s25676_s10 + $0xcb8] sm:$0xff]  }
0x3905   : > { %14674 = vmatpush1.bf16.msra.mxu0 %v18171_v36  ;;  %14725 = vmatpush1.bf16.msra.mxu1 %v18173_v26  ;;  %v20341_v36 = vld [vmem:[%s25676_s10 + $0xcb0] sm:$0xff]   ;;  %v20344_v26 = vld [vmem:[%s25676_s10 + $0xc28] sm:$0xff]  }
0x3906   : > { %14773 = vmatprep.subr.bf16.mxu0 %v18192_v59  ;;  %14824 = vmatprep.subr.bf16.mxu1 %v18194_v58  ;;  %v20345_v59 = vld [vmem:[%s25676_s10 + $0xca8] sm:$0xff]   ;;  %v20346_v58 = vld [vmem:[%s25676_s10 + $0xc60] sm:$0xff]  }
0x3907   : > { %18200 = vmatmul.mubr.msk.bf16.gmra.mxu0 %vm895_vm0, %v24853_v9  ;;  %18202 = vmatmul.mubr.msk.bf16.gmra.mxu1 %vm895_vm0, %v24853_v9 }
0x3908   : > { %14691 = vmatprep.mubr.bf16.mxu0 %v25806_v48  ;;  %14742 = vmatprep.mubr.bf16.mxu1 %v25806_v48 }
0x390f   : > { %18203 = vmatmul.mubr.msk.bf16.vlgmr.msra.gmra.mxu0 %vm895_vm0, %v24821_v12  ;;  %18205 = vmatmul.mubr.msk.bf16.vlgmr.msra.gmra.mxu1 %vm895_vm0, %v24821_v12 }
0x3910   : > { %14701 = vmatprep.mubr.bf16.mxu0 %v25806_v48  ;;  %14752 = vmatprep.mubr.bf16.mxu1 %v25806_v48 }
0x3911   : > { %14774 = vmatpush1.bf16.msra.mxu0 %v18191_v24  ;;  %14825 = vmatpush1.bf16.msra.mxu1 %v18193_v46  ;;  %v20352_v24 = vld [vmem:[%s25676_s10 + $0xc18] sm:$0xff]  }
0x3912   : > { %14775 = vmatprep.subr.bf16.mxu0 %v18176_v3  ;;  %14826 = vmatprep.subr.bf16.mxu1 %v18178_v41  ;;  %v20353_v46 = vld [vmem:[%s25676_s10 + $0xc98] sm:$0xff]   ;;  %v20354_v3 = vld [vmem:[%s25676_s10 + $0xc50] sm:$0xff]  }
0x3913   : > { %v20355_v41 = vld [vmem:[%s25676_s10 + $0xcd0] sm:$0xff]  }
0x3915   : > { %14776 = vmatpush1.bf16.msra.mxu0 %v18175_v53  ;;  %14827 = vmatpush1.bf16.msra.mxu1 %v18177_v19  ;;  %v20360_v53 = vld [vmem:[%s25676_s10 + $0xc08] sm:$0xff]  }
0x3916   : > { %14875 = vmatprep.subr.bf16.mxu0 %v18196_v15  ;;  %14926 = vmatprep.subr.bf16.mxu1 %v18198_v0  ;;  %v20361_v19 = vld [vmem:[%s25676_s10 + $0xc88] sm:$0xff]   ;;  %v20362_v15 = vld [vmem:[%s25676_s10 + $0xc40] sm:$0xff]  }
0x3917   : > { %18204 = vmatmul.mubr.msk.bf16.gmra.mxu0 %vm895_vm0, %v24853_v9  ;;  %18206 = vmatmul.mubr.msk.bf16.gmra.mxu1 %vm895_vm0, %v24853_v9  ;;  %v20363_v0 = vld [vmem:[%s25676_s10 + $0xcc0] sm:$0xff]  }
0x3918   : > { %14793 = vmatprep.mubr.bf16.mxu0 %v25806_v48  ;;  %14844 = vmatprep.mubr.bf16.mxu1 %v25806_v48 }
0x391f   : > { %18207 = vmatmul.mubr.msk.bf16.vlgmr.msra.gmra.mxu0 %vm895_vm0, %v24821_v12  ;;  %18209 = vmatmul.mubr.msk.bf16.vlgmr.msra.gmra.mxu1 %vm895_vm0, %v24821_v12 }
0x3920   : > { %14803 = vmatprep.mubr.bf16.mxu0 %v25806_v48  ;;  %14854 = vmatprep.mubr.bf16.mxu1 %v25806_v48 }
0x3921   : > { %14876 = vmatpush1.bf16.msra.mxu0 %v18195_v40  ;;  %14927 = vmatpush1.bf16.msra.mxu1 %v18197_v2  ;;  %v25036_v40 = vld [vmem:[%s25675_s9 + $0x30] sm:$0xff] }
0x3922   : > { %14877 = vmatprep.subr.bf16.mxu0 %v18180_v28  ;;  %14928 = vmatprep.subr.bf16.mxu1 %v18182_v17  ;;  %v14318_v17 = vrot.slane %v25036_v40, %v21643_v60 }
0x3925   : > { %14878 = vmatpush1.bf16.msra.mxu0 %v18179_v62  ;;  %14929 = vmatpush1.bf16.msra.mxu1 %v18181_v55  ;;  %v14326_v62 = vrot.slane %v25036_v40, %v25812_v31  ;;  %v14314_v55 = vrot.slane %v25036_v40, %v25813_v25 }
0x3926   : > { %19190 = vmatprep.subr.bf16.mxu0 %v20334_v27  ;;  %19218 = vmatprep.subr.bf16.mxu1 %v20335_v57  ;;  %v14322_v27 = vrot.slane %v25036_v40, %v25814_v43 }
0x3927   : > { %18208 = vmatmul.mubr.msk.bf16.gmra.mxu0 %vm895_vm0, %v24853_v9  ;;  %18210 = vmatmul.mubr.msk.bf16.gmra.mxu1 %vm895_vm0, %v24853_v9 }
0x3928   : > { %14895 = vmatprep.mubr.bf16.mxu0 %v25806_v48  ;;  %14946 = vmatprep.mubr.bf16.mxu1 %v25806_v48 }
0x392f   : > { %18211 = vmatmul.mubr.msk.bf16.vlgmr.msra.gmra.mxu0 %vm895_vm0, %v24821_v12  ;;  %18213 = vmatmul.mubr.msk.bf16.vlgmr.msra.gmra.mxu1 %vm895_vm0, %v24821_v12  ;;  %v20342_v12 = vld [vmem:[%s25676_s10 + $0xc68] sm:$0xff]  }
0x3930   : > { %14905 = vmatprep.mubr.bf16.mxu0 %v25806_v48  ;;  %14956 = vmatprep.mubr.bf16.mxu1 %v25806_v48  ;;  %v20343_v48 = vld [vmem:[%s25676_s10 + $0xce8] sm:$0xff]  }
0x3931   : > { %19191 = vmatpush3.bf16.msra.mxu0 %v20336_v39  ;;  %19219 = vmatpush3.bf16.msra.mxu1 %v20337_v1 }
0x3932   : > { %19192 = vmatprep.subr.bf16.mxu0 %v20338_v22  ;;  %19220 = vmatprep.subr.bf16.mxu1 %v20339_v11 }
0x3935   : > { %19193 = vmatpush3.bf16.msra.mxu0 %v20340_v21  ;;  %19221 = vmatpush3.bf16.msra.mxu1 %v20341_v36 }
0x3936   : > { %19194 = vmatprep.subr.bf16.mxu0 %v20342_v12  ;;  %19222 = vmatprep.subr.bf16.mxu1 %v20343_v48 }
0x3937   : > { %18212 = vmatmul.mubr.msk.bf16.gmra.mxu0 %vm895_vm0, %v24853_v9  ;;  %18214 = vmatmul.mubr.msk.bf16.gmra.mxu1 %vm895_vm0, %v24853_v9  ;;  %v20351_v9 = vld [vmem:[%s25676_s10 + $0xcd8] sm:$0xff]  }
0x3939   : > { %19195 = vmatpush3.bf16.msra.mxu0 %v20344_v26  ;;  %19223 = vmatpush3.bf16.msra.mxu1 %v20345_v59 }
0x393a   : > { %19196 = vmatprep.subr.bf16.mxu0 %v20346_v58  ;;  %19224 = vmatprep.subr.bf16.mxu1 %v20347_v16 }
0x393d   : > { %19197 = vmatpush3.bf16.msra.mxu0 %v20348_v30  ;;  %19225 = vmatpush3.bf16.msra.mxu1 %v20349_v47 }
0x393e   : > { %19198 = vmatprep.subr.bf16.mxu0 %v20350_v8  ;;  %19226 = vmatprep.subr.bf16.mxu1 %v20351_v9 }
0x3941   : > { %19199 = vmatpush3.bf16.msra.mxu0 %v20352_v24  ;;  %19227 = vmatpush3.bf16.msra.mxu1 %v20353_v46 }
0x3942   : > { %19200 = vmatprep.subr.bf16.mxu0 %v20354_v3  ;;  %19228 = vmatprep.subr.bf16.mxu1 %v20355_v41 }
0x3945   : > { %19201 = vmatpush3.bf16.msra.mxu0 %v20356_v13  ;;  %19229 = vmatpush3.bf16.msra.mxu1 %v20357_v7 }
0x3946   : > { %19202 = vmatprep.subr.bf16.mxu0 %v20358_v63  ;;  %19230 = vmatprep.subr.bf16.mxu1 %v20359_v38 }
0x3949   : > { %19203 = vmatpush3.bf16.msra.mxu0 %v20360_v53  ;;  %19231 = vmatpush3.bf16.msra.mxu1 %v20361_v19 }
0x394a   : > { %19204 = vmatprep.subr.bf16.mxu0 %v20362_v15  ;;  %19232 = vmatprep.subr.bf16.mxu1 %v20363_v0 }
0x394d   : > { %19205 = vmatpush3.bf16.msra.mxu0 %v20364_v23  ;;  %19233 = vmatpush3.bf16.msra.mxu1 %v20365_v56  ;;  %v20368_v56 = vld [vmem:[%s25676_s10 + $0xd38] sm:$0xff]  }
0x394e   : > { %19246 = vmatprep.subr.bf16.mxu0 %v20366_v44  ;;  %19274 = vmatprep.subr.bf16.mxu1 %v20367_v5  ;;  %v20369_v44 = vld [vmem:[%s25676_s10 + $0xdb8] sm:$0xff]  }
0x39bf   : > { %v14591_v2 = vpop.f32.mrf.mxu0  ;;  %v14642_v28 = vpop.f32.mrf.mxu1 }
0x39c0   : > { %v14592_v48 = vadd.f32 %v14591_v2, %v14314_v55  ;;  %v14643_v26 = vadd.f32 %v14642_v28, %v14322_v27 }
0x39c1   : > { %v14593_v57 = vpop.f32.mrf.mxu0  ;;  %v14644_v39 = vpop.f32.mrf.mxu1 }
0x39c2   : > { %v14594_v11 = vadd.f32 %v14593_v57, %v14318_v17  ;;  %v14645_v21 = vadd.f32 %v14644_v39, %v14326_v62  ;;  %v14965_v7 = vmax.f32 %v14592_v48, 0.0  ;;  %v14967_v63 = vmax.f32 %v14643_v26, 0.0  ;;  %v20373_v48 = vld [vmem:[%s25676_s10 + $0xdb0] sm:$0xff]  }
0x39c3   : > { %v14595_v1 = vpop.f32.mrf.mxu0  ;;  %v14646_v22 = vpop.f32.mrf.mxu1 }
0x39c4   : > { %v14596_v36 = vadd.f32 %v14595_v1, %v14314_v55  ;;  %v14647_v12 = vadd.f32 %v14646_v22, %v14322_v27  ;;  %v14966_v46 = vmax.f32 %v14594_v11, 0.0  ;;  %v14968_v3 = vmax.f32 %v14645_v21, 0.0  ;;  %v20370_v22 = vld [vmem:[%s25676_s10 + $0xd70] sm:$0xff]  }
0x39c5   : > { %v14597_v59 = vpop.f32.mrf.mxu0  ;;  %v14648_v58 = vpop.f32.mrf.mxu1 }
0x39c6   : > { %v14598_v16 = vadd.f32 %v14597_v59, %v14318_v17  ;;  %v14649_v30 = vadd.f32 %v14648_v58, %v14326_v62  ;;  %v14981_v47 = vmax.f32 %v14596_v36, 0.0  ;;  %v14983_v8 = vmax.f32 %v14647_v12, 0.0  ;;  %v20372_v12 = vld [vmem:[%s25676_s10 + $0xd30] sm:$0xff]  }
0x39c7   : > { %v14601_v9 = vpop.f32.mrf.mxu0  ;;  %v14652_v24 = vpop.f32.mrf.mxu1 }
0x39c8   : > { %v14982_v41 = vmax.f32 %v14598_v16, 0.0  ;;  %v14984_v13 = vmax.f32 %v14649_v30, 0.0  ;;  %v15013_v5 = vpack.c.bf16 %v14981_v47, %v14965_v7  ;;  %v15015_v2 = vpack.c.bf16 %v14983_v8, %v14967_v63  ;;  %v20374_v30 = vld [vmem:[%s25676_s10 + $0xd68] sm:$0xff]  }
0x39c9   : > { %v14603_v38 = vpop.f32.mrf.mxu0  ;;  %v14654_v53 = vpop.f32.mrf.mxu1  ;;  %v14602_v28 = vadd.f32 %v14601_v9, %v14314_v55  ;;  %v14653_v57 = vadd.f32 %v14652_v24, %v14322_v27  ;;  %v20375_v47 = vld [vmem:[%s25676_s10 + $0xde8] sm:$0xff]   ;;  %v25076_v8 = vrot.slane %v25036_v40, %v25815_v61  ;;  %v25080_v9 = vrot.slane %v25036_v40, %v25816_v33 }
0x39ca   : > { %v15014_v19 = vpack.c.bf16 %v14982_v41, %v14966_v46  ;;  %v15016_v15 = vpack.c.bf16 %v14984_v13, %v14968_v3  ;;  %v14604_v0 = vadd.f32 %v14603_v38, %v14318_v17  ;;  %v14655_v23 = vadd.f32 %v14654_v53, %v14326_v62  ;;  %v20371_v17 = vld [vmem:[%s25676_s10 + $0xdf0] sm:$0xff]   ;;  %v20376_v3 = vld [vmem:[%s25676_s10 + $0xd28] sm:$0xff]   ;;  %v20378_v53 = vld [vmem:[%s25676_s10 + $0xd60] sm:$0xff]  }
0x39cb   : > { %v14605_v39 = vpop.f32.mrf.mxu0  ;;  %v14656_v1 = vpop.f32.mrf.mxu1  ;;  %v14997_v26 = vmax.f32 %v14602_v28, 0.0  ;;  %v14999_v59 = vmax.f32 %v14653_v57, 0.0  ;;  %v20377_v41 = vld [vmem:[%s25676_s10 + $0xda8] sm:$0xff]  }
0x39cc   : > { %v14998_v62 = vmax.f32 %v14604_v0, 0.0  ;;  %v15000_v11 = vmax.f32 %v14655_v23, 0.0  ;;  %15851 = vmatprep.mubr.bf16.mxu0 %v15014_v19  ;;  %15899 = vmatprep.mubr.bf16.mxu1 %v15016_v15  ;;  %v20379_v19 = vld [vmem:[%s25676_s10 + $0xde0] sm:$0xff]   ;;  %v20382_v1 = vld [vmem:[%s25676_s10 + $0xd58] sm:$0xff]  }
0x39cd   : > { %v14606_v21 = vpop.f32.mrf.mxu0  ;;  %v14657_v36 = vpop.f32.mrf.mxu1  ;;  %15852 = vmatmul.mubr.bf16.vlgmr.msra.gmra.mxu0 %v15013_v5  ;;  %15900 = vmatmul.mubr.bf16.vlgmr.msra.gmra.mxu1 %v15015_v2  ;;  %v15029_v13 = vpack.c.bf16 %v14997_v26, %v14997_v26  ;;  %v15031_v7 = vpack.c.bf16 %v14999_v59, %v14999_v59  ;;  %v20380_v2 = vld [vmem:[%s25676_s10 + $0xd20] sm:$0xff]  }
0x39ce   : > { %v15030_v55 = vpack.c.bf16 %v14998_v62, %v14998_v62  ;;  %v15032_v27 = vpack.c.bf16 %v15000_v11, %v15000_v11  ;;  %19247 = vmatpush3.bf16.msra.mxu0 %v20368_v56  ;;  %19275 = vmatpush3.bf16.msra.mxu1 %v20369_v44  ;;  %v20381_v39 = vld [vmem:[%s25676_s10 + $0xda0] sm:$0xff]   ;;  %v20383_v21 = vld [vmem:[%s25676_s10 + $0xdd8] sm:$0xff]  }
0x39cf   : > { %v25064_v58 = vpop.f32.mrf.mxu0  ;;  %v25066_v16 = vpop.f32.mrf.mxu1  ;;  %19248 = vmatprep.subr.bf16.mxu0 %v20370_v22  ;;  %19276 = vmatprep.subr.bf16.mxu1 %v20371_v17 }
0x39d0   : > { %15859 = vmatprep.mubr.bf16.mxu0 %v15030_v55  ;;  %15907 = vmatprep.mubr.bf16.mxu1 %v15032_v27 }
0x39d1   : > { %v14695_v24 = vpop.f32.mrf.mxu0  ;;  %v14746_v46 = vpop.f32.mrf.mxu1 }
0x39d2   : > { %19249 = vmatpush3.bf16.msra.mxu0 %v20372_v12  ;;  %19277 = vmatpush3.bf16.msra.mxu1 %v20373_v48  ;;  %v14696_v15 = vadd.f32 %v14695_v24, %v25076_v8  ;;  %v14747_v0 = vadd.f32 %v14746_v46, %v25080_v9  ;;  %v20384_v48 = vld [vmem:[%s25676_s10 + $0xd18] sm:$0xff]   ;;  %v20387_v24 = vld [vmem:[%s25676_s10 + $0xdd0] sm:$0xff]  }
0x39d3   : > { %v14697_v63 = vpop.f32.mrf.mxu0  ;;  %v25088_v38 = vpop.f32.mrf.mxu1  ;;  %19250 = vmatprep.subr.bf16.mxu0 %v20374_v30  ;;  %19278 = vmatprep.subr.bf16.mxu1 %v20375_v47  ;;  %v20385_v30 = vld [vmem:[%s25676_s10 + $0xd98] sm:$0xff]   ;;  %v20386_v47 = vld [vmem:[%s25676_s10 + $0xd50] sm:$0xff]  }
0x39d4   : > { %v14970_v22 = vmax.f32 %v14696_v15, 0.0  ;;  %v14972_v17 = vmax.f32 %v14747_v0, 0.0  ;;  %v20391_v15 = vld [vmem:[%s25676_s10 + $0xdc8] sm:$0xff]   ;;  %v14330_v0 = vrot.slane %v25036_v40, %v25817_v29 }
0x39d5   : > { %v14699_v23 = vpop.f32.mrf.mxu0  ;;  %v14750_v56 = vpop.f32.mrf.mxu1  ;;  %15860 = vmatmul.mubr.bf16.gmra.mxu0 %v15029_v13  ;;  %15908 = vmatmul.mubr.bf16.gmra.mxu1 %v15031_v7 }
0x39d6   : > { %v14700_v44 = vadd.f32 %v14699_v23, %v25076_v8  ;;  %v14751_v5 = vadd.f32 %v14750_v56, %v25080_v9  ;;  %19251 = vmatpush3.bf16.msra.mxu0 %v20376_v3  ;;  %19279 = vmatpush3.bf16.msra.mxu1 %v20377_v41  ;;  %v20388_v41 = vld [vmem:[%s25676_s10 + $0xd10] sm:$0xff]  }
0x39d7   : > { %v25103_v28 = vpop.f32.mrf.mxu0  ;;  %v25105_v57 = vpop.f32.mrf.mxu1  ;;  %19252 = vmatprep.subr.bf16.mxu0 %v20378_v53  ;;  %19280 = vmatprep.subr.bf16.mxu1 %v20379_v19  ;;  %v20389_v53 = vld [vmem:[%s25676_s10 + $0xd90] sm:$0xff]   ;;  %v20390_v19 = vld [vmem:[%s25676_s10 + $0xd48] sm:$0xff]  }
0x39d8   : > { %v14986_v62 = vmax.f32 %v14700_v44, 0.0  ;;  %v14988_v11 = vmax.f32 %v14751_v5, 0.0  ;;  %v14338_v44 = vrot.slane %v25036_v40, %v25818_v52  ;;  %v20392_v5 = vld [vmem:[%s25676_s10 + $0xd08] sm:$0xff]   ;;  %v20394_v40 = vld [vmem:[%s25676_s10 + $0xd40] sm:$0xff]  }
0x39d9   : > { %v14705_v36 = vpop.f32.mrf.mxu0  ;;  %v14756_v55 = vpop.f32.mrf.mxu1 }
0x39da   : > { %v15018_v27 = vpack.c.bf16 %v14986_v62, %v14970_v22  ;;  %v15020_v12 = vpack.c.bf16 %v14988_v11, %v14972_v17  ;;  %19253 = vmatpush3.bf16.msra.mxu0 %v20380_v2  ;;  %19281 = vmatpush3.bf16.msra.mxu1 %v20381_v39  ;;  %v14698_v2 = vadd.f32 %v14697_v63, %v14330_v0  ;;  %v20393_v22 = vld [vmem:[%s25676_s10 + $0xd88] sm:$0xff]   ;;  %v20395_v63 = vld [vmem:[%s25676_s10 + $0xdc0] sm:$0xff]  }
0x39db   : > { %v14707_v26 = vpop.f32.mrf.mxu0  ;;  %v14758_v59 = vpop.f32.mrf.mxu1  ;;  %19254 = vmatprep.subr.bf16.mxu0 %v20382_v1  ;;  %19282 = vmatprep.subr.bf16.mxu1 %v20383_v21  ;;  %v14749_v17 = vadd.f32 %v25088_v38, %v14338_v44  ;;  %v14706_v62 = vadd.f32 %v14705_v36, %v25076_v8  ;;  %v14694_v11 = vadd.f32 %v25064_v58, %v14330_v0  ;;  %v20396_v38 = vld [vmem:[%s25676_s10 + $0xd00] sm:$0xff]  }
0x39dc   : > { %15947 = vmatprep.mubr.bf16.mxu0 %v15018_v27  ;;  %15995 = vmatprep.mubr.bf16.mxu1 %v15020_v12  ;;  %v14757_v21 = vadd.f32 %v14756_v55, %v25080_v9  ;;  %v14985_v26 = vmax.f32 %v14698_v2, 0.0  ;;  %v20397_v58 = vld [vmem:[%s25676_s10 + $0xd80] sm:$0xff]   ;;  %v20399_v59 = vld [vmem:[%s25676_s10 + $0xef8] sm:$0xff]  }
0x39dd   : > { %v14708_v46 = vpop.f32.mrf.mxu0  ;;  %v14759_v3 = vpop.f32.mrf.mxu1  ;;  %v14987_v9 = vmax.f32 %v14749_v17, 0.0  ;;  %v15002_v55 = vmax.f32 %v14706_v62, 0.0 }
0x39de   : > { %19255 = vmatpush3.bf16.msra.mxu0 %v20384_v48  ;;  %19283 = vmatpush3.bf16.msra.mxu1 %v20385_v30  ;;  %v14745_v48 = vadd.f32 %v25066_v16, %v14338_v44  ;;  %v20398_v16 = vld [vmem:[%s25676_s10 + $0xe78] sm:$0xff]   ;;  %v14969_v30 = vmax.f32 %v14694_v11, 0.0 }
0x39df   : > { %v25131_v13 = vpop.f32.mrf.mxu0  ;;  %v25133_v7 = vpop.f32.mrf.mxu1  ;;  %19256 = vmatprep.subr.bf16.mxu0 %v20386_v47  ;;  %19284 = vmatprep.subr.bf16.mxu1 %v20387_v24  ;;  %v15004_v47 = vmax.f32 %v14757_v21, 0.0  ;;  %v25192_v24 = vld [vmem:[%s25675_s9 + $0x38] sm:$0xff]  ;;  %v15034_v62 = vpack.c.bf16 %v15002_v55, %v15002_v55 }
0x39e1   : > { %v25146_v23 = vpop.f32.mrf.mxu0  ;;  %v25148_v56 = vpop.f32.mrf.mxu1 }
0x39e2   : > { %19257 = vmatpush3.bf16.msra.mxu0 %v20388_v41  ;;  %19285 = vmatpush3.bf16.msra.mxu1 %v20389_v53  ;;  %v14971_v41 = vmax.f32 %v14745_v48, 0.0  ;;  %v25200_v53 = vrot.slane %v25192_v24, %v21643_v60  ;;  %v14755_v60 = vadd.f32 %v25105_v57, %v14338_v44  ;;  %v20403_v57 = vld [vmem:[%s25676_s10 + $0xef0] sm:$0xff]  }
0x39e3   : > { %v25155_v39 = vpop.f32.mrf.mxu0  ;;  %v25157_v1 = vpop.f32.mrf.mxu1  ;;  %19258 = vmatprep.subr.bf16.mxu0 %v20390_v19  ;;  %19286 = vmatprep.subr.bf16.mxu1 %v20391_v15  ;;  %v15017_v19 = vpack.c.bf16 %v14985_v26, %v14969_v30  ;;  %v14704_v15 = vadd.f32 %v25103_v28, %v14330_v0  ;;  %v20402_v28 = vld [vmem:[%s25676_s10 + $0xe70] sm:$0xff]   ;;  %v15036_v0 = vpack.c.bf16 %v15004_v47, %v15004_v47  ;;  %v20407_v47 = vld [vmem:[%s25676_s10 + $0xee8] sm:$0xff]  }
0x39e4   : > { %v15019_v17 = vpack.c.bf16 %v14987_v9, %v14971_v41  ;;  %v14798_v44 = vadd.f32 %v25146_v23, %v25200_v53  ;;  %v20405_v23 = vld [vmem:[%s25676_s10 + $0xeb0] sm:$0xff]  }
0x39e5   : > { %v14801_v27 = vpop.f32.mrf.mxu0  ;;  %v14852_v12 = vpop.f32.mrf.mxu1 }
0x39e6   : > { %19259 = vmatpush3.bf16.msra.mxu0 %v20392_v5  ;;  %19287 = vmatpush3.bf16.msra.mxu1 %v20393_v22  ;;  %v25205_v5 = vrot.slane %v25192_v24, %v25812_v31  ;;  %v20401_v31 = vld [vmem:[%s25676_s10 + $0xeb8] sm:$0xff]   ;;  %v14974_v41 = vmax.f32 %v14798_v44, 0.0  ;;  %v20413_v44 = vld [vmem:[%s25676_s10 + $0xea0] sm:$0xff]  }
0x39e7   : > { %v25176_v8 = vpop.f32.mrf.mxu0  ;;  %v25178_v36 = vpop.f32.mrf.mxu1  ;;  %19260 = vmatprep.subr.bf16.mxu0 %v20394_v40  ;;  %19288 = vmatprep.subr.bf16.mxu1 %v20395_v63  ;;  %v20400_v40 = vld [vmem:[%s25676_s10 + $0xe38] sm:$0xff]   ;;  %v14802_v63 = vadd.f32 %v14801_v27, %v25200_v53  ;;  %v15001_v27 = vmax.f32 %v14704_v15, 0.0 }
0x39e8   : > { %v14853_v11 = vadd.f32 %v14852_v12, %v25205_v5 }
0x39e9   : > { %v25194_v46 = vpop.f32.mrf.mxu0  ;;  %v25196_v3 = vpop.f32.mrf.mxu1  ;;  %v14990_v9 = vmax.f32 %v14802_v63, 0.0  ;;  %v20410_v63 = vld [vmem:[%s25676_s10 + $0xe60] sm:$0xff]  }
0x39ea   : > { %19261 = vmatpush3.bf16.msra.mxu0 %v20396_v38  ;;  %19289 = vmatpush3.bf16.msra.mxu1 %v20397_v58  ;;  %v14849_v38 = vadd.f32 %v25148_v56, %v25205_v5  ;;  %v20404_v58 = vld [vmem:[%s25676_s10 + $0xe30] sm:$0xff]   ;;  %v20406_v56 = vld [vmem:[%s25676_s10 + $0xe68] sm:$0xff]   ;;  %v14992_v55 = vmax.f32 %v14853_v11, 0.0  ;;  %v20411_v11 = vld [vmem:[%s25676_s10 + $0xee0] sm:$0xff]  }
0x39eb   : > { %v14809_v2 = vpop.f32.mrf.mxu0  ;;  %v14860_v22 = vpop.f32.mrf.mxu1  ;;  %19302 = vmatprep.subr.bf16.mxu0 %v20398_v16  ;;  %19330 = vmatprep.subr.bf16.mxu1 %v20399_v59  ;;  %v15003_v16 = vmax.f32 %v14755_v60, 0.0  ;;  %v15022_v60 = vpack.c.bf16 %v14990_v9, %v14974_v41 }
0x39ec   : > { %v14976_v15 = vmax.f32 %v14849_v38, 0.0 }
0x39ed   : > { %15948 = vmatmul.mubr.bf16.vlgmr.msra.gmra.mxu0 %v15017_v19  ;;  %v14810_v21 = vpop.f32.mrf.mxu0  ;;  %v14861_v48 = vpop.f32.mrf.mxu1  ;;  %15996 = vmatmul.mubr.bf16.vlgmr.msra.gmra.mxu1 %v15019_v17  ;;  %v15033_v19 = vpack.c.bf16 %v15001_v27, %v15001_v27  ;;  %v15035_v17 = vpack.c.bf16 %v15003_v16, %v15003_v16  ;;  %v20414_v27 = vld [vmem:[%s25676_s10 + $0xe58] sm:$0xff]  }
0x39ee   : > { %15955 = vmatprep.mubr.bf16.mxu0 %v15034_v62  ;;  %16003 = vmatprep.mubr.bf16.mxu1 %v15036_v0  ;;  %v20409_v62 = vld [vmem:[%s25676_s10 + $0xea8] sm:$0xff]   ;;  %v20415_v16 = vld [vmem:[%s25676_s10 + $0xed8] sm:$0xff]  }
0x39ef   : > { %19303 = vmatpush3.bf16.msra.mxu0 %v20400_v40  ;;  %v25226_v26 = vpop.f32.mrf.mxu0  ;;  %v25228_v12 = vpop.f32.mrf.mxu1  ;;  %19331 = vmatpush3.bf16.msra.mxu1 %v20401_v31  ;;  %v20408_v40 = vld [vmem:[%s25676_s10 + $0xe28] sm:$0xff]   ;;  %v15024_v31 = vpack.c.bf16 %v14992_v55, %v14976_v15  ;;  %v20417_v55 = vld [vmem:[%s25676_s10 + $0xe98] sm:$0xff]   ;;  %v20419_v15 = vld [vmem:[%s25676_s10 + $0xed0] sm:$0xff]  }
0x39f0   : > { %19304 = vmatprep.subr.bf16.mxu0 %v20402_v28  ;;  %19332 = vmatprep.subr.bf16.mxu1 %v20403_v57  ;;  %v20412_v57 = vld [vmem:[%s25676_s10 + $0xe20] sm:$0xff]  }
0x39f1   : > { %v25239_v59 = vpop.f32.mrf.mxu0  ;;  %v25241_v30 = vpop.f32.mrf.mxu1 }
0x39f3   : > { %19305 = vmatpush3.bf16.msra.mxu0 %v20404_v58  ;;  %v25246_v2 = vpop.f32.mrf.mxu0  ;;  %v25248_v22 = vpop.f32.mrf.mxu1  ;;  %19333 = vmatpush3.bf16.msra.mxu1 %v20405_v23 }
0x39f4   : > { %19306 = vmatprep.subr.bf16.mxu0 %v20406_v56  ;;  %19334 = vmatprep.subr.bf16.mxu1 %v20407_v47  ;;  %v20416_v56 = vld [vmem:[%s25676_s10 + $0xe18] sm:$0xff]   ;;  %v20418_v47 = vld [vmem:[%s25676_s10 + $0xe50] sm:$0xff]  }
0x39f5   : > { %15956 = vmatmul.mubr.bf16.gmra.mxu0 %v15033_v19  ;;  %v25259_v28 = vpop.f32.mrf.mxu0  ;;  %v25261_v0 = vpop.f32.mrf.mxu1  ;;  %16004 = vmatmul.mubr.bf16.gmra.mxu1 %v15035_v17  ;;  %v20421_v17 = vld [vmem:[%s25676_s10 + $0xe90] sm:$0xff]  }
0x39f6   : > { %16043 = vmatprep.mubr.bf16.mxu0 %v15022_v60  ;;  %16091 = vmatprep.mubr.bf16.mxu1 %v15024_v31  ;;  %v20422_v60 = vld [vmem:[%s25676_s10 + $0xe48] sm:$0xff]   ;;  %v14354_v31 = vrot.slane %v25192_v24, %v25814_v43  ;;  %v14808_v43 = vadd.f32 %v25194_v46, %v25200_v53  ;;  %v20429_v46 = vld [vmem:[%s25676_s10 + $0xe80] sm:$0xff]  }
0x39f7   : > { %19307 = vmatpush3.bf16.msra.mxu0 %v20408_v40  ;;  %v25266_v21 = vpop.f32.mrf.mxu0  ;;  %v25268_v48 = vpop.f32.mrf.mxu1  ;;  %19335 = vmatpush3.bf16.msra.mxu1 %v20409_v62  ;;  %v20420_v40 = vld [vmem:[%s25676_s10 + $0xe10] sm:$0xff]   ;;  %v20423_v62 = vld [vmem:[%s25676_s10 + $0xec8] sm:$0xff]  }
0x39f8   : > { %19308 = vmatprep.subr.bf16.mxu0 %v20410_v63  ;;  %19336 = vmatprep.subr.bf16.mxu1 %v20411_v11  ;;  %v14346_v63 = vrot.slane %v25192_v24, %v25813_v25  ;;  %v20424_v11 = vld [vmem:[%s25676_s10 + $0xe08] sm:$0xff]   ;;  %v20426_v25 = vld [vmem:[%s25676_s10 + $0xe40] sm:$0xff]  }
0x39f9   : > { %v25279_v38 = vpop.f32.mrf.mxu0  ;;  %v25281_v58 = vpop.f32.mrf.mxu1 }
0x39fb   : > { %19309 = vmatpush3.bf16.msra.mxu0 %v20412_v57  ;;  %v14911_v9 = vpop.f32.mrf.mxu0  ;;  %v14962_v23 = vpop.f32.mrf.mxu1  ;;  %19337 = vmatpush3.bf16.msra.mxu1 %v20413_v44  ;;  %v14800_v57 = vadd.f32 %v25155_v39, %v14346_v63  ;;  %v20425_v44 = vld [vmem:[%s25676_s10 + $0xe88] sm:$0xff]   ;;  %v20427_v39 = vld [vmem:[%s25676_s10 + $0xec0] sm:$0xff]  }
0x39fc   : > { %19310 = vmatprep.subr.bf16.mxu0 %v20414_v27  ;;  %19338 = vmatprep.subr.bf16.mxu1 %v20415_v16  ;;  %v14851_v27 = vadd.f32 %v25157_v1, %v14354_v31  ;;  %v14796_v16 = vadd.f32 %v25131_v13, %v14346_v63  ;;  %v14859_v9 = vadd.f32 %v25196_v3, %v25205_v5  ;;  %v20428_v1 = vld [vmem:[%s25676_s10 + $0xe00] sm:$0xff]   ;;  %v20430_v13 = vld [vmem:[%s25676_s10 + $0xf78] sm:$0xff]   ;;  %v15006_v3 = vmax.f32 %v14808_v43, 0.0  ;;  %v20438_v43 = vld [vmem:[%s25676_s10 + $0xf68] sm:$0xff]  }
0x39fd   : > { %v14912_v41 = vpop.f32.mrf.mxu0  ;;  %v14963_v19 = vpop.f32.mrf.mxu1  ;;  %v14847_v23 = vadd.f32 %v25133_v7, %v14354_v31  ;;  %v20431_v7 = vld [vmem:[%s25676_s10 + $0xff8] sm:$0xff]  }
0x39fe   : > { %v14991_v53 = vmax.f32 %v14851_v27, 0.0  ;;  %v14973_v5 = vmax.f32 %v14796_v16, 0.0  ;;  %v25348_v41 = vrot.slane %v25192_v24, %v25815_v61 }
0x39ff   : > { %19311 = vmatpush3.bf16.msra.mxu0 %v20416_v56  ;;  %19339 = vmatpush3.bf16.msra.mxu1 %v20417_v55  ;;  %v14989_v56 = vmax.f32 %v14800_v57, 0.0  ;;  %v15008_v55 = vmax.f32 %v14859_v9, 0.0 }
0x3a00   : > { %19312 = vmatprep.subr.bf16.mxu0 %v20418_v47  ;;  %19340 = vmatprep.subr.bf16.mxu1 %v20419_v15  ;;  %v14975_v47 = vmax.f32 %v14847_v23, 0.0  ;;  %v14806_v15 = vadd.f32 %v25176_v8, %v14346_v63  ;;  %v14904_v61 = vadd.f32 %v25259_v28, %v25348_v41  ;;  %v20433_v8 = vld [vmem:[%s25676_s10 + $0xfb8] sm:$0xff]   ;;  %v14900_v28 = vadd.f32 %v25239_v59, %v25348_v41  ;;  %v20437_v59 = vld [vmem:[%s25676_s10 + $0xfb0] sm:$0xff]  }
0x3a01   : > { %v15021_v19 = vpack.c.bf16 %v14989_v56, %v14973_v5  ;;  %v15040_v63 = vpack.c.bf16 %v15008_v55, %v15008_v55  ;;  %v20444_v5 = vld [vmem:[%s25676_s10 + $0xf20] sm:$0xff]  }
0x3a02   : > { %v14994_v27 = vmax.f32 %v14904_v61, 0.0  ;;  %v14978_v16 = vmax.f32 %v14900_v28, 0.0  ;;  %v20445_v55 = vld [vmem:[%s25676_s10 + $0xfa0] sm:$0xff]   ;;  %v20453_v61 = vld [vmem:[%s25676_s10 + $0xf90] sm:$0xff]  }
0x3a03   : > { %19313 = vmatpush3.bf16.msra.mxu0 %v20420_v40  ;;  %19341 = vmatpush3.bf16.msra.mxu1 %v20421_v17  ;;  %v25353_v40 = vrot.slane %v25192_v24, %v25816_v33  ;;  %v20432_v17 = vld [vmem:[%s25676_s10 + $0xf38] sm:$0xff]   ;;  %v20434_v33 = vld [vmem:[%s25676_s10 + $0xf70] sm:$0xff]  }
0x3a04   : > { %19314 = vmatprep.subr.bf16.mxu0 %v20422_v60  ;;  %19342 = vmatprep.subr.bf16.mxu1 %v20423_v62  ;;  %v15023_v60 = vpack.c.bf16 %v14991_v53, %v14975_v47  ;;  %v14857_v62 = vadd.f32 %v25178_v36, %v14354_v31  ;;  %v20435_v36 = vld [vmem:[%s25676_s10 + $0xff0] sm:$0xff]   ;;  %v15005_v31 = vmax.f32 %v14806_v15, 0.0  ;;  %v20442_v53 = vld [vmem:[%s25676_s10 + $0xf60] sm:$0xff]   ;;  %v20446_v47 = vld [vmem:[%s25676_s10 + $0xf58] sm:$0xff]  }
0x3a05   : > { %v14955_v57 = vadd.f32 %v25261_v0, %v25353_v40  ;;  %v20436_v0 = vld [vmem:[%s25676_s10 + $0xf30] sm:$0xff]   ;;  %v20448_v15 = vld [vmem:[%s25676_s10 + $0xf18] sm:$0xff]  }
0x3a06   : > { %v15037_v9 = vpack.c.bf16 %v15005_v31, %v15005_v31  ;;  %v20457_v31 = vld [vmem:[%s25676_s10 + $0xf88] sm:$0xff]  }
0x3a07   : > { %19315 = vmatpush3.bf16.msra.mxu0 %v20424_v11  ;;  %19343 = vmatpush3.bf16.msra.mxu1 %v20425_v44  ;;  %v15038_v11 = vpack.c.bf16 %v15006_v3, %v15006_v3  ;;  %v14951_v44 = vadd.f32 %v25241_v30, %v25353_v40  ;;  %v20439_v30 = vld [vmem:[%s25676_s10 + $0xfe8] sm:$0xff]  }
0x3a08   : > { %19316 = vmatprep.subr.bf16.mxu0 %v20426_v25  ;;  %19344 = vmatprep.subr.bf16.mxu1 %v20427_v39  ;;  %v15007_v25 = vmax.f32 %v14857_v62, 0.0  ;;  %v14996_v39 = vmax.f32 %v14955_v57, 0.0  ;;  %v20451_v62 = vld [vmem:[%s25676_s10 + $0xfd0] sm:$0xff]   ;;  %v14370_v57 = vrot.slane %v25192_v24, %v25818_v52  ;;  %v14910_v52 = vadd.f32 %v25279_v38, %v25348_v41  ;;  %v20461_v38 = vld [vmem:[%s25676_s10 + $0xf80] sm:$0xff]  }
0x3a09   : > { %v14980_v23 = vmax.f32 %v14951_v44, 0.0 }
0x3a0a   : > { %v15039_v56 = vpack.c.bf16 %v15007_v25, %v15007_v25  ;;  %v14953_v44 = vadd.f32 %v25248_v22, %v14370_v57  ;;  %v14949_v25 = vadd.f32 %v25228_v12, %v14370_v57  ;;  %v20460_v22 = vld [vmem:[%s25676_s10 + $0xf00] sm:$0xff]  }
0x3a0b   : > { %19317 = vmatpush3.bf16.msra.mxu0 %v20428_v1  ;;  %19345 = vmatpush3.bf16.msra.mxu1 %v20429_v46  ;;  %v20440_v1 = vld [vmem:[%s25676_s10 + $0xf28] sm:$0xff]   ;;  %v15026_v46 = vpack.c.bf16 %v14994_v27, %v14978_v16  ;;  %v15028_v3 = vpack.c.bf16 %v14996_v39, %v14980_v23 }
0x3a0c   : > { %19358 = vmatprep.subr.bf16.mxu0 %v20430_v13  ;;  %19386 = vmatprep.subr.bf16.mxu1 %v20431_v7  ;;  %v20441_v13 = vld [vmem:[%s25676_s10 + $0xfa8] sm:$0xff]   ;;  %v20443_v7 = vld [vmem:[%s25676_s10 + $0xfe0] sm:$0xff]   ;;  %v14995_v41 = vmax.f32 %v14953_v44, 0.0 }
0x3a0e   : > { %16044 = vmatmul.mubr.bf16.vlgmr.msra.gmra.mxu0 %v15021_v19  ;;  %16092 = vmatmul.mubr.bf16.vlgmr.msra.gmra.mxu1 %v15023_v60  ;;  %v20447_v19 = vld [vmem:[%s25676_s10 + $0xfd8] sm:$0xff]   ;;  %v20450_v60 = vld [vmem:[%s25676_s10 + $0xf50] sm:$0xff]  }
0x3a0f   : > { %16051 = vmatprep.mubr.bf16.mxu0 %v15038_v11  ;;  %16099 = vmatprep.mubr.bf16.mxu1 %v15040_v63  ;;  %v20452_v11 = vld [vmem:[%s25676_s10 + $0xf10] sm:$0xff]   ;;  %v14362_v63 = vrot.slane %v25192_v24, %v25817_v29  ;;  %v20458_v29 = vld [vmem:[%s25676_s10 + $0xf40] sm:$0xff]  }
0x3a10   : > { %19359 = vmatpush3.bf16.msra.mxu0 %v20432_v17  ;;  %19387 = vmatpush3.bf16.msra.mxu1 %v20433_v8  ;;  %v20449_v17 = vld [vmem:[%s25676_s10 + $0xf98] sm:$0xff]   ;;  %v20454_v8 = vld [vmem:[%s25676_s10 + $0xf48] sm:$0xff]   ;;  %v20459_v24 = vld [vmem:[%s25676_s10 + $0xfc0] sm:$0xff]  }
0x3a11   : > { %19360 = vmatprep.subr.bf16.mxu0 %v20434_v33  ;;  %19388 = vmatprep.subr.bf16.mxu1 %v20435_v36  ;;  %v20455_v33 = vld [vmem:[%s25676_s10 + $0xfc8] sm:$0xff]   ;;  %v14902_v28 = vadd.f32 %v25246_v2, %v14362_v63  ;;  %v14898_v2 = vadd.f32 %v25226_v26, %v14362_v63 }
0x3a12   : > { %v20456_v36 = vld [vmem:[%s25676_s10 + $0xf08] sm:$0xff]  }
0x3a13   : > { %v14993_v27 = vmax.f32 %v14902_v28, 0.0  ;;  %v14977_v26 = vmax.f32 %v14898_v2, 0.0 }
0x3a14   : > { %19361 = vmatpush3.bf16.msra.mxu0 %v20436_v0  ;;  %19389 = vmatpush3.bf16.msra.mxu1 %v20437_v59  ;;  %v14961_v0 = vadd.f32 %v25281_v58, %v25353_v40  ;;  %v15010_v59 = vmax.f32 %v14910_v52, 0.0  ;;  %v14979_v58 = vmax.f32 %v14949_v25, 0.0  ;;  %v14908_v40 = vadd.f32 %v25266_v21, %v14362_v63  ;;  %v18215_v21 = vld [vmem:[%s25677_s11 + $0x3] ss:$0 sm:$0xff] }
0x3a15   : > { %19362 = vmatprep.subr.bf16.mxu0 %v20438_v43  ;;  %19390 = vmatprep.subr.bf16.mxu1 %v20439_v30  ;;  %v15025_v12 = vpack.c.bf16 %v14993_v27, %v14977_v26  ;;  %v14959_v30 = vadd.f32 %v25268_v48, %v14370_v57 }
0x3a16   : > { %16052 = vmatmul.mubr.bf16.gmra.mxu0 %v15037_v9  ;;  %16100 = vmatmul.mubr.bf16.gmra.mxu1 %v15039_v56  ;;  %v15012_v43 = vmax.f32 %v14961_v0, 0.0  ;;  %v15027_v39 = vpack.c.bf16 %v14995_v41, %v14979_v58  ;;  %v15042_v16 = vpack.c.bf16 %v15010_v59, %v15010_v59  ;;  %v15009_v23 = vmax.f32 %v14908_v40, 0.0 }
0x3a17   : > { %16139 = vmatprep.mubr.bf16.mxu0 %v15026_v46  ;;  %16187 = vmatprep.mubr.bf16.mxu1 %v15028_v3 }
0x3a18   : > { %19363 = vmatpush3.bf16.msra.mxu0 %v20440_v1  ;;  %19391 = vmatpush3.bf16.msra.mxu1 %v20441_v13  ;;  %v15044_v9 = vpack.c.bf16 %v15012_v43, %v15012_v43  ;;  %v15011_v1 = vmax.f32 %v14959_v30, 0.0  ;;  %v15041_v56 = vpack.c.bf16 %v15009_v23, %v15009_v23 }
0x3a19   : > { %19364 = vmatprep.subr.bf16.mxu0 %v20442_v53  ;;  %19392 = vmatprep.subr.bf16.mxu1 %v20443_v7 }
0x3a1a   : > { %v15043_v46 = vpack.c.bf16 %v15011_v1, %v15011_v1 }
0x3a1c   : > { %19365 = vmatpush3.bf16.msra.mxu0 %v20444_v5  ;;  %19393 = vmatpush3.bf16.msra.mxu1 %v20445_v55 }
0x3a1d   : > { %19366 = vmatprep.subr.bf16.mxu0 %v20446_v47  ;;  %19394 = vmatprep.subr.bf16.mxu1 %v20447_v19 }
0x3a20   : > { %19367 = vmatpush3.bf16.msra.mxu0 %v20448_v15  ;;  %19395 = vmatpush3.bf16.msra.mxu1 %v20449_v17 }
0x3a21   : > { %19368 = vmatprep.subr.bf16.mxu0 %v20450_v60  ;;  %19396 = vmatprep.subr.bf16.mxu1 %v20451_v62 }
0x3a24   : > { %19369 = vmatpush3.bf16.msra.mxu0 %v20452_v11  ;;  %19397 = vmatpush3.bf16.msra.mxu1 %v20453_v61 }
0x3a25   : > { %19370 = vmatprep.subr.bf16.mxu0 %v20454_v8  ;;  %19398 = vmatprep.subr.bf16.mxu1 %v20455_v33 }
0x3a28   : > { %19371 = vmatpush3.bf16.msra.mxu0 %v20456_v36  ;;  %19399 = vmatpush3.bf16.msra.mxu1 %v20457_v31 }
0x3a29   : > { %19372 = vmatprep.subr.bf16.mxu0 %v20458_v29  ;;  %19400 = vmatprep.subr.bf16.mxu1 %v20459_v24 }
0x3a2c   : > { %19373 = vmatpush3.bf16.msra.mxu0 %v20460_v22  ;;  %19401 = vmatpush3.bf16.msra.mxu1 %v20461_v38 }
0x3a2f   : > { %16140 = vmatmul.mubr.bf16.vlgmr.msra.gmra.mxu0 %v15025_v12  ;;  %16188 = vmatmul.mubr.bf16.vlgmr.msra.gmra.mxu1 %v15027_v39 }
0x3a30   : > { %16147 = vmatprep.mubr.bf16.mxu0 %v15042_v16  ;;  %16195 = vmatprep.mubr.bf16.mxu1 %v15044_v9 }
0x3a37   : > { %16148 = vmatmul.mubr.bf16.gmra.mxu0 %v15041_v56  ;;  %16196 = vmatmul.mubr.bf16.gmra.mxu1 %v15043_v46 }
0x3a8d   : > { %v19206_v13 = vpop.f32.mrf.mxu0  ;;  %v19234_v53 = vpop.f32.mrf.mxu1 }
0x3a8f   : > { %v19207_v3 = vpop.f32.mrf.mxu0  ;;  %v19235_v48 = vpop.f32.mrf.mxu1 }
0x3a90   : > { %v19208_v7 = vadd.f32 %v19207_v3, %v19206_v13  ;;  %v19236_v5 = vadd.f32 %v19235_v48, %v19234_v53 }
0x3a91   : > { %v19209_v55 = vpop.f32.mrf.mxu0  ;;  %v19237_v47 = vpop.f32.mrf.mxu1 }
0x3a92   : > { %v15854_v19 = vadd.f32 %v19208_v7, %v18215_v21 }
0x3a93   : > { %v19210_v15 = vpop.f32.mrf.mxu0  ;;  %v19238_v17 = vpop.f32.mrf.mxu1 }
0x3a94   : > { %v15902_v60 = vadd.f32 %v19236_v5, %v15854_v19  ;;  %v19211_v62 = vadd.f32 %v19210_v15, %v19209_v55  ;;  %v19239_v11 = vadd.f32 %v19238_v17, %v19237_v47 }
0x3a95   : > { %v19212_v61 = vpop.f32.mrf.mxu0  ;;  %v19240_v8 = vpop.f32.mrf.mxu1 }
0x3a96   : > { %v15857_v33 = vadd.f32 %v19211_v62, %v18215_v21 }
0x3a97   : > { %v19213_v63 = vpop.f32.mrf.mxu0  ;;  %v19241_v57 = vpop.f32.mrf.mxu1 }
0x3a98   : > { %v15905_v36 = vadd.f32 %v19239_v11, %v15857_v33  ;;  %v19214_v28 = vadd.f32 %v19213_v63, %v19212_v61  ;;  %v19242_v31 = vadd.f32 %v19241_v57, %v19240_v8 }
0x3a99   : > { %v19215_v29 = vpop.f32.mrf.mxu0  ;;  %v19243_v44 = vpop.f32.mrf.mxu1 }
0x3a9a   : > { %v15862_v52 = vadd.f32 %v19214_v28, %v18215_v21  ;;  %v12306_v28 = vpop.xlane.xlu1 %12305 }
0x3a9b   : > { %v19216_v24 = vpop.f32.mrf.mxu0  ;;  %v19244_v2 = vpop.f32.mrf.mxu1 }
0x3a9c   : > { %v15910_v0 = vadd.f32 %v19242_v31, %v15862_v52 }
0x3aad   : > { %v19262_v25 = vpop.f32.mrf.mxu0  ;;  %v19290_v22 = vpop.f32.mrf.mxu1 }
0x3aaf   : > { %v19263_v27 = vpop.f32.mrf.mxu0  ;;  %v19291_v38 = vpop.f32.mrf.mxu1 }
0x3ab0   : > { %v19264_v11 = vadd.f32 %v19263_v27, %v19262_v25  ;;  %v19292_v33 = vadd.f32 %v19291_v38, %v19290_v22  ;;  %v12312_v27 = vpop.xlane.xlu1 %12311 }
0x3ab1   : > { %v19265_v41 = vpop.f32.mrf.mxu0  ;;  %v19293_v59 = vpop.f32.mrf.mxu1 }
0x3ab2   : > { %v15950_v61 = vadd.f32 %v19264_v11, %v15902_v60 }
0x3ab3   : > { %v19266_v26 = vpop.f32.mrf.mxu0  ;;  %v19294_v43 = vpop.f32.mrf.mxu1 }
0x3ab4   : > { %v19267_v8 = vadd.f32 %v19266_v26, %v19265_v41  ;;  %v15998_v31 = vadd.f32 %v19292_v33, %v15950_v61  ;;  %v19295_v44 = vadd.f32 %v19294_v43, %v19293_v59 }
0x3ab5   : > { %v19268_v58 = vpop.f32.mrf.mxu0  ;;  %v19296_v12 = vpop.f32.mrf.mxu1 }
0x3ab6   : > { %v15953_v29 = vadd.f32 %v19267_v8, %v15905_v36 }
0x3ab7   : > { %v19269_v40 = vpop.f32.mrf.mxu0  ;;  %v19297_v39 = vpop.f32.mrf.mxu1 }
0x3ab8   : > { %v19270_v57 = vadd.f32 %v19269_v40, %v19268_v58 }
0x3ab9   : > { %v19271_v30 = vpop.f32.mrf.mxu0  ;;  %v19299_v16 = vpop.f32.mrf.mxu1 }
0x3aba   : > { %v15958_v2 = vadd.f32 %v19270_v57, %v15910_v0  ;;  %v12309_v16 = vpop.xlane.xlu0 %12308 }
0x3abb   : > { %v19272_v9 = vpop.f32.mrf.mxu0  ;;  %v19300_v23 = vpop.f32.mrf.mxu1  ;;  %v12314_v58 = vmul.f32 0.03125, %v12309_v16 }
0x3abc   : > { %v12313_v9 = vmul.f32 0.03125, %v12306_v28  ;;  %v16001_v23 = vadd.f32 %v19295_v44, %v15953_v29 }
0x3abd   : > { %v12346_v11 = vrot.slane %v12314_v58, %v21299_v50 }
0x3abe   : > { %v12325_v43 = vrot.slane %v12313_v9, %v21296_v49 }
0x3abf   : > { %v25487_v16 = vsub.f32 %v24699_v18, %v12346_v11 }
0x3ace   : > { %v19318_v1 = vpop.f32.mrf.mxu0  ;;  %v19346_v56 = vpop.f32.mrf.mxu1 }
0x3ad0   : > { %v19319_v46 = vpop.f32.mrf.mxu0  ;;  %v19347_v13 = vpop.f32.mrf.mxu1 }
0x3ad1   : > { %v19320_v63 = vadd.f32 %v19319_v46, %v19318_v1 }
0x3ad2   : > { %v19321_v53 = vpop.f32.mrf.mxu0  ;;  %v19349_v21 = vpop.f32.mrf.mxu1 }
0x3ad3   : > { %v16046_v52 = vadd.f32 %v19320_v63, %v15998_v31 }
0x3ad4   : > { %v19322_v3 = vpop.f32.mrf.mxu0  ;;  %v19350_v48 = vpop.f32.mrf.mxu1 }
0x3ad5   : > { %v19323_v24 = vadd.f32 %v19322_v3, %v19321_v53  ;;  %v19351_v0 = vadd.f32 %v19350_v48, %v19349_v21  ;;  %v25476_v21 = vsub.f32 %v24703_v32, %v12325_v43 }
0x3ad6   : > { %v19324_v7 = vpop.f32.mrf.mxu0  ;;  %v19352_v5 = vpop.f32.mrf.mxu1 }
0x3ad7   : > { %v16049_v38 = vadd.f32 %v19323_v24, %v16001_v23 }
0x3ad8   : > { %v19325_v55 = vpop.f32.mrf.mxu0  ;;  %v19353_v47 = vpop.f32.mrf.mxu1 }
0x3ad9   : > { %v19326_v25 = vadd.f32 %v19325_v55, %v19324_v7  ;;  %v16097_v53 = vadd.f32 %v19351_v0, %v16049_v38  ;;  %v19354_v61 = vadd.f32 %v19353_v47, %v19352_v5 }
0x3ada   : > { %v19327_v19 = vpop.f32.mrf.mxu0  ;;  %v19355_v15 = vpop.f32.mrf.mxu1 }
0x3adb   : > { %v19348_v19 = vadd.f32 %v19347_v13, %v19346_v56  ;;  %v12332_v56 = vrot.slane %v12313_v9, %v21299_v50  ;;  %v12315_v13 = vmul.f32 0.03125, %v12312_v27 }
0x3adc   : > { %v19328_v17 = vpop.f32.mrf.mxu0  ;;  %v19356_v62 = vpop.f32.mrf.mxu1 }
0x3add   : > { %v19298_v17 = vadd.f32 %v19297_v39, %v19296_v12  ;;  %v16094_v22 = vadd.f32 %v19348_v19, %v16046_v52  ;;  %v12339_v62 = vrot.slane %v12314_v58, %v21296_v49  ;;  %v25479_v28 = vsub.f32 %v24687_v14, %v12332_v56 }
0x3ade   : > { %v12353_v31 = vrot.slane %v12315_v13, %v21296_v49  ;;  %v12360_v29 = vrot.slane %v12315_v13, %v21299_v50 }
0x3adf   : > { %v16006_v36 = vadd.f32 %v19298_v17, %v15958_v2 }
0x3ae1   : > { %v16054_v12 = vadd.f32 %v19326_v25, %v16006_v36  ;;  %v25490_v25 = vsub.f32 %v24720_v35, %v12353_v31 }
0x3ae3   : > { %v16102_v44 = vadd.f32 %v19354_v61, %v16054_v12 }
0x3aef   : > { %v19374_v30 = vpop.f32.mrf.mxu0  ;;  %v19402_v15 = vpop.f32.mrf.mxu1 }
0x3af1   : > { %v19375_v60 = vpop.f32.mrf.mxu0  ;;  %v19403_v26 = vpop.f32.mrf.mxu1 }
0x3af2   : > { %v19376_v41 = vadd.f32 %v19375_v60, %v19374_v30  ;;  %v19404_v1 = vadd.f32 %v19403_v26, %v19402_v15  ;;  %v12369_v30 = vsub.f32 %v24707_v6, %v12339_v62  ;;  %v12374_v6 = vmul.f32 %v25479_v28, %v25479_v28 }
0x3af3   : > { %v19377_v59 = vpop.f32.mrf.mxu0  ;;  %v19405_v46 = vpop.f32.mrf.mxu1 }
0x3af4   : > { %v16142_v40 = vadd.f32 %v19376_v41, %v16094_v22  ;;  %v12375_v58 = vmul.f32 %v12369_v30, %v12369_v30 }
0x3af5   : > { %v19378_v39 = vpop.f32.mrf.mxu0  ;;  %v19406_v55 = vpop.f32.mrf.mxu1 }
0x3af6   : > { %v16190_v3 = vadd.f32 %v19404_v1, %v16142_v40  ;;  %v19379_v7 = vadd.f32 %v19378_v39, %v19377_v59  ;;  %v19407_v63 = vadd.f32 %v19406_v55, %v19405_v46  ;;  %v12376_v59 = vmul.f32 %v25487_v16, %v25487_v16 }
0x3af7   : > { %v19380_v8 = vpop.f32.mrf.mxu0  ;;  %v19408_v57 = vpop.f32.mrf.mxu1  ;;  %v12377_v40 = vmul.f32 %v25490_v25, %v25490_v25 }
0x3af8   : > { %v16206_v48 = vcombine.high %v16190_v3, %v16190_v3  ;;  %v16145_v33 = vadd.f32 %v19379_v7, %v16097_v53  ;;  %v16212_v24 = vadd.f32 %v16190_v3, %v24797_v54  ;;  %v12372_v54 = vsub.f32 %v24714_v20, %v12360_v29 }
0x3af9   : > { %v19381_v52 = vpop.f32.mrf.mxu0  ;;  %v19409_v2 = vpop.f32.mrf.mxu1  ;;  %v12386_v56 = vcombine.low %v12375_v58, %v12376_v59 }
0x3afa   : > { %v16193_v5 = vadd.f32 %v19407_v63, %v16145_v33  ;;  %v19382_v47 = vadd.f32 %v19381_v52, %v19380_v8  ;;  %v16213_v32 = vadd.f32 %v16206_v48, %v24799_v45  ;;  %v19410_v19 = vadd.f32 %v19409_v2, %v19408_v57 }
0x3afb   : > { %v19383_v14 = vpop.f32.mrf.mxu0  ;;  %v19411_v15 = vpop.f32.mrf.mxu1  ;;  %v12373_v45 = vmul.f32 %v25476_v21, %v25476_v21  ;;  %v12378_v20 = vmul.f32 %v12372_v54, %v12372_v54  ;;  %v12394_v12 = vsel %vm895_vm0, %v12386_v56, 0.0 }
0x3afc   : > { %v16207_v9 = vcombine.high %v16193_v5, %v16193_v5  ;;  %v16150_v23 = vadd.f32 %v19382_v47, %v16102_v44  ;;  %v16224_v17 = vcombine.low %v16212_v24, %v16213_v32  ;;  %v16214_v18 = vadd.f32 %v16193_v5, %v24801_v34 }
0x3afd   : > { %v19384_v60 = vpop.f32.mrf.mxu0  ;;  %v19412_v22 = vpop.f32.mrf.mxu1  ;;  %v12385_v36 = vcombine.low %v12373_v45, %v12374_v6  ;;  %v12387_v13 = vcombine.low %v12377_v40, %v12378_v20 }
0x3afe   : > { %v16198_v27 = vadd.f32 %v19410_v19, %v16150_v23  ;;  %v16230_v38 = vsel %vm895_vm0, %v16224_v17, 0.0  ;;  %v16215_v41 = vadd.f32 %v16207_v9, %v24803_v10 }
0x3aff   : > { %16231 = vadd.xlane.f32.xlu0 %v16230_v38  ;;  %v12391_v46 = vsel %vm895_vm0, %v12385_v36, 0.0 }
0x3b00   : > { %v16208_v35 = vcombine.high %v16198_v27, %v16198_v27  ;;  %v16225_v26 = vcombine.low %v16214_v18, %v16215_v41  ;;  %v16216_v43 = vadd.f32 %v16198_v27, %v24823_v42  ;;  %v12397_v42 = vsel %vm895_vm0, %v12387_v13, 0.0 }
0x3b02   : > { %v16233_v0 = vsel %vm895_vm0, %v16225_v26, 0.0  ;;  %v16217_v34 = vadd.f32 %v16208_v35, %v24825_v51 }
0x3b03   : > { %16234 = vadd.xlane.f32.xlu1 %v16233_v0 }
0x3b04   : > { %v16226_v10 = vcombine.low %v16216_v43, %v16217_v34 }
0x3b06   : > { %v16236_v1 = vsel %vm895_vm0, %v16226_v10, 0.0 }
0x3b07   : > { %16237 = vadd.xlane.f32.xlu0 %v16236_v1  ;;  %12392 = vadd.xlane.f32.xlu1 %v12391_v46  ;;  %v17831_v46 = vld [vmem:[%s25822_s27 + $0x2] ss:$0 sm:$0xff] }
0x3b08   : > { %v12454_v13 = vcombine.high %v17831_v46, %v17831_v46 }
0x3b0b   : > { %12395 = vadd.xlane.f32.xlu0 %v12394_v12  ;;  %12398 = vadd.xlane.f32.xlu1 %v12397_v42 }
0x3b88   : > { %v16232_v51 = vpop.xlane.xlu0 %16231 }
0x3b89   : > { %v16239_v39 = vmul.f32 0.03125, %v16232_v51  ;;  %v18344_v51 = vld [vmem:[%s25822_s27 + $0x3] ss:$0 sm:$0xff] }
0x3b8b   : > { %v16251_v53 = vrot.slane %v16239_v39, %v21296_v49  ;;  %v16258_v3 = vrot.slane %v16239_v39, %v21299_v50 }
0x3b8c   : > { %v16235_v7 = vpop.xlane.xlu1 %16234 }
0x3b8d   : > { %v25513_v55 = vsub.f32 %v16212_v24, %v16251_v53  ;;  %v25515_v62 = vsub.f32 %v16213_v32, %v16258_v3  ;;  %v16240_v11 = vmul.f32 0.03125, %v16235_v7  ;;  %v17832_v53 = vld [vmem:[%s25823_s17 + $0x2] ss:$0 sm:$0xff] }
0x3b8f   : > { %v16265_v61 = vrot.slane %v16240_v11, %v21296_v49  ;;  %v16272_v8 = vrot.slane %v16240_v11, %v21299_v50  ;;  %v16299_v48 = vmul.f32 %v25513_v55, %v25513_v55  ;;  %v16300_v33 = vmul.f32 %v25515_v62, %v25515_v62  ;;  %v18345_v11 = vld [vmem:[%s25823_s17 + $0x3] ss:$0 sm:$0xff]  ;;  %s20887_s17 = smov [#allocation2]  }
0x3b90   : > { %v16238_v63 = vpop.xlane.xlu0 %16237  ;;  %v12393_v54 = vpop.xlane.xlu1 %12392  ;;  %s20778_s30 = sshll.u32 %s20887_s17, 4  ;;  %s20779_s30 = int_to_ptr.vmem [resolvable:$false] %s20778_s30 }
0x3b91   : > { %v16295_v57 = vsub.f32 %v16214_v18, %v16265_v61  ;;  %v25523_v31 = vsub.f32 %v16215_v41, %v16272_v8  ;;  %v16241_v29 = vmul.f32 0.03125, %v16238_v63  ;;  %v16311_v44 = vcombine.low %v16299_v48, %v16300_v33  ;;  %s20780_s4 = scalar_lea.vmem %s20779_s30, 512  ;;  %p20781_p0 = scmp.lt.s32.totalorder %s25588_s15, %s20779_s30 }
0x3b92   : > { %v12400_v60 = vmul.f32 0.03125, %v12393_v54  ;;  %v16380_v61 = vcombine.high %v18344_v51, %v18344_v51  ;;  %v12466_v8 = vcombine.high %v17832_v53, %v17832_v53  ;;  %p20782_p1 = scmp.lt.s32.totalorder %s20780_s4, %s20774_s0 }
0x3b93   : > { %v16301_v52 = vmul.f32 %v16295_v57, %v16295_v57  ;;  %v16279_v24 = vrot.slane %v16241_v29, %v21296_v49  ;;  %v16286_v5 = vrot.slane %v16241_v29, %v21299_v50  ;;  %v16317_v47 = vsel %vm895_vm0, %v16311_v44, 0.0 }
0x3b94   : > { %v16302_v2 = vmul.f32 %v25523_v31, %v25523_v31  ;;  %16318 = vadd.xlane.f32.xlu0 %v16317_v47  ;;  %v12396_v45 = vpop.xlane.xlu0 %12395  ;;  %v12403_v6 = vadd.f32 1e-05, %v12400_v60  ;;  %v12399_v27 = vpop.xlane.xlu1 %12398  ;;  %v16392_v29 = vcombine.high %v18345_v11, %v18345_v11  ;;  %p20783_p2 = por %p20782_p1, %p20781_p0 }
0x3b95   : > { %v25530_v32 = vsub.f32 %v16216_v43, %v16279_v24  ;;  %v16298_v30 = vsub.f32 %v16217_v34, %v16286_v5  ;;  %v12401_v18 = vmul.f32 0.03125, %v12396_v45  ;;  %v12402_v22 = vmul.f32 0.03125, %v12399_v27 }
0x3b96   : > { %v16312_v14 = vcombine.low %v16301_v52, %v16302_v2  ;;  %20754 = vrsqrt.f32 %v12403_v6  ;;  %p20784_p3 = pnand %p20783_p2, %p20777_p13 }
0x3b97   : > { %v16304_v9 = vmul.f32 %v16298_v30, %v16298_v30  ;;  %v16303_v23 = vmul.f32 %v25530_v32, %v25530_v32  ;;  %v12404_v38 = vadd.f32 1e-05, %v12401_v18  ;;  %v12405_v41 = vadd.f32 1e-05, %v12402_v22 }
0x3b98   : > { %v16320_v19 = vsel %vm895_vm0, %v16312_v14, 0.0 }
0x3b99   : > { %16321 = vadd.xlane.f32.xlu1 %v16320_v19  ;;  %v16313_v15 = vcombine.low %v16303_v23, %v16304_v9  ;;  %20756 = vrsqrt.f32 %v12404_v38 }
0x3b9a   : > { %20758 = vrsqrt.f32 %v12405_v41  ;;  %v25825_v41 = vld [vmem:[#allocation24_spill] sm:$0xff] }
0x3b9b   : > { %v16323_v17 = vsel %vm895_vm0, %v16313_v15, 0.0 }
0x3b9c   : > { %16324 = vadd.xlane.f32.xlu0 %v16323_v17 }
0x3ba3   : > { %v20755_v34 = vpop.eup %20754 }
0x3ba4   : > { %v12418_v10 = vrot.slane %v20755_v34, %v21296_v49  ;;  %v12425_v1 = vrot.slane %v20755_v34, %v21299_v50 }
0x3ba6   : > { %v20757_v56 = vpop.eup %20756  ;;  %v12444_v12 = vmul.f32 %v12418_v10, %v25476_v21  ;;  %v12445_v42 = vmul.f32 %v12425_v1, %v25479_v28 }
0x3ba7   : > { %v20759_v39 = vpop.eup %20758  ;;  %v12432_v3 = vrot.slane %v20757_v56, %v21299_v50 }
0x3ba8   : > { %v12456_v48 = vmul.f32 %v17831_v46, %v12444_v12  ;;  %v12457_v33 = vmul.f32 %v12454_v13, %v12445_v42  ;;  %v12439_v63 = vrot.slane %v20759_v39, %v21296_v49 }
0x3ba9   : > { %v12446_v57 = vmul.f32 %v12432_v3, %v25487_v16 }
0x3baa   : > { %v12468_v30 = vadd.f32 %v17832_v53, %v12456_v48  ;;  %v12469_v14 = vadd.f32 %v12466_v8, %v12457_v33  ;;  %v12447_v9 = vmul.f32 %v12439_v63, %v25490_v25 }
0x3bab   : > { %v12458_v19 = vmul.f32 %v12454_v13, %v12446_v57 }
0x3bac   : > { %v12459_v45 = vmul.f32 %v17831_v46, %v12447_v9  ;;  %v16406_v38 = vmul.f32 %v12468_v30, %v23302_v4 }
0x3c1d   : > { %v16319_v35 = vpop.xlane.xlu0 %16318 }
0x3c1e   : > { %v16326_v26 = vmul.f32 0.03125, %v16319_v35 }
0x3c20   : > { %v16329_v58 = vadd.f32 1e-05, %v16326_v26  ;;  %v25826_v26 = vld [vmem:[#allocation25_spill] sm:$0xff] }
0x3c22   : > { %v16322_v20 = vpop.xlane.xlu1 %16321  ;;  %20760 = vrsqrt.f32 %v16329_v58 }
0x3c23   : > { %v16327_v36 = vmul.f32 0.03125, %v16322_v20  ;;  %v12471_v20 = vadd.f32 %v17832_v53, %v12459_v45 }
0x3c25   : > { %v16330_v59 = vadd.f32 1e-05, %v16327_v36  ;;  %v16325_v43 = vpop.xlane.xlu0 %16324 }
0x3c26   : > { %v16328_v0 = vmul.f32 0.03125, %v16325_v43 }
0x3c27   : > { %20762 = vrsqrt.f32 %v16330_v59 }
0x3c28   : > { %v16331_v40 = vadd.f32 1e-05, %v16328_v0 }
0x3c2a   : > { %20764 = vrsqrt.f32 %v16331_v40 }
0x3c2f   : > { %v20761_v7 = vpop.eup %20760 }
0x3c30   : > { %v16344_v21 = vrot.slane %v20761_v7, %v21296_v49  ;;  %v16351_v28 = vrot.slane %v20761_v7, %v21299_v50 }
0x3c32   : > { %v16370_v44 = vmul.f32 %v16344_v21, %v25513_v55  ;;  %v16371_v52 = vmul.f32 %v16351_v28, %v25515_v62 }
0x3c34   : > { %v20763_v24 = vpop.eup %20762  ;;  %v16382_v5 = vmul.f32 %v18344_v51, %v16370_v44  ;;  %v16383_v47 = vmul.f32 %v16380_v61, %v16371_v52 }
0x3c35   : > { %v16358_v2 = vrot.slane %v20763_v24, %v21299_v50  ;;  %v12470_v50 = vadd.f32 %v12466_v8, %v12458_v19 }
0x3c36   : > { %v16394_v15 = vadd.f32 %v18345_v11, %v16382_v5  ;;  %v16395_v17 = vadd.f32 %v16392_v29, %v16383_v47 }
0x3c37   : > { %v20765_v23 = vpop.eup %20764  ;;  %v16372_v16 = vmul.f32 %v16358_v2, %v25523_v31  ;;  %v16407_v31 = vmul.f32 %v12469_v14, %v23307_v37  ;;  %v16408_v42 = vmul.f32 %v12470_v50, %v23302_v4 }
0x3c38   : > { %v16365_v55 = vrot.slane %v20765_v23, %v21296_v49  ;;  %v16398_v62 = vadd.f32 %v16394_v15, %v12468_v30  ;;  %v16399_v60 = vadd.f32 %v16395_v17, %v12469_v14  ;;  %v16419_v59 = vmul.f32 %v16395_v17, %v23307_v37 }
0x3c39   : > { %v16384_v54 = vmul.f32 %v16380_v61, %v16372_v16 }
0x3c3a   : > { %v16373_v6 = vmul.f32 %v16365_v55, %v25530_v32  ;;  %v16402_v25 = vmul.f32 0.5, %v16398_v62  ;;  %v16403_v27 = vmul.f32 0.5, %v16399_v60  ;;  %v16418_v32 = vmul.f32 %v16394_v15, %v23302_v4 }
0x3c3b   : > { %v16396_v18 = vadd.f32 %v16392_v29, %v16384_v54 }
0x3c3c   : > { %v16385_v22 = vmul.f32 %v18344_v51, %v16373_v6  ;;  %v16410_v35 = vmul.f32 %v16402_v25, %v25825_v41  ;;  %v16411_v58 = vmul.f32 %v16403_v27, %v25826_v26  ;;  %v16409_v51 = vmul.f32 %v12471_v20, %v23307_v37 }
0x3c3d   : > { %v16400_v49 = vadd.f32 %v16396_v18, %v12470_v50  ;;  %v16420_v53 = vmul.f32 %v16396_v18, %v23302_v4 }
0x3c3e   : > { %v16397_v36 = vadd.f32 %v18345_v11, %v16385_v22  ;;  %v16414_v0 = vadd.f32 %v16410_v35, %v16406_v38  ;;  %v16415_v34 = vadd.f32 %v16411_v58, %v16407_v31  ;;  %v16422_v40 = vadd.f32 %v16418_v32, %v16410_v35 }
0x3c3f   : > { %v16404_v43 = vmul.f32 0.5, %v16400_v49  ;;  %v16423_v1 = vadd.f32 %v16419_v59, %v16411_v58 }
0x3c40   : > { %v16401_v10 = vadd.f32 %v16397_v36, %v12471_v20  ;;  %v16430_v46 = vcombine.low %v16414_v0, %v16415_v34  ;;  %v16421_v3 = vmul.f32 %v16397_v36, %v23307_v37 }
0x3c41   : > { %v16412_v13 = vmul.f32 %v16404_v43, %v25825_v41  ;;  %v16440_v12 = vcombine.low %v16422_v40, %v16423_v1 }
0x3c42   : > { %v16405_v56 = vmul.f32 0.5, %v16401_v10  ;;  %16434 = vst.msk [vmem:[%s512_s5] sm:$0xff] %vm895_vm0, %v16430_v46 }
0x3c43   : > { %16444 = vst.msk [vmem:[%s519_s19] sm:$0xff] %vm895_vm0, %v16440_v12  ;;  %v16416_v7 = vadd.f32 %v16412_v13, %v16408_v42  ;;  %v16424_v61 = vadd.f32 %v16420_v53, %v16412_v13 }
0x3c44   : > { %v16413_v39 = vmul.f32 %v16405_v56, %v25826_v26 }
0x3c46   : > { %v16417_v11 = vadd.f32 %v16413_v39, %v16409_v51  ;;  %v16425_v21 = vadd.f32 %v16421_v3, %v16413_v39 }
0x3c48   : > { %v16431_v4 = vcombine.low %v16416_v7, %v16417_v11  ;;  %v16441_v37 = vcombine.low %v16424_v61, %v16425_v21 }
0x3c4a   : > { %16435 = vst.msk [vmem:[%s512_s5 + $0x8] sm:$0xff] %vm895_vm0, %v16431_v4  ;;  %16445 = vst.msk [vmem:[%s519_s19 + $0x8] sm:$0xff] %vm895_vm0, %v16441_v37 }
0x3c4b   : > { %20787 = shalt.err (!%p20784_p3)
}
0x3c4c   : > { %s20788_s28 = scalar_lea.hbm %s25586_s20, 256  ;;  %s20792_s5 = scalar_lea.hbm %s25830_s24, 512 }
0x3c4d   : > { %p20789_p4 = scmp.ne.s32.totalorder %s25586_s20, %s20788_s28  ;;  %p20793_p9 = scmp.lt.s32.totalorder %s25586_s20, %s25830_s24 }
0x3c4e   : > { %p20794_p10 = scmp.lt.s32.totalorder %s20792_s5, %s20788_s28 }
0x3c4f   : > { %p20790_p7 = pnand %p20789_p4, %p21008_p5 }
0x3c50   : > { %p20795_p11 = por %p20794_p10, %p20793_p9 }
0x3c51   : > { %p20791_p8 = pneg %p20790_p7 }
0x3c53   : > { %p20796_p12 = pnand %p20795_p11, %p20791_p8 }
0x3c55   : > { %20799 = shalt.err (!%p20796_p12)
}
0x3c56   : > { %s20888_s7 = smov 128   ;;  %s16452_s1 = scalar_lea.sflag [#allocation5], %s25565_s12 }
0x3c57   : > { %19862 = dma.vmem_to_hbm [thread:$0]  (%p21008_p5), %s25588_s15, 256, %s25586_s20, %s16447_s25, %s20888_s7, %s20888_s7, %s25798_s18  }
0x3c58   : > { %s20800_s21 = scalar_lea.vmem %s25595_s13, 256  ;;  %s20889_s29 = smov [#allocation4]  }
0x3c59   : > { %p20801_p13 = scmp.ne.s32.totalorder %s25595_s13, %s20800_s21  ;;  %s20804_s27 = sshll.u32 %s20889_s29, 4  ;;  %s20805_s27 = int_to_ptr.vmem [resolvable:$false] %s20804_s27 }
0x3c5a   : > { %s20806_s0 = scalar_lea.vmem %s20805_s27, 512  ;;  %p20807_p2 = scmp.lt.s32.totalorder %s25595_s13, %s20805_s27 }
0x3c5b   : > { %p20802_p0 = pnand %p20801_p13, %p21008_p5  ;;  %p20808_p3 = scmp.lt.s32.totalorder %s20806_s0, %s20800_s21 }
0x3c5d   : > { %p20803_p1 = pneg %p20802_p0  ;;  %p20809_p4 = por %p20808_p3, %p20807_p2 }
0x3c5f   : > { %p20810_p7 = pnand %p20809_p4, %p20803_p1 }
0x3c61   : > { %20813 = shalt.err (!%p20810_p7)
}
0x3c62   : > { %s20814_s15 = scalar_lea.hbm %s25593_s16, 256  ;;  %s20818_s25 = scalar_lea.hbm %s25831_s23, 512 }
0x3c63   : > { %p20815_p8 = scmp.ne.s32.totalorder %s25593_s16, %s20814_s15  ;;  %p20819_p11 = scmp.lt.s32.totalorder %s25593_s16, %s25831_s23 }
0x3c64   : > { %p20820_p12 = scmp.lt.s32.totalorder %s20818_s25, %s20814_s15 }
0x3c65   : > { %p20816_p9 = pnand %p20815_p8, %p21008_p5 }
0x3c66   : > { %p20821_p13 = por %p20820_p12, %p20819_p11 }
0x3c67   : > { %p20817_p10 = pneg %p20816_p9 }
0x3c69   : > { %p20822_p0 = pnand %p20821_p13, %p20817_p10 }
0x3c6b   : > { %20825 = shalt.err (!%p20822_p0)
}
0x3c6c   : > { %19863 = dma.vmem_to_hbm [thread:$0]  (%p21008_p5), %s25595_s13, 256, %s25593_s16, %s16452_s1, %s20888_s7, %s20888_s7, %s25798_s18  }
0x3c6d PF: > { %s25832_s4 = sld [smem:[#allocation11_spill]] }
0x3c6e   : > { %s25833_s28 = sld [smem:[#allocation8_spill]] }
0x3c73   : > { %p19873_p1 = scmp.ge.s32.totalorder %s25832_s4, 2 }
0x3c74   : > { %s16496_s14 = sand.u32 1, %s25833_s28  }
0x3c75   : > { %p19867_p2 = pnand %p19873_p1, %p21012_p6  ;;  %s16497_s5 = scalar_lea.sflag [#allocation3], %s16496_s14 }
0x3c77   : > { %p19868_p3 = pneg %p19867_p2 }
0x3c79   : > { %20843 = dma.done.wait (%p19868_p3), %s16497_s5, 256  }
0x3c7a   : > { %20845 = vsyncadd (%p19868_p3), %s16497_s5, 4294967040  ;;  %s16506_s26 = scalar_lea.sflag [#allocation5], %s16496_s14 }
0x3c7b   : > { %20847 = dma.done.wait (%p19868_p3), %s16506_s26, 256  }
0x3c7c   : > { %20849 = vsyncadd (%p19868_p3), %s16506_s26, 4294967040  ;;  %s25835_s21 = sld [smem:[#allocation13_spill]] }
0x3c7d   : > { %s25836_s18 = sld [smem:[#allocation9_spill]] }
0x3c7e   : > { %s25837_s19 = sld [smem:[#allocation10_spill]] }
0x3c7f   : > { %s25838_s20 = sld [smem:[#allocation14_spill]] }
0x3c82   : > { %p29_p5 = scmp.ge.s32.totalorder %s25835_s21, 4  }
0x3c84   :  { %31 = sbr.rel (!%p29_p5) target bundleno = 16 (0x10), region = 167 }
0x3c89   :  { %16511 = vsyncpa [#allocation3], 1 }
0x3c8a   :  { %16513 = vsyncpa [#allocation3 + $0x1], 1 }
0x3c8b   :  { %16514 = vsyncpa [#allocation5], 1 }
0x3c8c   :  { %16516 = vsyncpa [#allocation5 + $0x1], 1 }

</bundles_post_ra>
